<compile_context>
chip_gen: v5e
topology: v5e:2x2
jax: 0.10.0
libtpu: 0.0.40
codegen_flags: <defaults>
</compile_context>

<pallas_src>
import jax
import jax.numpy as jnp
from jax.experimental import pallas as pl
from jax.experimental.pallas import tpu as pltpu

TB = 1024      # batch tile (rows per grid step); multiple of _CHUNK
_CHUNK = 256   # inner row chunk (>= 256 rows per MXU call, bounded vreg pressure)


def _mlp_kernel(x_ref, w1_ref, b1_ref, w2_ref, b2_ref, w3_ref, b3_ref, o_ref):
    tb = x_ref.shape[0]
    chunk = min(_CHUNK, tb)
    n_chunks = tb // chunk

    # Loop-invariant reads hoisted out of the chunk loop.
    w1 = w1_ref[...].astype(jnp.bfloat16)   # (D, 128)  bf16 MXU operand
    w2 = w2_ref[...].astype(jnp.bfloat16)   # (128, 64) bf16 MXU operand
    b1 = b1_ref[...]                         # (1, 128) f32
    b2 = b2_ref[...]                         # (1, 64)  f32
    w3 = w3_ref[...]                         # (1, 64)  f32 (last-layer weights, row)
    b3 = b3_ref[...]                         # (1, 1)   f32

    # Static (fully unrolled) chunk loop: keeps h1/h2 live ranges to one chunk.
    for c in range(n_chunks):
        lo = c * chunk
        xb = x_ref[lo:lo + chunk, :].astype(jnp.bfloat16)

        h1 = jnp.dot(xb, w1, preferred_element_type=jnp.float32) + b1
        h1 = jnp.maximum(h1, 0.0)

        h2 = jnp.dot(h1.astype(jnp.bfloat16), w2,
                     preferred_element_type=jnp.float32) + b2
        h2 = jnp.maximum(h2, 0.0)

        # Final (64 -> 1) layer on VPU/XLU: elementwise mul + lane reduction.
        # Result is a lane-dense (1, chunk) row -> unmasked vector stores.
        y = jnp.sum(h2 * w3, axis=-1)[None, :] + b3      # (1, chunk)
        o_ref[:, lo:lo + chunk] = y


def variational_function(x, params, *, tb=TB):
    """x: (B, input_dim) float32. Returns (B, 1) float32."""
    w1, b1, w2, b2, w3, b3 = params
    B, D = x.shape

    grid_b = pl.cdiv(B, tb)
    Bp = grid_b * tb
    if Bp != B:
        x = jnp.pad(x, ((0, Bp - B), (0, 0)))

    const_spec = lambda a: pl.BlockSpec(a.shape, lambda i: (0,) * a.ndim)

    flops = 2 * Bp * (D * 128 + 128 * 64 + 64)
    bytes_accessed = Bp * D * 4 + Bp * 4 + sum(int(p.size) * 4 for p in params)

    out = pl.pallas_call(
        _mlp_kernel,
        out_shape=jax.ShapeDtypeStruct((grid_b, tb), jnp.float32),
        grid=(grid_b,),
        in_specs=[
            pl.BlockSpec((tb, D), lambda i: (i, 0)),   # streamed x tiles
            const_spec(w1), const_spec(b1),            # weights stay VMEM-resident
            const_spec(w2), const_spec(b2),
            const_spec(w3), const_spec(b3),
        ],
        out_specs=pl.BlockSpec((1, tb), lambda i: (i, 0)),  # lane-dense output row
        compiler_params=pltpu.CompilerParams(
            dimension_semantics=("parallel",)),
        cost_estimate=pl.CostEstimate(
            flops=flops, transcendentals=0, bytes_accessed=bytes_accessed),
    )(x, w1, b1, w2, b2, w3, b3)

    # (grid_b, tb) rows are written in batch order; flatten and trim the padding.
    return out.reshape(Bp, 1)[:B]


def init_params(key, input_dim):
    """Mimics torch.nn.Linear init: uniform(-1/sqrt(fan_in), +1/sqrt(fan_in)).
    Weights are stored as (in, out); the last-layer weight is stored as a
    lane-dense (1, 64) row for the VPU reduction."""
    dims = [(input_dim, 128), (128, 64), (64, 1)]
    params = []
    for fan_in, fan_out in dims:
        key, kw, kb = jax.random.split(key, 3)
        bound = 1.0 / (fan_in ** 0.5)
        w = jax.random.uniform(kw, (fan_in, fan_out), jnp.float32, -bound, bound)
        b = jax.random.uniform(kb, (1, fan_out), jnp.float32, -bound, bound)
        params += [w, b]
    w1, b1, w2, b2, w3, b3 = params
    w3 = w3.reshape(1, 64)   # (64, 1) column -> (1, 64) row (same element order)
    return (w1, b1, w2, b2, w3, b3)


if __name__ == "__main__":
    key = jax.random.PRNGKey(0)
    input_dim = 32
    batch = 8

    k_x, k_p = jax.random.split(key)
    x = jax.random.normal(k_x, (batch, input_dim), dtype=jnp.float32)
    params = init_params(k_p, input_dim)

    out = variational_function(x, params)
    out = jax.block_until_ready(out)
    assert out.shape == (batch, 1)

    w1, b1, w2, b2, w3, b3 = params

    # Reference matching the kernel's bf16-operand / f32-accumulation arithmetic.
    h = jnp.maximum(
        jnp.dot(x.astype(jnp.bfloat16), w1.astype(jnp.bfloat16),
                preferred_element_type=jnp.float32) + b1, 0.0)
    h = jnp.maximum(
        jnp.dot(h.astype(jnp.bfloat16), w2.astype(jnp.bfloat16),
                preferred_element_type=jnp.float32) + b2, 0.0)
    ref_bf16 = jnp.sum(h * w3, axis=-1, keepdims=True) + b3
    assert jnp.allclose(out, ref_bf16, atol=1e-4, rtol=1e-4), "mismatch vs bf16 reference"

    # Full-f32 reference (original module semantics) within bf16 tolerance.
    h32 = jnp.maximum(x @ w1 + b1, 0.0)
    h32 = jnp.maximum(h32 @ w2 + b2, 0.0)
    ref_f32 = jnp.sum(h32 * w3, axis=-1, keepdims=True) + b3
    assert jnp.allclose(out, ref_f32, atol=2e-2, rtol=2e-2), "mismatch vs f32 reference"

    print("KERNEL_OK")
</pallas_src>

<mosaic_0001>
module attributes {stable_mosaic.version = 11 : i64} {
  func.func @_mlp_kernel(%arg0: i32, %arg1: memref<1024x32xf32, #tpu.memory_space<vmem>>, %arg2: memref<32x128xf32, #tpu.memory_space<vmem>>, %arg3: memref<1x128xf32, #tpu.memory_space<vmem>>, %arg4: memref<128x64xf32, #tpu.memory_space<vmem>>, %arg5: memref<1x64xf32, #tpu.memory_space<vmem>>, %arg6: memref<1x64xf32, #tpu.memory_space<vmem>>, %arg7: memref<1x1xf32, #tpu.memory_space<vmem>>, %arg8: memref<1x1024xf32, #tpu.memory_space<vmem>>) attributes {dimension_semantics = [#tpu.dimension_semantics<parallel>], iteration_bounds = array<i64: 1>, scalar_prefetch = 0 : i64, scratch_operands = 0 : i64, tpu.core_type = #tpu.core_type<tc>, window_params = [{transform_indices = @transform_0, window_bounds = array<i64: 1024, 32>}, {pipeline_mode = #tpu.pipeline_mode<synchronous>, transform_indices = @transform_1, window_bounds = array<i64: 32, 128>}, {pipeline_mode = #tpu.pipeline_mode<synchronous>, transform_indices = @transform_2, window_bounds = array<i64: 1, 128>}, {pipeline_mode = #tpu.pipeline_mode<synchronous>, transform_indices = @transform_3, window_bounds = array<i64: 128, 64>}, {pipeline_mode = #tpu.pipeline_mode<synchronous>, transform_indices = @transform_4, window_bounds = array<i64: 1, 64>}, {pipeline_mode = #tpu.pipeline_mode<synchronous>, transform_indices = @transform_5, window_bounds = array<i64: 1, 64>}, {pipeline_mode = #tpu.pipeline_mode<synchronous>, transform_indices = @transform_6, window_bounds = array<i64: 1, 1>}, {transform_indices = @transform_7, window_bounds = array<i64: 1, 1024>}]} {
    %c0 = arith.constant 0 : index
    %c0_0 = arith.constant 0 : index
    %0 = vector.load %arg2[%c0, %c0_0] : memref<32x128xf32, #tpu.memory_space<vmem>>, vector<32x128xf32>
    %1 = arith.truncf %0 : vector<32x128xf32> to vector<32x128xbf16>
    %c0_1 = arith.constant 0 : index
    %c0_2 = arith.constant 0 : index
    %2 = vector.load %arg4[%c0_1, %c0_2] : memref<128x64xf32, #tpu.memory_space<vmem>>, vector<128x64xf32>
    %3 = arith.truncf %2 : vector<128x64xf32> to vector<128x64xbf16>
    %c0_3 = arith.constant 0 : index
    %c0_4 = arith.constant 0 : index
    %4 = vector.load %arg3[%c0_3, %c0_4] : memref<1x128xf32, #tpu.memory_space<vmem>>, vector<1x128xf32>
    %c0_5 = arith.constant 0 : index
    %c0_6 = arith.constant 0 : index
    %5 = vector.load %arg5[%c0_5, %c0_6] : memref<1x64xf32, #tpu.memory_space<vmem>>, vector<1x64xf32>
    %c0_7 = arith.constant 0 : index
    %c0_8 = arith.constant 0 : index
    %6 = vector.load %arg6[%c0_7, %c0_8] : memref<1x64xf32, #tpu.memory_space<vmem>>, vector<1x64xf32>
    %c0_9 = arith.constant 0 : index
    %c0_10 = arith.constant 0 : index
    %7 = vector.load %arg7[%c0_9, %c0_10] : memref<1x1xf32, #tpu.memory_space<vmem>>, vector<1x1xf32>
    %c0_11 = arith.constant 0 : index
    %c0_12 = arith.constant 0 : index
    %8 = vector.load %arg1[%c0_11, %c0_12] : memref<1024x32xf32, #tpu.memory_space<vmem>>, vector<256x32xf32>
    %9 = arith.truncf %8 : vector<256x32xf32> to vector<256x32xbf16>
    %cst = arith.constant dense<0.000000e+00> : vector<256x128xf32>
    %10 = tpu.matmul %9, %1, %cst {dimension_numbers = #tpu.dot_dimension_numbers<[1], [0], [0], [1], [0, 0, 1, 1], [], []>} : vector<256x32xbf16>, vector<32x128xbf16>, vector<256x128xf32> -> vector<256x128xf32>
    %11 = vector.broadcast %4 : vector<1x128xf32> to vector<256x128xf32>
    %12 = arith.addf %10, %11 : vector<256x128xf32>
    %cst_13 = arith.constant 0.000000e+00 : f32
    %13 = vector.broadcast %cst_13 : f32 to vector<256x128xf32>
    %14 = arith.maximumf %12, %13 : vector<256x128xf32>
    %15 = arith.truncf %14 : vector<256x128xf32> to vector<256x128xbf16>
    %cst_14 = arith.constant dense<0.000000e+00> : vector<256x64xf32>
    %16 = tpu.matmul %15, %3, %cst_14 {dimension_numbers = #tpu.dot_dimension_numbers<[1], [0], [0], [1], [0, 0, 1, 1], [], []>} : vector<256x128xbf16>, vector<128x64xbf16>, vector<256x64xf32> -> vector<256x64xf32>
    %17 = vector.broadcast %5 : vector<1x64xf32> to vector<256x64xf32>
    %18 = arith.addf %16, %17 : vector<256x64xf32>
    %cst_15 = arith.constant 0.000000e+00 : f32
    %19 = vector.broadcast %cst_15 : f32 to vector<256x64xf32>
    %20 = arith.maximumf %18, %19 : vector<256x64xf32>
    %21 = vector.broadcast %6 : vector<1x64xf32> to vector<256x64xf32>
    %22 = arith.mulf %20, %21 : vector<256x64xf32>
    %cst_16 = arith.constant dense<0.000000e+00> : vector<256xf32>
    %23 = vector.multi_reduction <add>, %22, %cst_16 [1] : vector<256x64xf32> to vector<256xf32>
    %24 = vector.shape_cast %23 : vector<256xf32> to vector<1x256xf32>
    %25 = vector.broadcast %7 : vector<1x1xf32> to vector<1x256xf32>
    %26 = arith.addf %24, %25 : vector<1x256xf32>
    %c0_17 = arith.constant 0 : index
    %c0_18 = arith.constant 0 : index
    %27 = vector.load %arg8[%c0_17, %c0_18] : memref<1x1024xf32, #tpu.memory_space<vmem>>, vector<1x256xf32>
    tpu.vector_store %arg8[%c0_17, %c0_18], %26 {strides = array<i32>} : memref<1x1024xf32, #tpu.memory_space<vmem>>, vector<1x256xf32>,
    %c256 = arith.constant 256 : index
    %c0_19 = arith.constant 0 : index
    %28 = vector.load %arg1[%c256, %c0_19] : memref<1024x32xf32, #tpu.memory_space<vmem>>, vector<256x32xf32>
    %29 = arith.truncf %28 : vector<256x32xf32> to vector<256x32xbf16>
    %cst_20 = arith.constant dense<0.000000e+00> : vector<256x128xf32>
    %30 = tpu.matmul %29, %1, %cst_20 {dimension_numbers = #tpu.dot_dimension_numbers<[1], [0], [0], [1], [0, 0, 1, 1], [], []>} : vector<256x32xbf16>, vector<32x128xbf16>, vector<256x128xf32> -> vector<256x128xf32>
    %31 = vector.broadcast %4 : vector<1x128xf32> to vector<256x128xf32>
    %32 = arith.addf %30, %31 : vector<256x128xf32>
    %cst_21 = arith.constant 0.000000e+00 : f32
    %33 = vector.broadcast %cst_21 : f32 to vector<256x128xf32>
    %34 = arith.maximumf %32, %33 : vector<256x128xf32>
    %35 = arith.truncf %34 : vector<256x128xf32> to vector<256x128xbf16>
    %cst_22 = arith.constant dense<0.000000e+00> : vector<256x64xf32>
    %36 = tpu.matmul %35, %3, %cst_22 {dimension_numbers = #tpu.dot_dimension_numbers<[1], [0], [0], [1], [0, 0, 1, 1], [], []>} : vector<256x128xbf16>, vector<128x64xbf16>, vector<256x64xf32> -> vector<256x64xf32>
    %37 = vector.broadcast %5 : vector<1x64xf32> to vector<256x64xf32>
    %38 = arith.addf %36, %37 : vector<256x64xf32>
    %cst_23 = arith.constant 0.000000e+00 : f32
    %39 = vector.broadcast %cst_23 : f32 to vector<256x64xf32>
    %40 = arith.maximumf %38, %39 : vector<256x64xf32>
    %41 = vector.broadcast %6 : vector<1x64xf32> to vector<256x64xf32>
    %42 = arith.mulf %40, %41 : vector<256x64xf32>
    %cst_24 = arith.constant dense<0.000000e+00> : vector<256xf32>
    %43 = vector.multi_reduction <add>, %42, %cst_24 [1] : vector<256x64xf32> to vector<256xf32>
    %44 = vector.shape_cast %43 : vector<256xf32> to vector<1x256xf32>
    %45 = vector.broadcast %7 : vector<1x1xf32> to vector<1x256xf32>
    %46 = arith.addf %44, %45 : vector<1x256xf32>
    %c0_25 = arith.constant 0 : index
    %c256_26 = arith.constant 256 : index
    %47 = vector.load %arg8[%c0_25, %c256_26] : memref<1x1024xf32, #tpu.memory_space<vmem>>, vector<1x256xf32>
    tpu.vector_store %arg8[%c0_25, %c256_26], %46 {strides = array<i32>} : memref<1x1024xf32, #tpu.memory_space<vmem>>, vector<1x256xf32>,
    %c512 = arith.constant 512 : index
    %c0_27 = arith.constant 0 : index
    %48 = vector.load %arg1[%c512, %c0_27] : memref<1024x32xf32, #tpu.memory_space<vmem>>, vector<256x32xf32>
    %49 = arith.truncf %48 : vector<256x32xf32> to vector<256x32xbf16>
    %cst_28 = arith.constant dense<0.000000e+00> : vector<256x128xf32>
    %50 = tpu.matmul %49, %1, %cst_28 {dimension_numbers = #tpu.dot_dimension_numbers<[1], [0], [0], [1], [0, 0, 1, 1], [], []>} : vector<256x32xbf16>, vector<32x128xbf16>, vector<256x128xf32> -> vector<256x128xf32>
    %51 = vector.broadcast %4 : vector<1x128xf32> to vector<256x128xf32>
    %52 = arith.addf %50, %51 : vector<256x128xf32>
    %cst_29 = arith.constant 0.000000e+00 : f32
    %53 = vector.broadcast %cst_29 : f32 to vector<256x128xf32>
    %54 = arith.maximumf %52, %53 : vector<256x128xf32>
    %55 = arith.truncf %54 : vector<256x128xf32> to vector<256x128xbf16>
    %cst_30 = arith.constant dense<0.000000e+00> : vector<256x64xf32>
    %56 = tpu.matmul %55, %3, %cst_30 {dimension_numbers = #tpu.dot_dimension_numbers<[1], [0], [0], [1], [0, 0, 1, 1], [], []>} : vector<256x128xbf16>, vector<128x64xbf16>, vector<256x64xf32> -> vector<256x64xf32>
    %57 = vector.broadcast %5 : vector<1x64xf32> to vector<256x64xf32>
    %58 = arith.addf %56, %57 : vector<256x64xf32>
    %cst_31 = arith.constant 0.000000e+00 : f32
    %59 = vector.broadcast %cst_31 : f32 to vector<256x64xf32>
    %60 = arith.maximumf %58, %59 : vector<256x64xf32>
    %61 = vector.broadcast %6 : vector<1x64xf32> to vector<256x64xf32>
    %62 = arith.mulf %60, %61 : vector<256x64xf32>
    %cst_32 = arith.constant dense<0.000000e+00> : vector<256xf32>
    %63 = vector.multi_reduction <add>, %62, %cst_32 [1] : vector<256x64xf32> to vector<256xf32>
    %64 = vector.shape_cast %63 : vector<256xf32> to vector<1x256xf32>
    %65 = vector.broadcast %7 : vector<1x1xf32> to vector<1x256xf32>
    %66 = arith.addf %64, %65 : vector<1x256xf32>
    %c0_33 = arith.constant 0 : index
    %c512_34 = arith.constant 512 : index
    %67 = vector.load %arg8[%c0_33, %c512_34] : memref<1x1024xf32, #tpu.memory_space<vmem>>, vector<1x256xf32>
    tpu.vector_store %arg8[%c0_33, %c512_34], %66 {strides = array<i32>} : memref<1x1024xf32, #tpu.memory_space<vmem>>, vector<1x256xf32>,
    %c768 = arith.constant 768 : index
    %c0_35 = arith.constant 0 : index
    %68 = vector.load %arg1[%c768, %c0_35] : memref<1024x32xf32, #tpu.memory_space<vmem>>, vector<256x32xf32>
    %69 = arith.truncf %68 : vector<256x32xf32> to vector<256x32xbf16>
    %cst_36 = arith.constant dense<0.000000e+00> : vector<256x128xf32>
    %70 = tpu.matmul %69, %1, %cst_36 {dimension_numbers = #tpu.dot_dimension_numbers<[1], [0], [0], [1], [0, 0, 1, 1], [], []>} : vector<256x32xbf16>, vector<32x128xbf16>, vector<256x128xf32> -> vector<256x128xf32>
    %71 = vector.broadcast %4 : vector<1x128xf32> to vector<256x128xf32>
    %72 = arith.addf %70, %71 : vector<256x128xf32>
    %cst_37 = arith.constant 0.000000e+00 : f32
    %73 = vector.broadcast %cst_37 : f32 to vector<256x128xf32>
    %74 = arith.maximumf %72, %73 : vector<256x128xf32>
    %75 = arith.truncf %74 : vector<256x128xf32> to vector<256x128xbf16>
    %cst_38 = arith.constant dense<0.000000e+00> : vector<256x64xf32>
    %76 = tpu.matmul %75, %3, %cst_38 {dimension_numbers = #tpu.dot_dimension_numbers<[1], [0], [0], [1], [0, 0, 1, 1], [], []>} : vector<256x128xbf16>, vector<128x64xbf16>, vector<256x64xf32> -> vector<256x64xf32>
    %77 = vector.broadcast %5 : vector<1x64xf32> to vector<256x64xf32>
    %78 = arith.addf %76, %77 : vector<256x64xf32>
    %cst_39 = arith.constant 0.000000e+00 : f32
    %79 = vector.broadcast %cst_39 : f32 to vector<256x64xf32>
    %80 = arith.maximumf %78, %79 : vector<256x64xf32>
    %81 = vector.broadcast %6 : vector<1x64xf32> to vector<256x64xf32>
    %82 = arith.mulf %80, %81 : vector<256x64xf32>
    %cst_40 = arith.constant dense<0.000000e+00> : vector<256xf32>
    %83 = vector.multi_reduction <add>, %82, %cst_40 [1] : vector<256x64xf32> to vector<256xf32>
    %84 = vector.shape_cast %83 : vector<256xf32> to vector<1x256xf32>
    %85 = vector.broadcast %7 : vector<1x1xf32> to vector<1x256xf32>
    %86 = arith.addf %84, %85 : vector<1x256xf32>
    %c0_41 = arith.constant 0 : index
    %c768_42 = arith.constant 768 : index
    %87 = vector.load %arg8[%c0_41, %c768_42] : memref<1x1024xf32, #tpu.memory_space<vmem>>, vector<1x256xf32>
    tpu.vector_store %arg8[%c0_41, %c768_42], %86 {strides = array<i32>} : memref<1x1024xf32, #tpu.memory_space<vmem>>, vector<1x256xf32>,
    return
  }
  func.func @transform_0(%arg0: i32) -> (i32, i32) {
    %c0_i32 = arith.constant 0 : i32
    %c0_i32_0 = arith.constant 0 : i32
    return %arg0, %c0_i32 : i32, i32
  }
  func.func @transform_1(%arg0: i32) -> (i32, i32) {
    %c0_i32 = arith.constant 0 : i32
    %c0_i32_0 = arith.constant 0 : i32
    %c0_i32_1 = arith.constant 0 : i32
    return %c0_i32, %c0_i32_0 : i32, i32
  }
  func.func @transform_2(%arg0: i32) -> (i32, i32) {
    %c0_i32 = arith.constant 0 : i32
    %c0_i32_0 = arith.constant 0 : i32
    %c0_i32_1 = arith.constant 0 : i32
    return %c0_i32, %c0_i32_0 : i32, i32
  }
  func.func @transform_3(%arg0: i32) -> (i32, i32) {
    %c0_i32 = arith.constant 0 : i32
    %c0_i32_0 = arith.constant 0 : i32
    %c0_i32_1 = arith.constant 0 : i32
    return %c0_i32, %c0_i32_0 : i32, i32
  }
  func.func @transform_4(%arg0: i32) -> (i32, i32) {
    %c0_i32 = arith.constant 0 : i32
    %c0_i32_0 = arith.constant 0 : i32
    %c0_i32_1 = arith.constant 0 : i32
    return %c0_i32, %c0_i32_0 : i32, i32
  }
  func.func @transform_5(%arg0: i32) -> (i32, i32) {
    %c0_i32 = arith.constant 0 : i32
    %c0_i32_0 = arith.constant 0 : i32
    %c0_i32_1 = arith.constant 0 : i32
    return %c0_i32, %c0_i32_0 : i32, i32
  }
  func.func @transform_6(%arg0: i32) -> (i32, i32) {
    %c0_i32 = arith.constant 0 : i32
    %c0_i32_0 = arith.constant 0 : i32
    %c0_i32_1 = arith.constant 0 : i32
    return %c0_i32, %c0_i32_0 : i32, i32
  }
  func.func @transform_7(%arg0: i32) -> (i32, i32) {
    %c0_i32 = arith.constant 0 : i32
    %c0_i32_0 = arith.constant 0 : i32
    return %arg0, %c0_i32 : i32, i32
  }
}

</mosaic_0001>

<bundles_post_ra>
// kernel: tpu_custom_call.1
= control target key start
LH: loop header
LB: loop body
LE: loop exit
PB: predicated region body
PF: predicated region fallthrough
CT: control target
= control target key end

     0   :  { %s7752_s0 = inlined_call_operand.vmem [shape: f32[1024,32], index: 0, kind: input, shape index: {}]   ;;  %s7753_s1 = inlined_call_operand.vmem [shape: f32[32,128], index: 1, kind: input, shape index: {}]   ;;  %s7754_s2 = inlined_call_operand.vmem [shape: f32[1,128], index: 2, kind: input, shape index: {}]   ;;  %s7755_s3 = inlined_call_operand.vmem [shape: f32[128,64], index: 3, kind: input, shape index: {}]   ;;  %s7756_s4 = inlined_call_operand.vmem [shape: f32[1,64], index: 4, kind: input, shape index: {}]   ;;  %s7757_s5 = inlined_call_operand.vmem [shape: f32[1,64], index: 5, kind: input, shape index: {}]   ;;  %s7758_s6 = inlined_call_operand.<no memory space> [shape: f32[1,1], index: 6, kind: input, shape index: {}]   ;;  %s7759_s7 = inlined_call_operand.hbm [shape: f32[1,1024], index: 7, kind: output, shape index: {}]  }
   0x1   :  { %v12_v0 = vstv %s7758_s6 }
   0x2   :  { %13 = vst [vmem:[#allocation2] sm:$0x1] %v12_v0 }
   0x3   :  { %v32_v1 = vld [vmem:[%s7753_s1 + $0x10] sm:$0xff]  ;;  %v33_v2 = vld [vmem:[%s7753_s1 + $0x18] sm:$0xff]  ;;  %v30_v3 = vld [vmem:[%s7753_s1] sm:$0xff] }
   0x4   :  { %v5341_v4 = vpack.c.bf16 %v33_v2, %v32_v1  ;;  %v31_v5 = vld [vmem:[%s7753_s1 + $0x8] sm:$0xff]  ;;  %v64_v6 = vld [vmem:[%s7752_s0] sm:$0xff] }
   0x5   :  { %v5351_v7 = vpack.c.bf16 %v31_v5, %v30_v3  ;;  %v65_v8 = vld [vmem:[%s7752_s0 + $0x8] sm:$0xff]  ;;  %v1377_v9 = vld [vmem:[%s7752_s0 + $0x100] sm:$0xff] }
   0x6   :  { %170 = vmatpush.bf16.msra.mxu0 %v5341_v4  ;;  %1479 = vmatpush.bf16.msra.mxu2 %v5341_v4  ;;  %v1378_v10 = vld [vmem:[%s7752_s0 + $0x108] sm:$0xff] }
   0x7   :  { %14 = vsyncpa [#allocation4], 0  ;;  %v96_v11 = vpack.c.bf16 %v65_v8, %v64_v6  ;;  %v1409_v12 = vpack.c.bf16 %v1378_v10, %v1377_v9  ;;  %vm115_vm0 = vcmask 261120   ;;  %v66_v13 = vld [vmem:[%s7752_s0 + $0x10] sm:$0xff]  ;;  %v67_v14 = vld [vmem:[%s7752_s0 + $0x18] sm:$0xff]  ;;  %vm460_vm1 = vcmask 523264  }
   0x8   :  { %v1379_v15 = vld [vmem:[%s7752_s0 + $0x110] sm:$0xff]  ;;  %v1380_v16 = vld [vmem:[%s7752_s0 + $0x118] sm:$0xff]  ;;  %v97_v17 = vpack.c.bf16 %v67_v14, %v66_v13  ;;  %v68_v19 = vld [vmem:[%s7752_s0 + $0x20] sm:$0xff]  ;;  %vm1279_vm2 = vcmask 130112   ;;  %vm1283_vm3 = vcmask 195712   ;;  %vm1287_vm4 = vcmask 261312  }
   0x9   :  { %v1410_v18 = vpack.c.bf16 %v1380_v16, %v1379_v15  ;;  %v69_v20 = vld [vmem:[%s7752_s0 + $0x28] sm:$0xff]  ;;  %v1381_v21 = vld [vmem:[%s7752_s0 + $0x120] sm:$0xff]  ;;  %v70_v25 = vld [vmem:[%s7752_s0 + $0x30] sm:$0xff]  ;;  %vm1291_vm5 = vcmask 326912   ;;  %vm1295_vm6 = vcmask 392512   ;;  %vm7764_vm7 = vcmask 458112  }
   0xa   :  { %171 = vmatpush.bf16.msra.mxu0 %v5351_v7  ;;  %1480 = vmatpush.bf16.msra.mxu2 %v5351_v7  ;;  %v1382_v22 = vld [vmem:[%s7752_s0 + $0x128] sm:$0xff]  ;;  %v98_v23 = vpack.c.bf16 %v69_v20, %v68_v19  ;;  %v71_v26 = vld [vmem:[%s7752_s0 + $0x38] sm:$0xff]  ;;  %v1383_v27 = vld [vmem:[%s7752_s0 + $0x130] sm:$0xff]  ;;  %vm1303_vm8 = vcmask 523712   ;;  %vm1307_vm9 = vcmask 589312   ;;  %vm1311_vm10 = vcmask 654912  }
   0xb   :  { %v1411_v24 = vpack.c.bf16 %v1382_v22, %v1381_v21  ;;  %v1384_v28 = vld [vmem:[%s7752_s0 + $0x138] sm:$0xff]  ;;  %v99_v29 = vpack.c.bf16 %v71_v26, %v70_v25  ;;  %v72_v31 = vld [vmem:[%s7752_s0 + $0x40] sm:$0xff]  ;;  %v73_v32 = vld [vmem:[%s7752_s0 + $0x48] sm:$0xff]  ;;  %vm1315_vm11 = vcmask 720512   ;;  %vm1319_vm12 = vcmask 786112   ;;  %s5161_s8 = sshll.u32 %s7759_s7, 4  ;;  %s5162_s8 = int_to_ptr.hbm [resolvable:$true] %s5161_s8 }
   0xc   :  { %v1412_v30 = vpack.c.bf16 %v1384_v28, %v1383_v27  ;;  %v1385_v33 = vld [vmem:[%s7752_s0 + $0x140] sm:$0xff]  ;;  %v1386_v34 = vld [vmem:[%s7752_s0 + $0x148] sm:$0xff]  ;;  %v100_v35 = vpack.c.bf16 %v73_v32, %v72_v31  ;;  %v50_v37 = vld [vmem:[%s7755_s3 + $0x70] sm:$0xff]  ;;  %vm7761_vm13 = vcmask 851712   ;;  %vm1327_vm14 = vcmask 917312  }
   0xd   :  { %5170 = vmatmul.msk.bf16.vlgmr.msra.gmra.mxu0 %vm115_vm0, %v96_v11  ;;  %5186 = vmatmul.msk.bf16.vlgmr.msra.gmra.mxu2 %vm115_vm0, %v1409_v12  ;;  %v1413_v36 = vpack.c.bf16 %v1386_v34, %v1385_v33  ;;  %v51_v38 = vld [vmem:[%s7755_s3 + $0x78] sm:$0xff]  ;;  %v74_v40 = vld [vmem:[%s7752_s0 + $0x50] sm:$0xff]  ;;  %v48_v46 = vld [vmem:[%s7755_s3 + $0x60] sm:$0xff]  ;;  %vm1331_vm15 = vcmask 982912  }
   0xe   :  { %2738 = vmatpush.bf16.msrb.mxu0 %v5341_v4  ;;  %v5430_v39 = vpack.c.bf16 %v51_v38, %v50_v37  ;;  %v75_v41 = vld [vmem:[%s7752_s0 + $0x58] sm:$0xff]  ;;  %v1387_v42 = vld [vmem:[%s7752_s0 + $0x150] sm:$0xff]  ;;  %v49_v47 = vld [vmem:[%s7755_s3 + $0x68] sm:$0xff] }
   0xf   :  { %v1388_v43 = vld [vmem:[%s7752_s0 + $0x158] sm:$0xff]  ;;  %v101_v44 = vpack.c.bf16 %v75_v41, %v74_v40  ;;  %v58_v48 = vpack.c.bf16 %v49_v47, %v48_v46  ;;  %v46_v49 = vld [vmem:[%s7755_s3 + $0x50] sm:$0xff]  ;;  %v44_v52 = vld [vmem:[%s7755_s3 + $0x40] sm:$0xff] }
  0x10   :  { %304 = vmatpush.bf16.msra.mxu1 %v5430_v39  ;;  %1610 = vmatpush.bf16.msra.mxu3 %v5430_v39  ;;  %v1414_v45 = vpack.c.bf16 %v1388_v43, %v1387_v42  ;;  %v47_v50 = vld [vmem:[%s7755_s3 + $0x58] sm:$0xff]  ;;  %v45_v53 = vld [vmem:[%s7755_s3 + $0x48] sm:$0xff]  ;;  %v76_v55 = vld [vmem:[%s7752_s0 + $0x60] sm:$0xff] }
  0x11   :  { %2869 = vmatpush.bf16.msrb.mxu2 %v5430_v39  ;;  %v57_v51 = vpack.c.bf16 %v47_v50, %v46_v49  ;;  %v56_v54 = vpack.c.bf16 %v45_v53, %v44_v52  ;;  %v77_v56 = vld [vmem:[%s7752_s0 + $0x68] sm:$0xff]  ;;  %v1389_v57 = vld [vmem:[%s7752_s0 + $0x160] sm:$0xff]  ;;  %v42_v59 = vld [vmem:[%s7755_s3 + $0x30] sm:$0xff] }
  0x12   :  { %2739 = vmatpush.bf16.msrb.mxu0 %v5351_v7  ;;  %v1390_v58 = vld [vmem:[%s7752_s0 + $0x168] sm:$0xff]  ;;  %v43_v60 = vld [vmem:[%s7755_s3 + $0x38] sm:$0xff]  ;;  %v102_v62 = vpack.c.bf16 %v77_v56, %v76_v55  ;;  %v40_v0 = vld [vmem:[%s7755_s3 + $0x20] sm:$0xff] }
  0x13   :  { %v55_v61 = vpack.c.bf16 %v43_v60, %v42_v59  ;;  %v1415_v63 = vpack.c.bf16 %v1390_v58, %v1389_v57  ;;  %v41_v1 = vld [vmem:[%s7755_s3 + $0x28] sm:$0xff]  ;;  %v38_v3 = vld [vmem:[%s7755_s3 + $0x10] sm:$0xff]  ;;  %v39_v5 = vld [vmem:[%s7755_s3 + $0x18] sm:$0xff] }
  0x14   :  { %305 = vmatpush.bf16.msra.mxu1 %v58_v48  ;;  %1611 = vmatpush.bf16.msra.mxu3 %v58_v48  ;;  %v54_v2 = vpack.c.bf16 %v41_v1, %v40_v0  ;;  %v53_v6 = vpack.c.bf16 %v39_v5, %v38_v3  ;;  %v36_v8 = vld [vmem:[%s7755_s3] sm:$0xff]  ;;  %v37_v9 = vld [vmem:[%s7755_s3 + $0x8] sm:$0xff]  ;;  %v78_v11 = vld [vmem:[%s7752_s0 + $0x70] sm:$0xff] }
  0x15   :  { %2870 = vmatpush.bf16.msrb.mxu2 %v58_v48  ;;  %v52_v10 = vpack.c.bf16 %v37_v9, %v36_v8  ;;  %v79_v12 = vld [vmem:[%s7752_s0 + $0x78] sm:$0xff]  ;;  %v1391_v13 = vld [vmem:[%s7752_s0 + $0x170] sm:$0xff]  ;;  %v1394_v20 = vld [vmem:[%s7752_s0 + $0x188] sm:$0xff] }
  0x16   :  { %v1392_v14 = vld [vmem:[%s7752_s0 + $0x178] sm:$0xff]  ;;  %v103_v15 = vpack.c.bf16 %v79_v12, %v78_v11  ;;  %v5537_v21 = vld [vmem:[%s7754_s2] ss:$0 sm:$0xff]  ;;  %v82_v40 = vld [vmem:[%s7752_s0 + $0x90] sm:$0xff] }
  0x17   :  { %v1416_v16 = vpack.c.bf16 %v1392_v14, %v1391_v13  ;;  %v1396_v37 = vld [vmem:[%s7752_s0 + $0x198] sm:$0xff]  ;;  %v1397_v56 = vld [vmem:[%s7752_s0 + $0x1a0] sm:$0xff]  ;;  %v1398_v57 = vld [vmem:[%s7752_s0 + $0x1a8] sm:$0xff] }
  0x18   :  { %306 = vmatpush.bf16.msra.mxu1 %v57_v51  ;;  %1612 = vmatpush.bf16.msra.mxu3 %v57_v51  ;;  %v83_v41 = vld [vmem:[%s7752_s0 + $0x98] sm:$0xff]  ;;  %v1419_v59 = vpack.c.bf16 %v1398_v57, %v1397_v56 }
  0x19   :  { %2871 = vmatpush.bf16.msrb.mxu2 %v57_v51  ;;  %v105_v42 = vpack.c.bf16 %v83_v41, %v82_v40  ;;  %v1400_v56 = vld [vmem:[%s7752_s0 + $0x1b8] sm:$0xff] }
  0x1c   :  { %307 = vmatpush.bf16.msra.mxu1 %v56_v54  ;;  %1613 = vmatpush.bf16.msra.mxu3 %v56_v54 }
  0x1d   :  { %5171 = vmatmul.msk.bf16.gmra.mxu0 %vm115_vm0, %v97_v17  ;;  %5187 = vmatmul.msk.bf16.gmra.mxu2 %vm115_vm0, %v1410_v18  ;;  %v80_v17 = vld [vmem:[%s7752_s0 + $0x80] sm:$0xff] }
  0x1e   :  { %2872 = vmatpush.bf16.msrb.mxu2 %v56_v54 }
  0x20   :  { %308 = vmatpush.bf16.msra.mxu1 %v55_v61  ;;  %1614 = vmatpush.bf16.msra.mxu3 %v55_v61 }
  0x22   :  { %2873 = vmatpush.bf16.msrb.mxu2 %v55_v61 }
  0x24   :  { %309 = vmatpush.bf16.msra.mxu1 %v54_v2  ;;  %1615 = vmatpush.bf16.msra.mxu3 %v54_v2 }
  0x26   :  { %2874 = vmatpush.bf16.msrb.mxu2 %v54_v2 }
  0x28   :  { %310 = vmatpush.bf16.msra.mxu1 %v53_v6  ;;  %1616 = vmatpush.bf16.msra.mxu3 %v53_v6 }
  0x2a   :  { %2875 = vmatpush.bf16.msrb.mxu2 %v53_v6 }
  0x2c   :  { %311 = vmatpush.bf16.msra.mxu1 %v52_v10  ;;  %1617 = vmatpush.bf16.msra.mxu3 %v52_v10 }
  0x2d   :  { %5172 = vmatmul.msk.bf16.gmra.mxu0 %vm115_vm0, %v98_v23  ;;  %5188 = vmatmul.msk.bf16.gmra.mxu2 %vm115_vm0, %v1411_v24 }
  0x2e   :  { %2876 = vmatpush.bf16.msrb.mxu2 %v52_v10 }
  0x30   :  { %3997 = vmatpush.bf16.msrb.mxu1 %v5341_v4  ;;  %4128 = vmatpush.bf16.msrb.mxu3 %v5430_v39  ;;  %v81_v4 = vld [vmem:[%s7752_s0 + $0x88] sm:$0xff] }
  0x31   :  { %v104_v18 = vpack.c.bf16 %v81_v4, %v80_v17 }
  0x34   :  { %3998 = vmatpush.bf16.msrb.mxu1 %v5351_v7  ;;  %4129 = vmatpush.bf16.msrb.mxu3 %v58_v48  ;;  %v1393_v7 = vld [vmem:[%s7752_s0 + $0x180] sm:$0xff] }
  0x35   :  { %v1417_v22 = vpack.c.bf16 %v1394_v20, %v1393_v7 }
  0x38   :  { %4130 = vmatpush.bf16.msrb.mxu3 %v57_v51 }
  0x3c   :  { %4131 = vmatpush.bf16.msrb.mxu3 %v56_v54 }
  0x3d   :  { %5173 = vmatmul.msk.bf16.gmra.mxu0 %vm115_vm0, %v99_v29  ;;  %5189 = vmatmul.msk.bf16.gmra.mxu2 %vm115_vm0, %v1412_v30 }
  0x40   :  { %4132 = vmatpush.bf16.msrb.mxu3 %v55_v61  ;;  %v84_v61 = vld [vmem:[%s7752_s0 + $0xa0] sm:$0xff] }
  0x44   :  { %4133 = vmatpush.bf16.msrb.mxu3 %v54_v2 }
  0x48   :  { %4134 = vmatpush.bf16.msrb.mxu3 %v53_v6 }
  0x4c   :  { %4135 = vmatpush.bf16.msrb.mxu3 %v52_v10 }
  0x4d   :  { %5174 = vmatmul.msk.bf16.gmra.mxu0 %vm115_vm0, %v100_v35  ;;  %5190 = vmatmul.msk.bf16.gmra.mxu2 %vm115_vm0, %v1413_v36  ;;  %v1395_v36 = vld [vmem:[%s7752_s0 + $0x190] sm:$0xff] }
  0x4e   :  { %v1418_v39 = vpack.c.bf16 %v1396_v37, %v1395_v36 }
  0x5d   :  { %5175 = vmatmul.msk.bf16.gmra.mxu0 %vm115_vm0, %v101_v44  ;;  %5191 = vmatmul.msk.bf16.gmra.mxu2 %vm115_vm0, %v1414_v45 }
  0x6d   :  { %5176 = vmatmul.msk.bf16.gmra.mxu0 %vm115_vm0, %v102_v62  ;;  %5192 = vmatmul.msk.bf16.gmra.mxu2 %vm115_vm0, %v1415_v63  ;;  %v85_v62 = vld [vmem:[%s7752_s0 + $0xa8] sm:$0xff] }
  0x6e   :  { %v106_v0 = vpack.c.bf16 %v85_v62, %v84_v61  ;;  %v86_v61 = vld [vmem:[%s7752_s0 + $0xb0] sm:$0xff]  ;;  %v87_v62 = vld [vmem:[%s7752_s0 + $0xb8] sm:$0xff] }
  0x7d   :  { %5177 = vmatmul.msk.bf16.gmra.mxu0 %vm115_vm0, %v103_v15  ;;  %5193 = vmatmul.msk.bf16.gmra.mxu2 %vm115_vm0, %v1416_v16 }
  0x8a   :  { %v173_v19 = vpop.f32.mrf.mxu0 }
  0x8b   :  { %v174_v24 = vadd.f32 %v5537_v21, %v173_v19 }
  0x8d   :  { %5178 = vmatmul.msk.bf16.gmra.mxu0 %vm115_vm0, %v104_v18  ;;  %5194 = vmatmul.msk.bf16.gmra.mxu2 %vm115_vm0, %v1417_v22  ;;  %v253_v27 = vmax.f32 %v174_v24, 0.0 }
  0x90   :  { %v1482_v23 = vpop.f32.mrf.mxu2 }
  0x91   :  { %v1483_v29 = vadd.f32 %v5537_v21, %v1482_v23 }
  0x92   :  { %v175_v25 = vpop.f32.mrf.mxu0 }
  0x93   :  { %v176_v26 = vadd.f32 %v5537_v21, %v175_v25  ;;  %v1562_v34 = vmax.f32 %v1483_v29, 0.0 }
  0x95   :  { %v254_v28 = vmax.f32 %v176_v26, 0.0 }
  0x97   :  { %v285_v30 = vpack.c.bf16 %v254_v28, %v253_v27 }
  0x98   :  { %v1484_v31 = vpop.f32.mrf.mxu2 }
  0x99   :  { %v1485_v32 = vadd.f32 %v5537_v21, %v1484_v31  ;;  %312 = vmatmul.bf16.vlgmr.msra.gmra.mxu1 %v285_v30 }
  0x9a   :  { %v178_v33 = vpop.f32.mrf.mxu0 }
  0x9b   :  { %v1563_v35 = vmax.f32 %v1485_v32, 0.0  ;;  %v179_v44 = vadd.f32 %v5537_v21, %v178_v33 }
  0x9d   :  { %v1594_v38 = vpack.c.bf16 %v1563_v35, %v1562_v34  ;;  %5195 = vmatmul.msk.bf16.gmra.mxu2 %vm115_vm0, %v1418_v39  ;;  %5179 = vmatmul.msk.bf16.gmra.mxu0 %vm115_vm0, %v105_v42  ;;  %v255_v47 = vmax.f32 %v179_v44, 0.0  ;;  %v63_v44 = vld [vmem:[#allocation2] sm:$0x1] }
  0x9f   :  { %1618 = vmatmul.bf16.vlgmr.msra.gmra.mxu3 %v1594_v38 }
  0xa0   :  { %v1487_v43 = vpop.f32.mrf.mxu2 }
  0xa1   :  { %v1488_v49 = vadd.f32 %v5537_v21, %v1487_v43  ;;  %v5287_v43 = vmov 0  }
  0xa2   :  { %v180_v45 = vpop.f32.mrf.mxu0  ;;  %5236 = vset.pattern.permute.xlu2 %v5287_v43  ;;  %5237 = vset.pattern.permute.xlu0 %v5287_v43 }
  0xa3   :  { %v181_v46 = vadd.f32 %v5537_v21, %v180_v45  ;;  %v1564_v54 = vmax.f32 %v1488_v49, 0.0  ;;  %559 = vperm.xlu2 %5236, %v63_v44   ;;  %5238 = vset.pattern.permute.xlu1 %v5287_v43 }
  0xa5   :  { %v256_v48 = vmax.f32 %v181_v46, 0.0 }
  0xa7   :  { %v286_v50 = vpack.c.bf16 %v256_v48, %v255_v47 }
  0xa8   :  { %v1489_v51 = vpop.f32.mrf.mxu2 }
  0xa9   :  { %v1490_v52 = vadd.f32 %v5537_v21, %v1489_v51  ;;  %317 = vmatmul.bf16.gmra.mxu1 %v286_v50 }
  0xaa   :  { %v183_v53 = vpop.f32.mrf.mxu0 }
  0xab   :  { %v1565_v55 = vmax.f32 %v1490_v52, 0.0  ;;  %v184_v63 = vadd.f32 %v5537_v21, %v183_v53 }
  0xad   :  { %v1595_v58 = vpack.c.bf16 %v1565_v55, %v1564_v54  ;;  %5196 = vmatmul.msk.bf16.gmra.mxu2 %vm115_vm0, %v1419_v59  ;;  %5180 = vmatmul.msk.bf16.gmra.mxu0 %vm115_vm0, %v106_v0  ;;  %v257_v3 = vmax.f32 %v184_v63, 0.0  ;;  %v1399_v55 = vld [vmem:[%s7752_s0 + $0x1b0] sm:$0xff]  ;;  %v107_v63 = vpack.c.bf16 %v87_v62, %v86_v61 }
  0xae   :  { %v1420_v59 = vpack.c.bf16 %v1400_v56, %v1399_v55 }
  0xaf   :  { %1623 = vmatmul.bf16.gmra.mxu3 %v1595_v58 }
  0xb0   :  { %v1492_v60 = vpop.f32.mrf.mxu2 }
  0xb1   :  { %v1493_v6 = vadd.f32 %v5537_v21, %v1492_v60 }
  0xb2   :  { %v185_v1 = vpop.f32.mrf.mxu0 }
  0xb3   :  { %v186_v2 = vadd.f32 %v5537_v21, %v185_v1  ;;  %v1566_v12 = vmax.f32 %v1493_v6, 0.0 }
  0xb5   :  { %v258_v5 = vmax.f32 %v186_v2, 0.0 }
  0xb7   :  { %v287_v8 = vpack.c.bf16 %v258_v5, %v257_v3 }
  0xb8   :  { %v1494_v9 = vpop.f32.mrf.mxu2 }
  0xb9   :  { %v1495_v10 = vadd.f32 %v5537_v21, %v1494_v9  ;;  %322 = vmatmul.bf16.gmra.mxu1 %v287_v8 }
  0xba   :  { %v188_v11 = vpop.f32.mrf.mxu0 }
  0xbb   :  { %v1567_v13 = vmax.f32 %v1495_v10, 0.0  ;;  %v189_v16 = vadd.f32 %v5537_v21, %v188_v11 }
  0xbd   :  { %v1596_v14 = vpack.c.bf16 %v1567_v13, %v1566_v12  ;;  %v259_v18 = vmax.f32 %v189_v16, 0.0  ;;  %5197 = vmatmul.msk.bf16.gmra.mxu2 %vm115_vm0, %v1420_v59  ;;  %5181 = vmatmul.msk.bf16.gmra.mxu0 %vm115_vm0, %v107_v63  ;;  %v1401_v12 = vld [vmem:[%s7752_s0 + $0x1c0] sm:$0xff]  ;;  %v1402_v13 = vld [vmem:[%s7752_s0 + $0x1c8] sm:$0xff] }
  0xbf   :  { %1628 = vmatmul.bf16.gmra.mxu3 %v1596_v14 }
  0xc0   :  { %v1497_v15 = vpop.f32.mrf.mxu2 }
  0xc1   :  { %v1498_v7 = vadd.f32 %v5537_v21, %v1497_v15  ;;  %v1421_v15 = vpack.c.bf16 %v1402_v13, %v1401_v12 }
  0xc2   :  { %v190_v17 = vpop.f32.mrf.mxu0 }
  0xc3   :  { %v191_v4 = vadd.f32 %v5537_v21, %v190_v17  ;;  %v1568_v25 = vmax.f32 %v1498_v7, 0.0 }
  0xc5   :  { %v260_v19 = vmax.f32 %v191_v4, 0.0 }
  0xc7   :  { %v288_v20 = vpack.c.bf16 %v260_v19, %v259_v18  ;;  %v88_v18 = vld [vmem:[%s7752_s0 + $0xc0] sm:$0xff]  ;;  %v89_v19 = vld [vmem:[%s7752_s0 + $0xc8] sm:$0xff] }
  0xc8   :  { %v1499_v22 = vpop.f32.mrf.mxu2  ;;  %v108_v7 = vpack.c.bf16 %v89_v19, %v88_v18 }
  0xc9   :  { %v1500_v23 = vadd.f32 %v5537_v21, %v1499_v22  ;;  %327 = vmatmul.bf16.gmra.mxu1 %v288_v20 }
  0xca   :  { %v193_v24 = vpop.f32.mrf.mxu0 }
  0xcb   :  { %v1569_v26 = vmax.f32 %v1500_v23, 0.0  ;;  %v194_v29 = vadd.f32 %v5537_v21, %v193_v24 }
  0xcd   :  { %v1597_v27 = vpack.c.bf16 %v1569_v26, %v1568_v25  ;;  %v261_v32 = vmax.f32 %v194_v29, 0.0  ;;  %5198 = vmatmul.msk.bf16.gmra.mxu2 %vm115_vm0, %v1421_v15  ;;  %5182 = vmatmul.msk.bf16.gmra.mxu0 %vm115_vm0, %v108_v7 }
  0xcf   :  { %1633 = vmatmul.bf16.gmra.mxu3 %v1597_v27 }
  0xd0   :  { %v1502_v28 = vpop.f32.mrf.mxu2 }
  0xd1   :  { %v1503_v34 = vadd.f32 %v5537_v21, %v1502_v28 }
  0xd2   :  { %v195_v30 = vpop.f32.mrf.mxu0 }
  0xd3   :  { %v196_v31 = vadd.f32 %v5537_v21, %v195_v30  ;;  %v1570_v39 = vmax.f32 %v1503_v34, 0.0 }
  0xd5   :  { %v262_v33 = vmax.f32 %v196_v31, 0.0 }
  0xd7   :  { %v289_v35 = vpack.c.bf16 %v262_v33, %v261_v32 }
  0xd8   :  { %v1504_v36 = vpop.f32.mrf.mxu2 }
  0xd9   :  { %v1505_v37 = vadd.f32 %v5537_v21, %v1504_v36  ;;  %332 = vmatmul.bf16.gmra.mxu1 %v289_v35 }
  0xda   :  { %v198_v38 = vpop.f32.mrf.mxu0 }
  0xdb   :  { %v1571_v40 = vmax.f32 %v1505_v37, 0.0  ;;  %v199_v45 = vadd.f32 %v5537_v21, %v198_v38 }
  0xdd   :  { %v1598_v41 = vpack.c.bf16 %v1571_v40, %v1570_v39  ;;  %v263_v48 = vmax.f32 %v199_v45, 0.0  ;;  %v5634_v39 = vld [vmem:[%s7756_s4] ss:$0 sm:$0xff] }
  0xde   :  { %v5640_v45 = vld [vmem:[%s7757_s5] ss:$0 sm:$0xff] }
  0xdf   :  { %1638 = vmatmul.bf16.gmra.mxu3 %v1598_v41 }
  0xe0   :  { %v1507_v42 = vpop.f32.mrf.mxu2 }
  0xe1   :  { %v1508_v50 = vadd.f32 %v5537_v21, %v1507_v42 }
  0xe2   :  { %v200_v46 = vpop.f32.mrf.mxu0 }
  0xe3   :  { %v201_v47 = vadd.f32 %v5537_v21, %v200_v46  ;;  %v1572_v57 = vmax.f32 %v1508_v50, 0.0 }
  0xe5   :  { %v264_v49 = vmax.f32 %v201_v47, 0.0 }
  0xe7   :  { %v290_v51 = vpack.c.bf16 %v264_v49, %v263_v48 }
  0xe8   :  { %v1509_v52 = vpop.f32.mrf.mxu2 }
  0xe9   :  { %v1510_v53 = vadd.f32 %v5537_v21, %v1509_v52  ;;  %337 = vmatmul.bf16.gmra.mxu1 %v290_v51 }
  0xea   :  { %v203_v54 = vpop.f32.mrf.mxu0 }
  0xeb   :  { %v1573_v58 = vmax.f32 %v1510_v53, 0.0  ;;  %v204_v1 = vadd.f32 %v5537_v21, %v203_v54 }
  0xed   :  { %v1599_v60 = vpack.c.bf16 %v1573_v58, %v1572_v57  ;;  %v265_v5 = vmax.f32 %v204_v1, 0.0 }
  0xef   :  { %1643 = vmatmul.bf16.gmra.mxu3 %v1599_v60 }
  0xf0   :  { %v1512_v0 = vpop.f32.mrf.mxu2 }
  0xf1   :  { %v1513_v8 = vadd.f32 %v5537_v21, %v1512_v0 }
  0xf2   :  { %v205_v2 = vpop.f32.mrf.mxu0 }
  0xf3   :  { %v206_v3 = vadd.f32 %v5537_v21, %v205_v2  ;;  %v1574_v16 = vmax.f32 %v1513_v8, 0.0 }
  0xf5   :  { %v266_v6 = vmax.f32 %v206_v3, 0.0 }
  0xf7   :  { %v291_v9 = vpack.c.bf16 %v266_v6, %v265_v5 }
  0xf8   :  { %v1514_v10 = vpop.f32.mrf.mxu2 }
  0xf9   :  { %v1515_v11 = vadd.f32 %v5537_v21, %v1514_v10  ;;  %342 = vmatmul.bf16.gmra.mxu1 %v291_v9 }
  0xfa   :  { %v208_v14 = vpop.f32.mrf.mxu0 }
  0xfb   :  { %v1575_v17 = vmax.f32 %v1515_v11, 0.0  ;;  %v209_v22 = vadd.f32 %v5537_v21, %v208_v14 }
  0xfd   :  { %v1600_v4 = vpack.c.bf16 %v1575_v17, %v1574_v16  ;;  %v267_v25 = vmax.f32 %v209_v22, 0.0 }
  0xff   :  { %1648 = vmatmul.bf16.gmra.mxu3 %v1600_v4 }
 0x100   :  { %v1517_v20 = vpop.f32.mrf.mxu2 }
 0x101   :  { %v1518_v26 = vadd.f32 %v5537_v21, %v1517_v20 }
 0x102   :  { %v210_v23 = vpop.f32.mrf.mxu0 }
 0x103   :  { %v211_v24 = vadd.f32 %v5537_v21, %v210_v23  ;;  %v1576_v30 = vmax.f32 %v1518_v26, 0.0 }
 0x105   :  { %v268_v27 = vmax.f32 %v211_v24, 0.0 }
 0x107   :  { %v292_v28 = vpack.c.bf16 %v268_v27, %v267_v25 }
 0x108   :  { %v1519_v29 = vpop.f32.mrf.mxu2 }
 0x109   :  { %v1520_v31 = vadd.f32 %v5537_v21, %v1519_v29  ;;  %347 = vmatmul.bf16.gmra.mxu1 %v292_v28 }
 0x10a   :  { %v213_v32 = vpop.f32.mrf.mxu0 }
 0x10b   :  { %v1577_v33 = vmax.f32 %v1520_v31, 0.0  ;;  %v214_v35 = vadd.f32 %v5537_v21, %v213_v32 }
 0x10d   :  { %v1601_v34 = vpack.c.bf16 %v1577_v33, %v1576_v30  ;;  %v269_v40 = vmax.f32 %v214_v35, 0.0 }
 0x10f   :  { %1653 = vmatmul.bf16.gmra.mxu3 %v1601_v34 }
 0x110   :  { %v1522_v37 = vpop.f32.mrf.mxu2 }
 0x111   :  { %v1523_v46 = vadd.f32 %v5537_v21, %v1522_v37 }
 0x112   :  { %v215_v36 = vpop.f32.mrf.mxu0 }
 0x113   :  { %v216_v38 = vadd.f32 %v5537_v21, %v215_v36  ;;  %v1578_v50 = vmax.f32 %v1523_v46, 0.0 }
 0x115   :  { %v270_v41 = vmax.f32 %v216_v38, 0.0 }
 0x116   :  { %v313_v42 = vpop.f32.mrf.mxu1 }
 0x117   :  { %v314_v43 = vadd.f32 %v5634_v39, %v313_v42  ;;  %v293_v44 = vpack.c.bf16 %v270_v41, %v269_v40  ;;  %v1403_v42 = vld [vmem:[%s7752_s0 + $0x1d0] sm:$0xff] }
 0x118   :  { %v1524_v48 = vpop.f32.mrf.mxu2 }
 0x119   :  { %v393_v47 = vmax.f32 %v314_v43, 0.0  ;;  %352 = vmatmul.bf16.gmra.mxu1 %v293_v44  ;;  %v1525_v51 = vadd.f32 %v5537_v21, %v1524_v48  ;;  %v1404_v43 = vld [vmem:[%s7752_s0 + $0x1d8] sm:$0xff] }
 0x11a   :  { %v218_v54 = vpop.f32.mrf.mxu0  ;;  %v1422_v48 = vpack.c.bf16 %v1404_v43, %v1403_v42 }
 0x11b   :  { %v428_v49 = vmul.f32 %v5640_v45, %v393_v47  ;;  %v1579_v53 = vmax.f32 %v1525_v51, 0.0  ;;  %v219_v60 = vadd.f32 %v5537_v21, %v218_v54 }
 0x11c   :  { %5199 = vmatmul.msk.bf16.gmra.mxu2 %vm115_vm0, %v1422_v48 }
 0x11d   :  { %v461_v52 = vsel %vm460_vm1, %v428_v49, 0.0  ;;  %v1602_v57 = vpack.c.bf16 %v1579_v53, %v1578_v50  ;;  %v271_v5 = vmax.f32 %v219_v60, 0.0 }
 0x11e   :  { %v315_v55 = vpop.f32.mrf.mxu1  ;;  %462 = vadd.xlane.f32.xlu0 %v461_v52 }
 0x11f   :  { %v316_v56 = vadd.f32 %v5634_v39, %v315_v55  ;;  %1658 = vmatmul.bf16.gmra.mxu3 %v1602_v57 }
 0x120   :  { %v1527_v61 = vpop.f32.mrf.mxu2 }
 0x121   :  { %v394_v58 = vmax.f32 %v316_v56, 0.0  ;;  %v1528_v10 = vadd.f32 %v5537_v21, %v1527_v61 }
 0x122   :  { %v1619_v59 = vpop.f32.mrf.mxu3  ;;  %v220_v2 = vpop.f32.mrf.mxu0 }
 0x123   :  { %v1620_v62 = vadd.f32 %v5634_v39, %v1619_v59  ;;  %v429_v63 = vmul.f32 %v5640_v45, %v394_v58  ;;  %v221_v6 = vadd.f32 %v5537_v21, %v220_v2  ;;  %v1580_v18 = vmax.f32 %v1528_v10, 0.0  ;;  %v90_v58 = vld [vmem:[%s7752_s0 + $0xd0] sm:$0xff]  ;;  %v91_v59 = vld [vmem:[%s7752_s0 + $0xd8] sm:$0xff] }
 0x125   :  { %v1699_v0 = vmax.f32 %v1620_v62, 0.0  ;;  %v464_v1 = vsel %vm460_vm1, %v429_v63, 0.0  ;;  %v272_v11 = vmax.f32 %v221_v6, 0.0  ;;  %v109_v63 = vpack.c.bf16 %v91_v59, %v90_v58 }
 0x126   :  { %v318_v3 = vpop.f32.mrf.mxu1  ;;  %465 = vadd.xlane.f32.xlu0 %v464_v1 }
 0x127   :  { %v319_v8 = vadd.f32 %v5634_v39, %v318_v3  ;;  %v1731_v9 = vmul.f32 %v5640_v45, %v1699_v0  ;;  %v294_v16 = vpack.c.bf16 %v272_v11, %v271_v5  ;;  %5183 = vmatmul.msk.bf16.gmra.mxu0 %vm115_vm0, %v109_v63 }
 0x128   :  { %v1529_v15 = vpop.f32.mrf.mxu2 }
 0x129   :  { %v395_v12 = vmax.f32 %v319_v8, 0.0  ;;  %v1763_v13 = vsel %vm460_vm1, %v1731_v9, 0.0  ;;  %v1530_v19 = vadd.f32 %v5537_v21, %v1529_v15  ;;  %357 = vmatmul.bf16.gmra.mxu1 %v294_v16 }
 0x12a   :  { %v1621_v14 = vpop.f32.mrf.mxu3  ;;  %1764 = vadd.xlane.f32.xlu2 %v1763_v13  ;;  %v223_v26 = vpop.f32.mrf.mxu0 }
 0x12b   :  { %v1622_v17 = vadd.f32 %v5634_v39, %v1621_v14  ;;  %v430_v4 = vmul.f32 %v5640_v45, %v395_v12  ;;  %v1581_v22 = vmax.f32 %v1530_v19, 0.0  ;;  %v224_v35 = vadd.f32 %v5537_v21, %v223_v26 }
 0x12d   :  { %v1700_v7 = vmax.f32 %v1622_v17, 0.0  ;;  %v467_v20 = vsel %vm460_vm1, %v430_v4, 0.0  ;;  %v1603_v24 = vpack.c.bf16 %v1581_v22, %v1580_v18  ;;  %v273_v50 = vmax.f32 %v224_v35, 0.0 }
 0x12e   :  { %v320_v23 = vpop.f32.mrf.mxu1  ;;  %468 = vadd.xlane.f32.xlu1 %v467_v20 }
 0x12f   :  { %v321_v25 = vadd.f32 %v5634_v39, %v320_v23  ;;  %v1732_v27 = vmul.f32 %v5640_v45, %v1700_v7  ;;  %1663 = vmatmul.bf16.gmra.mxu3 %v1603_v24 }
 0x130   :  { %v1532_v29 = vpop.f32.mrf.mxu2 }
 0x131   :  { %v396_v31 = vmax.f32 %v321_v25, 0.0  ;;  %v1766_v33 = vsel %vm460_vm1, %v1732_v27, 0.0  ;;  %v1533_v36 = vadd.f32 %v5537_v21, %v1532_v29 }
 0x132   :  { %v1624_v28 = vpop.f32.mrf.mxu3  ;;  %v225_v41 = vpop.f32.mrf.mxu0 }
 0x133   :  { %v1625_v30 = vadd.f32 %v5634_v39, %v1624_v28  ;;  %v431_v40 = vmul.f32 %v5640_v45, %v396_v31  ;;  %v226_v47 = vadd.f32 %v5537_v21, %v225_v41  ;;  %v1582_v51 = vmax.f32 %v1533_v36, 0.0 }
 0x135   :  { %v1701_v32 = vmax.f32 %v1625_v30, 0.0  ;;  %v274_v55 = vmax.f32 %v226_v47, 0.0  ;;  %v470_v57 = vsel %vm460_vm1, %v431_v40, 0.0 }
 0x136   :  { %v323_v34 = vpop.f32.mrf.mxu1  ;;  %1767 = vadd.xlane.f32.xlu1 %v1766_v33 }
 0x137   :  { %v324_v37 = vadd.f32 %v5634_v39, %v323_v34  ;;  %v1733_v38 = vmul.f32 %v5640_v45, %v1701_v32  ;;  %v295_v1 = vpack.c.bf16 %v274_v55, %v273_v50 }
 0x138   :  { %v1534_v52 = vpop.f32.mrf.mxu2 }
 0x139   :  { %v397_v44 = vmax.f32 %v324_v37, 0.0  ;;  %v1769_v46 = vsel %vm460_vm1, %v1733_v38, 0.0  ;;  %v1535_v56 = vadd.f32 %v5537_v21, %v1534_v52  ;;  %362 = vmatmul.bf16.gmra.mxu1 %v295_v1 }
 0x13a   :  { %v1626_v49 = vpop.f32.mrf.mxu3  ;;  %1770 = vadd.xlane.f32.xlu0 %v1769_v46 }
 0x13b   :  { %v1627_v53 = vadd.f32 %v5634_v39, %v1626_v49  ;;  %v432_v54 = vmul.f32 %v5640_v45, %v397_v44  ;;  %v1583_v62 = vmax.f32 %v1535_v56, 0.0 }
 0x13d   :  { %v1702_v60 = vmax.f32 %v1627_v53, 0.0  ;;  %v473_v61 = vsel %vm460_vm1, %v432_v54, 0.0  ;;  %v1604_v2 = vpack.c.bf16 %v1583_v62, %v1582_v51 }
 0x13e   :  { %v325_v0 = vpop.f32.mrf.mxu1  ;;  %474 = vadd.xlane.f32.xlu2 %v473_v61  ;;  %471 = vadd.xlane.f32.xlu1 %v470_v57 }
 0x13f   :  { %v326_v3 = vadd.f32 %v5634_v39, %v325_v0  ;;  %v1734_v5 = vmul.f32 %v5640_v45, %v1702_v60  ;;  %1668 = vmatmul.bf16.gmra.mxu3 %v1604_v2 }
 0x141   :  { %v398_v9 = vmax.f32 %v326_v3, 0.0  ;;  %v1772_v11 = vsel %vm460_vm1, %v1734_v5, 0.0 }
 0x142   :  { %v1629_v6 = vpop.f32.mrf.mxu3 }
 0x143   :  { %v1630_v8 = vadd.f32 %v5634_v39, %v1629_v6  ;;  %v433_v17 = vmul.f32 %v5640_v45, %v398_v9 }
 0x145   :  { %v1703_v10 = vmax.f32 %v1630_v8, 0.0  ;;  %v476_v20 = vsel %vm460_vm1, %v433_v17, 0.0 }
 0x146   :  { %v328_v12 = vpop.f32.mrf.mxu1  ;;  %1773 = vadd.xlane.f32.xlu2 %v1772_v11  ;;  %v228_v11 = vpop.f32.mrf.mxu0 }
 0x147   :  { %v329_v13 = vadd.f32 %v5634_v39, %v328_v12  ;;  %v1735_v14 = vmul.f32 %v5640_v45, %v1703_v10 }
 0x149   :  { %v399_v15 = vmax.f32 %v329_v13, 0.0  ;;  %v1775_v16 = vsel %vm460_vm1, %v1735_v14, 0.0 }
 0x14a   :  { %v1631_v4 = vpop.f32.mrf.mxu3  ;;  %1776 = vadd.xlane.f32.xlu1 %v1775_v16 }
 0x14b   :  { %v1632_v18 = vadd.f32 %v5634_v39, %v1631_v4  ;;  %v434_v19 = vmul.f32 %v5640_v45, %v399_v15  ;;  %v1537_v15 = vpop.f32.mrf.mxu2 }
 0x14d   :  { %v1704_v7 = vmax.f32 %v1632_v18, 0.0  ;;  %v479_v22 = vsel %vm460_vm1, %v434_v19, 0.0 }
 0x14e   :  { %v330_v23 = vpop.f32.mrf.mxu1  ;;  %477 = vadd.xlane.f32.xlu2 %v476_v20  ;;  %480 = vadd.xlane.f32.xlu0 %v479_v22 }
 0x14f   :  { %v331_v24 = vadd.f32 %v5634_v39, %v330_v23  ;;  %v1736_v26 = vmul.f32 %v5640_v45, %v1704_v7 }
 0x151   :  { %v400_v25 = vmax.f32 %v331_v24, 0.0  ;;  %v1778_v31 = vsel %vm460_vm1, %v1736_v26, 0.0  ;;  %v1405_v24 = vld [vmem:[%s7752_s0 + $0x1e0] sm:$0xff] }
 0x152   :  { %v1634_v27 = vpop.f32.mrf.mxu3 }
 0x153   :  { %v1635_v28 = vadd.f32 %v5634_v39, %v1634_v27  ;;  %v435_v29 = vmul.f32 %v5640_v45, %v400_v25  ;;  %v1406_v25 = vld [vmem:[%s7752_s0 + $0x1e8] sm:$0xff]  ;;  %v230_v27 = vpop.f32.mrf.mxu0 }
 0x155   :  { %v1705_v30 = vmax.f32 %v1635_v28, 0.0  ;;  %v482_v32 = vsel %vm460_vm1, %v435_v29, 0.0  ;;  %v1423_v28 = vpack.c.bf16 %v1406_v25, %v1405_v24 }
 0x156   :  { %v333_v33 = vpop.f32.mrf.mxu1  ;;  %1779 = vadd.xlane.f32.xlu2 %v1778_v31  ;;  %483 = vadd.xlane.f32.xlu1 %v482_v32  ;;  %v1539_v31 = vpop.f32.mrf.mxu2 }
 0x157   :  { %v334_v34 = vadd.f32 %v5634_v39, %v333_v33  ;;  %v1737_v35 = vmul.f32 %v5640_v45, %v1705_v30  ;;  %5200 = vmatmul.msk.bf16.gmra.mxu2 %vm115_vm0, %v1423_v28 }
 0x159   :  { %v401_v36 = vmax.f32 %v334_v34, 0.0  ;;  %v1781_v37 = vsel %vm460_vm1, %v1737_v35, 0.0  ;;  %v229_v34 = vadd.f32 %v5537_v21, %v228_v11  ;;  %v231_v35 = vadd.f32 %v5537_v21, %v230_v27 }
 0x15a   :  { %v1636_v38 = vpop.f32.mrf.mxu3  ;;  %1782 = vadd.xlane.f32.xlu0 %v1781_v37 }
 0x15b   :  { %v1637_v40 = vadd.f32 %v5634_v39, %v1636_v38  ;;  %v436_v41 = vmul.f32 %v5640_v45, %v401_v36 }
 0x15d   :  { %v1706_v42 = vmax.f32 %v1637_v40, 0.0  ;;  %v485_v43 = vsel %vm460_vm1, %v436_v41, 0.0  ;;  %v1538_v40 = vadd.f32 %v5537_v21, %v1537_v15  ;;  %v1540_v41 = vadd.f32 %v5537_v21, %v1539_v31 }
 0x15e   :  { %v335_v44 = vpop.f32.mrf.mxu1  ;;  %486 = vadd.xlane.f32.xlu2 %v485_v43  ;;  %v1542_v15 = vpop.f32.mrf.mxu2 }
 0x15f   :  { %v336_v46 = vadd.f32 %v5634_v39, %v335_v44  ;;  %v1738_v47 = vmul.f32 %v5640_v45, %v1706_v42  ;;  %v275_v44 = vmax.f32 %v229_v34, 0.0  ;;  %v1408_v34 = vld [vmem:[%s7752_s0 + $0x1f8] sm:$0xff] }
 0x161   :  { %v402_v48 = vmax.f32 %v336_v46, 0.0  ;;  %v1784_v49 = vsel %vm460_vm1, %v1738_v47, 0.0  ;;  %v276_v46 = vmax.f32 %v231_v35, 0.0 }
 0x162   :  { %v1639_v50 = vpop.f32.mrf.mxu3  ;;  %1785 = vadd.xlane.f32.xlu1 %v1784_v49 }
 0x163   :  { %v1640_v51 = vadd.f32 %v5634_v39, %v1639_v50  ;;  %v437_v52 = vmul.f32 %v5640_v45, %v402_v48  ;;  %v1584_v50 = vmax.f32 %v1538_v40, 0.0 }
 0x165   :  { %v1707_v53 = vmax.f32 %v1640_v51, 0.0  ;;  %v488_v54 = vsel %vm460_vm1, %v437_v52, 0.0  ;;  %v1585_v51 = vmax.f32 %v1540_v41, 0.0  ;;  %v92_v52 = vld [vmem:[%s7752_s0 + $0xe0] sm:$0xff] }
 0x166   :  { %v338_v55 = vpop.f32.mrf.mxu1  ;;  %489 = vadd.xlane.f32.xlu0 %v488_v54 }
 0x167   :  { %v339_v56 = vadd.f32 %v5634_v39, %v338_v55  ;;  %v1739_v57 = vmul.f32 %v5640_v45, %v1707_v53  ;;  %v93_v53 = vld [vmem:[%s7752_s0 + $0xe8] sm:$0xff] }
 0x169   :  { %v403_v58 = vmax.f32 %v339_v56, 0.0  ;;  %v1787_v59 = vsel %vm460_vm1, %v1739_v57, 0.0  ;;  %v110_v56 = vpack.c.bf16 %v93_v53, %v92_v52  ;;  %v296_v57 = vpack.c.bf16 %v276_v46, %v275_v44 }
 0x16a   :  { %v1641_v60 = vpop.f32.mrf.mxu3  ;;  %1788 = vadd.xlane.f32.xlu2 %v1787_v59 }
 0x16b   :  { %v1642_v61 = vadd.f32 %v5634_v39, %v1641_v60  ;;  %v438_v62 = vmul.f32 %v5640_v45, %v403_v58  ;;  %5184 = vmatmul.msk.bf16.gmra.mxu0 %vm115_vm0, %v110_v56  ;;  %367 = vmatmul.bf16.gmra.mxu1 %v296_v57 }
 0x16d   :  { %v1708_v63 = vmax.f32 %v1642_v61, 0.0  ;;  %v491_v0 = vsel %vm460_vm1, %v438_v62, 0.0  ;;  %v560_v61 = vpop.permute.xlu2 %559  ;;  %v1605_v62 = vpack.c.bf16 %v1585_v51, %v1584_v50 }
 0x16e   :  { %v340_v1 = vpop.f32.mrf.mxu1  ;;  %492 = vadd.xlane.f32.xlu1 %v491_v0 }
 0x16f   :  { %v341_v2 = vadd.f32 %v5634_v39, %v340_v1  ;;  %v1740_v3 = vmul.f32 %v5640_v45, %v1708_v63  ;;  %1673 = vmatmul.bf16.gmra.mxu3 %v1605_v62 }
 0x171   :  { %v404_v5 = vmax.f32 %v341_v2, 0.0  ;;  %v1790_v6 = vsel %vm460_vm1, %v1740_v3, 0.0  ;;  %v5768_v2 = vperm.slane %v560_v61, 0 }
 0x172   :  { %v1644_v8 = vpop.f32.mrf.mxu3  ;;  %1791 = vadd.xlane.f32.xlu0 %v1790_v6 }
 0x173   :  { %v1645_v9 = vadd.f32 %v5634_v39, %v1644_v8  ;;  %v439_v10 = vmul.f32 %v5640_v45, %v404_v5 }
 0x175   :  { %v1709_v12 = vmax.f32 %v1645_v9, 0.0  ;;  %v494_v13 = vsel %vm460_vm1, %v439_v10, 0.0  ;;  %v233_v10 = vpop.f32.mrf.mxu0 }
 0x176   :  { %v343_v14 = vpop.f32.mrf.mxu1  ;;  %495 = vadd.xlane.f32.xlu2 %v494_v13 }
 0x177   :  { %v344_v16 = vadd.f32 %v5634_v39, %v343_v14  ;;  %v1741_v17 = vmul.f32 %v5640_v45, %v1709_v12 }
 0x179   :  { %v405_v4 = vmax.f32 %v344_v16, 0.0  ;;  %v1793_v18 = vsel %vm460_vm1, %v1741_v17, 0.0 }
 0x17a   :  { %v1646_v19 = vpop.f32.mrf.mxu3  ;;  %1794 = vadd.xlane.f32.xlu1 %v1793_v18 }
 0x17b   :  { %v1647_v7 = vadd.f32 %v5634_v39, %v1646_v19  ;;  %v440_v20 = vmul.f32 %v5640_v45, %v405_v4 }
 0x17d   :  { %v1710_v22 = vmax.f32 %v1647_v7, 0.0  ;;  %v497_v23 = vsel %vm460_vm1, %v440_v20, 0.0 }
 0x17e   :  { %v345_v26 = vpop.f32.mrf.mxu1  ;;  %498 = vadd.xlane.f32.xlu0 %v497_v23 }
 0x17f   :  { %v346_v29 = vadd.f32 %v5634_v39, %v345_v26  ;;  %v1742_v30 = vmul.f32 %v5640_v45, %v1710_v22 }
 0x181   :  { %v406_v32 = vmax.f32 %v346_v29, 0.0  ;;  %v1796_v33 = vsel %vm460_vm1, %v1742_v30, 0.0 }
 0x182   :  { %v1649_v36 = vpop.f32.mrf.mxu3  ;;  %1797 = vadd.xlane.f32.xlu2 %v1796_v33  ;;  %v1407_v33 = vld [vmem:[%s7752_s0 + $0x1f0] sm:$0xff] }
 0x183   :  { %v1650_v37 = vadd.f32 %v5634_v39, %v1649_v36  ;;  %v441_v38 = vmul.f32 %v5640_v45, %v406_v32  ;;  %v235_v32 = vpop.f32.mrf.mxu0  ;;  %v234_v36 = vadd.f32 %v5537_v21, %v233_v10  ;;  %v1424_v46 = vpack.c.bf16 %v1408_v34, %v1407_v33 }
 0x185   :  { %v1711_v42 = vmax.f32 %v1650_v37, 0.0  ;;  %v500_v43 = vsel %vm460_vm1, %v441_v38, 0.0  ;;  %v1543_v37 = vadd.f32 %v5537_v21, %v1542_v15  ;;  %v1544_v38 = vpop.f32.mrf.mxu2  ;;  %v277_v50 = vmax.f32 %v234_v36, 0.0  ;;  %5201 = vmatmul.msk.bf16.gmra.mxu2 %vm115_vm0, %v1424_v46 }
 0x186   :  { %v348_v47 = vpop.f32.mrf.mxu1  ;;  %501 = vadd.xlane.f32.xlu1 %v500_v43  ;;  %v1545_v43 = vadd.f32 %v5537_v21, %v1544_v38 }
 0x187   :  { %v349_v48 = vadd.f32 %v5634_v39, %v348_v47  ;;  %v1743_v49 = vmul.f32 %v5640_v45, %v1711_v42  ;;  %v236_v42 = vadd.f32 %v5537_v21, %v235_v32  ;;  %v94_v47 = vld [vmem:[%s7752_s0 + $0xf0] sm:$0xff]  ;;  %v1586_v51 = vmax.f32 %v1543_v37, 0.0 }
 0x189   :  { %v407_v54 = vmax.f32 %v349_v48, 0.0  ;;  %v1799_v55 = vsel %vm460_vm1, %v1743_v49, 0.0  ;;  %v95_v48 = vld [vmem:[%s7752_s0 + $0xf8] sm:$0xff]  ;;  %v278_v21 = vmax.f32 %v236_v42, 0.0 }
 0x18a   :  { %v1651_v58 = vpop.f32.mrf.mxu3  ;;  %1800 = vadd.xlane.f32.xlu0 %v1799_v55  ;;  %v111_v56 = vpack.c.bf16 %v95_v48, %v94_v47 }
 0x18b   :  { %v1652_v59 = vadd.f32 %v5634_v39, %v1651_v58  ;;  %v442_v60 = vmul.f32 %v5640_v45, %v407_v54  ;;  %v1587_v54 = vmax.f32 %v1545_v43, 0.0 }
 0x18c   :  { %5185 = vmatmul.msk.bf16.gmra.mxu0 %vm115_vm0, %v111_v56 }
 0x18d   :  { %v1712_v63 = vmax.f32 %v1652_v59, 0.0  ;;  %v503_v0 = vsel %vm460_vm1, %v442_v60, 0.0 }
 0x18e   :  { %v350_v1 = vpop.f32.mrf.mxu1  ;;  %504 = vadd.xlane.f32.xlu2 %v503_v0  ;;  %v1606_v0 = vpack.c.bf16 %v1587_v54, %v1586_v51 }
 0x18f   :  { %v351_v3 = vadd.f32 %v5634_v39, %v350_v1  ;;  %v1744_v5 = vmul.f32 %v5640_v45, %v1712_v63  ;;  %v297_v63 = vpack.c.bf16 %v278_v21, %v277_v50 }
 0x190   :  { %1678 = vmatmul.bf16.gmra.mxu3 %v1606_v0 }
 0x191   :  { %v408_v6 = vmax.f32 %v351_v3, 0.0  ;;  %v463_v8 = vpop.xlane.xlu0 %462  ;;  %v1802_v9 = vsel %vm460_vm1, %v1744_v5, 0.0  ;;  %372 = vmatmul.bf16.gmra.mxu1 %v297_v63 }
 0x192   :  { %v563_v11 = vadd.f32 %v5768_v2, %v463_v8  ;;  %v1654_v12 = vpop.f32.mrf.mxu3  ;;  %1803 = vadd.xlane.f32.xlu1 %v1802_v9 }
 0x193   :  { %v1655_v13 = vadd.f32 %v5634_v39, %v1654_v12  ;;  %v443_v14 = vmul.f32 %v5640_v45, %v408_v6 }
 0x194   :  { %v627_v16 = vperm.slane %v563_v11, 0  ;;  %v628_v17 = vperm.slane %v563_v11, 1  ;;  %v629_v4 = vperm.slane %v563_v11, 2  ;;  %v630_v18 = vperm.slane %v563_v11, 3 }
 0x195   :  { %v631_v19 = vperm.slane %v563_v11, 4  ;;  %v1713_v7 = vmax.f32 %v1655_v13, 0.0  ;;  %v506_v22 = vsel %vm460_vm1, %v443_v14, 0.0  ;;  %v632_v23 = vperm.slane %v563_v11, 5 }
 0x196   :  { %883 = vst [vmem:[#allocation1] ss:$9 sm:$0xff] %v627_v16  ;;  %v353_v20 = vpop.f32.mrf.mxu1  ;;  %507 = vadd.xlane.f32.xlu0 %v506_v22  ;;  %v633_v25 = vperm.slane %v563_v11, 6  ;;  %v634_v27 = vperm.slane %v563_v11, 7 }
 0x197   :  { %885 = vst [vmem:[#allocation1 + $0x1] ss:$9 sm:$0xff] %v628_v17  ;;  %v354_v24 = vadd.f32 %v5634_v39, %v353_v20  ;;  %v1745_v26 = vmul.f32 %v5640_v45, %v1713_v7 }
 0x198   :  { %887 = vst [vmem:[#allocation1 + $0x2] ss:$9 sm:$0xff] %v629_v4 }
 0x199   :  { %889 = vst [vmem:[#allocation1 + $0x3] ss:$9 sm:$0xff] %v630_v18  ;;  %v409_v28 = vmax.f32 %v354_v24, 0.0  ;;  %v466_v29 = vpop.xlane.xlu0 %465  ;;  %v1805_v30 = vsel %vm460_vm1, %v1745_v26, 0.0 }
 0x19a   :  { %891 = vst [vmem:[#allocation1 + $0x4] ss:$9 sm:$0xff] %v631_v19  ;;  %1806 = vadd.xlane.f32.xlu2 %v1805_v30  ;;  %v564_v35 = vadd.f32 %v5768_v2, %v466_v29  ;;  %v1656_v38 = vpop.f32.mrf.mxu3 }
 0x19b   :  { %893 = vst [vmem:[#allocation1 + $0x5] ss:$9 sm:$0xff] %v632_v23  ;;  %v444_v31 = vmul.f32 %v5640_v45, %v409_v28 }
 0x19c   :  { %895 = vst [vmem:[#allocation1 + $0x6] ss:$9 sm:$0xff] %v633_v25  ;;  %v635_v49 = vperm.slane %v564_v35, 0  ;;  %v636_v52 = vperm.slane %v564_v35, 1  ;;  %v637_v55 = vperm.slane %v564_v35, 2  ;;  %v638_v58 = vperm.slane %v564_v35, 3 }
 0x19d   :  { %897 = vst [vmem:[#allocation1 + $0x7] ss:$9 sm:$0xff] %v634_v27  ;;  %v509_v41 = vsel %vm460_vm1, %v444_v31, 0.0  ;;  %v639_v60 = vperm.slane %v564_v35, 4  ;;  %v640_v61 = vperm.slane %v564_v35, 5  ;;  %v641_v1 = vperm.slane %v564_v35, 6  ;;  %v5807_v18 = vpop.xlane.xlu2 %1764 }
 0x19e   :  { %v355_v40 = vpop.f32.mrf.mxu1  ;;  %510 = vadd.xlane.f32.xlu1 %v509_v41  ;;  %v642_v3 = vperm.slane %v564_v35, 7  ;;  %v1657_v41 = vadd.f32 %v5634_v39, %v1656_v38 }
 0x19f   :  { %v356_v44 = vadd.f32 %v5634_v39, %v355_v40 }
 0x1a0   :  { %v1714_v46 = vmax.f32 %v1657_v41, 0.0 }
 0x1a1   :  { %v410_v53 = vmax.f32 %v356_v44, 0.0  ;;  %v469_v59 = vpop.xlane.xlu1 %468 }
 0x1a2   :  { %v565_v6 = vadd.f32 %v5768_v2, %v469_v59 }
 0x1a3   :  { %v445_v62 = vmul.f32 %v5640_v45, %v410_v53 }
 0x1a4   :  { %v898_v57 = vld [vmem:[#allocation1] sm:$0xff]  ;;  %v643_v9 = vperm.slane %v565_v6, 0  ;;  %v644_v10 = vperm.slane %v565_v6, 1  ;;  %v645_v11 = vperm.slane %v565_v6, 2  ;;  %v646_v13 = vperm.slane %v565_v6, 3 }
 0x1a5   :  { %899 = vst [vmem:[#allocation1] ss:$9 sm:$0xff] %v635_v49  ;;  %v512_v5 = vsel %vm460_vm1, %v445_v62, 0.0  ;;  %v647_v14 = vperm.slane %v565_v6, 4  ;;  %v648_v15 = vperm.slane %v565_v6, 5  ;;  %v649_v16 = vperm.slane %v565_v6, 6 }
 0x1a6   :  { %900 = vst [vmem:[#allocation1 + $0x1] ss:$9 sm:$0xff] %v636_v52  ;;  %513 = vadd.xlane.f32.xlu2 %v512_v5  ;;  %v650_v17 = vperm.slane %v565_v6, 7  ;;  %v1746_v49 = vmul.f32 %v5640_v45, %v1714_v46  ;;  %v358_v62 = vpop.f32.mrf.mxu1 }
 0x1a7   :  { %901 = vst [vmem:[#allocation1 + $0x2] ss:$9 sm:$0xff] %v637_v55  ;;  %v359_v63 = vadd.f32 %v5634_v39, %v358_v62 }
 0x1a8   :  { %902 = vst [vmem:[#allocation1 + $0x3] ss:$9 sm:$0xff] %v638_v58  ;;  %v1808_v53 = vsel %vm460_vm1, %v1746_v49, 0.0 }
 0x1a9   :  { %903 = vst [vmem:[#allocation1 + $0x4] ss:$9 sm:$0xff] %v639_v60  ;;  %v5805_v8 = vpop.xlane.xlu1 %1767  ;;  %v1659_v60 = vpop.f32.mrf.mxu3 }
 0x1aa   :  { %904 = vst [vmem:[#allocation1 + $0x5] ss:$9 sm:$0xff] %v640_v61  ;;  %1179 = vperm.xlu0 %5237, %v898_v57  }
 0x1ab   :  { %905 = vst [vmem:[#allocation1 + $0x6] ss:$9 sm:$0xff] %v641_v1 }
 0x1ac   :  { %906 = vst [vmem:[#allocation1 + $0x7] ss:$9 sm:$0xff] %v642_v3 }
 0x1ad   :  { %v5818_v51 = vpop.xlane.xlu0 %1770 }
 0x1b1   :  { %v472_v4 = vpop.xlane.xlu1 %471  ;;  %v475_v24 = vpop.xlane.xlu2 %474 }
 0x1b2   :  { %v566_v19 = vadd.f32 %v5768_v2, %v472_v4  ;;  %v567_v30 = vadd.f32 %v5768_v2, %v475_v24 }
 0x1b3   :  { %v907_v12 = vld [vmem:[#allocation1] sm:$0xff] }
 0x1b4   :  { %908 = vst [vmem:[#allocation1] ss:$9 sm:$0xff] %v643_v9  ;;  %v651_v7 = vperm.slane %v566_v19, 0  ;;  %v652_v20 = vperm.slane %v566_v19, 1  ;;  %v653_v22 = vperm.slane %v566_v19, 2  ;;  %v654_v25 = vperm.slane %v566_v19, 3 }
 0x1b5   :  { %909 = vst [vmem:[#allocation1 + $0x1] ss:$9 sm:$0xff] %v644_v10  ;;  %v655_v26 = vperm.slane %v566_v19, 4  ;;  %v656_v27 = vperm.slane %v566_v19, 5  ;;  %v657_v28 = vperm.slane %v566_v19, 6  ;;  %v658_v29 = vperm.slane %v566_v19, 7 }
 0x1b6   :  { %910 = vst [vmem:[#allocation1 + $0x2] ss:$9 sm:$0xff] %v645_v11  ;;  %v659_v32 = vperm.slane %v567_v30, 0  ;;  %v660_v33 = vperm.slane %v567_v30, 1  ;;  %v661_v35 = vperm.slane %v567_v30, 2  ;;  %v662_v36 = vperm.slane %v567_v30, 3  ;;  %v1661_v11 = vpop.f32.mrf.mxu3 }
 0x1b7   :  { %911 = vst [vmem:[#allocation1 + $0x3] ss:$9 sm:$0xff] %v646_v13  ;;  %1182 = vperm.xlu1 %5238, %v907_v12   ;;  %v663_v37 = vperm.slane %v567_v30, 4  ;;  %v664_v40 = vperm.slane %v567_v30, 5  ;;  %v665_v42 = vperm.slane %v567_v30, 6  ;;  %v666_v44 = vperm.slane %v567_v30, 7 }
 0x1b8   :  { %912 = vst [vmem:[#allocation1 + $0x4] ss:$9 sm:$0xff] %v647_v14  ;;  %v411_v10 = vmax.f32 %v359_v63, 0.0  ;;  %v1660_v14 = vadd.f32 %v5634_v39, %v1659_v60 }
 0x1b9   :  { %913 = vst [vmem:[#allocation1 + $0x5] ss:$9 sm:$0xff] %v648_v15  ;;  %v5811_v31 = vpop.xlane.xlu2 %1773  ;;  %v1662_v15 = vadd.f32 %v5634_v39, %v1661_v11 }
 0x1ba   :  { %914 = vst [vmem:[#allocation1 + $0x6] ss:$9 sm:$0xff] %v649_v16  ;;  %v446_v4 = vmul.f32 %v5640_v45, %v411_v10 }
 0x1bb   :  { %915 = vst [vmem:[#allocation1 + $0x7] ss:$9 sm:$0xff] %v650_v17 }
 0x1bd   :  { %v5825_v0 = vpop.xlane.xlu1 %1776 }
 0x1c1   :  { %v478_v43 = vpop.xlane.xlu2 %477  ;;  %v481_v59 = vpop.xlane.xlu0 %480 }
 0x1c2   :  { %v916_v23 = vld [vmem:[#allocation1] sm:$0xff]  ;;  %v568_v47 = vadd.f32 %v5768_v2, %v478_v43  ;;  %v569_v61 = vadd.f32 %v5768_v2, %v481_v59 }
 0x1c3   :  { %917 = vst [vmem:[#allocation1] ss:$9 sm:$0xff] %v651_v7  ;;  %1185 = vperm.xlu2 %5236, %v916_v23   ;;  %v1715_v7 = vmax.f32 %v1660_v14, 0.0  ;;  %v360_v23 = vpop.f32.mrf.mxu1 }
 0x1c4   :  { %918 = vst [vmem:[#allocation1 + $0x1] ss:$9 sm:$0xff] %v652_v20  ;;  %v667_v48 = vperm.slane %v568_v47, 0  ;;  %v668_v50 = vperm.slane %v568_v47, 1  ;;  %v669_v52 = vperm.slane %v568_v47, 2  ;;  %v670_v54 = vperm.slane %v568_v47, 3 }
 0x1c5   :  { %919 = vst [vmem:[#allocation1 + $0x2] ss:$9 sm:$0xff] %v653_v22  ;;  %v671_v55 = vperm.slane %v568_v47, 4  ;;  %v672_v56 = vperm.slane %v568_v47, 5  ;;  %v673_v57 = vperm.slane %v568_v47, 6  ;;  %v674_v58 = vperm.slane %v568_v47, 7 }
 0x1c6   :  { %920 = vst [vmem:[#allocation1 + $0x3] ss:$9 sm:$0xff] %v654_v25  ;;  %v675_v1 = vperm.slane %v569_v61, 0  ;;  %v676_v5 = vperm.slane %v569_v61, 1  ;;  %v677_v6 = vperm.slane %v569_v61, 2  ;;  %v678_v9 = vperm.slane %v569_v61, 3 }
 0x1c7   :  { %921 = vst [vmem:[#allocation1 + $0x4] ss:$9 sm:$0xff] %v655_v26  ;;  %v679_v12 = vperm.slane %v569_v61, 4  ;;  %v680_v13 = vperm.slane %v569_v61, 5  ;;  %v681_v16 = vperm.slane %v569_v61, 6  ;;  %v682_v17 = vperm.slane %v569_v61, 7  ;;  %v1664_v26 = vpop.f32.mrf.mxu3 }
 0x1c8   :  { %922 = vst [vmem:[#allocation1 + $0x5] ss:$9 sm:$0xff] %v656_v27  ;;  %v1716_v20 = vmax.f32 %v1662_v15, 0.0  ;;  %v515_v22 = vsel %vm460_vm1, %v446_v4, 0.0  ;;  %v1747_v27 = vmul.f32 %v5640_v45, %v1715_v7 }
 0x1c9   :  { %923 = vst [vmem:[#allocation1 + $0x6] ss:$9 sm:$0xff] %v657_v28  ;;  %v484_v19 = vpop.xlane.xlu1 %483  ;;  %v5834_v25 = vpop.xlane.xlu2 %1779 }
 0x1ca   :  { %924 = vst [vmem:[#allocation1 + $0x7] ss:$9 sm:$0xff] %v658_v29  ;;  %v570_v24 = vadd.f32 %v5768_v2, %v484_v19  ;;  %v1748_v28 = vmul.f32 %v5640_v45, %v1716_v20  ;;  %v361_v29 = vadd.f32 %v5634_v39, %v360_v23 }
 0x1cb   :  { %v5844_v43 = vpop.f32.mrf.mxu1 }
 0x1cc   :  { %v683_v30 = vperm.slane %v570_v24, 0  ;;  %v685_v38 = vperm.slane %v570_v24, 2  ;;  %v412_v41 = vmax.f32 %v361_v29, 0.0  ;;  %v688_v46 = vperm.slane %v570_v24, 5 }
 0x1cd   :  { %v689_v49 = vperm.slane %v570_v24, 6 }
 0x1d1   :  { %v5813_v34 = vld [vmem:[#allocation1] sm:$0xff] }
 0x1d2   :  { %926 = vst [vmem:[#allocation1] ss:$9 sm:$0xff] %v659_v32  ;;  %v1811_v32 = vsel %vm460_vm1, %v1747_v27, 0.0 }
 0x1d3   :  { %927 = vst [vmem:[#allocation1 + $0x1] ss:$9 sm:$0xff] %v660_v33  ;;  %v1814_v33 = vsel %vm460_vm1, %v1748_v28, 0.0  ;;  %v365_v62 = vpop.f32.mrf.mxu1 }
 0x1d4   :  { %928 = vst [vmem:[#allocation1 + $0x2] ss:$9 sm:$0xff] %v661_v35  ;;  %1809 = vadd.xlane.f32.xlu0 %v1808_v53  ;;  %v5847_v53 = vpop.f32.mrf.mxu3 }
 0x1d5   :  { %929 = vst [vmem:[#allocation1 + $0x3] ss:$9 sm:$0xff] %v662_v36  ;;  %v684_v36 = vperm.slane %v570_v24, 1 }
 0x1d6   :  { %930 = vst [vmem:[#allocation1 + $0x4] ss:$9 sm:$0xff] %v663_v37  ;;  %v1665_v37 = vadd.f32 %v5634_v39, %v1664_v26  ;;  %v447_v39 = vmul.f32 %v5640_v45, %v412_v41  ;;  %v5890_v41 = vpop.xlane.xlu1 %1785 }
 0x1d7   :  { %931 = vst [vmem:[#allocation1 + $0x5] ss:$9 sm:$0xff] %v664_v40  ;;  %v686_v40 = vperm.slane %v570_v24, 3 }
 0x1d8   :  { %932 = vst [vmem:[#allocation1 + $0x6] ss:$9 sm:$0xff] %v665_v42  ;;  %v238_v42 = vpop.f32.mrf.mxu0  ;;  %v1717_v47 = vmax.f32 %v1665_v37, 0.0 }
 0x1d9   :  { %933 = vst [vmem:[#allocation1 + $0x7] ss:$9 sm:$0xff] %v666_v44  ;;  %v687_v44 = vperm.slane %v570_v24, 4 }
 0x1dc   :  { %516 = vadd.xlane.f32.xlu0 %v515_v22 }
 0x1e0   :  { %v5821_v21 = vld [vmem:[#allocation1] sm:$0xff]  ;;  %v240_v61 = vpop.f32.mrf.mxu0 }
 0x1e1   :  { %935 = vst [vmem:[#allocation1] ss:$9 sm:$0xff] %v667_v48  ;;  %1812 = vadd.xlane.f32.xlu1 %v1811_v32  ;;  %v1547_v48 = vpop.f32.mrf.mxu2  ;;  %v5884_v32 = vld [vmem:[%s7757_s5] ss:$0 sm:$0xff] }
 0x1e2   :  { %936 = vst [vmem:[#allocation1 + $0x1] ss:$9 sm:$0xff] %v668_v50  ;;  %v690_v50 = vperm.slane %v570_v24, 7 }
 0x1e3   :  { %937 = vst [vmem:[#allocation1 + $0x2] ss:$9 sm:$0xff] %v669_v52  ;;  %v487_v52 = vpop.xlane.xlu2 %486 }
 0x1e4   :  { %938 = vst [vmem:[#allocation1 + $0x3] ss:$9 sm:$0xff] %v670_v54  ;;  %v1749_v54 = vmul.f32 %v5640_v45, %v1717_v47  ;;  %v5860_v45 = vpop.xlane.xlu0 %1782 }
 0x1e5   :  { %939 = vst [vmem:[#allocation1 + $0x4] ss:$9 sm:$0xff] %v671_v55  ;;  %v518_v55 = vsel %vm460_vm1, %v447_v39, 0.0 }
 0x1e6   :  { %940 = vst [vmem:[#allocation1 + $0x5] ss:$9 sm:$0xff] %v672_v56  ;;  %v2636_v56 = vld [vmem:[%s7752_s0 + $0x200] sm:$0xff]  ;;  %v1817_v59 = vsel %vm460_vm1, %v1749_v54, 0.0 }
 0x1e7   :  { %941 = vst [vmem:[#allocation1 + $0x6] ss:$9 sm:$0xff] %v673_v57  ;;  %v2637_v57 = vld [vmem:[%s7752_s0 + $0x208] sm:$0xff]  ;;  %1818 = vadd.xlane.f32.xlu0 %v1817_v59 }
 0x1e8   :  { %942 = vst [vmem:[#allocation1 + $0x7] ss:$9 sm:$0xff] %v674_v58  ;;  %v571_v58 = vadd.f32 %v5768_v2, %v487_v52  ;;  %v2668_v60 = vpack.c.bf16 %v2637_v57, %v2636_v56 }
 0x1e9   :  { %519 = vadd.xlane.f32.xlu1 %v518_v55  ;;  %v493_v55 = vpop.xlane.xlu1 %492 }
 0x1ea   :  { %5202 = vmatmul.msk.bf16.vlgmr.msrb.gmra.mxu0 %vm115_vm0, %v2668_v60  ;;  %v691_v63 = vperm.slane %v571_v58, 0  ;;  %v693_v14 = vperm.slane %v571_v58, 2  ;;  %v694_v15 = vperm.slane %v571_v58, 3  ;;  %v695_v19 = vperm.slane %v571_v58, 4 }
 0x1eb   :  { %v696_v7 = vperm.slane %v571_v58, 5  ;;  %v697_v24 = vperm.slane %v571_v58, 6  ;;  %v698_v26 = vperm.slane %v571_v58, 7  ;;  %v573_v57 = vadd.f32 %v5768_v2, %v493_v55  ;;  %v5899_v59 = vpop.xlane.xlu2 %1788 }
 0x1ec   :  { %1815 = vadd.xlane.f32.xlu2 %v1814_v33  ;;  %v490_v29 = vpop.xlane.xlu0 %489 }
 0x1ed   :  { %v707_v60 = vperm.slane %v573_v57, 0 }
 0x1ef   :  { %v5827_v3 = vld [vmem:[#allocation1] sm:$0xff] }
 0x1f0   :  { %944 = vst [vmem:[#allocation1] ss:$9 sm:$0xff] %v675_v1  ;;  %v1549_v1 = vpop.f32.mrf.mxu2 }
 0x1f1   :  { %945 = vst [vmem:[#allocation1 + $0x1] ss:$9 sm:$0xff] %v676_v5 }
 0x1f2   :  { %946 = vst [vmem:[#allocation1 + $0x2] ss:$9 sm:$0xff] %v677_v6  ;;  %v692_v6 = vperm.slane %v571_v58, 1 }
 0x1f3   :  { %947 = vst [vmem:[#allocation1 + $0x3] ss:$9 sm:$0xff] %v678_v9  ;;  %v5867_v9 = vld [vmem:[%s7754_s2] ss:$0 sm:$0xff] }
 0x1f4   :  { %948 = vst [vmem:[#allocation1 + $0x4] ss:$9 sm:$0xff] %v679_v12  ;;  %v239_v10 = vadd.f32 %v5867_v9, %v238_v42  ;;  %v241_v11 = vadd.f32 %v5867_v9, %v240_v61  ;;  %v5874_v12 = vld [vmem:[%s7756_s4] ss:$0 sm:$0xff]  ;;  %v1550_v4 = vadd.f32 %v5867_v9, %v1549_v1  ;;  %v711_v1 = vperm.slane %v573_v57, 4 }
 0x1f5   :  { %949 = vst [vmem:[#allocation1 + $0x5] ss:$9 sm:$0xff] %v680_v13  ;;  %v366_v13 = vadd.f32 %v5874_v12, %v365_v62  ;;  %v709_v62 = vperm.slane %v573_v57, 2 }
 0x1f6   :  { %950 = vst [vmem:[#allocation1 + $0x6] ss:$9 sm:$0xff] %v681_v16  ;;  %v1548_v16 = vadd.f32 %v5867_v9, %v1547_v48  ;;  %v279_v20 = vmax.f32 %v239_v10, 0.0  ;;  %v280_v22 = vmax.f32 %v241_v11, 0.0  ;;  %v1589_v28 = vmax.f32 %v1550_v4, 0.0 }
 0x1f7   :  { %951 = vst [vmem:[#allocation1 + $0x7] ss:$9 sm:$0xff] %v682_v17  ;;  %v5878_v17 = vpop.f32.mrf.mxu3  ;;  %v414_v23 = vmax.f32 %v366_v13, 0.0  ;;  %v713_v10 = vperm.slane %v573_v57, 6  ;;  %v714_v11 = vperm.slane %v573_v57, 7  ;;  %v496_v13 = vpop.xlane.xlu2 %495 }
 0x1f8   :  { %v1588_v27 = vmax.f32 %v1548_v16, 0.0 }
 0x1f9   :  { %v449_v33 = vmul.f32 %v5884_v32, %v414_v23 }
 0x1fb   :  { %v524_v37 = vsel %vm460_vm1, %v449_v33, 0.0 }
 0x1fc   :  { %525 = vadd.xlane.f32.xlu0 %v524_v37 }
 0x1fe   :  { %v5841_v35 = vld [vmem:[#allocation1] sm:$0xff] }
 0x1ff   :  { %953 = vst [vmem:[#allocation1] ss:$9 sm:$0xff] %v683_v30  ;;  %v298_v30 = vpack.c.bf16 %v280_v22, %v279_v20 }
 0x200   :  { %954 = vst [vmem:[#allocation1 + $0x1] ss:$9 sm:$0xff] %v684_v36  ;;  %v572_v36 = vadd.f32 %v5768_v2, %v490_v29  ;;  %v5910_v29 = vpop.xlane.xlu1 %1794 }
 0x201   :  { %955 = vst [vmem:[#allocation1 + $0x2] ss:$9 sm:$0xff] %v685_v38  ;;  %377 = vmatmul.bf16.gmra.mxu1 %v298_v30  ;;  %v1607_v38 = vpack.c.bf16 %v1589_v28, %v1588_v27 }
 0x202   :  { %956 = vst [vmem:[#allocation1 + $0x3] ss:$9 sm:$0xff] %v686_v40  ;;  %v1671_v40 = vpop.f32.mrf.mxu3  ;;  %v699_v42 = vperm.slane %v572_v36, 0  ;;  %v701_v48 = vperm.slane %v572_v36, 2  ;;  %1191 = vperm.xlu1 %5238, %v5821_v21   ;;  %v705_v52 = vperm.slane %v572_v36, 6  ;;  %v706_v54 = vperm.slane %v572_v36, 7 }
 0x203   :  { %957 = vst [vmem:[#allocation1 + $0x4] ss:$9 sm:$0xff] %v687_v44  ;;  %1683 = vmatmul.bf16.gmra.mxu3 %v1607_v38  ;;  %v1672_v47 = vadd.f32 %v5874_v12, %v1671_v40  ;;  %v708_v21 = vperm.slane %v573_v57, 1 }
 0x204   :  { %958 = vst [vmem:[#allocation1 + $0x5] ss:$9 sm:$0xff] %v688_v46  ;;  %1188 = vperm.xlu2 %5236, %v5813_v34   ;;  %v700_v46 = vperm.slane %v572_v36, 1  ;;  %v702_v34 = vperm.slane %v572_v36, 3 }
 0x205   :  { %959 = vst [vmem:[#allocation1 + $0x6] ss:$9 sm:$0xff] %v689_v49  ;;  %v703_v49 = vperm.slane %v572_v36, 4  ;;  %v1720_v39 = vmax.f32 %v1672_v47, 0.0 }
 0x206   :  { %960 = vst [vmem:[#allocation1 + $0x7] ss:$9 sm:$0xff] %v690_v50  ;;  %v704_v50 = vperm.slane %v572_v36, 5 }
 0x207   :  { %v1752_v56 = vmul.f32 %v5884_v32, %v1720_v39 }
 0x208   :  { %v502_v47 = vpop.xlane.xlu1 %501 }
 0x209   :  { %v1826_v58 = vsel %vm460_vm1, %v1752_v56, 0.0 }
 0x20a   :  { %1827 = vadd.xlane.f32.xlu0 %v1826_v58 }
 0x20d   :  { %v5862_v5 = vld [vmem:[#allocation1] sm:$0xff] }
 0x20e   :  { %962 = vst [vmem:[#allocation1] ss:$9 sm:$0xff] %v691_v63  ;;  %v710_v63 = vperm.slane %v573_v57, 3 }
 0x20f   :  { %963 = vst [vmem:[#allocation1 + $0x1] ss:$9 sm:$0xff] %v692_v6  ;;  %v712_v6 = vperm.slane %v573_v57, 5 }
 0x210   :  { %964 = vst [vmem:[#allocation1 + $0x2] ss:$9 sm:$0xff] %v693_v14  ;;  %v574_v14 = vadd.f32 %v5768_v2, %v496_v13 }
 0x211   :  { %965 = vst [vmem:[#allocation1 + $0x3] ss:$9 sm:$0xff] %v694_v15  ;;  %v5904_v15 = vpop.xlane.xlu0 %1791 }
 0x212   :  { %966 = vst [vmem:[#allocation1 + $0x4] ss:$9 sm:$0xff] %v695_v19  ;;  %v715_v16 = vperm.slane %v574_v14, 0  ;;  %v716_v19 = vperm.slane %v574_v14, 1  ;;  %v718_v20 = vperm.slane %v574_v14, 3  ;;  %v719_v22 = vperm.slane %v574_v14, 4 }
 0x213   :  { %967 = vst [vmem:[#allocation1 + $0x5] ss:$9 sm:$0xff] %v696_v7  ;;  %v717_v7 = vperm.slane %v574_v14, 2  ;;  %v720_v23 = vperm.slane %v574_v14, 5 }
 0x214   :  { %968 = vst [vmem:[#allocation1 + $0x6] ss:$9 sm:$0xff] %v697_v24  ;;  %v721_v24 = vperm.slane %v574_v14, 6 }
 0x215   :  { %969 = vst [vmem:[#allocation1 + $0x7] ss:$9 sm:$0xff] %v698_v26  ;;  %v722_v26 = vperm.slane %v574_v14, 7 }
 0x219   :  { %v499_v27 = vpop.xlane.xlu0 %498 }
 0x21a   :  { %v575_v28 = vadd.f32 %v5768_v2, %v499_v27 }
 0x21c   :  { %v5892_v44 = vld [vmem:[#allocation1] sm:$0xff]  ;;  %v723_v30 = vperm.slane %v575_v28, 0  ;;  %v725_v36 = vperm.slane %v575_v28, 2  ;;  %v726_v37 = vperm.slane %v575_v28, 3  ;;  %v727_v38 = vperm.slane %v575_v28, 4 }
 0x21d   :  { %971 = vst [vmem:[#allocation1] ss:$9 sm:$0xff] %v699_v42  ;;  %v728_v40 = vperm.slane %v575_v28, 5  ;;  %v729_v42 = vperm.slane %v575_v28, 6 }
 0x21e   :  { %972 = vst [vmem:[#allocation1 + $0x1] ss:$9 sm:$0xff] %v700_v46  ;;  %1200 = vperm.xlu0 %5237, %v5862_v5   ;;  %v724_v5 = vperm.slane %v575_v28, 1  ;;  %v730_v46 = vperm.slane %v575_v28, 7 }
 0x21f   :  { %973 = vst [vmem:[#allocation1 + $0x2] ss:$9 sm:$0xff] %v701_v48  ;;  %v576_v48 = vadd.f32 %v5768_v2, %v502_v47 }
 0x220   :  { %974 = vst [vmem:[#allocation1 + $0x3] ss:$9 sm:$0xff] %v702_v34  ;;  %v5915_v34 = vpop.xlane.xlu2 %1797 }
 0x221   :  { %975 = vst [vmem:[#allocation1 + $0x4] ss:$9 sm:$0xff] %v703_v49  ;;  %v731_v49 = vperm.slane %v576_v48, 0  ;;  %v732_v39 = vperm.slane %v576_v48, 1  ;;  %v735_v55 = vperm.slane %v576_v48, 4  ;;  %v736_v56 = vperm.slane %v576_v48, 5 }
 0x222   :  { %976 = vst [vmem:[#allocation1 + $0x5] ss:$9 sm:$0xff] %v704_v50  ;;  %v737_v57 = vperm.slane %v576_v48, 6  ;;  %v738_v58 = vperm.slane %v576_v48, 7 }
 0x223   :  { %977 = vst [vmem:[#allocation1 + $0x6] ss:$9 sm:$0xff] %v705_v52  ;;  %v733_v52 = vperm.slane %v576_v48, 2 }
 0x224   :  { %978 = vst [vmem:[#allocation1 + $0x7] ss:$9 sm:$0xff] %v706_v54  ;;  %v734_v54 = vperm.slane %v576_v48, 3 }
 0x22b   :  { %v5901_v61 = vld [vmem:[#allocation1] sm:$0xff] }
 0x22c   :  { %980 = vst [vmem:[#allocation1] ss:$9 sm:$0xff] %v707_v60  ;;  %v505_v60 = vpop.xlane.xlu2 %504 }
 0x22d   :  { %981 = vst [vmem:[#allocation1 + $0x1] ss:$9 sm:$0xff] %v708_v21  ;;  %v577_v21 = vadd.f32 %v5768_v2, %v505_v60 }
 0x22e   :  { %982 = vst [vmem:[#allocation1 + $0x2] ss:$9 sm:$0xff] %v709_v62  ;;  %v5920_v62 = vpop.xlane.xlu0 %1800 }
 0x22f   :  { %983 = vst [vmem:[#allocation1 + $0x3] ss:$9 sm:$0xff] %v710_v63  ;;  %v739_v63 = vperm.slane %v577_v21, 0  ;;  %v741_v13 = vperm.slane %v577_v21, 2  ;;  %v742_v14 = vperm.slane %v577_v21, 3 }
 0x230   :  { %984 = vst [vmem:[#allocation1 + $0x4] ss:$9 sm:$0xff] %v711_v1  ;;  %v364_v1 = vadd.f32 %v5874_v12, %v5844_v43 }
 0x231   :  { %985 = vst [vmem:[#allocation1 + $0x5] ss:$9 sm:$0xff] %v712_v6  ;;  %v1667_v6 = vadd.f32 %v5874_v12, %v5847_v53  ;;  %v2638_v53 = vld [vmem:[%s7752_s0 + $0x210] sm:$0xff] }
 0x232   :  { %986 = vst [vmem:[#allocation1 + $0x6] ss:$9 sm:$0xff] %v713_v10 }
 0x233   :  { %987 = vst [vmem:[#allocation1 + $0x7] ss:$9 sm:$0xff] %v714_v11  ;;  %v740_v11 = vperm.slane %v577_v21, 1 }
 0x236   :  { %v508_v43 = vpop.xlane.xlu0 %507 }
 0x23a   :  { %v5906_v4 = vld [vmem:[#allocation1] sm:$0xff] }
 0x23b   :  { %989 = vst [vmem:[#allocation1] ss:$9 sm:$0xff] %v715_v16  ;;  %v743_v16 = vperm.slane %v577_v21, 4 }
 0x23c   :  { %990 = vst [vmem:[#allocation1 + $0x1] ss:$9 sm:$0xff] %v716_v19  ;;  %v413_v19 = vmax.f32 %v364_v1, 0.0 }
 0x23d   :  { %991 = vst [vmem:[#allocation1 + $0x2] ss:$9 sm:$0xff] %v717_v7  ;;  %v1718_v7 = vmax.f32 %v1667_v6, 0.0 }
 0x23e   :  { %992 = vst [vmem:[#allocation1 + $0x3] ss:$9 sm:$0xff] %v718_v20  ;;  %v744_v20 = vperm.slane %v577_v21, 5  ;;  %v448_v27 = vmul.f32 %v5884_v32, %v413_v19 }
 0x23f   :  { %993 = vst [vmem:[#allocation1 + $0x4] ss:$9 sm:$0xff] %v719_v22  ;;  %v745_v22 = vperm.slane %v577_v21, 6  ;;  %v1750_v28 = vmul.f32 %v5884_v32, %v1718_v7 }
 0x240   :  { %994 = vst [vmem:[#allocation1 + $0x5] ss:$9 sm:$0xff] %v720_v23  ;;  %v746_v23 = vperm.slane %v577_v21, 7 }
 0x241   :  { %995 = vst [vmem:[#allocation1 + $0x6] ss:$9 sm:$0xff] %v721_v24  ;;  %v2639_v24 = vld [vmem:[%s7752_s0 + $0x218] sm:$0xff] }
 0x242   :  { %996 = vst [vmem:[#allocation1 + $0x7] ss:$9 sm:$0xff] %v722_v26  ;;  %v2669_v26 = vpack.c.bf16 %v2639_v24, %v2638_v53  ;;  %v2641_v53 = vld [vmem:[%s7752_s0 + $0x228] sm:$0xff] }
 0x244   :  { %5203 = vmatmul.msk.bf16.gmra.mxu0 %vm115_vm0, %v2669_v26 }
 0x249   :  { %v5912_v33 = vld [vmem:[#allocation1] sm:$0xff] }
 0x24a   :  { %998 = vst [vmem:[#allocation1] ss:$9 sm:$0xff] %v723_v30  ;;  %v243_v30 = vpop.f32.mrf.mxu0 }
 0x24b   :  { %999 = vst [vmem:[#allocation1 + $0x1] ss:$9 sm:$0xff] %v724_v5  ;;  %v368_v5 = vpop.f32.mrf.mxu1 }
 0x24c   :  { %1000 = vst [vmem:[#allocation1 + $0x2] ss:$9 sm:$0xff] %v725_v36  ;;  %v578_v36 = vadd.f32 %v5768_v2, %v508_v43  ;;  %v369_v6 = vadd.f32 %v5874_v12, %v368_v5  ;;  %v2640_v43 = vld [vmem:[%s7752_s0 + $0x220] sm:$0xff] }
 0x24d   :  { %1001 = vst [vmem:[#allocation1 + $0x3] ss:$9 sm:$0xff] %v726_v37  ;;  %v521_v37 = vsel %vm460_vm1, %v448_v27, 0.0  ;;  %v2670_v5 = vpack.c.bf16 %v2641_v53, %v2640_v43 }
 0x24e   :  { %1002 = vst [vmem:[#allocation1 + $0x4] ss:$9 sm:$0xff] %v727_v38  ;;  %v1820_v38 = vsel %vm460_vm1, %v1750_v28, 0.0  ;;  %522 = vadd.xlane.f32.xlu2 %v521_v37  ;;  %v748_v48 = vperm.slane %v578_v36, 1  ;;  %v752_v60 = vperm.slane %v578_v36, 5  ;;  %v753_v21 = vperm.slane %v578_v36, 6 }
 0x24f   :  { %1003 = vst [vmem:[#allocation1 + $0x5] ss:$9 sm:$0xff] %v728_v40  ;;  %v1552_v40 = vpop.f32.mrf.mxu2  ;;  %1821 = vadd.xlane.f32.xlu1 %v1820_v38  ;;  %v415_v7 = vmax.f32 %v369_v6, 0.0 }
 0x250   :  { %1004 = vst [vmem:[#allocation1 + $0x6] ss:$9 sm:$0xff] %v729_v42  ;;  %v5940_v42 = vpop.xlane.xlu1 %1803 }
 0x251   :  { %1005 = vst [vmem:[#allocation1 + $0x7] ss:$9 sm:$0xff] %v730_v46  ;;  %v747_v46 = vperm.slane %v578_v36, 0  ;;  %v450_v24 = vmul.f32 %v5884_v32, %v415_v7 }
 0x254   :  { %5204 = vmatmul.msk.bf16.gmra.mxu0 %vm115_vm0, %v2670_v5 }
 0x258   :  { %v5917_v50 = vld [vmem:[#allocation1] sm:$0xff]  ;;  %v511_v19 = vpop.xlane.xlu1 %510 }
 0x259   :  { %1007 = vst [vmem:[#allocation1] ss:$9 sm:$0xff] %v731_v49  ;;  %v749_v49 = vperm.slane %v578_v36, 2  ;;  %v579_v26 = vadd.f32 %v5768_v2, %v511_v19 }
 0x25a   :  { %1008 = vst [vmem:[#allocation1 + $0x1] ss:$9 sm:$0xff] %v732_v39  ;;  %v750_v39 = vperm.slane %v578_v36, 3 }
 0x25b   :  { %1009 = vst [vmem:[#allocation1 + $0x2] ss:$9 sm:$0xff] %v733_v52  ;;  %v245_v52 = vpop.f32.mrf.mxu0  ;;  %v759_v6 = vperm.slane %v579_v26, 4  ;;  %v761_v7 = vperm.slane %v579_v26, 6 }
 0x25c   :  { %1010 = vst [vmem:[#allocation1 + $0x3] ss:$9 sm:$0xff] %v734_v54  ;;  %v5944_v54 = vpop.f32.mrf.mxu1 }
 0x25d   :  { %1011 = vst [vmem:[#allocation1 + $0x4] ss:$9 sm:$0xff] %v735_v55  ;;  %v751_v55 = vperm.slane %v578_v36, 4 }
 0x25e   :  { %1012 = vst [vmem:[#allocation1 + $0x5] ss:$9 sm:$0xff] %v736_v56  ;;  %v244_v56 = vadd.f32 %v5867_v9, %v243_v30 }
 0x25f   :  { %1013 = vst [vmem:[#allocation1 + $0x6] ss:$9 sm:$0xff] %v737_v57  ;;  %v246_v57 = vadd.f32 %v5867_v9, %v245_v52  ;;  %v756_v52 = vperm.slane %v579_v26, 1 }
 0x260   :  { %1014 = vst [vmem:[#allocation1 + $0x7] ss:$9 sm:$0xff] %v738_v58  ;;  %v5948_v58 = vpop.f32.mrf.mxu3  ;;  %v281_v1 = vmax.f32 %v244_v56, 0.0 }
 0x263   :  { %v248_v27 = vpop.f32.mrf.mxu0 }
 0x264   :  { %v373_v28 = vpop.f32.mrf.mxu1 }
 0x266   :  { %1194 = vperm.xlu2 %5236, %v5827_v3  }
 0x267   :  { %v5926_v10 = vld [vmem:[#allocation1] sm:$0xff] }
 0x268   :  { %1016 = vst [vmem:[#allocation1] ss:$9 sm:$0xff] %v739_v63  ;;  %v1554_v63 = vpop.f32.mrf.mxu2  ;;  %v5962_v37 = vpop.f32.mrf.mxu3 }
 0x269   :  { %1017 = vst [vmem:[#allocation1 + $0x1] ss:$9 sm:$0xff] %v740_v11  ;;  %v1553_v11 = vadd.f32 %v5867_v9, %v1552_v40  ;;  %v527_v40 = vsel %vm460_vm1, %v450_v24, 0.0 }
 0x26a   :  { %1018 = vst [vmem:[#allocation1 + $0x2] ss:$9 sm:$0xff] %v741_v13  ;;  %v282_v13 = vmax.f32 %v246_v57, 0.0  ;;  %528 = vadd.xlane.f32.xlu1 %v527_v40  ;;  %v757_v57 = vperm.slane %v579_v26, 2 }
 0x26b   :  { %1019 = vst [vmem:[#allocation1 + $0x3] ss:$9 sm:$0xff] %v742_v14  ;;  %v754_v14 = vperm.slane %v578_v36, 7  ;;  %v374_v36 = vadd.f32 %v5874_v12, %v373_v28 }
 0x26c   :  { %1020 = vst [vmem:[#allocation1 + $0x4] ss:$9 sm:$0xff] %v743_v16  ;;  %v1555_v16 = vadd.f32 %v5867_v9, %v1554_v63 }
 0x26d   :  { %1021 = vst [vmem:[#allocation1 + $0x5] ss:$9 sm:$0xff] %v744_v20  ;;  %v1590_v20 = vmax.f32 %v1553_v11, 0.0  ;;  %v250_v11 = vpop.f32.mrf.mxu0 }
 0x26e   :  { %1022 = vst [vmem:[#allocation1 + $0x6] ss:$9 sm:$0xff] %v745_v22  ;;  %v299_v22 = vpack.c.bf16 %v282_v13, %v281_v1  ;;  %v760_v13 = vperm.slane %v579_v26, 5 }
 0x26f   :  { %1023 = vst [vmem:[#allocation1 + $0x7] ss:$9 sm:$0xff] %v746_v23  ;;  %v1591_v23 = vmax.f32 %v1555_v16, 0.0  ;;  %v251_v16 = vadd.f32 %v5867_v9, %v250_v11 }
 0x270   :  { %382 = vmatmul.bf16.gmra.mxu1 %v299_v22  ;;  %v1557_v38 = vpop.f32.mrf.mxu2  ;;  %v1679_v19 = vpop.f32.mrf.mxu3 }
 0x271   :  { %v1608_v30 = vpack.c.bf16 %v1591_v23, %v1590_v20  ;;  %v1558_v63 = vadd.f32 %v5867_v9, %v1557_v38  ;;  %v1680_v20 = vadd.f32 %v5874_v12, %v1679_v19  ;;  %v762_v23 = vperm.slane %v579_v26, 7 }
 0x272   :  { %v284_v53 = vmax.f32 %v251_v16, 0.0 }
 0x273   :  { %1688 = vmatmul.bf16.gmra.mxu3 %v1608_v30  ;;  %v1592_v43 = vmax.f32 %v1558_v63, 0.0  ;;  %v1723_v28 = vmax.f32 %v1680_v20, 0.0  ;;  %v2643_v20 = vld [vmem:[%s7752_s0 + $0x238] sm:$0xff] }
 0x276   :  { %v5942_v47 = vld [vmem:[#allocation1] sm:$0xff] }
 0x277   :  { %1025 = vst [vmem:[#allocation1] ss:$9 sm:$0xff] %v747_v46  ;;  %v417_v46 = vmax.f32 %v374_v36, 0.0  ;;  %v1755_v36 = vmul.f32 %v5884_v32, %v1723_v28  ;;  %v1670_v28 = vadd.f32 %v5874_v12, %v5878_v17  ;;  %v371_v17 = vadd.f32 %v5874_v12, %v5944_v54 }
 0x278   :  { %1026 = vst [vmem:[#allocation1 + $0x1] ss:$9 sm:$0xff] %v748_v48  ;;  %v5966_v48 = vpop.xlane.xlu2 %1806  ;;  %v1559_v22 = vpop.f32.mrf.mxu2 }
 0x279   :  { %1027 = vst [vmem:[#allocation1 + $0x2] ss:$9 sm:$0xff] %v749_v49  ;;  %v755_v49 = vperm.slane %v579_v26, 0  ;;  %v452_v56 = vmul.f32 %v5884_v32, %v417_v46  ;;  %v1560_v24 = vadd.f32 %v5867_v9, %v1559_v22  ;;  %v1835_v3 = vsel %vm460_vm1, %v1755_v36, 0.0 }
 0x27a   :  { %1028 = vst [vmem:[#allocation1 + $0x3] ss:$9 sm:$0xff] %v750_v39 }
 0x27b   :  { %1029 = vst [vmem:[#allocation1 + $0x4] ss:$9 sm:$0xff] %v751_v55  ;;  %v249_v55 = vadd.f32 %v5867_v9, %v248_v27  ;;  %v533_v1 = vsel %vm460_vm1, %v452_v56, 0.0  ;;  %v1593_v30 = vmax.f32 %v1560_v24, 0.0 }
 0x27c   :  { %1030 = vst [vmem:[#allocation1 + $0x5] ss:$9 sm:$0xff] %v752_v60  ;;  %v758_v60 = vperm.slane %v579_v26, 3  ;;  %534 = vadd.xlane.f32.xlu0 %v533_v1 }
 0x27d   :  { %1031 = vst [vmem:[#allocation1 + $0x6] ss:$9 sm:$0xff] %v753_v21  ;;  %v5972_v21 = vpop.permute.xlu0 %1179  ;;  %v1609_v40 = vpack.c.bf16 %v1593_v30, %v1592_v43  ;;  %v2741_v43 = vpop.f32.mrf.mxu0 }
 0x27e   :  { %1032 = vst [vmem:[#allocation1 + $0x7] ss:$9 sm:$0xff] %v754_v14  ;;  %v283_v14 = vmax.f32 %v249_v55, 0.0 }
 0x27f   :  { %7780 = vst [vmem:[#allocation6_spill] sm:$0xff] %v5972_v21 }
 0x280   :  { %v514_v27 = vpop.xlane.xlu2 %513  ;;  %v300_v5 = vpack.c.bf16 %v284_v53, %v283_v14 }
 0x281   :  { %v580_v38 = vadd.f32 %v5768_v2, %v514_v27 }
 0x282   :  { %387 = vmatmul.bf16.gmra.mxu1 %v300_v5 }
 0x283   :  { %1693 = vmatmul.bf16.gmra.mxu3 %v1609_v40  ;;  %v763_v26 = vperm.slane %v580_v38, 0  ;;  %v765_v55 = vperm.slane %v580_v38, 2  ;;  %v766_v56 = vperm.slane %v580_v38, 3  ;;  %v768_v63 = vperm.slane %v580_v38, 5  ;;  %1197 = vperm.xlu1 %5238, %v5841_v35   ;;  %v375_v40 = vpop.f32.mrf.mxu1 }
 0x284   :  { %1836 = vadd.xlane.f32.xlu0 %v1835_v3  ;;  %v769_v1 = vperm.slane %v580_v38, 6  ;;  %v770_v11 = vperm.slane %v580_v38, 7  ;;  %v1719_v3 = vmax.f32 %v1670_v28, 0.0 }
 0x285   :  { %v5968_v39 = vld [vmem:[#allocation1] sm:$0xff]  ;;  %v5982_v46 = vpop.xlane.xlu0 %1809 }
 0x286   :  { %1034 = vst [vmem:[#allocation1] ss:$9 sm:$0xff] %v755_v49 }
 0x287   :  { %1035 = vst [vmem:[#allocation1 + $0x1] ss:$9 sm:$0xff] %v756_v52  ;;  %v764_v52 = vperm.slane %v580_v38, 1 }
 0x288   :  { %1036 = vst [vmem:[#allocation1 + $0x2] ss:$9 sm:$0xff] %v757_v57  ;;  %v5987_v57 = vpop.permute.xlu1 %1182 }
 0x289   :  { %1037 = vst [vmem:[#allocation1 + $0x3] ss:$9 sm:$0xff] %v758_v60  ;;  %v767_v60 = vperm.slane %v580_v38, 4  ;;  %v2742_v38 = vadd.f32 %v5867_v9, %v2741_v43 }
 0x28a   :  { %1038 = vst [vmem:[#allocation1 + $0x4] ss:$9 sm:$0xff] %v759_v6 }
 0x28b   :  { %1039 = vst [vmem:[#allocation1 + $0x5] ss:$9 sm:$0xff] %v760_v13 }
 0x28c   :  { %1040 = vst [vmem:[#allocation1 + $0x6] ss:$9 sm:$0xff] %v761_v7  ;;  %v2642_v7 = vld [vmem:[%s7752_s0 + $0x230] sm:$0xff] }
 0x28d   :  { %1041 = vst [vmem:[#allocation1 + $0x7] ss:$9 sm:$0xff] %v762_v23  ;;  %v517_v6 = vpop.xlane.xlu0 %516  ;;  %v2671_v23 = vpack.c.bf16 %v2643_v20, %v2642_v7 }
 0x28e   :  { %v581_v13 = vadd.f32 %v5768_v2, %v517_v6 }
 0x28f   :  { %5205 = vmatmul.msk.bf16.gmra.mxu0 %vm115_vm0, %v2671_v23  ;;  %v6016_v23 = vpop.f32.mrf.mxu1 }
 0x290   :  { %v5991_v14 = vpop.xlane.xlu1 %1812  ;;  %v771_v16 = vperm.slane %v581_v13, 0  ;;  %v772_v19 = vperm.slane %v581_v13, 1  ;;  %v773_v22 = vperm.slane %v581_v13, 2  ;;  %v774_v35 = vperm.slane %v581_v13, 3 }
 0x291   :  { %v775_v24 = vperm.slane %v581_v13, 4  ;;  %v776_v27 = vperm.slane %v581_v13, 5  ;;  %v777_v30 = vperm.slane %v581_v13, 6  ;;  %v778_v5 = vperm.slane %v581_v13, 7  ;;  %v6011_v13 = vpop.f32.mrf.mxu3 }
 0x294   :  { %v5985_v49 = vld [vmem:[#allocation1] sm:$0xff] }
 0x295   :  { %1043 = vst [vmem:[#allocation1] ss:$9 sm:$0xff] %v763_v26  ;;  %v2743_v26 = vpop.f32.mrf.mxu0 }
 0x296   :  { %1044 = vst [vmem:[#allocation1 + $0x1] ss:$9 sm:$0xff] %v764_v52  ;;  %v2744_v52 = vadd.f32 %v5867_v9, %v2743_v26 }
 0x297   :  { %1045 = vst [vmem:[#allocation1 + $0x2] ss:$9 sm:$0xff] %v765_v55  ;;  %v2821_v55 = vmax.f32 %v2742_v38, 0.0 }
 0x298   :  { %1046 = vst [vmem:[#allocation1 + $0x3] ss:$9 sm:$0xff] %v766_v56  ;;  %1209 = vperm.xlu0 %5237, %v5906_v4   ;;  %v520_v36 = vpop.xlane.xlu1 %519  ;;  %v1751_v56 = vmul.f32 %v5884_v32, %v1719_v3  ;;  %v376_v3 = vadd.f32 %v5874_v12, %v375_v40  ;;  %v2644_v40 = vld [vmem:[%s7752_s0 + $0x240] sm:$0xff] }
 0x299   :  { %1047 = vst [vmem:[#allocation1 + $0x4] ss:$9 sm:$0xff] %v767_v60  ;;  %v582_v4 = vadd.f32 %v5768_v2, %v520_v36  ;;  %v2822_v60 = vmax.f32 %v2744_v52, 0.0  ;;  %v380_v36 = vpop.f32.mrf.mxu1 }
 0x29a   :  { %1048 = vst [vmem:[#allocation1 + $0x5] ss:$9 sm:$0xff] %v768_v63  ;;  %v1823_v20 = vsel %vm460_vm1, %v1751_v56, 0.0  ;;  %v381_v38 = vadd.f32 %v5874_v12, %v380_v36  ;;  %v418_v52 = vmax.f32 %v376_v3, 0.0 }
 0x29b   :  { %1049 = vst [vmem:[#allocation1 + $0x6] ss:$9 sm:$0xff] %v769_v1  ;;  %v779_v63 = vperm.slane %v582_v4, 0  ;;  %v780_v1 = vperm.slane %v582_v4, 1  ;;  %v2853_v6 = vpack.c.bf16 %v2822_v60, %v2821_v55  ;;  %v782_v7 = vperm.slane %v582_v4, 3  ;;  %1824 = vadd.xlane.f32.xlu2 %v1823_v20 }
 0x29c   :  { %1050 = vst [vmem:[#allocation1 + $0x7] ss:$9 sm:$0xff] %v770_v11  ;;  %v781_v11 = vperm.slane %v582_v4, 2  ;;  %v784_v54 = vperm.slane %v582_v4, 5  ;;  %v785_v43 = vperm.slane %v582_v4, 6  ;;  %v453_v60 = vmul.f32 %v5884_v32, %v418_v52 }
 0x29d   :  { %2877 = vmatmul.bf16.vlgmr.msrb.gmra.mxu2 %v2853_v6 }
 0x2a3   :  { %v5999_v53 = vld [vmem:[#allocation1] sm:$0xff] }
 0x2a4   :  { %1052 = vst [vmem:[#allocation1] ss:$9 sm:$0xff] %v771_v16  ;;  %v416_v16 = vmax.f32 %v371_v17, 0.0 }
 0x2a5   :  { %1053 = vst [vmem:[#allocation1 + $0x1] ss:$9 sm:$0xff] %v772_v19 }
 0x2a6   :  { %1054 = vst [vmem:[#allocation1 + $0x2] ss:$9 sm:$0xff] %v773_v22  ;;  %v783_v22 = vperm.slane %v582_v4, 4 }
 0x2a7   :  { %1055 = vst [vmem:[#allocation1 + $0x3] ss:$9 sm:$0xff] %v774_v35  ;;  %v786_v35 = vperm.slane %v582_v4, 7  ;;  %v420_v4 = vmax.f32 %v381_v38, 0.0 }
 0x2a8   :  { %1056 = vst [vmem:[#allocation1 + $0x4] ss:$9 sm:$0xff] %v775_v24  ;;  %v451_v24 = vmul.f32 %v5884_v32, %v416_v16 }
 0x2a9   :  { %1057 = vst [vmem:[#allocation1 + $0x5] ss:$9 sm:$0xff] %v776_v27  ;;  %v1675_v27 = vadd.f32 %v5874_v12, %v5948_v58  ;;  %v455_v56 = vmul.f32 %v5884_v32, %v420_v4 }
 0x2aa   :  { %1058 = vst [vmem:[#allocation1 + $0x6] ss:$9 sm:$0xff] %v777_v30  ;;  %v530_v28 = vsel %vm460_vm1, %v451_v24, 0.0  ;;  %v6022_v30 = vpop.f32.mrf.mxu3 }
 0x2ab   :  { %1059 = vst [vmem:[#allocation1 + $0x7] ss:$9 sm:$0xff] %v778_v5  ;;  %531 = vadd.xlane.f32.xlu2 %v530_v28  ;;  %v1721_v5 = vmax.f32 %v1675_v27, 0.0  ;;  %v2646_v28 = vld [vmem:[%s7752_s0 + $0x250] sm:$0xff] }
 0x2ad   :  { %v1753_v26 = vmul.f32 %v5884_v32, %v1721_v5 }
 0x2af   :  { %v1829_v55 = vsel %vm460_vm1, %v1753_v26, 0.0 }
 0x2b0   :  { %1830 = vadd.xlane.f32.xlu1 %v1829_v55 }
 0x2b2   :  { %v6013_v19 = vld [vmem:[#allocation1] sm:$0xff]  ;;  %v1686_v58 = vpop.f32.mrf.mxu3 }
 0x2b3   :  { %1061 = vst [vmem:[#allocation1] ss:$9 sm:$0xff] %v779_v63  ;;  %v1687_v17 = vadd.f32 %v5874_v12, %v1686_v58  ;;  %v6031_v63 = vpop.permute.xlu2 %1185  ;;  %v6063_v58 = vpop.permute.xlu1 %1191 }
 0x2b4   :  { %1062 = vst [vmem:[#allocation1 + $0x1] ss:$9 sm:$0xff] %v780_v1  ;;  %v2645_v1 = vld [vmem:[%s7752_s0 + $0x248] sm:$0xff] }
 0x2b5   :  { %1063 = vst [vmem:[#allocation1 + $0x2] ss:$9 sm:$0xff] %v781_v11  ;;  %v1726_v6 = vmax.f32 %v1687_v17, 0.0  ;;  %v542_v11 = vsel %vm460_vm1, %v455_v56, 0.0  ;;  %v2672_v16 = vpack.c.bf16 %v2645_v1, %v2644_v40 }
 0x2b6   :  { %1064 = vst [vmem:[#allocation1 + $0x3] ss:$9 sm:$0xff] %v782_v7  ;;  %v536_v7 = vsel %vm460_vm1, %v453_v60, 0.0  ;;  %v1677_v60 = vadd.f32 %v5874_v12, %v5962_v37 }
 0x2b7   :  { %1065 = vst [vmem:[#allocation1 + $0x4] ss:$9 sm:$0xff] %v783_v22  ;;  %5206 = vmatmul.msk.bf16.gmra.mxu0 %vm115_vm0, %v2672_v16  ;;  %v1758_v20 = vmul.f32 %v5884_v32, %v1726_v6 }
 0x2b8   :  { %1066 = vst [vmem:[#allocation1 + $0x5] ss:$9 sm:$0xff] %v784_v54  ;;  %537 = vadd.xlane.f32.xlu1 %v536_v7  ;;  %v1722_v1 = vmax.f32 %v1677_v60, 0.0 }
 0x2b9   :  { %1067 = vst [vmem:[#allocation1 + $0x6] ss:$9 sm:$0xff] %v785_v43  ;;  %v1844_v54 = vsel %vm460_vm1, %v1758_v20, 0.0  ;;  %v379_v20 = vadd.f32 %v5874_v12, %v6016_v23 }
 0x2ba   :  { %1068 = vst [vmem:[#allocation1 + $0x7] ss:$9 sm:$0xff] %v786_v35  ;;  %v6049_v35 = vpop.xlane.xlu0 %1818  ;;  %v1754_v37 = vmul.f32 %v5884_v32, %v1722_v1 }
 0x2bb   :  { %7781 = vst [vmem:[#allocation7_spill] sm:$0xff] %v6031_v63  ;;  %v6043_v22 = vpop.xlane.xlu2 %1815 }
 0x2bc   :  { %7783 = vst [vmem:[#allocation9_spill] sm:$0xff] %v6063_v58 }
 0x2c1   :  { %v6059_v3 = vld [vmem:[#allocation1] sm:$0xff]  ;;  %v2746_v56 = vpop.f32.mrf.mxu0 }
 0x2c2   :  { %543 = vadd.xlane.f32.xlu0 %v542_v11  ;;  %v526_v40 = vpop.xlane.xlu0 %525  ;;  %v2747_v6 = vadd.f32 %v5867_v9, %v2746_v56  ;;  %v6069_v11 = vpop.xlane.xlu1 %1821 }
 0x2c3   :  { %1203 = vperm.xlu2 %5236, %v5892_v44   ;;  %v6047_v43 = vpop.permute.xlu2 %1188  ;;  %v2647_v44 = vld [vmem:[%s7752_s0 + $0x258] sm:$0xff] }
 0x2c4   :  { %7782 = vst [vmem:[#allocation8_spill] sm:$0xff] %v6047_v43  ;;  %v2673_v52 = vpack.c.bf16 %v2647_v44, %v2646_v28 }
 0x2c7   :  { %5207 = vmatmul.msk.bf16.gmra.mxu0 %vm115_vm0, %v2673_v52  ;;  %v1832_v52 = vsel %vm460_vm1, %v1754_v37, 0.0 }
 0x2c9   :  { %v2748_v7 = vpop.f32.mrf.mxu0 }
 0x2ca   :  { %1845 = vadd.xlane.f32.xlu0 %v1844_v54  ;;  %v2823_v54 = vmax.f32 %v2747_v6, 0.0 }
 0x2cb   :  { %v523_v24 = vpop.xlane.xlu2 %522 }
 0x2cc   :  { %v583_v27 = vadd.f32 %v5768_v2, %v523_v24  ;;  %v2749_v24 = vadd.f32 %v5867_v9, %v2748_v7 }
 0x2ce   :  { %v787_v5 = vperm.slane %v583_v27, 0  ;;  %v788_v36 = vperm.slane %v583_v27, 1  ;;  %v789_v38 = vperm.slane %v583_v27, 2  ;;  %v790_v26 = vperm.slane %v583_v27, 3 }
 0x2cf   :  { %v791_v4 = vperm.slane %v583_v27, 4  ;;  %v793_v55 = vperm.slane %v583_v27, 6  ;;  %v794_v17 = vperm.slane %v583_v27, 7 }
 0x2d0   :  { %1070 = vst [vmem:[#allocation1] ss:$9 sm:$0xff] %v787_v5  ;;  %v2824_v5 = vmax.f32 %v2749_v24, 0.0 }
 0x2d1   :  { %1206 = vperm.xlu1 %5238, %v5901_v61   ;;  %v792_v61 = vperm.slane %v583_v27, 5  ;;  %1071 = vst [vmem:[#allocation1 + $0x1] ss:$9 sm:$0xff] %v788_v36  ;;  %v2751_v60 = vpop.f32.mrf.mxu0 }
 0x2d2   :  { %1072 = vst [vmem:[#allocation1 + $0x2] ss:$9 sm:$0xff] %v789_v38 }
 0x2d3   :  { %1073 = vst [vmem:[#allocation1 + $0x3] ss:$9 sm:$0xff] %v790_v26  ;;  %v419_v26 = vmax.f32 %v379_v20, 0.0  ;;  %v2752_v20 = vadd.f32 %v5867_v9, %v2751_v60 }
 0x2d4   :  { %1074 = vst [vmem:[#allocation1 + $0x4] ss:$9 sm:$0xff] %v791_v4  ;;  %v2854_v4 = vpack.c.bf16 %v2824_v5, %v2823_v54 }
 0x2d5   :  { %1075 = vst [vmem:[#allocation1 + $0x5] ss:$9 sm:$0xff] %v792_v61 }
 0x2d6   :  { %1076 = vst [vmem:[#allocation1 + $0x6] ss:$9 sm:$0xff] %v793_v55  ;;  %2882 = vmatmul.bf16.gmra.mxu2 %v2854_v4 }
 0x2d7   :  { %1077 = vst [vmem:[#allocation1 + $0x7] ss:$9 sm:$0xff] %v794_v17 }
 0x2dd   :  { %v529_v56 = vpop.xlane.xlu1 %528 }
 0x2de   :  { %1218 = vperm.xlu0 %5237, %v5926_v10   ;;  %v584_v10 = vadd.f32 %v5768_v2, %v526_v40  ;;  %v6075_v28 = vld [vmem:[#allocation1] sm:$0xff]  ;;  %v454_v40 = vmul.f32 %v5884_v32, %v419_v26  ;;  %v585_v1 = vadd.f32 %v5768_v2, %v529_v56 }
 0x2e0   :  { %v795_v16 = vperm.slane %v584_v10, 0  ;;  %v796_v27 = vperm.slane %v584_v10, 1  ;;  %v797_v44 = vperm.slane %v584_v10, 2  ;;  %v798_v36 = vperm.slane %v584_v10, 3 }
 0x2e1   :  { %v799_v38 = vperm.slane %v584_v10, 4  ;;  %v800_v23 = vperm.slane %v584_v10, 5  ;;  %v801_v55 = vperm.slane %v584_v10, 6  ;;  %v802_v17 = vperm.slane %v584_v10, 7 }
 0x2e2   :  { %1079 = vst [vmem:[#allocation1] ss:$9 sm:$0xff] %v795_v16  ;;  %v539_v6 = vsel %vm460_vm1, %v454_v40, 0.0  ;;  %v1682_v16 = vadd.f32 %v5874_v12, %v6011_v13  ;;  %v803_v54 = vperm.slane %v585_v1, 0  ;;  %v804_v37 = vperm.slane %v585_v1, 1 }
 0x2e3   :  { %1080 = vst [vmem:[#allocation1 + $0x1] ss:$9 sm:$0xff] %v796_v27  ;;  %v2753_v27 = vpop.f32.mrf.mxu0  ;;  %v805_v5 = vperm.slane %v585_v1, 2  ;;  %v807_v26 = vperm.slane %v585_v1, 4  ;;  %v808_v4 = vperm.slane %v585_v1, 5  ;;  %v810_v60 = vperm.slane %v585_v1, 7 }
 0x2e4   :  { %1081 = vst [vmem:[#allocation1 + $0x2] ss:$9 sm:$0xff] %v797_v44  ;;  %v1724_v44 = vmax.f32 %v1682_v16, 0.0  ;;  %v2754_v13 = vadd.f32 %v5867_v9, %v2753_v27 }
 0x2e5   :  { %1082 = vst [vmem:[#allocation1 + $0x3] ss:$9 sm:$0xff] %v798_v36  ;;  %v806_v36 = vperm.slane %v585_v1, 3 }
 0x2e6   :  { %1083 = vst [vmem:[#allocation1 + $0x4] ss:$9 sm:$0xff] %v799_v38  ;;  %v2825_v38 = vmax.f32 %v2752_v20, 0.0  ;;  %v1756_v56 = vmul.f32 %v5884_v32, %v1724_v44 }
 0x2e7   :  { %1084 = vst [vmem:[#allocation1 + $0x5] ss:$9 sm:$0xff] %v800_v23 }
 0x2e8   :  { %1085 = vst [vmem:[#allocation1 + $0x6] ss:$9 sm:$0xff] %v801_v55  ;;  %v809_v55 = vperm.slane %v585_v1, 6  ;;  %v2648_v1 = vld [vmem:[%s7752_s0 + $0x260] sm:$0xff] }
 0x2e9   :  { %1086 = vst [vmem:[#allocation1 + $0x7] ss:$9 sm:$0xff] %v802_v17 }
 0x2ec   :  { %1833 = vadd.xlane.f32.xlu2 %v1832_v52  ;;  %v2826_v52 = vmax.f32 %v2754_v13, 0.0 }
 0x2ed   :  { %v383_v61 = vpop.f32.mrf.mxu1 }
 0x2ee   :  { %v384_v23 = vadd.f32 %v5874_v12, %v383_v61  ;;  %v2855_v16 = vpack.c.bf16 %v2826_v52, %v2825_v38 }
 0x2f0   :  { %v6088_v24 = vld [vmem:[#allocation1] sm:$0xff]  ;;  %2887 = vmatmul.bf16.gmra.mxu2 %v2855_v16  ;;  %v421_v20 = vmax.f32 %v384_v23, 0.0  ;;  %v6112_v23 = vpop.permute.xlu2 %1194 }
 0x2f1   :  { %1088 = vst [vmem:[#allocation1] ss:$9 sm:$0xff] %v803_v54  ;;  %v1838_v54 = vsel %vm460_vm1, %v1756_v56, 0.0  ;;  %v6116_v56 = vpop.xlane.xlu0 %1827 }
 0x2f2   :  { %1089 = vst [vmem:[#allocation1 + $0x1] ss:$9 sm:$0xff] %v804_v37  ;;  %v2649_v37 = vld [vmem:[%s7752_s0 + $0x268] sm:$0xff] }
 0x2f3   :  { %1090 = vst [vmem:[#allocation1 + $0x2] ss:$9 sm:$0xff] %v805_v5  ;;  %v2674_v27 = vpack.c.bf16 %v2649_v37, %v2648_v1  ;;  %v456_v5 = vmul.f32 %v5884_v32, %v421_v20 }
 0x2f4   :  { %540 = vadd.xlane.f32.xlu2 %v539_v6  ;;  %1091 = vst [vmem:[#allocation1 + $0x3] ss:$9 sm:$0xff] %v806_v36 }
 0x2f5   :  { %v6083_v7 = vpop.f32.mrf.mxu1  ;;  %1092 = vst [vmem:[#allocation1 + $0x4] ss:$9 sm:$0xff] %v807_v26  ;;  %5208 = vmatmul.msk.bf16.gmra.mxu0 %vm115_vm0, %v2674_v27  ;;  %v545_v26 = vsel %vm460_vm1, %v456_v5, 0.0 }
 0x2f6   :  { %v6086_v10 = vpop.f32.mrf.mxu3  ;;  %1093 = vst [vmem:[#allocation1 + $0x5] ss:$9 sm:$0xff] %v808_v4 }
 0x2f7   :  { %1094 = vst [vmem:[#allocation1 + $0x6] ss:$9 sm:$0xff] %v809_v55 }
 0x2f8   :  { %1095 = vst [vmem:[#allocation1 + $0x7] ss:$9 sm:$0xff] %v810_v60 }
 0x2f9   :  { %7784 = vst [vmem:[#allocation10_spill] sm:$0xff] %v6112_v23 }
 0x2fb   :  { %1839 = vadd.xlane.f32.xlu1 %v1838_v54 }
 0x2fe   :  { %v6094_v6 = vpop.f32.mrf.mxu3 }
 0x2ff   :  { %v388_v17 = vpop.f32.mrf.mxu1 }
 0x300   :  { %v389_v40 = vadd.f32 %v5874_v12, %v388_v17 }
 0x302   :  { %v423_v9 = vmax.f32 %v389_v40, 0.0 }
 0x303   :  { %546 = vadd.xlane.f32.xlu1 %v545_v26 }
 0x304   :  { %v458_v61 = vmul.f32 %v5884_v32, %v423_v9 }
 0x306   :  { %v551_v44 = vsel %vm460_vm1, %v458_v61, 0.0  ;;  %v1694_v36 = vpop.f32.mrf.mxu3  ;;  %v6128_v61 = vld [vmem:[#allocation1] sm:$0xff] }
 0x307   :  { %v1695_v38 = vadd.f32 %v5874_v12, %v1694_v36  ;;  %v6121_v12 = vld [vmem:[%s7754_s2] ss:$0 sm:$0xff] }
 0x308   :  { %552 = vadd.xlane.f32.xlu0 %v551_v44 }
 0x309   :  { %v1729_v13 = vmax.f32 %v1695_v38, 0.0 }
 0x30b   :  { %v1761_v4 = vmul.f32 %v5884_v32, %v1729_v13  ;;  %v6132_v13 = vpop.permute.xlu1 %1197 }
 0x30c   :  { %1212 = vperm.xlu2 %5236, %v5912_v33   ;;  %v2756_v17 = vpop.f32.mrf.mxu0  ;;  %v6125_v33 = vpop.permute.xlu0 %1200  ;;  %7786 = vst [vmem:[#allocation12_spill] sm:$0xff] %v6132_v13 }
 0x30d   :  { %v1853_v52 = vsel %vm460_vm1, %v1761_v4, 0.0  ;;  %v2757_v32 = vadd.f32 %v6121_v12, %v2756_v17  ;;  %7785 = vst [vmem:[#allocation11_spill] sm:$0xff] %v6125_v33  ;;  %v390_v33 = vpop.f32.mrf.mxu1 }
 0x30e   :  { %v6114_v55 = vpop.xlane.xlu2 %1824 }
 0x30f   :  { %v2827_v37 = vmax.f32 %v2757_v32, 0.0 }
 0x310   :  { %1854 = vadd.xlane.f32.xlu0 %v1853_v52 }
 0x314   :  { %v2758_v16 = vpop.f32.mrf.mxu0  ;;  %v535_v52 = vpop.xlane.xlu0 %534 }
 0x315   :  { %v2759_v44 = vadd.f32 %v6121_v12, %v2758_v16  ;;  %v2650_v16 = vld [vmem:[%s7752_s0 + $0x270] sm:$0xff] }
 0x317   :  { %v2828_v38 = vmax.f32 %v2759_v44, 0.0 }
 0x319   :  { %v2856_v26 = vpack.c.bf16 %v2828_v38, %v2827_v37 }
 0x31b   :  { %2892 = vmatmul.bf16.gmra.mxu2 %v2856_v26 }
 0x31c   :  { %1215 = vperm.xlu1 %5238, %v5917_v50   ;;  %v6137_v50 = vld [vmem:[%s7756_s4] ss:$0 sm:$0xff] }
 0x31d   :  { %v1685_v4 = vadd.f32 %v6137_v50, %v6022_v30  ;;  %v2651_v30 = vld [vmem:[%s7752_s0 + $0x278] sm:$0xff] }
 0x31e   :  { %v532_v60 = vpop.xlane.xlu2 %531  ;;  %v2675_v37 = vpack.c.bf16 %v2651_v30, %v2650_v16 }
 0x31f   :  { %v586_v40 = vadd.f32 %v5768_v2, %v532_v60  ;;  %v1725_v17 = vmax.f32 %v1685_v4, 0.0  ;;  %v587_v60 = vadd.f32 %v5768_v2, %v535_v52 }
 0x320   :  { %5209 = vmatmul.msk.bf16.gmra.mxu0 %vm115_vm0, %v2675_v37 }
 0x321   :  { %v811_v9 = vperm.slane %v586_v40, 0  ;;  %v812_v20 = vperm.slane %v586_v40, 1  ;;  %v813_v54 = vperm.slane %v586_v40, 2  ;;  %v814_v1 = vperm.slane %v586_v40, 3 }
 0x322   :  { %v815_v27 = vperm.slane %v586_v40, 4  ;;  %v816_v5 = vperm.slane %v586_v40, 5  ;;  %v817_v36 = vperm.slane %v586_v40, 6  ;;  %v823_v38 = vperm.slane %v587_v60, 4 }
 0x323   :  { %1097 = vst [vmem:[#allocation1] ss:$9 sm:$0xff] %v811_v9  ;;  %v6142_v32 = vpop.xlane.xlu1 %1830  ;;  %v819_v9 = vperm.slane %v587_v60, 0  ;;  %v824_v26 = vperm.slane %v587_v60, 5  ;;  %v825_v4 = vperm.slane %v587_v60, 6  ;;  %v826_v52 = vperm.slane %v587_v60, 7 }
 0x324   :  { %1227 = vperm.xlu0 %5237, %v5985_v49   ;;  %1098 = vst [vmem:[#allocation1 + $0x1] ss:$9 sm:$0xff] %v812_v20  ;;  %v818_v49 = vperm.slane %v586_v40, 7  ;;  %v6144_v40 = vpop.f32.mrf.mxu2  ;;  %v386_v20 = vadd.f32 %v6137_v50, %v6083_v7 }
 0x325   :  { %1099 = vst [vmem:[#allocation1 + $0x2] ss:$9 sm:$0xff] %v813_v54  ;;  %v6157_v54 = vld [vmem:[%s7757_s5] ss:$0 sm:$0xff] }
 0x326   :  { %1100 = vst [vmem:[#allocation1 + $0x3] ss:$9 sm:$0xff] %v814_v1  ;;  %v1757_v1 = vmul.f32 %v6157_v54, %v1725_v17 }
 0x327   :  { %1101 = vst [vmem:[#allocation1 + $0x4] ss:$9 sm:$0xff] %v815_v27  ;;  %v820_v27 = vperm.slane %v587_v60, 1 }
 0x328   :  { %1102 = vst [vmem:[#allocation1 + $0x5] ss:$9 sm:$0xff] %v816_v5  ;;  %v821_v5 = vperm.slane %v587_v60, 2  ;;  %v1841_v7 = vsel %vm460_vm1, %v1757_v1, 0.0 }
 0x329   :  { %1103 = vst [vmem:[#allocation1 + $0x6] ss:$9 sm:$0xff] %v817_v36  ;;  %v822_v36 = vperm.slane %v587_v60, 3  ;;  %v2652_v60 = vld [vmem:[%s7752_s0 + $0x280] sm:$0xff] }
 0x32a   :  { %1104 = vst [vmem:[#allocation1 + $0x7] ss:$9 sm:$0xff] %v818_v49  ;;  %v422_v49 = vmax.f32 %v386_v20, 0.0 }
 0x32b   :  { %v538_v17 = vpop.xlane.xlu1 %537 }
 0x32c   :  { %v457_v16 = vmul.f32 %v6157_v54, %v422_v49  ;;  %v2880_v30 = vpop.f32.mrf.mxu2 }
 0x32d   :  { %v2881_v20 = vadd.f32 %v6137_v50, %v2880_v30 }
 0x32e   :  { %v548_v1 = vsel %vm460_vm1, %v457_v16, 0.0 }
 0x331   :  { %v6160_v44 = vld [vmem:[#allocation1] sm:$0xff] }
 0x332   :  { %1106 = vst [vmem:[#allocation1] ss:$9 sm:$0xff] %v819_v9  ;;  %v588_v9 = vadd.f32 %v5768_v2, %v538_v17 }
 0x333   :  { %1107 = vst [vmem:[#allocation1 + $0x1] ss:$9 sm:$0xff] %v820_v27  ;;  %v1690_v27 = vadd.f32 %v6137_v50, %v6086_v10 }
 0x334   :  { %1108 = vst [vmem:[#allocation1 + $0x2] ss:$9 sm:$0xff] %v821_v5  ;;  %v2761_v37 = vpop.f32.mrf.mxu0  ;;  %v827_v5 = vperm.slane %v588_v9, 0  ;;  %v828_v49 = vperm.slane %v588_v9, 1  ;;  %v830_v17 = vperm.slane %v588_v9, 3  ;;  %v831_v16 = vperm.slane %v588_v9, 4 }
 0x335   :  { %1109 = vst [vmem:[#allocation1 + $0x3] ss:$9 sm:$0xff] %v822_v36  ;;  %1842 = vadd.xlane.f32.xlu2 %v1841_v7  ;;  %v2653_v36 = vld [vmem:[%s7752_s0 + $0x288] sm:$0xff]  ;;  %v2959_v7 = vmax.f32 %v2881_v20, 0.0  ;;  %v1727_v10 = vmax.f32 %v1690_v27, 0.0 }
 0x336   :  { %1110 = vst [vmem:[#allocation1 + $0x4] ss:$9 sm:$0xff] %v823_v38 }
 0x337   :  { %1111 = vst [vmem:[#allocation1 + $0x5] ss:$9 sm:$0xff] %v824_v26  ;;  %v2762_v26 = vadd.f32 %v6121_v12, %v2761_v37  ;;  %v2991_v13 = vmul.f32 %v6157_v54, %v2959_v7  ;;  %v833_v37 = vperm.slane %v588_v9, 6  ;;  %v1759_v27 = vmul.f32 %v6157_v54, %v1727_v10 }
 0x338   :  { %1112 = vst [vmem:[#allocation1 + $0x6] ss:$9 sm:$0xff] %v825_v4  ;;  %v2676_v4 = vpack.c.bf16 %v2653_v36, %v2652_v60  ;;  %v834_v60 = vperm.slane %v588_v9, 7  ;;  %v391_v36 = vadd.f32 %v6137_v50, %v390_v33  ;;  %v6189_v33 = vpop.permute.xlu2 %1203 }
 0x339   :  { %1113 = vst [vmem:[#allocation1 + $0x7] ss:$9 sm:$0xff] %v826_v52  ;;  %v829_v52 = vperm.slane %v588_v9, 2  ;;  %v2829_v23 = vmax.f32 %v2762_v26, 0.0  ;;  %v1847_v7 = vsel %vm460_vm1, %v1759_v27, 0.0 }
 0x33a   :  { %5210 = vmatmul.msk.bf16.gmra.mxu0 %vm115_vm0, %v2676_v4  ;;  %7787 = vst [vmem:[#allocation13_spill] sm:$0xff] %v6189_v33 }
 0x33c   :  { %v2763_v30 = vpop.f32.mrf.mxu0 }
 0x33d   :  { %549 = vadd.xlane.f32.xlu2 %v548_v1  ;;  %v832_v1 = vperm.slane %v588_v9, 5  ;;  %v2764_v20 = vadd.f32 %v6121_v12, %v2763_v30 }
 0x340   :  { %v6176_v38 = vld [vmem:[#allocation1] sm:$0xff] }
 0x341   :  { %1115 = vst [vmem:[#allocation1] ss:$9 sm:$0xff] %v827_v5  ;;  %v2830_v5 = vmax.f32 %v2764_v20, 0.0 }
 0x342   :  { %1116 = vst [vmem:[#allocation1 + $0x1] ss:$9 sm:$0xff] %v828_v49  ;;  %v3025_v49 = vsel %vm460_vm1, %v2991_v13, 0.0 }
 0x343   :  { %1117 = vst [vmem:[#allocation1 + $0x2] ss:$9 sm:$0xff] %v829_v52  ;;  %v2857_v4 = vpack.c.bf16 %v2830_v5, %v2829_v23  ;;  %v424_v52 = vmax.f32 %v391_v36, 0.0 }
 0x344   :  { %1118 = vst [vmem:[#allocation1 + $0x3] ss:$9 sm:$0xff] %v830_v17  ;;  %v2766_v17 = vpop.f32.mrf.mxu0 }
 0x345   :  { %1119 = vst [vmem:[#allocation1 + $0x4] ss:$9 sm:$0xff] %v831_v16  ;;  %2897 = vmatmul.bf16.gmra.mxu2 %v2857_v4  ;;  %v459_v26 = vmul.f32 %v6157_v54, %v424_v52  ;;  %v2767_v23 = vadd.f32 %v6121_v12, %v2766_v17  ;;  %v6195_v16 = vpop.xlane.xlu0 %1836 }
 0x346   :  { %1120 = vst [vmem:[#allocation1 + $0x5] ss:$9 sm:$0xff] %v832_v1  ;;  %1848 = vadd.xlane.f32.xlu1 %v1847_v7  ;;  %v6203_v7 = vpop.permute.xlu1 %1206 }
 0x347   :  { %1121 = vst [vmem:[#allocation1 + $0x6] ss:$9 sm:$0xff] %v833_v37  ;;  %v554_v9 = vsel %vm460_vm1, %v459_v26, 0.0  ;;  %v2831_v30 = vmax.f32 %v2767_v23, 0.0 }
 0x348   :  { %1122 = vst [vmem:[#allocation1 + $0x7] ss:$9 sm:$0xff] %v834_v60 }
 0x349   :  { %7789 = vst [vmem:[#allocation15_spill] sm:$0xff] %v6203_v7 }
 0x34c   :  { %v2768_v10 = vpop.f32.mrf.mxu0 }
 0x34d   :  { %v2769_v1 = vadd.f32 %v6121_v12, %v2768_v10  ;;  %v6199_v5 = vpop.permute.xlu0 %1209  ;;  %v1692_v10 = vadd.f32 %v6137_v50, %v6094_v6 }
 0x34e   :  { %3026 = vadd.xlane.f32.xlu0 %v3025_v49  ;;  %555 = vadd.xlane.f32.xlu1 %v554_v9  ;;  %7788 = vst [vmem:[#allocation14_spill] sm:$0xff] %v6199_v5 }
 0x34f   :  { %v2832_v20 = vmax.f32 %v2769_v1, 0.0  ;;  %v6201_v49 = vld [vmem:[#allocation1] sm:$0xff]  ;;  %v1728_v1 = vmax.f32 %v1692_v10, 0.0 }
 0x351   :  { %v2858_v60 = vpack.c.bf16 %v2832_v20, %v2831_v30 }
 0x355   :  { %1221 = vperm.xlu2 %5236, %v5942_v47   ;;  %2902 = vmatmul.bf16.gmra.mxu2 %v2858_v60  ;;  %v544_v30 = vpop.xlane.xlu0 %543 }
 0x356   :  { %v590_v20 = vadd.f32 %v5768_v2, %v544_v30 }
 0x358   :  { %v843_v60 = vperm.slane %v590_v20, 0  ;;  %v846_v6 = vperm.slane %v590_v20, 3  ;;  %v850_v10 = vperm.slane %v590_v20, 7 }
 0x359   :  { %v6206_v23 = vpop.f32.mrf.mxu2 }
 0x35f   :  { %v6192_v13 = vpop.xlane.xlu2 %1833 }
 0x362   :  { %1236 = vperm.xlu0 %5237, %v6059_v3  }
 0x367   :  { %v541_v37 = vpop.xlane.xlu2 %540  ;;  %1224 = vperm.xlu1 %5238, %v5968_v39   ;;  %v6213_v39 = vpop.f32.mrf.mxu2 }
 0x368   :  { %v589_v47 = vadd.f32 %v5768_v2, %v541_v37 }
 0x36a   :  { %v835_v36 = vperm.slane %v589_v47, 0  ;;  %v836_v27 = vperm.slane %v589_v47, 1  ;;  %v837_v3 = vperm.slane %v589_v47, 2  ;;  %v838_v4 = vperm.slane %v589_v47, 3 }
 0x36b   :  { %v839_v52 = vperm.slane %v589_v47, 4  ;;  %v840_v26 = vperm.slane %v589_v47, 5  ;;  %v841_v9 = vperm.slane %v589_v47, 6  ;;  %v842_v17 = vperm.slane %v589_v47, 7 }
 0x36c   :  { %1124 = vst [vmem:[#allocation1] ss:$9 sm:$0xff] %v835_v36  ;;  %v1760_v47 = vmul.f32 %v6157_v54, %v1728_v1  ;;  %v844_v36 = vperm.slane %v590_v20, 1  ;;  %v2654_v1 = vld [vmem:[%s7752_s0 + $0x290] sm:$0xff] }
 0x36d   :  { %1125 = vst [vmem:[#allocation1 + $0x1] ss:$9 sm:$0xff] %v836_v27 }
 0x36e   :  { %1126 = vst [vmem:[#allocation1 + $0x2] ss:$9 sm:$0xff] %v837_v3  ;;  %v6211_v37 = vpop.xlane.xlu1 %1839  ;;  %v845_v3 = vperm.slane %v590_v20, 2 }
 0x36f   :  { %1127 = vst [vmem:[#allocation1 + $0x3] ss:$9 sm:$0xff] %v838_v4  ;;  %v847_v4 = vperm.slane %v590_v20, 4 }
 0x370   :  { %1128 = vst [vmem:[#allocation1 + $0x4] ss:$9 sm:$0xff] %v839_v52  ;;  %v1850_v52 = vsel %vm460_vm1, %v1760_v47, 0.0 }
 0x371   :  { %1129 = vst [vmem:[#allocation1 + $0x5] ss:$9 sm:$0xff] %v840_v26  ;;  %v848_v26 = vperm.slane %v590_v20, 5 }
 0x372   :  { %1130 = vst [vmem:[#allocation1 + $0x6] ss:$9 sm:$0xff] %v841_v9  ;;  %v849_v9 = vperm.slane %v590_v20, 6  ;;  %v2771_v30 = vpop.f32.mrf.mxu0  ;;  %v3895_v20 = vld [vmem:[%s7752_s0 + $0x300] sm:$0xff] }
 0x373   :  { %1131 = vst [vmem:[#allocation1 + $0x7] ss:$9 sm:$0xff] %v842_v17  ;;  %v2888_v47 = vpop.f32.mrf.mxu2 }
 0x376   :  { %v547_v17 = vpop.xlane.xlu1 %546 }
 0x37a   :  { %v6216_v27 = vld [vmem:[#allocation1] sm:$0xff]  ;;  %v2773_v58 = vpop.f32.mrf.mxu0 }
 0x37b   :  { %1133 = vst [vmem:[#allocation1] ss:$9 sm:$0xff] %v843_v60  ;;  %v2655_v60 = vld [vmem:[%s7752_s0 + $0x298] sm:$0xff] }
 0x37c   :  { %1134 = vst [vmem:[#allocation1 + $0x1] ss:$9 sm:$0xff] %v844_v36  ;;  %v591_v36 = vadd.f32 %v5768_v2, %v547_v17  ;;  %v1696_v17 = vpop.f32.mrf.mxu3 }
 0x37d   :  { %1135 = vst [vmem:[#allocation1 + $0x2] ss:$9 sm:$0xff] %v845_v3  ;;  %v2677_v3 = vpack.c.bf16 %v2655_v60, %v2654_v1 }
 0x37e   :  { %1136 = vst [vmem:[#allocation1 + $0x3] ss:$9 sm:$0xff] %v846_v6  ;;  %1851 = vadd.xlane.f32.xlu2 %v1850_v52  ;;  %v3896_v6 = vld [vmem:[%s7752_s0 + $0x308] sm:$0xff]  ;;  %v851_v52 = vperm.slane %v591_v36, 0  ;;  %v852_v5 = vperm.slane %v591_v36, 1  ;;  %v853_v1 = vperm.slane %v591_v36, 2 }
 0x37f   :  { %1137 = vst [vmem:[#allocation1 + $0x4] ss:$9 sm:$0xff] %v847_v4  ;;  %5211 = vmatmul.msk.bf16.gmra.mxu0 %vm115_vm0, %v2677_v3  ;;  %v2889_v4 = vadd.f32 %v6137_v50, %v2888_v47  ;;  %v854_v7 = vperm.slane %v591_v36, 3  ;;  %v855_v63 = vperm.slane %v591_v36, 4  ;;  %v1697_v47 = vadd.f32 %v6137_v50, %v1696_v17 }
 0x380   :  { %1138 = vst [vmem:[#allocation1 + $0x5] ss:$9 sm:$0xff] %v848_v26  ;;  %v2772_v26 = vadd.f32 %v6121_v12, %v2771_v30  ;;  %v2774_v30 = vadd.f32 %v6121_v12, %v2773_v58  ;;  %v858_v43 = vperm.slane %v591_v36, 7  ;;  %v3897_v58 = vld [vmem:[%s7752_s0 + $0x310] sm:$0xff] }
 0x381   :  { %1139 = vst [vmem:[#allocation1 + $0x6] ss:$9 sm:$0xff] %v849_v9  ;;  %v3927_v9 = vpack.c.bf16 %v3896_v6, %v3895_v20  ;;  %v856_v20 = vperm.slane %v591_v36, 5 }
 0x382   :  { %1140 = vst [vmem:[#allocation1 + $0x7] ss:$9 sm:$0xff] %v850_v10  ;;  %v2962_v10 = vmax.f32 %v2889_v4, 0.0  ;;  %v2833_v3 = vmax.f32 %v2772_v26, 0.0  ;;  %v857_v4 = vperm.slane %v591_v36, 6  ;;  %v6256_v26 = vpop.permute.xlu2 %1212 }
 0x383   :  { %5218 = vmatmul.msk.bf16.vlgmr.msrb.gmra.mxu1 %vm115_vm0, %v3927_v9  ;;  %v2834_v9 = vmax.f32 %v2774_v30, 0.0 }
 0x384   :  { %v2994_v33 = vmul.f32 %v6157_v54, %v2962_v10  ;;  %v1730_v10 = vmax.f32 %v1697_v47, 0.0 }
 0x385   :  { %v2859_v21 = vpack.c.bf16 %v2834_v9, %v2833_v3 }
 0x386   :  { %v3034_v6 = vsel %vm460_vm1, %v2994_v33, 0.0  ;;  %v3898_v33 = vld [vmem:[%s7752_s0 + $0x318] sm:$0xff] }
 0x387   :  { %2907 = vmatmul.bf16.gmra.mxu2 %v2859_v21 }
 0x389   :  { %v6236_v60 = vld [vmem:[#allocation1] sm:$0xff] }
 0x38a   :  { %1142 = vst [vmem:[#allocation1] ss:$9 sm:$0xff] %v851_v52 }
 0x38b   :  { %1143 = vst [vmem:[#allocation1 + $0x1] ss:$9 sm:$0xff] %v852_v5  ;;  %v2879_v5 = vadd.f32 %v6137_v50, %v6144_v40  ;;  %v6259_v40 = vpop.f32.mrf.mxu2 }
 0x38c   :  { %1144 = vst [vmem:[#allocation1 + $0x2] ss:$9 sm:$0xff] %v853_v1  ;;  %3035 = vadd.xlane.f32.xlu0 %v3034_v6  ;;  %v6263_v1 = vpop.xlane.xlu0 %1845 }
 0x38d   :  { %1145 = vst [vmem:[#allocation1 + $0x3] ss:$9 sm:$0xff] %v854_v7  ;;  %v1762_v7 = vmul.f32 %v6157_v54, %v1730_v10  ;;  %v2958_v36 = vmax.f32 %v2879_v5, 0.0 }
 0x38e   :  { %1146 = vst [vmem:[#allocation1 + $0x4] ss:$9 sm:$0xff] %v855_v63  ;;  %v3928_v63 = vpack.c.bf16 %v3898_v33, %v3897_v58 }
 0x38f   :  { %1147 = vst [vmem:[#allocation1 + $0x5] ss:$9 sm:$0xff] %v856_v20  ;;  %v1856_v52 = vsel %vm460_vm1, %v1762_v7, 0.0  ;;  %v2990_v21 = vmul.f32 %v6157_v54, %v2958_v36  ;;  %v6274_v7 = vpop.permute.xlu1 %1215 }
 0x390   :  { %1148 = vst [vmem:[#allocation1 + $0x6] ss:$9 sm:$0xff] %v857_v4 }
 0x391   :  { %1149 = vst [vmem:[#allocation1 + $0x7] ss:$9 sm:$0xff] %v858_v43  ;;  %1857 = vadd.xlane.f32.xlu1 %v1856_v52  ;;  %v3022_v43 = vsel %vm460_vm1, %v2990_v21, 0.0 }
 0x393   :  { %5219 = vmatmul.msk.bf16.gmra.mxu1 %vm115_vm0, %v3928_v63 }
 0x394   :  { %v6270_v20 = vpop.permute.xlu0 %1218 }
 0x395   :  { %7790 = vst [vmem:[#allocation16_spill] sm:$0xff] %v6270_v20 }
 0x396   :  { %1230 = vperm.xlu2 %5236, %v5999_v53   ;;  %v2884_v53 = vadd.f32 %v6137_v50, %v6206_v23 }
 0x398   :  { %v6272_v10 = vld [vmem:[#allocation1] sm:$0xff] }
 0x399   :  { %3023 = vadd.xlane.f32.xlu1 %v3022_v43 }
 0x39c   :  { %v553_v21 = vpop.xlane.xlu0 %552 }
 0x39e   :  { %v6265_v47 = vpop.f32.mrf.mxu2 }
 0x3a0   :  { %1245 = vperm.xlu0 %5237, %v6128_v61   ;;  %v2960_v61 = vmax.f32 %v2884_v53, 0.0 }
 0x3a2   :  { %v2992_v52 = vmul.f32 %v6157_v54, %v2960_v61 }
 0x3a4   :  { %v3028_v53 = vsel %vm460_vm1, %v2992_v52, 0.0 }
 0x3a6   :  { %v2895_v36 = vpop.f32.mrf.mxu2 }
 0x3a7   :  { %v2896_v43 = vadd.f32 %v6137_v50, %v2895_v36 }
 0x3a8   :  { %v6261_v17 = vpop.xlane.xlu2 %1842 }
 0x3b0   :  { %v550_v3 = vpop.xlane.xlu2 %549 }
 0x3b1   :  { %v592_v30 = vadd.f32 %v5768_v2, %v550_v3  ;;  %v593_v3 = vadd.f32 %v5768_v2, %v553_v21 }
 0x3b2   :  { %1233 = vperm.xlu1 %5238, %v6013_v19  }
 0x3b3   :  { %v859_v6 = vperm.slane %v592_v30, 0  ;;  %v860_v4 = vperm.slane %v592_v30, 1  ;;  %v861_v9 = vperm.slane %v592_v30, 2  ;;  %v862_v58 = vperm.slane %v592_v30, 3 }
 0x3b4   :  { %v863_v33 = vperm.slane %v592_v30, 4  ;;  %v864_v5 = vperm.slane %v592_v30, 5  ;;  %v865_v63 = vperm.slane %v592_v30, 6  ;;  %v866_v23 = vperm.slane %v592_v30, 7 }
 0x3b5   :  { %1151 = vst [vmem:[#allocation1] ss:$9 sm:$0xff] %v859_v6  ;;  %v2965_v6 = vmax.f32 %v2896_v43, 0.0  ;;  %v867_v30 = vperm.slane %v593_v3, 0  ;;  %v873_v36 = vperm.slane %v593_v3, 6  ;;  %v874_v21 = vperm.slane %v593_v3, 7 }
 0x3b6   :  { %1152 = vst [vmem:[#allocation1 + $0x1] ss:$9 sm:$0xff] %v860_v4 }
 0x3b7   :  { %1153 = vst [vmem:[#allocation1 + $0x2] ss:$9 sm:$0xff] %v861_v9  ;;  %v868_v9 = vperm.slane %v593_v3, 1  ;;  %v2997_v61 = vmul.f32 %v6157_v54, %v2965_v6 }
 0x3b8   :  { %1154 = vst [vmem:[#allocation1 + $0x3] ss:$9 sm:$0xff] %v862_v58  ;;  %v869_v58 = vperm.slane %v593_v3, 2 }
 0x3b9   :  { %1155 = vst [vmem:[#allocation1 + $0x4] ss:$9 sm:$0xff] %v863_v33  ;;  %v6281_v4 = vpop.xlane.xlu1 %1848  ;;  %v870_v33 = vperm.slane %v593_v3, 3 }
 0x3ba   :  { %1156 = vst [vmem:[#allocation1 + $0x5] ss:$9 sm:$0xff] %v864_v5  ;;  %v871_v5 = vperm.slane %v593_v3, 4 }
 0x3bb   :  { %1157 = vst [vmem:[#allocation1 + $0x6] ss:$9 sm:$0xff] %v865_v63  ;;  %v872_v63 = vperm.slane %v593_v3, 5  ;;  %v1859_v3 = vadd.f32 %v5807_v18, %v5768_v2  ;;  %v1860_v18 = vadd.f32 %v5805_v8, %v5768_v2  ;;  %v1861_v8 = vadd.f32 %v5818_v51, %v5768_v2 }
 0x3bc   :  { %1158 = vst [vmem:[#allocation1 + $0x7] ss:$9 sm:$0xff] %v866_v23  ;;  %v3043_v23 = vsel %vm460_vm1, %v2997_v61, 0.0  ;;  %v1862_v51 = vadd.f32 %v5811_v31, %v5768_v2  ;;  %v1863_v31 = vadd.f32 %v5825_v0, %v5768_v2  ;;  %v1864_v0 = vadd.f32 %v5834_v25, %v5768_v2 }
 0x3bd   :  { %v1865_v25 = vadd.f32 %v5860_v45, %v5768_v2  ;;  %v1866_v45 = vadd.f32 %v5890_v41, %v5768_v2  ;;  %v2776_v41 = vpop.f32.mrf.mxu0 }
 0x3bf   :  { %3029 = vadd.xlane.f32.xlu2 %v3028_v53 }
 0x3c1   :  { %v556_v52 = vpop.xlane.xlu1 %555 }
 0x3c2   :  { %v594_v43 = vadd.f32 %v5768_v2, %v556_v52  ;;  %v1925_v52 = vperm.slane %v1859_v3, 2 }
 0x3c3   :  { %v6283_v19 = vld [vmem:[#allocation1] sm:$0xff] }
 0x3c4   :  { %1160 = vst [vmem:[#allocation1] ss:$9 sm:$0xff] %v867_v30  ;;  %v875_v53 = vperm.slane %v594_v43, 0  ;;  %v876_v6 = vperm.slane %v594_v43, 1  ;;  %v877_v30 = vperm.slane %v594_v43, 2  ;;  %v879_v20 = vperm.slane %v594_v43, 4 }
 0x3c5   :  { %1161 = vst [vmem:[#allocation1 + $0x1] ss:$9 sm:$0xff] %v868_v9  ;;  %v881_v61 = vperm.slane %v594_v43, 6 }
 0x3c6   :  { %1162 = vst [vmem:[#allocation1 + $0x2] ss:$9 sm:$0xff] %v869_v58  ;;  %v878_v58 = vperm.slane %v594_v43, 3 }
 0x3c7   :  { %1163 = vst [vmem:[#allocation1 + $0x3] ss:$9 sm:$0xff] %v870_v33  ;;  %v880_v33 = vperm.slane %v594_v43, 5 }
 0x3c8   :  { %1164 = vst [vmem:[#allocation1 + $0x4] ss:$9 sm:$0xff] %v871_v5  ;;  %v882_v5 = vperm.slane %v594_v43, 7  ;;  %v1927_v43 = vperm.slane %v1859_v3, 4 }
 0x3c9   :  { %1165 = vst [vmem:[#allocation1 + $0x5] ss:$9 sm:$0xff] %v872_v63  ;;  %v1923_v63 = vperm.slane %v1859_v3, 0 }
 0x3ca   :  { %1166 = vst [vmem:[#allocation1 + $0x6] ss:$9 sm:$0xff] %v873_v36  ;;  %3044 = vadd.xlane.f32.xlu0 %v3043_v23  ;;  %v1924_v23 = vperm.slane %v1859_v3, 1 }
 0x3cb   :  { %1167 = vst [vmem:[#allocation1 + $0x7] ss:$9 sm:$0xff] %v874_v21  ;;  %v1926_v21 = vperm.slane %v1859_v3, 3 }
 0x3d2   :  { %v6288_v9 = vld [vmem:[#allocation1] sm:$0xff] }
 0x3d3   :  { %1169 = vst [vmem:[#allocation1] ss:$9 sm:$0xff] %v875_v53  ;;  %v1930_v53 = vperm.slane %v1859_v3, 7 }
 0x3d4   :  { %1170 = vst [vmem:[#allocation1 + $0x1] ss:$9 sm:$0xff] %v876_v6  ;;  %v1932_v6 = vperm.slane %v1860_v18, 1 }
 0x3d5   :  { %1171 = vst [vmem:[#allocation1 + $0x2] ss:$9 sm:$0xff] %v877_v30 }
 0x3d6   :  { %1172 = vst [vmem:[#allocation1 + $0x3] ss:$9 sm:$0xff] %v878_v58  ;;  %v1933_v58 = vperm.slane %v1860_v18, 2 }
 0x3d7   :  { %1173 = vst [vmem:[#allocation1 + $0x4] ss:$9 sm:$0xff] %v879_v20  ;;  %1239 = vperm.xlu2 %5236, %v6075_v28   ;;  %v1928_v20 = vperm.slane %v1859_v3, 5  ;;  %v1929_v28 = vperm.slane %v1859_v3, 6  ;;  %v1938_v3 = vperm.slane %v1860_v18, 7 }
 0x3d8   :  { %1174 = vst [vmem:[#allocation1 + $0x5] ss:$9 sm:$0xff] %v880_v33  ;;  %v1934_v33 = vperm.slane %v1860_v18, 3 }
 0x3d9   :  { %1175 = vst [vmem:[#allocation1 + $0x6] ss:$9 sm:$0xff] %v881_v61  ;;  %v1935_v61 = vperm.slane %v1860_v18, 4 }
 0x3da   :  { %1176 = vst [vmem:[#allocation1 + $0x7] ss:$9 sm:$0xff] %v882_v5  ;;  %v1936_v5 = vperm.slane %v1860_v18, 5 }
 0x3de   :  { %1254 = vperm.xlu0 %5237, %v6201_v49   ;;  %v1931_v49 = vperm.slane %v1860_v18, 0 }
 0x3e1   :  { %v6294_v36 = vld [vmem:[#allocation1] sm:$0xff] }
 0x3e2   :  { %2179 = vst [vmem:[#allocation1] ss:$9 sm:$0xff] %v1923_v63  ;;  %v1937_v63 = vperm.slane %v1860_v18, 6  ;;  %v1946_v18 = vperm.slane %v1861_v8, 7 }
 0x3e3   :  { %2181 = vst [vmem:[#allocation1 + $0x1] ss:$9 sm:$0xff] %v1924_v23  ;;  %v1939_v23 = vperm.slane %v1861_v8, 0 }
 0x3e4   :  { %2183 = vst [vmem:[#allocation1 + $0x2] ss:$9 sm:$0xff] %v1925_v52  ;;  %v1940_v52 = vperm.slane %v1861_v8, 1 }
 0x3e5   :  { %2185 = vst [vmem:[#allocation1 + $0x3] ss:$9 sm:$0xff] %v1926_v21 }
 0x3e6   :  { %2187 = vst [vmem:[#allocation1 + $0x4] ss:$9 sm:$0xff] %v1927_v43  ;;  %v1941_v43 = vperm.slane %v1861_v8, 2 }
 0x3e7   :  { %2189 = vst [vmem:[#allocation1 + $0x5] ss:$9 sm:$0xff] %v1928_v20  ;;  %v1942_v20 = vperm.slane %v1861_v8, 3 }
 0x3e8   :  { %2191 = vst [vmem:[#allocation1 + $0x6] ss:$9 sm:$0xff] %v1929_v28  ;;  %v1943_v28 = vperm.slane %v1861_v8, 4 }
 0x3e9   :  { %2193 = vst [vmem:[#allocation1 + $0x7] ss:$9 sm:$0xff] %v1930_v53  ;;  %v1944_v53 = vperm.slane %v1861_v8, 5 }
 0x3f0   :  { %v6298_v30 = vld [vmem:[#allocation1] sm:$0xff] }
 0x3f1   :  { %2195 = vst [vmem:[#allocation1] ss:$9 sm:$0xff] %v1931_v49  ;;  %v1945_v49 = vperm.slane %v1861_v8, 6  ;;  %v1954_v8 = vperm.slane %v1862_v51, 7 }
 0x3f2   :  { %2196 = vst [vmem:[#allocation1 + $0x1] ss:$9 sm:$0xff] %v1932_v6  ;;  %v1947_v6 = vperm.slane %v1862_v51, 0 }
 0x3f3   :  { %2197 = vst [vmem:[#allocation1 + $0x2] ss:$9 sm:$0xff] %v1933_v58  ;;  %v1948_v58 = vperm.slane %v1862_v51, 1 }
 0x3f4   :  { %2198 = vst [vmem:[#allocation1 + $0x3] ss:$9 sm:$0xff] %v1934_v33 }
 0x3f5   :  { %2199 = vst [vmem:[#allocation1 + $0x4] ss:$9 sm:$0xff] %v1935_v61  ;;  %v1949_v61 = vperm.slane %v1862_v51, 2 }
 0x3f6   :  { %2200 = vst [vmem:[#allocation1 + $0x5] ss:$9 sm:$0xff] %v1936_v5  ;;  %v1950_v5 = vperm.slane %v1862_v51, 3 }
 0x3f7   :  { %2201 = vst [vmem:[#allocation1 + $0x6] ss:$9 sm:$0xff] %v1937_v63  ;;  %v1951_v63 = vperm.slane %v1862_v51, 4 }
 0x3f8   :  { %2202 = vst [vmem:[#allocation1 + $0x7] ss:$9 sm:$0xff] %v1938_v3  ;;  %v1952_v3 = vperm.slane %v1862_v51, 5 }
 0x3ff   :  { %v6302_v21 = vld [vmem:[#allocation1] sm:$0xff] }
 0x400   :  { %2204 = vst [vmem:[#allocation1] ss:$9 sm:$0xff] %v1939_v23  ;;  %v1953_v23 = vperm.slane %v1862_v51, 6  ;;  %v1962_v51 = vperm.slane %v1863_v31, 7 }
 0x401   :  { %2205 = vst [vmem:[#allocation1 + $0x1] ss:$9 sm:$0xff] %v1940_v52  ;;  %v1955_v52 = vperm.slane %v1863_v31, 0 }
 0x402   :  { %2206 = vst [vmem:[#allocation1 + $0x2] ss:$9 sm:$0xff] %v1941_v43  ;;  %v1956_v43 = vperm.slane %v1863_v31, 1 }
 0x403   :  { %2207 = vst [vmem:[#allocation1 + $0x3] ss:$9 sm:$0xff] %v1942_v20 }
 0x404   :  { %2208 = vst [vmem:[#allocation1 + $0x4] ss:$9 sm:$0xff] %v1943_v28  ;;  %v1957_v28 = vperm.slane %v1863_v31, 2 }
 0x405   :  { %2209 = vst [vmem:[#allocation1 + $0x5] ss:$9 sm:$0xff] %v1944_v53  ;;  %v1958_v53 = vperm.slane %v1863_v31, 3 }
 0x406   :  { %2210 = vst [vmem:[#allocation1 + $0x6] ss:$9 sm:$0xff] %v1945_v49  ;;  %v1959_v49 = vperm.slane %v1863_v31, 4 }
 0x407   :  { %2211 = vst [vmem:[#allocation1 + $0x7] ss:$9 sm:$0xff] %v1946_v18  ;;  %v1960_v18 = vperm.slane %v1863_v31, 5 }
 0x40e   :  { %v6306_v33 = vld [vmem:[#allocation1] sm:$0xff] }
 0x40f   :  { %2213 = vst [vmem:[#allocation1] ss:$9 sm:$0xff] %v1947_v6  ;;  %v1961_v6 = vperm.slane %v1863_v31, 6  ;;  %v1970_v31 = vperm.slane %v1864_v0, 7 }
 0x410   :  { %2214 = vst [vmem:[#allocation1 + $0x1] ss:$9 sm:$0xff] %v1948_v58  ;;  %v1963_v58 = vperm.slane %v1864_v0, 0 }
 0x411   :  { %2215 = vst [vmem:[#allocation1 + $0x2] ss:$9 sm:$0xff] %v1949_v61  ;;  %v1964_v61 = vperm.slane %v1864_v0, 1 }
 0x412   :  { %2216 = vst [vmem:[#allocation1 + $0x3] ss:$9 sm:$0xff] %v1950_v5 }
 0x413   :  { %2217 = vst [vmem:[#allocation1 + $0x4] ss:$9 sm:$0xff] %v1951_v63  ;;  %v1965_v63 = vperm.slane %v1864_v0, 2 }
 0x414   :  { %2218 = vst [vmem:[#allocation1 + $0x5] ss:$9 sm:$0xff] %v1952_v3  ;;  %v1966_v3 = vperm.slane %v1864_v0, 3 }
 0x415   :  { %2219 = vst [vmem:[#allocation1 + $0x6] ss:$9 sm:$0xff] %v1953_v23  ;;  %v1967_v23 = vperm.slane %v1864_v0, 4 }
 0x416   :  { %2220 = vst [vmem:[#allocation1 + $0x7] ss:$9 sm:$0xff] %v1954_v8  ;;  %v1968_v8 = vperm.slane %v1864_v0, 5 }
 0x41d   :  { %v6310_v20 = vld [vmem:[#allocation1] sm:$0xff] }
 0x41e   :  { %2222 = vst [vmem:[#allocation1] ss:$9 sm:$0xff] %v1955_v52  ;;  %v1969_v52 = vperm.slane %v1864_v0, 6  ;;  %v1978_v0 = vperm.slane %v1865_v25, 7 }
 0x41f   :  { %2223 = vst [vmem:[#allocation1 + $0x1] ss:$9 sm:$0xff] %v1956_v43  ;;  %v1971_v43 = vperm.slane %v1865_v25, 0 }
 0x420   :  { %2224 = vst [vmem:[#allocation1 + $0x2] ss:$9 sm:$0xff] %v1957_v28  ;;  %v1972_v28 = vperm.slane %v1865_v25, 1 }
 0x421   :  { %2225 = vst [vmem:[#allocation1 + $0x3] ss:$9 sm:$0xff] %v1958_v53 }
 0x422   :  { %2226 = vst [vmem:[#allocation1 + $0x4] ss:$9 sm:$0xff] %v1959_v49  ;;  %v1973_v49 = vperm.slane %v1865_v25, 2 }
 0x423   :  { %2227 = vst [vmem:[#allocation1 + $0x5] ss:$9 sm:$0xff] %v1960_v18  ;;  %v1974_v18 = vperm.slane %v1865_v25, 3 }
 0x424   :  { %2228 = vst [vmem:[#allocation1 + $0x6] ss:$9 sm:$0xff] %v1961_v6  ;;  %v1975_v6 = vperm.slane %v1865_v25, 4 }
 0x425   :  { %2229 = vst [vmem:[#allocation1 + $0x7] ss:$9 sm:$0xff] %v1962_v51  ;;  %v1976_v51 = vperm.slane %v1865_v25, 5 }
 0x42c   :  { %v6314_v5 = vld [vmem:[#allocation1] sm:$0xff] }
 0x42d   :  { %2231 = vst [vmem:[#allocation1] ss:$9 sm:$0xff] %v1963_v58  ;;  %v1977_v58 = vperm.slane %v1865_v25, 6  ;;  %v1984_v25 = vperm.slane %v1866_v45, 5 }
 0x42e   :  { %2232 = vst [vmem:[#allocation1 + $0x1] ss:$9 sm:$0xff] %v1964_v61  ;;  %v2886_v61 = vadd.f32 %v6137_v50, %v6213_v39 }
 0x42f   :  { %2233 = vst [vmem:[#allocation1 + $0x2] ss:$9 sm:$0xff] %v1965_v63  ;;  %v1979_v63 = vperm.slane %v1866_v45, 0 }
 0x430   :  { %2234 = vst [vmem:[#allocation1 + $0x3] ss:$9 sm:$0xff] %v1966_v3  ;;  %v1980_v3 = vperm.slane %v1866_v45, 1 }
 0x431   :  { %2235 = vst [vmem:[#allocation1 + $0x4] ss:$9 sm:$0xff] %v1967_v23 }
 0x432   :  { %2236 = vst [vmem:[#allocation1 + $0x5] ss:$9 sm:$0xff] %v1968_v8  ;;  %v1981_v8 = vperm.slane %v1866_v45, 2 }
 0x433   :  { %2237 = vst [vmem:[#allocation1 + $0x6] ss:$9 sm:$0xff] %v1969_v52  ;;  %v1982_v52 = vperm.slane %v1866_v45, 3 }
 0x434   :  { %2238 = vst [vmem:[#allocation1 + $0x7] ss:$9 sm:$0xff] %v1970_v31  ;;  %v2961_v31 = vmax.f32 %v2886_v61, 0.0  ;;  %v2777_v61 = vadd.f32 %v6121_v12, %v2776_v41  ;;  %v2656_v41 = vld [vmem:[%s7752_s0 + $0x2a0] sm:$0xff] }
 0x436   :  { %v2993_v50 = vmul.f32 %v6157_v54, %v2961_v31 }
 0x438   :  { %v3031_v39 = vsel %vm460_vm1, %v2993_v50, 0.0  ;;  %v2657_v50 = vld [vmem:[%s7752_s0 + $0x2a8] sm:$0xff] }
 0x439   :  { %3032 = vadd.xlane.f32.xlu1 %v3031_v39  ;;  %v2678_v39 = vpack.c.bf16 %v2657_v50, %v2656_v41  ;;  %v1869_v41 = vadd.f32 %v5910_v29, %v5768_v2  ;;  %v2658_v50 = vld [vmem:[%s7752_s0 + $0x2b0] sm:$0xff] }
 0x43b   :  { %v6318_v53 = vld [vmem:[#allocation1] sm:$0xff]  ;;  %5212 = vmatmul.msk.bf16.gmra.mxu0 %vm115_vm0, %v2678_v39  ;;  %v2007_v29 = vperm.slane %v1869_v41, 4 }
 0x43c   :  { %2240 = vst [vmem:[#allocation1] ss:$9 sm:$0xff] %v1971_v43  ;;  %v1983_v43 = vperm.slane %v1866_v45, 4 }
 0x43d   :  { %2241 = vst [vmem:[#allocation1 + $0x1] ss:$9 sm:$0xff] %v1972_v28  ;;  %v1985_v28 = vperm.slane %v1866_v45, 6 }
 0x43e   :  { %2242 = vst [vmem:[#allocation1 + $0x2] ss:$9 sm:$0xff] %v1973_v49  ;;  %v1986_v49 = vperm.slane %v1866_v45, 7 }
 0x43f   :  { %2243 = vst [vmem:[#allocation1 + $0x3] ss:$9 sm:$0xff] %v1974_v18  ;;  %v1867_v18 = vadd.f32 %v5899_v59, %v5768_v2 }
 0x440   :  { %2244 = vst [vmem:[#allocation1 + $0x4] ss:$9 sm:$0xff] %v1975_v6 }
 0x441   :  { %2245 = vst [vmem:[#allocation1 + $0x5] ss:$9 sm:$0xff] %v1976_v51  ;;  %v1987_v6 = vperm.slane %v1867_v18, 0  ;;  %v2778_v51 = vpop.f32.mrf.mxu0  ;;  %v1990_v54 = vperm.slane %v1867_v18, 3  ;;  %v1992_v31 = vperm.slane %v1867_v18, 5 }
 0x442   :  { %2246 = vst [vmem:[#allocation1 + $0x6] ss:$9 sm:$0xff] %v1977_v58  ;;  %v1988_v58 = vperm.slane %v1867_v18, 1  ;;  %v2779_v45 = vadd.f32 %v6121_v12, %v2778_v51 }
 0x443   :  { %2247 = vst [vmem:[#allocation1 + $0x7] ss:$9 sm:$0xff] %v1978_v0 }
 0x44a   :  { %v6324_v23 = vld [vmem:[#allocation1] sm:$0xff] }
 0x44b   :  { %2249 = vst [vmem:[#allocation1] ss:$9 sm:$0xff] %v1979_v63  ;;  %v1989_v63 = vperm.slane %v1867_v18, 2 }
 0x44c   :  { %2250 = vst [vmem:[#allocation1 + $0x1] ss:$9 sm:$0xff] %v1980_v3  ;;  %v2835_v3 = vmax.f32 %v2777_v61, 0.0 }
 0x44d   :  { %2251 = vst [vmem:[#allocation1 + $0x2] ss:$9 sm:$0xff] %v1981_v8  ;;  %v2836_v8 = vmax.f32 %v2779_v45, 0.0 }
 0x44e   :  { %2252 = vst [vmem:[#allocation1 + $0x3] ss:$9 sm:$0xff] %v1982_v52  ;;  %v1991_v52 = vperm.slane %v1867_v18, 4 }
 0x44f   :  { %2253 = vst [vmem:[#allocation1 + $0x4] ss:$9 sm:$0xff] %v1983_v43  ;;  %v2860_v59 = vpack.c.bf16 %v2836_v8, %v2835_v3  ;;  %v1993_v43 = vperm.slane %v1867_v18, 6 }
 0x450   :  { %2254 = vst [vmem:[#allocation1 + $0x5] ss:$9 sm:$0xff] %v1984_v25  ;;  %v1994_v25 = vperm.slane %v1867_v18, 7 }
 0x451   :  { %2255 = vst [vmem:[#allocation1 + $0x6] ss:$9 sm:$0xff] %v1985_v28  ;;  %2912 = vmatmul.bf16.gmra.mxu2 %v2860_v59  ;;  %v2781_v28 = vpop.f32.mrf.mxu0  ;;  %v3900_v59 = vld [vmem:[%s7752_s0 + $0x328] sm:$0xff] }
 0x452   :  { %2256 = vst [vmem:[#allocation1 + $0x7] ss:$9 sm:$0xff] %v1986_v49  ;;  %v1868_v49 = vadd.f32 %v5904_v15, %v5768_v2  ;;  %v2782_v15 = vadd.f32 %v6121_v12, %v2781_v28  ;;  %1242 = vperm.xlu1 %5238, %v6088_v24   ;;  %v2659_v24 = vld [vmem:[%s7752_s0 + $0x2b8] sm:$0xff] }
 0x453   :  { %v2679_v39 = vpack.c.bf16 %v2659_v24, %v2658_v50 }
 0x454   :  { %v1996_v18 = vperm.slane %v1868_v49, 1  ;;  %v1997_v61 = vperm.slane %v1868_v49, 2  ;;  %v2837_v3 = vmax.f32 %v2782_v15, 0.0  ;;  %v2002_v28 = vperm.slane %v1868_v49, 7 }
 0x455   :  { %5213 = vmatmul.msk.bf16.gmra.mxu0 %vm115_vm0, %v2679_v39  ;;  %v2008_v15 = vperm.slane %v1869_v41, 5 }
 0x459   :  { %v6330_v0 = vld [vmem:[#allocation1] sm:$0xff] }
 0x45a   :  { %2258 = vst [vmem:[#allocation1] ss:$9 sm:$0xff] %v1987_v6  ;;  %v1995_v6 = vperm.slane %v1868_v49, 0 }
 0x45b   :  { %2259 = vst [vmem:[#allocation1 + $0x1] ss:$9 sm:$0xff] %v1988_v58  ;;  %v2783_v58 = vpop.f32.mrf.mxu0 }
 0x45c   :  { %2260 = vst [vmem:[#allocation1 + $0x2] ss:$9 sm:$0xff] %v1989_v63  ;;  %v2784_v45 = vadd.f32 %v6121_v12, %v2783_v58  ;;  %v1998_v63 = vperm.slane %v1868_v49, 3  ;;  %v2005_v58 = vperm.slane %v1869_v41, 2 }
 0x45d   :  { %2261 = vst [vmem:[#allocation1 + $0x3] ss:$9 sm:$0xff] %v1990_v54  ;;  %v1999_v54 = vperm.slane %v1868_v49, 4 }
 0x45e   :  { %2262 = vst [vmem:[#allocation1 + $0x4] ss:$9 sm:$0xff] %v1991_v52  ;;  %v2838_v8 = vmax.f32 %v2784_v45, 0.0  ;;  %v2000_v52 = vperm.slane %v1868_v49, 5  ;;  %v2009_v45 = vperm.slane %v1869_v41, 6 }
 0x45f   :  { %2263 = vst [vmem:[#allocation1 + $0x5] ss:$9 sm:$0xff] %v1992_v31  ;;  %v3899_v31 = vld [vmem:[%s7752_s0 + $0x320] sm:$0xff] }
 0x460   :  { %2264 = vst [vmem:[#allocation1 + $0x6] ss:$9 sm:$0xff] %v1993_v43  ;;  %v2001_v43 = vperm.slane %v1868_v49, 6  ;;  %v2861_v12 = vpack.c.bf16 %v2838_v8, %v2837_v3  ;;  %v2004_v49 = vperm.slane %v1869_v41, 1 }
 0x461   :  { %2265 = vst [vmem:[#allocation1 + $0x7] ss:$9 sm:$0xff] %v1994_v25  ;;  %v3929_v25 = vpack.c.bf16 %v3900_v59, %v3899_v31 }
 0x462   :  { %2917 = vmatmul.bf16.gmra.mxu2 %v2861_v12 }
 0x463   :  { %5220 = vmatmul.msk.bf16.gmra.mxu1 %vm115_vm0, %v3929_v25 }
 0x468   :  { %v6343_v51 = vld [vmem:[#allocation1] sm:$0xff] }
 0x469   :  { %2267 = vst [vmem:[#allocation1] ss:$9 sm:$0xff] %v1995_v6  ;;  %v2003_v6 = vperm.slane %v1869_v41, 0 }
 0x46a   :  { %2268 = vst [vmem:[#allocation1 + $0x1] ss:$9 sm:$0xff] %v1996_v18 }
 0x46b   :  { %2269 = vst [vmem:[#allocation1 + $0x2] ss:$9 sm:$0xff] %v1997_v61  ;;  %v2006_v61 = vperm.slane %v1869_v41, 3 }
 0x46c   :  { %2270 = vst [vmem:[#allocation1 + $0x3] ss:$9 sm:$0xff] %v1998_v63  ;;  %v2010_v63 = vperm.slane %v1869_v41, 7 }
 0x46d   :  { %2271 = vst [vmem:[#allocation1 + $0x4] ss:$9 sm:$0xff] %v1999_v54  ;;  %v1870_v54 = vadd.f32 %v5915_v34, %v5768_v2  ;;  %v1871_v34 = vadd.f32 %v5920_v62, %v5768_v2  ;;  %v1872_v62 = vadd.f32 %v5940_v42, %v5768_v2 }
 0x46e   :  { %2272 = vst [vmem:[#allocation1 + $0x5] ss:$9 sm:$0xff] %v2000_v52 }
 0x46f   :  { %2273 = vst [vmem:[#allocation1 + $0x6] ss:$9 sm:$0xff] %v2001_v43  ;;  %v2011_v3 = vperm.slane %v1870_v54, 0  ;;  %v2012_v8 = vperm.slane %v1870_v54, 1  ;;  %v2013_v31 = vperm.slane %v1870_v54, 2  ;;  %v2014_v59 = vperm.slane %v1870_v54, 3 }
 0x470   :  { %2274 = vst [vmem:[#allocation1 + $0x7] ss:$9 sm:$0xff] %v2002_v28  ;;  %v2015_v43 = vperm.slane %v1870_v54, 4  ;;  %v2016_v12 = vperm.slane %v1870_v54, 5  ;;  %v2017_v25 = vperm.slane %v1870_v54, 6  ;;  %v2018_v28 = vperm.slane %v1870_v54, 7 }
 0x471   :  { %v2019_v41 = vperm.slane %v1871_v34, 0  ;;  %v2020_v50 = vperm.slane %v1871_v34, 1  ;;  %v2021_v39 = vperm.slane %v1871_v34, 2 }
 0x477   :  { %v6363_v18 = vld [vmem:[#allocation1] sm:$0xff] }
 0x478   :  { %2276 = vst [vmem:[#allocation1] ss:$9 sm:$0xff] %v2003_v6  ;;  %v2022_v6 = vperm.slane %v1871_v34, 3 }
 0x479   :  { %2277 = vst [vmem:[#allocation1 + $0x1] ss:$9 sm:$0xff] %v2004_v49  ;;  %v2023_v49 = vperm.slane %v1871_v34, 4 }
 0x47a   :  { %2278 = vst [vmem:[#allocation1 + $0x2] ss:$9 sm:$0xff] %v2005_v58  ;;  %v2024_v58 = vperm.slane %v1871_v34, 5 }
 0x47b   :  { %2279 = vst [vmem:[#allocation1 + $0x3] ss:$9 sm:$0xff] %v2006_v61  ;;  %v2025_v61 = vperm.slane %v1871_v34, 6 }
 0x47c   :  { %2280 = vst [vmem:[#allocation1 + $0x4] ss:$9 sm:$0xff] %v2007_v29  ;;  %v2026_v29 = vperm.slane %v1871_v34, 7 }
 0x47d   :  { %2281 = vst [vmem:[#allocation1 + $0x5] ss:$9 sm:$0xff] %v2008_v15  ;;  %v6376_v15 = vpop.f32.mrf.mxu2 }
 0x47e   :  { %2282 = vst [vmem:[#allocation1 + $0x6] ss:$9 sm:$0xff] %v2009_v45  ;;  %v2027_v45 = vperm.slane %v1872_v62, 0 }
 0x47f   :  { %2283 = vst [vmem:[#allocation1 + $0x7] ss:$9 sm:$0xff] %v2010_v63  ;;  %v2028_v63 = vperm.slane %v1872_v62, 1 }
 0x485   :  { %v6380_v42 = vpop.f32.mrf.mxu2 }
 0x486   :  { %v6368_v52 = vld [vmem:[#allocation1] sm:$0xff] }
 0x487   :  { %2285 = vst [vmem:[#allocation1] ss:$9 sm:$0xff] %v2011_v3  ;;  %v2029_v3 = vperm.slane %v1872_v62, 2 }
 0x488   :  { %2286 = vst [vmem:[#allocation1 + $0x1] ss:$9 sm:$0xff] %v2012_v8  ;;  %v2030_v8 = vperm.slane %v1872_v62, 3 }
 0x489   :  { %2287 = vst [vmem:[#allocation1 + $0x2] ss:$9 sm:$0xff] %v2013_v31  ;;  %v2031_v31 = vperm.slane %v1872_v62, 4 }
 0x48a   :  { %2288 = vst [vmem:[#allocation1 + $0x3] ss:$9 sm:$0xff] %v2014_v59  ;;  %v2032_v59 = vperm.slane %v1872_v62, 5 }
 0x48b   :  { %2289 = vst [vmem:[#allocation1 + $0x4] ss:$9 sm:$0xff] %v2015_v43  ;;  %v2033_v43 = vperm.slane %v1872_v62, 6 }
 0x48c   :  { %2290 = vst [vmem:[#allocation1 + $0x5] ss:$9 sm:$0xff] %v2016_v12  ;;  %v2034_v12 = vperm.slane %v1872_v62, 7 }
 0x48d   :  { %2291 = vst [vmem:[#allocation1 + $0x6] ss:$9 sm:$0xff] %v2017_v25  ;;  %v1873_v25 = vadd.f32 %v5966_v48, %v5768_v2  ;;  %v6389_v48 = vld [vmem:[%s7756_s4] ss:$0 sm:$0xff] }
 0x48e   :  { %2292 = vst [vmem:[#allocation1 + $0x7] ss:$9 sm:$0xff] %v2018_v28 }
 0x48f   :  { %v2035_v28 = vperm.slane %v1873_v25, 0  ;;  %v2036_v34 = vperm.slane %v1873_v25, 1 }
 0x495   :  { %v6372_v24 = vld [vmem:[#allocation1] sm:$0xff] }
 0x496   :  { %2294 = vst [vmem:[#allocation1] ss:$9 sm:$0xff] %v2019_v41 }
 0x497   :  { %2295 = vst [vmem:[#allocation1 + $0x1] ss:$9 sm:$0xff] %v2020_v50  ;;  %v2037_v50 = vperm.slane %v1873_v25, 2 }
 0x498   :  { %2296 = vst [vmem:[#allocation1 + $0x2] ss:$9 sm:$0xff] %v2021_v39  ;;  %v2038_v39 = vperm.slane %v1873_v25, 3 }
 0x499   :  { %2297 = vst [vmem:[#allocation1 + $0x3] ss:$9 sm:$0xff] %v2022_v6  ;;  %v2039_v6 = vperm.slane %v1873_v25, 4 }
 0x49a   :  { %2298 = vst [vmem:[#allocation1 + $0x4] ss:$9 sm:$0xff] %v2023_v49  ;;  %v2903_v49 = vpop.f32.mrf.mxu2 }
 0x49b   :  { %2299 = vst [vmem:[#allocation1 + $0x5] ss:$9 sm:$0xff] %v2024_v58  ;;  %v2040_v58 = vperm.slane %v1873_v25, 5  ;;  %v2904_v62 = vadd.f32 %v6389_v48, %v2903_v49 }
 0x49c   :  { %2300 = vst [vmem:[#allocation1 + $0x6] ss:$9 sm:$0xff] %v2025_v61  ;;  %v2041_v61 = vperm.slane %v1873_v25, 6 }
 0x49d   :  { %2301 = vst [vmem:[#allocation1 + $0x7] ss:$9 sm:$0xff] %v2026_v29  ;;  %v2042_v29 = vperm.slane %v1873_v25, 7  ;;  %v3901_v25 = vld [vmem:[%s7752_s0 + $0x330] sm:$0xff] }
 0x4a4   :  { %v6378_v54 = vld [vmem:[#allocation1] sm:$0xff] }
 0x4a5   :  { %2303 = vst [vmem:[#allocation1] ss:$9 sm:$0xff] %v2027_v45  ;;  %v1874_v45 = vadd.f32 %v5982_v46, %v5768_v2  ;;  %v3902_v46 = vld [vmem:[%s7752_s0 + $0x338] sm:$0xff] }
 0x4a6   :  { %2304 = vst [vmem:[#allocation1 + $0x1] ss:$9 sm:$0xff] %v2028_v63  ;;  %v2968_v63 = vmax.f32 %v2904_v62, 0.0 }
 0x4a7   :  { %2305 = vst [vmem:[#allocation1 + $0x2] ss:$9 sm:$0xff] %v2029_v3  ;;  %v2043_v3 = vperm.slane %v1874_v45, 0  ;;  %v2048_v49 = vperm.slane %v1874_v45, 5 }
 0x4a8   :  { %2306 = vst [vmem:[#allocation1 + $0x3] ss:$9 sm:$0xff] %v2030_v8  ;;  %v2891_v8 = vadd.f32 %v6389_v48, %v6259_v40 }
 0x4a9   :  { %2307 = vst [vmem:[#allocation1 + $0x4] ss:$9 sm:$0xff] %v2031_v31  ;;  %v6399_v31 = vld [vmem:[%s7757_s5] ss:$0 sm:$0xff] }
 0x4aa   :  { %2308 = vst [vmem:[#allocation1 + $0x5] ss:$9 sm:$0xff] %v2032_v59  ;;  %v3000_v59 = vmul.f32 %v6399_v31, %v2968_v63  ;;  %v1875_v63 = vadd.f32 %v5991_v14, %v5768_v2  ;;  %v1876_v14 = vadd.f32 %v6043_v22, %v5768_v2  ;;  %v1877_v22 = vadd.f32 %v6049_v35, %v5768_v2 }
 0x4ab   :  { %2309 = vst [vmem:[#allocation1 + $0x6] ss:$9 sm:$0xff] %v2033_v43  ;;  %v2044_v43 = vperm.slane %v1874_v45, 1 }
 0x4ac   :  { %2310 = vst [vmem:[#allocation1 + $0x7] ss:$9 sm:$0xff] %v2034_v12  ;;  %v3052_v40 = vsel %vm460_vm1, %v3000_v59, 0.0 }
 0x4ad   :  { %3053 = vadd.xlane.f32.xlu0 %v3052_v40  ;;  %v2058_v40 = vperm.slane %v1875_v63, 7 }
 0x4b3   :  { %v6384_v41 = vld [vmem:[#allocation1] sm:$0xff] }
 0x4b4   :  { %2312 = vst [vmem:[#allocation1] ss:$9 sm:$0xff] %v2035_v28  ;;  %v2045_v28 = vperm.slane %v1874_v45, 2 }
 0x4b5   :  { %2313 = vst [vmem:[#allocation1 + $0x1] ss:$9 sm:$0xff] %v2036_v34  ;;  %v3930_v34 = vpack.c.bf16 %v3902_v46, %v3901_v25  ;;  %v2054_v25 = vperm.slane %v1875_v63, 3  ;;  %v2056_v46 = vperm.slane %v1875_v63, 5 }
 0x4b6   :  { %2314 = vst [vmem:[#allocation1 + $0x2] ss:$9 sm:$0xff] %v2037_v50  ;;  %v2046_v50 = vperm.slane %v1874_v45, 3 }
 0x4b7   :  { %2315 = vst [vmem:[#allocation1 + $0x3] ss:$9 sm:$0xff] %v2038_v39  ;;  %v2047_v39 = vperm.slane %v1874_v45, 4  ;;  %5221 = vmatmul.msk.bf16.gmra.mxu1 %vm115_vm0, %v3930_v34  ;;  %v2059_v34 = vperm.slane %v1876_v14, 0 }
 0x4b8   :  { %2316 = vst [vmem:[#allocation1 + $0x4] ss:$9 sm:$0xff] %v2039_v6  ;;  %v2963_v6 = vmax.f32 %v2891_v8, 0.0  ;;  %v2052_v8 = vperm.slane %v1875_v63, 1 }
 0x4b9   :  { %2317 = vst [vmem:[#allocation1 + $0x5] ss:$9 sm:$0xff] %v2040_v58  ;;  %v2049_v58 = vperm.slane %v1874_v45, 6 }
 0x4ba   :  { %2318 = vst [vmem:[#allocation1 + $0x6] ss:$9 sm:$0xff] %v2041_v61  ;;  %v2050_v61 = vperm.slane %v1874_v45, 7  ;;  %v2055_v45 = vperm.slane %v1875_v63, 4 }
 0x4bb   :  { %2319 = vst [vmem:[#allocation1 + $0x7] ss:$9 sm:$0xff] %v2042_v29  ;;  %v2995_v29 = vmul.f32 %v6399_v31, %v2963_v6  ;;  %v2061_v6 = vperm.slane %v1876_v14, 2 }
 0x4bd   :  { %v3037_v62 = vsel %vm460_vm1, %v2995_v29, 0.0  ;;  %v2065_v29 = vperm.slane %v1876_v14, 6 }
 0x4be   :  { %3038 = vadd.xlane.f32.xlu2 %v3037_v62  ;;  %v2067_v62 = vperm.slane %v1877_v22, 0 }
 0x4c1   :  { %1263 = vperm.xlu0 %5237, %v6272_v10   ;;  %v2066_v10 = vperm.slane %v1876_v14, 7 }
 0x4c2   :  { %v6402_v12 = vld [vmem:[#allocation1] sm:$0xff] }
 0x4c3   :  { %7791 = vst [vmem:[#allocation17_spill] sm:$0xff] %v6402_v12 }
 0x4c4   :  { %2321 = vst [vmem:[#allocation1] ss:$9 sm:$0xff] %v2043_v3  ;;  %v2051_v3 = vperm.slane %v1875_v63, 0 }
 0x4c5   :  { %2322 = vst [vmem:[#allocation1 + $0x1] ss:$9 sm:$0xff] %v2044_v43  ;;  %v2053_v43 = vperm.slane %v1875_v63, 2 }
 0x4c6   :  { %2323 = vst [vmem:[#allocation1 + $0x2] ss:$9 sm:$0xff] %v2045_v28  ;;  %v2057_v28 = vperm.slane %v1875_v63, 6  ;;  %v2894_v63 = vadd.f32 %v6389_v48, %v6265_v47 }
 0x4c7   :  { %2324 = vst [vmem:[#allocation1 + $0x3] ss:$9 sm:$0xff] %v2046_v50  ;;  %v2060_v50 = vperm.slane %v1876_v14, 1 }
 0x4c8   :  { %2325 = vst [vmem:[#allocation1 + $0x4] ss:$9 sm:$0xff] %v2047_v39 }
 0x4c9   :  { %2326 = vst [vmem:[#allocation1 + $0x5] ss:$9 sm:$0xff] %v2048_v49  ;;  %v2062_v49 = vperm.slane %v1876_v14, 3 }
 0x4ca   :  { %2327 = vst [vmem:[#allocation1 + $0x6] ss:$9 sm:$0xff] %v2049_v58  ;;  %v2063_v58 = vperm.slane %v1876_v14, 4 }
 0x4cb   :  { %2328 = vst [vmem:[#allocation1 + $0x7] ss:$9 sm:$0xff] %v2050_v61  ;;  %v2064_v61 = vperm.slane %v1876_v14, 5  ;;  %v1878_v14 = vadd.f32 %v6069_v11, %v5768_v2  ;;  %v6441_v11 = vld [vmem:[%s7754_s2] ss:$0 sm:$0xff] }
 0x4d2   :  { %v6416_v59 = vld [vmem:[#allocation1] sm:$0xff] }
 0x4d3   :  { %2330 = vst [vmem:[#allocation1] ss:$9 sm:$0xff] %v2051_v3  ;;  %v2068_v3 = vperm.slane %v1877_v22, 1 }
 0x4d4   :  { %2331 = vst [vmem:[#allocation1 + $0x1] ss:$9 sm:$0xff] %v2052_v8 }
 0x4d5   :  { %2332 = vst [vmem:[#allocation1 + $0x2] ss:$9 sm:$0xff] %v2053_v43  ;;  %v2069_v43 = vperm.slane %v1877_v22, 2 }
 0x4d6   :  { %2333 = vst [vmem:[#allocation1 + $0x3] ss:$9 sm:$0xff] %v2054_v25  ;;  %1248 = vperm.xlu2 %5236, %v6160_v44   ;;  %v2070_v25 = vperm.slane %v1877_v22, 3  ;;  %v2071_v44 = vperm.slane %v1877_v22, 4 }
 0x4d7   :  { %2334 = vst [vmem:[#allocation1 + $0x4] ss:$9 sm:$0xff] %v2055_v45  ;;  %v2964_v45 = vmax.f32 %v2894_v63, 0.0 }
 0x4d8   :  { %2335 = vst [vmem:[#allocation1 + $0x5] ss:$9 sm:$0xff] %v2056_v46  ;;  %v2072_v46 = vperm.slane %v1877_v22, 5 }
 0x4d9   :  { %2336 = vst [vmem:[#allocation1 + $0x6] ss:$9 sm:$0xff] %v2057_v28  ;;  %v2073_v28 = vperm.slane %v1877_v22, 6  ;;  %v2996_v35 = vmul.f32 %v6399_v31, %v2964_v45 }
 0x4da   :  { %2337 = vst [vmem:[#allocation1 + $0x7] ss:$9 sm:$0xff] %v2058_v40  ;;  %v2074_v40 = vperm.slane %v1877_v22, 7  ;;  %v2079_v22 = vperm.slane %v1878_v14, 4 }
 0x4db   :  { %v3040_v47 = vsel %vm460_vm1, %v2996_v35, 0.0 }
 0x4dc   :  { %3041 = vadd.xlane.f32.xlu1 %v3040_v47 }
 0x4e1   :  { %v6421_v39 = vld [vmem:[#allocation1] sm:$0xff] }
 0x4e2   :  { %7792 = vst [vmem:[#allocation18_spill] sm:$0xff] %v6421_v39 }
 0x4e3   :  { %2339 = vst [vmem:[#allocation1] ss:$9 sm:$0xff] %v2059_v34  ;;  %v2786_v34 = vpop.f32.mrf.mxu0 }
 0x4e4   :  { %2340 = vst [vmem:[#allocation1 + $0x1] ss:$9 sm:$0xff] %v2060_v50  ;;  %v4000_v50 = vpop.f32.mrf.mxu1 }
 0x4e5   :  { %2341 = vst [vmem:[#allocation1 + $0x2] ss:$9 sm:$0xff] %v2061_v6  ;;  %v2075_v6 = vperm.slane %v1878_v14, 0 }
 0x4e6   :  { %2342 = vst [vmem:[#allocation1 + $0x3] ss:$9 sm:$0xff] %v2062_v49  ;;  %v2076_v49 = vperm.slane %v1878_v14, 1 }
 0x4e7   :  { %2343 = vst [vmem:[#allocation1 + $0x4] ss:$9 sm:$0xff] %v2063_v58 }
 0x4e8   :  { %2344 = vst [vmem:[#allocation1 + $0x5] ss:$9 sm:$0xff] %v2064_v61  ;;  %v2077_v61 = vperm.slane %v1878_v14, 2 }
 0x4e9   :  { %2345 = vst [vmem:[#allocation1 + $0x6] ss:$9 sm:$0xff] %v2065_v29  ;;  %v6436_v29 = vpop.f32.mrf.mxu2 }
 0x4ea   :  { %2346 = vst [vmem:[#allocation1 + $0x7] ss:$9 sm:$0xff] %v2066_v10  ;;  %v2078_v10 = vperm.slane %v1878_v14, 3 }
 0x4eb   :  { %v2788_v63 = vpop.f32.mrf.mxu0 }
 0x4f1   :  { %v6428_v8 = vld [vmem:[#allocation1] sm:$0xff] }
 0x4f2   :  { %7793 = vst [vmem:[#allocation19_spill] sm:$0xff] %v6428_v8 }
 0x4f3   :  { %2348 = vst [vmem:[#allocation1] ss:$9 sm:$0xff] %v2067_v62  ;;  %v2080_v62 = vperm.slane %v1878_v14, 5 }
 0x4f4   :  { %2349 = vst [vmem:[#allocation1 + $0x1] ss:$9 sm:$0xff] %v2068_v3  ;;  %v4002_v3 = vpop.f32.mrf.mxu1 }
 0x4f5   :  { %2350 = vst [vmem:[#allocation1 + $0x2] ss:$9 sm:$0xff] %v2069_v43  ;;  %v2787_v43 = vadd.f32 %v6441_v11, %v2786_v34  ;;  %v4003_v45 = vadd.f32 %v6441_v11, %v4002_v3  ;;  %v1879_v34 = vadd.f32 %v6114_v55, %v5768_v2  ;;  %v2661_v3 = vld [vmem:[%s7752_s0 + $0x2c8] sm:$0xff]  ;;  %1251 = vperm.xlu1 %5238, %v6176_v38  }
 0x4f6   :  { %2351 = vst [vmem:[#allocation1 + $0x3] ss:$9 sm:$0xff] %v2070_v25  ;;  %v4001_v25 = vadd.f32 %v6441_v11, %v4000_v50 }
 0x4f7   :  { %2352 = vst [vmem:[#allocation1 + $0x4] ss:$9 sm:$0xff] %v2071_v44  ;;  %v2789_v44 = vadd.f32 %v6441_v11, %v2788_v63  ;;  %v2083_v63 = vperm.slane %v1879_v34, 0  ;;  %v2087_v55 = vperm.slane %v1879_v34, 4 }
 0x4f8   :  { %2353 = vst [vmem:[#allocation1 + $0x5] ss:$9 sm:$0xff] %v2072_v46  ;;  %v2081_v46 = vperm.slane %v1878_v14, 6  ;;  %v4080_v35 = vmax.f32 %v4001_v25, 0.0 }
 0x4f9   :  { %2354 = vst [vmem:[#allocation1 + $0x6] ss:$9 sm:$0xff] %v2073_v28  ;;  %v2082_v28 = vperm.slane %v1878_v14, 7  ;;  %v2840_v47 = vmax.f32 %v2789_v44, 0.0  ;;  %v2084_v14 = vperm.slane %v1879_v34, 1  ;;  %v2086_v44 = vperm.slane %v1879_v34, 3 }
 0x4fa   :  { %2355 = vst [vmem:[#allocation1 + $0x7] ss:$9 sm:$0xff] %v2074_v40  ;;  %v2839_v40 = vmax.f32 %v2787_v43, 0.0  ;;  %v2085_v43 = vperm.slane %v1879_v34, 2 }
 0x4fc   :  { %v4005_v50 = vpop.f32.mrf.mxu1 }
 0x501   :  { %v6434_v58 = vld [vmem:[#allocation1] sm:$0xff] }
 0x502   :  { %2357 = vst [vmem:[#allocation1] ss:$9 sm:$0xff] %v2075_v6  ;;  %v4081_v6 = vmax.f32 %v4003_v45, 0.0 }
 0x503   :  { %2358 = vst [vmem:[#allocation1 + $0x1] ss:$9 sm:$0xff] %v2076_v49  ;;  %v2862_v49 = vpack.c.bf16 %v2840_v47, %v2839_v40 }
 0x504   :  { %2359 = vst [vmem:[#allocation1 + $0x2] ss:$9 sm:$0xff] %v2077_v61  ;;  %v4112_v61 = vpack.c.bf16 %v4081_v6, %v4080_v35  ;;  %v4007_v40 = vpop.f32.mrf.mxu1  ;;  %v2090_v35 = vperm.slane %v1879_v34, 7  ;;  %v4006_v6 = vadd.f32 %v6441_v11, %v4005_v50 }
 0x505   :  { %2360 = vst [vmem:[#allocation1 + $0x3] ss:$9 sm:$0xff] %v2078_v10  ;;  %v6447_v10 = vpop.f32.mrf.mxu2  ;;  %2922 = vmatmul.bf16.gmra.mxu2 %v2862_v49  ;;  %v4008_v49 = vadd.f32 %v6441_v11, %v4007_v40 }
 0x506   :  { %2361 = vst [vmem:[#allocation1 + $0x4] ss:$9 sm:$0xff] %v2079_v22  ;;  %4136 = vmatmul.bf16.vlgmr.msrb.gmra.mxu3 %v4112_v61  ;;  %v1880_v61 = vadd.f32 %v6116_v56, %v5768_v2 }
 0x507   :  { %2362 = vst [vmem:[#allocation1 + $0x5] ss:$9 sm:$0xff] %v2080_v62  ;;  %v2660_v62 = vld [vmem:[%s7752_s0 + $0x2c0] sm:$0xff] }
 0x508   :  { %2363 = vst [vmem:[#allocation1 + $0x6] ss:$9 sm:$0xff] %v2081_v46  ;;  %v2680_v25 = vpack.c.bf16 %v2661_v3, %v2660_v62  ;;  %v2088_v46 = vperm.slane %v1879_v34, 5  ;;  %v4083_v62 = vmax.f32 %v4008_v49, 0.0  ;;  %v2091_v3 = vperm.slane %v1880_v61, 0 }
 0x509   :  { %2364 = vst [vmem:[#allocation1 + $0x7] ss:$9 sm:$0xff] %v2082_v28  ;;  %v2089_v28 = vperm.slane %v1879_v34, 6  ;;  %v2092_v38 = vperm.slane %v1880_v61, 1  ;;  %v2094_v50 = vperm.slane %v1880_v61, 3  ;;  %v2095_v56 = vperm.slane %v1880_v61, 4 }
 0x50a   :  { %5214 = vmatmul.msk.bf16.gmra.mxu0 %vm115_vm0, %v2680_v25  ;;  %v2093_v25 = vperm.slane %v1880_v61, 2  ;;  %v2098_v40 = vperm.slane %v1880_v61, 7 }
 0x50d   :  { %v2910_v45 = vpop.f32.mrf.mxu2 }
 0x50e   :  { %v2911_v47 = vadd.f32 %v6389_v48, %v2910_v45  ;;  %v2899_v45 = vadd.f32 %v6389_v48, %v6376_v15 }
 0x510   :  { %v6451_v22 = vld [vmem:[#allocation1] sm:$0xff] }
 0x511   :  { %7794 = vst [vmem:[#allocation20_spill] sm:$0xff] %v6451_v22 }
 0x512   :  { %2366 = vst [vmem:[#allocation1] ss:$9 sm:$0xff] %v2083_v63  ;;  %v2971_v63 = vmax.f32 %v2911_v47, 0.0  ;;  %v1881_v47 = vadd.f32 %v6142_v32, %v5768_v2 }
 0x513   :  { %2367 = vst [vmem:[#allocation1 + $0x1] ss:$9 sm:$0xff] %v2084_v14  ;;  %v4082_v14 = vmax.f32 %v4006_v6, 0.0 }
 0x514   :  { %2368 = vst [vmem:[#allocation1 + $0x2] ss:$9 sm:$0xff] %v2085_v43  ;;  %v3003_v43 = vmul.f32 %v6399_v31, %v2971_v63  ;;  %v2099_v49 = vperm.slane %v1881_v47, 0  ;;  %v2100_v63 = vperm.slane %v1881_v47, 1  ;;  %v2106_v32 = vperm.slane %v1881_v47, 7 }
 0x515   :  { %2369 = vst [vmem:[#allocation1 + $0x3] ss:$9 sm:$0xff] %v2086_v44 }
 0x516   :  { %2370 = vst [vmem:[#allocation1 + $0x4] ss:$9 sm:$0xff] %v2087_v55  ;;  %v3061_v44 = vsel %vm460_vm1, %v3003_v43, 0.0  ;;  %v4113_v55 = vpack.c.bf16 %v4083_v62, %v4082_v14  ;;  %v2101_v62 = vperm.slane %v1881_v47, 2  ;;  %v2104_v43 = vperm.slane %v1881_v47, 5 }
 0x517   :  { %2371 = vst [vmem:[#allocation1 + $0x5] ss:$9 sm:$0xff] %v2088_v46  ;;  %3062 = vadd.xlane.f32.xlu0 %v3061_v44  ;;  %v2096_v46 = vperm.slane %v1880_v61, 5 }
 0x518   :  { %2372 = vst [vmem:[#allocation1 + $0x6] ss:$9 sm:$0xff] %v2089_v28  ;;  %4141 = vmatmul.bf16.gmra.mxu3 %v4113_v55  ;;  %v2097_v28 = vperm.slane %v1880_v61, 6  ;;  %v2103_v61 = vperm.slane %v1881_v47, 4 }
 0x519   :  { %2373 = vst [vmem:[#allocation1 + $0x7] ss:$9 sm:$0xff] %v2090_v35  ;;  %v2966_v35 = vmax.f32 %v2899_v45, 0.0 }
 0x51b   :  { %v2998_v6 = vmul.f32 %v6399_v31, %v2966_v35 }
 0x51d   :  { %v3046_v15 = vsel %vm460_vm1, %v2998_v6, 0.0 }
 0x51e   :  { %3047 = vadd.xlane.f32.xlu2 %v3046_v15 }
 0x520   :  { %v6467_v34 = vld [vmem:[#allocation1] sm:$0xff] }
 0x521   :  { %7795 = vst [vmem:[#allocation21_spill] sm:$0xff] %v6467_v34 }
 0x522   :  { %2375 = vst [vmem:[#allocation1] ss:$9 sm:$0xff] %v2091_v3  ;;  %v2102_v3 = vperm.slane %v1881_v47, 3 }
 0x523   :  { %2376 = vst [vmem:[#allocation1 + $0x1] ss:$9 sm:$0xff] %v2092_v38  ;;  %v2105_v38 = vperm.slane %v1881_v47, 6  ;;  %v1883_v47 = vadd.f32 %v6195_v16, %v5768_v2 }
 0x524   :  { %2377 = vst [vmem:[#allocation1 + $0x2] ss:$9 sm:$0xff] %v2093_v25  ;;  %v1882_v25 = vadd.f32 %v6192_v13, %v5768_v2 }
 0x525   :  { %2378 = vst [vmem:[#allocation1 + $0x3] ss:$9 sm:$0xff] %v2094_v50  ;;  %v2115_v15 = vperm.slane %v1883_v47, 0  ;;  %v2122_v16 = vperm.slane %v1883_v47, 7 }
 0x526   :  { %2379 = vst [vmem:[#allocation1 + $0x4] ss:$9 sm:$0xff] %v2095_v56  ;;  %v2107_v44 = vperm.slane %v1882_v25, 0  ;;  %v2108_v55 = vperm.slane %v1882_v25, 1  ;;  %v2109_v45 = vperm.slane %v1882_v25, 2  ;;  %v2110_v56 = vperm.slane %v1882_v25, 3 }
 0x527   :  { %2380 = vst [vmem:[#allocation1 + $0x5] ss:$9 sm:$0xff] %v2096_v46  ;;  %v2111_v46 = vperm.slane %v1882_v25, 4  ;;  %v2114_v35 = vperm.slane %v1882_v25, 7 }
 0x528   :  { %2381 = vst [vmem:[#allocation1 + $0x6] ss:$9 sm:$0xff] %v2097_v28  ;;  %v2112_v28 = vperm.slane %v1882_v25, 5 }
 0x529   :  { %2382 = vst [vmem:[#allocation1 + $0x7] ss:$9 sm:$0xff] %v2098_v40  ;;  %v2901_v40 = vadd.f32 %v6389_v48, %v6380_v42 }
 0x52b   :  { %1272 = vperm.xlu0 %5237, %v6294_v36   ;;  %v2113_v36 = vperm.slane %v1882_v25, 6  ;;  %v2967_v13 = vmax.f32 %v2901_v40, 0.0  ;;  %v2791_v25 = vpop.f32.mrf.mxu0 }
 0x52d   :  { %v2999_v6 = vmul.f32 %v6399_v31, %v2967_v13 }
 0x530   :  { %v6476_v14 = vld [vmem:[#allocation1] sm:$0xff] }
 0x531   :  { %7796 = vst [vmem:[#allocation22_spill] sm:$0xff] %v6476_v14 }
 0x532   :  { %2384 = vst [vmem:[#allocation1] ss:$9 sm:$0xff] %v2099_v49  ;;  %v3049_v49 = vsel %vm460_vm1, %v2999_v6, 0.0 }
 0x533   :  { %2385 = vst [vmem:[#allocation1 + $0x1] ss:$9 sm:$0xff] %v2100_v63  ;;  %v2116_v63 = vperm.slane %v1883_v47, 1  ;;  %3050 = vadd.xlane.f32.xlu1 %v3049_v49  ;;  %v2793_v49 = vpop.f32.mrf.mxu0 }
 0x534   :  { %2386 = vst [vmem:[#allocation1 + $0x2] ss:$9 sm:$0xff] %v2101_v62  ;;  %v2117_v62 = vperm.slane %v1883_v47, 2 }
 0x535   :  { %2387 = vst [vmem:[#allocation1 + $0x3] ss:$9 sm:$0xff] %v2102_v3  ;;  %v2118_v3 = vperm.slane %v1883_v47, 3 }
 0x536   :  { %2388 = vst [vmem:[#allocation1 + $0x4] ss:$9 sm:$0xff] %v2103_v61  ;;  %1257 = vperm.xlu2 %5236, %v6216_v27   ;;  %v2119_v61 = vperm.slane %v1883_v47, 4  ;;  %v2120_v27 = vperm.slane %v1883_v47, 5 }
 0x537   :  { %2389 = vst [vmem:[#allocation1 + $0x5] ss:$9 sm:$0xff] %v2104_v43  ;;  %v2121_v43 = vperm.slane %v1883_v47, 6 }
 0x538   :  { %2390 = vst [vmem:[#allocation1 + $0x6] ss:$9 sm:$0xff] %v2105_v38  ;;  %v6492_v38 = vpop.f32.mrf.mxu2 }
 0x539   :  { %2391 = vst [vmem:[#allocation1 + $0x7] ss:$9 sm:$0xff] %v2106_v32  ;;  %v1884_v32 = vadd.f32 %v6211_v37, %v5768_v2  ;;  %v3903_v37 = vld [vmem:[%s7752_s0 + $0x340] sm:$0xff] }
 0x53b   :  { %v2127_v6 = vperm.slane %v1884_v32, 4 }
 0x540   :  { %v6481_v50 = vld [vmem:[#allocation1] sm:$0xff]  ;;  %v6510_v13 = vpop.f32.mrf.mxu2 }
 0x541   :  { %7797 = vst [vmem:[#allocation23_spill] sm:$0xff] %v6481_v50  ;;  %v6730_v50 = vld [vmem:[%s7754_s2] ss:$0 sm:$0xff] }
 0x542   :  { %2393 = vst [vmem:[#allocation1] ss:$9 sm:$0xff] %v2107_v44  ;;  %v2123_v44 = vperm.slane %v1884_v32, 0 }
 0x543   :  { %2394 = vst [vmem:[#allocation1 + $0x1] ss:$9 sm:$0xff] %v2108_v55  ;;  %v2124_v55 = vperm.slane %v1884_v32, 1 }
 0x544   :  { %2395 = vst [vmem:[#allocation1 + $0x2] ss:$9 sm:$0xff] %v2109_v45 }
 0x545   :  { %2396 = vst [vmem:[#allocation1 + $0x3] ss:$9 sm:$0xff] %v2110_v56  ;;  %v2662_v56 = vld [vmem:[%s7752_s0 + $0x2d0] sm:$0xff] }
 0x546   :  { %2397 = vst [vmem:[#allocation1 + $0x4] ss:$9 sm:$0xff] %v2111_v46  ;;  %v2663_v46 = vld [vmem:[%s7752_s0 + $0x2d8] sm:$0xff] }
 0x547   :  { %2398 = vst [vmem:[#allocation1 + $0x5] ss:$9 sm:$0xff] %v2112_v28  ;;  %v2125_v28 = vperm.slane %v1884_v32, 2  ;;  %v2681_v40 = vpack.c.bf16 %v2663_v46, %v2662_v56 }
 0x548   :  { %2399 = vst [vmem:[#allocation1 + $0x6] ss:$9 sm:$0xff] %v2113_v36  ;;  %v3904_v36 = vld [vmem:[%s7752_s0 + $0x348] sm:$0xff]  ;;  %v2918_v56 = vpop.f32.mrf.mxu2 }
 0x549   :  { %2400 = vst [vmem:[#allocation1 + $0x7] ss:$9 sm:$0xff] %v2114_v35  ;;  %v2126_v35 = vperm.slane %v1884_v32, 3  ;;  %v3931_v47 = vpack.c.bf16 %v3904_v36, %v3903_v37  ;;  %5215 = vmatmul.msk.bf16.gmra.mxu0 %vm115_vm0, %v2681_v40 }
 0x54b   :  { %5222 = vmatmul.msk.bf16.gmra.mxu1 %vm115_vm0, %v3931_v47 }
 0x54c   :  { %1260 = vperm.xlu1 %5238, %v6236_v60  }
 0x550   :  { %v6490_v42 = vld [vmem:[#allocation1] sm:$0xff] }
 0x551   :  { %7798 = vst [vmem:[#allocation24_spill] sm:$0xff] %v6490_v42 }
 0x552   :  { %2402 = vst [vmem:[#allocation1] ss:$9 sm:$0xff] %v2115_v15  ;;  %v2128_v15 = vperm.slane %v1884_v32, 5 }
 0x553   :  { %2403 = vst [vmem:[#allocation1 + $0x1] ss:$9 sm:$0xff] %v2116_v63  ;;  %v4010_v63 = vpop.f32.mrf.mxu1 }
 0x554   :  { %2404 = vst [vmem:[#allocation1 + $0x2] ss:$9 sm:$0xff] %v2117_v62  ;;  %v2129_v62 = vperm.slane %v1884_v32, 6  ;;  %v4011_v36 = vadd.f32 %v6441_v11, %v4010_v63  ;;  %v2664_v63 = vld [vmem:[%s7752_s0 + $0x2e0] sm:$0xff] }
 0x555   :  { %2405 = vst [vmem:[#allocation1 + $0x3] ss:$9 sm:$0xff] %v2118_v3  ;;  %v2792_v3 = vadd.f32 %v6441_v11, %v2791_v25  ;;  %v2919_v25 = vadd.f32 %v6389_v48, %v2918_v56 }
 0x556   :  { %2406 = vst [vmem:[#allocation1 + $0x4] ss:$9 sm:$0xff] %v2119_v61  ;;  %v2794_v61 = vadd.f32 %v6441_v11, %v2793_v49 }
 0x557   :  { %2407 = vst [vmem:[#allocation1 + $0x5] ss:$9 sm:$0xff] %v2120_v27  ;;  %v2130_v27 = vperm.slane %v1884_v32, 7  ;;  %v2974_v60 = vmax.f32 %v2919_v25, 0.0  ;;  %v1886_v25 = vadd.f32 %v6263_v1, %v5768_v2 }
 0x558   :  { %2408 = vst [vmem:[#allocation1 + $0x6] ss:$9 sm:$0xff] %v2121_v43  ;;  %v2841_v43 = vmax.f32 %v2792_v3, 0.0 }
 0x559   :  { %2409 = vst [vmem:[#allocation1 + $0x7] ss:$9 sm:$0xff] %v2122_v16  ;;  %v2842_v16 = vmax.f32 %v2794_v61, 0.0 }
 0x55b   :  { %v4012_v46 = vpop.f32.mrf.mxu1 }
 0x560   :  { %v6496_v45 = vld [vmem:[#allocation1] sm:$0xff] }
 0x561   :  { %7799 = vst [vmem:[#allocation25_spill] sm:$0xff] %v6496_v45 }
 0x562   :  { %2411 = vst [vmem:[#allocation1] ss:$9 sm:$0xff] %v2123_v44  ;;  %v2863_v44 = vpack.c.bf16 %v2842_v16, %v2841_v43  ;;  %v2665_v43 = vld [vmem:[%s7752_s0 + $0x2e8] sm:$0xff]  ;;  %v3905_v16 = vld [vmem:[%s7752_s0 + $0x350] sm:$0xff] }
 0x563   :  { %2412 = vst [vmem:[#allocation1 + $0x1] ss:$9 sm:$0xff] %v2124_v55  ;;  %v1885_v55 = vadd.f32 %v6261_v17, %v5768_v2  ;;  %v2796_v17 = vpop.f32.mrf.mxu0  ;;  %v2682_v56 = vpack.c.bf16 %v2665_v43, %v2664_v63  ;;  %v2144_v63 = vperm.slane %v1886_v25, 5 }
 0x564   :  { %2413 = vst [vmem:[#allocation1 + $0x2] ss:$9 sm:$0xff] %v2125_v28  ;;  %2927 = vmatmul.bf16.gmra.mxu2 %v2863_v44  ;;  %v2797_v44 = vadd.f32 %v6441_v11, %v2796_v17 }
 0x565   :  { %2414 = vst [vmem:[#allocation1 + $0x3] ss:$9 sm:$0xff] %v2126_v35  ;;  %v2131_v28 = vperm.slane %v1885_v55, 0  ;;  %v2132_v40 = vperm.slane %v1885_v55, 1  ;;  %v2133_v32 = vperm.slane %v1885_v55, 2  ;;  %v4013_v35 = vadd.f32 %v6441_v11, %v4012_v46  ;;  %v3906_v46 = vld [vmem:[%s7752_s0 + $0x358] sm:$0xff]  ;;  %5216 = vmatmul.msk.bf16.gmra.mxu0 %vm115_vm0, %v2682_v56 }
 0x566   :  { %2415 = vst [vmem:[#allocation1 + $0x4] ss:$9 sm:$0xff] %v2127_v6  ;;  %v2134_v47 = vperm.slane %v1885_v55, 3  ;;  %v2135_v6 = vperm.slane %v1885_v55, 4  ;;  %v2137_v49 = vperm.slane %v1885_v55, 6  ;;  %v2138_v61 = vperm.slane %v1885_v55, 7 }
 0x567   :  { %2416 = vst [vmem:[#allocation1 + $0x5] ss:$9 sm:$0xff] %v2128_v15  ;;  %v2136_v15 = vperm.slane %v1885_v55, 5  ;;  %v4085_v3 = vmax.f32 %v4013_v35, 0.0  ;;  %v2906_v35 = vadd.f32 %v6389_v48, %v6436_v29  ;;  %v2145_v29 = vperm.slane %v1886_v25, 6 }
 0x568   :  { %2417 = vst [vmem:[#allocation1 + $0x6] ss:$9 sm:$0xff] %v2129_v62  ;;  %v4084_v62 = vmax.f32 %v4011_v36, 0.0  ;;  %v4015_v36 = vpop.f32.mrf.mxu1 }
 0x569   :  { %2418 = vst [vmem:[#allocation1 + $0x7] ss:$9 sm:$0xff] %v2130_v27  ;;  %v3006_v27 = vmul.f32 %v6399_v31, %v2974_v60  ;;  %v2140_v60 = vperm.slane %v1886_v25, 1 }
 0x56b   :  { %v3070_v55 = vsel %vm460_vm1, %v3006_v27, 0.0  ;;  %v2143_v27 = vperm.slane %v1886_v25, 4 }
 0x56c   :  { %3071 = vadd.xlane.f32.xlu0 %v3070_v55 }
 0x570   :  { %v6520_v37 = vld [vmem:[#allocation1] sm:$0xff]  ;;  %v4017_v43 = vpop.f32.mrf.mxu1 }
 0x571   :  { %7800 = vst [vmem:[#allocation26_spill] sm:$0xff] %v6520_v37  ;;  %v4018_v55 = vadd.f32 %v6441_v11, %v4017_v43 }
 0x572   :  { %2420 = vst [vmem:[#allocation1] ss:$9 sm:$0xff] %v2131_v28  ;;  %v4114_v28 = vpack.c.bf16 %v4085_v3, %v4084_v62  ;;  %v2142_v62 = vperm.slane %v1886_v25, 3  ;;  %v2969_v3 = vmax.f32 %v2906_v35, 0.0 }
 0x573   :  { %2421 = vst [vmem:[#allocation1 + $0x1] ss:$9 sm:$0xff] %v2132_v40  ;;  %v3932_v40 = vpack.c.bf16 %v3906_v46, %v3905_v16  ;;  %v2146_v16 = vperm.slane %v1886_v25, 7 }
 0x574   :  { %2422 = vst [vmem:[#allocation1 + $0x2] ss:$9 sm:$0xff] %v2133_v32  ;;  %4146 = vmatmul.bf16.gmra.mxu3 %v4114_v28  ;;  %v2798_v32 = vpop.f32.mrf.mxu0  ;;  %v3001_v56 = vmul.f32 %v6399_v31, %v2969_v3  ;;  %v4087_v28 = vmax.f32 %v4018_v55, 0.0 }
 0x575   :  { %2423 = vst [vmem:[#allocation1 + $0x3] ss:$9 sm:$0xff] %v2134_v47  ;;  %5223 = vmatmul.msk.bf16.gmra.mxu1 %vm115_vm0, %v3932_v40  ;;  %v2843_v47 = vmax.f32 %v2797_v44, 0.0  ;;  %v2799_v17 = vadd.f32 %v6441_v11, %v2798_v32  ;;  %v4016_v44 = vadd.f32 %v6441_v11, %v4015_v36  ;;  %v1887_v32 = vadd.f32 %v6281_v4, %v5768_v2 }
 0x576   :  { %2424 = vst [vmem:[#allocation1 + $0x4] ss:$9 sm:$0xff] %v2135_v6  ;;  %v2139_v6 = vperm.slane %v1886_v25, 0  ;;  %v3055_v40 = vsel %vm460_vm1, %v3001_v56, 0.0 }
 0x577   :  { %2425 = vst [vmem:[#allocation1 + $0x5] ss:$9 sm:$0xff] %v2136_v15  ;;  %v2844_v1 = vmax.f32 %v2799_v17, 0.0  ;;  %v4086_v46 = vmax.f32 %v4016_v44, 0.0  ;;  %3056 = vadd.xlane.f32.xlu2 %v3055_v40  ;;  %v2148_v36 = vperm.slane %v1887_v32, 1  ;;  %v2154_v4 = vperm.slane %v1887_v32, 7 }
 0x578   :  { %2426 = vst [vmem:[#allocation1 + $0x6] ss:$9 sm:$0xff] %v2137_v49  ;;  %v2141_v49 = vperm.slane %v1886_v25, 2  ;;  %v6554_v25 = vpop.permute.xlu2 %1221 }
 0x579   :  { %2427 = vst [vmem:[#allocation1 + $0x7] ss:$9 sm:$0xff] %v2138_v61  ;;  %v2864_v61 = vpack.c.bf16 %v2844_v1, %v2843_v47  ;;  %v4115_v35 = vpack.c.bf16 %v4087_v28, %v4086_v46  ;;  %v2147_v47 = vperm.slane %v1887_v32, 0  ;;  %v2151_v1 = vperm.slane %v1887_v32, 4 }
 0x57a   :  { %v2909_v28 = vadd.f32 %v6389_v48, %v6447_v10 }
 0x57b   :  { %2932 = vmatmul.bf16.gmra.mxu2 %v2864_v61 }
 0x580   :  { %v6546_v15 = vld [vmem:[#allocation1] sm:$0xff]  ;;  %2478 = vperm.xlu0 %5237, %v6302_v21   ;;  %v1852_v3 = vpop.xlane.xlu2 %1851 }
 0x581   :  { %7801 = vst [vmem:[#allocation27_spill] sm:$0xff] %v6546_v15  ;;  %v1888_v61 = vadd.f32 %v1852_v3, %v5768_v2 }
 0x582   :  { %2429 = vst [vmem:[#allocation1] ss:$9 sm:$0xff] %v2139_v6  ;;  %v2149_v6 = vperm.slane %v1887_v32, 2 }
 0x583   :  { %2430 = vst [vmem:[#allocation1 + $0x1] ss:$9 sm:$0xff] %v2140_v60  ;;  %v2150_v60 = vperm.slane %v1887_v32, 3  ;;  %v2155_v21 = vperm.slane %v1888_v61, 0  ;;  %v2158_v43 = vperm.slane %v1888_v61, 3  ;;  %v2160_v44 = vperm.slane %v1888_v61, 5 }
 0x584   :  { %2431 = vst [vmem:[#allocation1 + $0x2] ss:$9 sm:$0xff] %v2141_v49  ;;  %4151 = vmatmul.bf16.gmra.mxu3 %v4115_v35  ;;  %v2152_v49 = vperm.slane %v1887_v32, 5  ;;  %v2161_v55 = vperm.slane %v1888_v61, 6  ;;  %v2162_v56 = vperm.slane %v1888_v61, 7  ;;  %v2970_v35 = vmax.f32 %v2909_v28, 0.0 }
 0x585   :  { %2432 = vst [vmem:[#allocation1 + $0x3] ss:$9 sm:$0xff] %v2142_v62  ;;  %v2153_v62 = vperm.slane %v1887_v32, 6  ;;  %v6567_v32 = vpop.permute.xlu1 %1224 }
 0x586   :  { %2433 = vst [vmem:[#allocation1 + $0x4] ss:$9 sm:$0xff] %v2143_v27  ;;  %v2156_v27 = vperm.slane %v1888_v61, 1 }
 0x587   :  { %2434 = vst [vmem:[#allocation1 + $0x5] ss:$9 sm:$0xff] %v2144_v63  ;;  %v2801_v28 = vpop.f32.mrf.mxu0 }
 0x588   :  { %2435 = vst [vmem:[#allocation1 + $0x6] ss:$9 sm:$0xff] %v2145_v29  ;;  %2484 = vperm.xlu0 %5237, %v6310_v20   ;;  %v2157_v29 = vperm.slane %v1888_v61, 2  ;;  %v1855_v20 = vpop.xlane.xlu0 %1854 }
 0x589   :  { %2436 = vst [vmem:[#allocation1 + $0x7] ss:$9 sm:$0xff] %v2146_v16  ;;  %v2159_v16 = vperm.slane %v1888_v61, 4  ;;  %v1889_v46 = vadd.f32 %v1855_v20, %v5768_v2 }
 0x58b   :  { %v2163_v40 = vperm.slane %v1889_v46, 0 }
 0x58d   :  { %v1858_v3 = vpop.xlane.xlu1 %1857 }
 0x58e   :  { %v1890_v61 = vadd.f32 %v1858_v3, %v5768_v2  ;;  %v2802_v3 = vadd.f32 %v6441_v11, %v2801_v28 }
 0x58f   :  { %1266 = vperm.xlu2 %5236, %v6283_v19  }
 0x590   :  { %v6556_v17 = vld [vmem:[#allocation1] sm:$0xff]  ;;  %v2176_v20 = vperm.slane %v1890_v61, 5 }
 0x591   :  { %7802 = vst [vmem:[#allocation28_spill] sm:$0xff] %v6556_v17 }
 0x592   :  { %2438 = vst [vmem:[#allocation1] ss:$9 sm:$0xff] %v2147_v47  ;;  %v2164_v47 = vperm.slane %v1889_v46, 1 }
 0x593   :  { %2439 = vst [vmem:[#allocation1 + $0x1] ss:$9 sm:$0xff] %v2148_v36  ;;  %v2165_v36 = vperm.slane %v1889_v46, 2 }
 0x594   :  { %2440 = vst [vmem:[#allocation1 + $0x2] ss:$9 sm:$0xff] %v2149_v6  ;;  %v2166_v6 = vperm.slane %v1889_v46, 3 }
 0x595   :  { %2441 = vst [vmem:[#allocation1 + $0x3] ss:$9 sm:$0xff] %v2150_v60  ;;  %v2167_v60 = vperm.slane %v1889_v46, 4 }
 0x596   :  { %2442 = vst [vmem:[#allocation1 + $0x4] ss:$9 sm:$0xff] %v2151_v1  ;;  %v3002_v1 = vmul.f32 %v6399_v31, %v2970_v35  ;;  %v6580_v35 = vpop.f32.mrf.mxu3 }
 0x597   :  { %2443 = vst [vmem:[#allocation1 + $0x5] ss:$9 sm:$0xff] %v2152_v49  ;;  %v2168_v49 = vperm.slane %v1889_v46, 5 }
 0x598   :  { %2444 = vst [vmem:[#allocation1 + $0x6] ss:$9 sm:$0xff] %v2153_v62  ;;  %v2169_v62 = vperm.slane %v1889_v46, 6  ;;  %v3058_v10 = vsel %vm460_vm1, %v3002_v1, 0.0 }
 0x599   :  { %2445 = vst [vmem:[#allocation1 + $0x7] ss:$9 sm:$0xff] %v2154_v4  ;;  %v2170_v4 = vperm.slane %v1889_v46, 7  ;;  %3059 = vadd.xlane.f32.xlu1 %v3058_v10  ;;  %v2177_v46 = vperm.slane %v1890_v61, 6  ;;  %v6590_v10 = vpop.permute.xlu0 %1227 }
 0x5a0   :  { %v6561_v63 = vld [vmem:[#allocation1] sm:$0xff] }
 0x5a1   :  { %7803 = vst [vmem:[#allocation29_spill] sm:$0xff] %v6561_v63 }
 0x5a2   :  { %2447 = vst [vmem:[#allocation1] ss:$9 sm:$0xff] %v2155_v21  ;;  %v6574_v21 = vpop.f32.mrf.mxu2 }
 0x5a3   :  { %2448 = vst [vmem:[#allocation1 + $0x1] ss:$9 sm:$0xff] %v2156_v27  ;;  %v2171_v27 = vperm.slane %v1890_v61, 0 }
 0x5a4   :  { %2449 = vst [vmem:[#allocation1 + $0x2] ss:$9 sm:$0xff] %v2157_v29 }
 0x5a5   :  { %2450 = vst [vmem:[#allocation1 + $0x3] ss:$9 sm:$0xff] %v2158_v43  ;;  %v2172_v43 = vperm.slane %v1890_v61, 1 }
 0x5a6   :  { %2451 = vst [vmem:[#allocation1 + $0x4] ss:$9 sm:$0xff] %v2159_v16  ;;  %v2173_v16 = vperm.slane %v1890_v61, 2 }
 0x5a7   :  { %2452 = vst [vmem:[#allocation1 + $0x5] ss:$9 sm:$0xff] %v2160_v44  ;;  %v2174_v44 = vperm.slane %v1890_v61, 3 }
 0x5a8   :  { %2453 = vst [vmem:[#allocation1 + $0x6] ss:$9 sm:$0xff] %v2161_v55  ;;  %v2175_v55 = vperm.slane %v1890_v61, 4 }
 0x5a9   :  { %2454 = vst [vmem:[#allocation1 + $0x7] ss:$9 sm:$0xff] %v2162_v56 }
 0x5aa   :  { %v6578_v56 = vpop.f32.mrf.mxu2 }
 0x5b0   :  { %v6569_v19 = vld [vmem:[#allocation1] sm:$0xff] }
 0x5b1   :  { %7804 = vst [vmem:[#allocation30_spill] sm:$0xff] %v6569_v19 }
 0x5b2   :  { %2456 = vst [vmem:[#allocation1] ss:$9 sm:$0xff] %v2163_v40  ;;  %v2178_v40 = vperm.slane %v1890_v61, 7  ;;  %1269 = vperm.xlu1 %5238, %v6288_v9   ;;  %v2914_v9 = vadd.f32 %v6389_v48, %v6492_v38 }
 0x5b3   :  { %2457 = vst [vmem:[#allocation1 + $0x1] ss:$9 sm:$0xff] %v2164_v47  ;;  %v3024_v47 = vpop.xlane.xlu1 %3023 }
 0x5b4   :  { %2458 = vst [vmem:[#allocation1 + $0x2] ss:$9 sm:$0xff] %v2165_v36  ;;  %v2666_v36 = vld [vmem:[%s7752_s0 + $0x2f0] sm:$0xff] }
 0x5b5   :  { %2459 = vst [vmem:[#allocation1 + $0x3] ss:$9 sm:$0xff] %v2166_v6  ;;  %v2667_v6 = vld [vmem:[%s7752_s0 + $0x2f8] sm:$0xff] }
 0x5b6   :  { %2460 = vst [vmem:[#allocation1 + $0x4] ss:$9 sm:$0xff] %v2167_v60  ;;  %v3118_v60 = vadd.f32 %v3024_v47, %v5768_v2  ;;  %v2683_v1 = vpack.c.bf16 %v2667_v6, %v2666_v36 }
 0x5b7   :  { %2461 = vst [vmem:[#allocation1 + $0x5] ss:$9 sm:$0xff] %v2168_v49  ;;  %v2925_v49 = vpop.f32.mrf.mxu2 }
 0x5b8   :  { %2462 = vst [vmem:[#allocation1 + $0x6] ss:$9 sm:$0xff] %v2169_v62  ;;  %5217 = vmatmul.msk.bf16.gmra.mxu0 %vm115_vm0, %v2683_v1  ;;  %v2803_v62 = vpop.f32.mrf.mxu0  ;;  %v3186_v47 = vperm.slane %v3118_v60, 4  ;;  %v3187_v36 = vperm.slane %v3118_v60, 5  ;;  %v3188_v6 = vperm.slane %v3118_v60, 6  ;;  %v3189_v1 = vperm.slane %v3118_v60, 7 }
 0x5b9   :  { %2463 = vst [vmem:[#allocation1 + $0x7] ss:$9 sm:$0xff] %v2170_v4  ;;  %v3182_v4 = vperm.slane %v3118_v60, 0  ;;  %v2804_v61 = vadd.f32 %v6441_v11, %v2803_v62 }
 0x5c0   :  { %v6576_v29 = vld [vmem:[#allocation1] sm:$0xff] }
 0x5c1   :  { %7805 = vst [vmem:[#allocation31_spill] sm:$0xff] %v6576_v29 }
 0x5c2   :  { %2465 = vst [vmem:[#allocation1] ss:$9 sm:$0xff] %v2171_v27 }
 0x5c3   :  { %2466 = vst [vmem:[#allocation1 + $0x1] ss:$9 sm:$0xff] %v2172_v43  ;;  %v3183_v43 = vperm.slane %v3118_v60, 1 }
 0x5c4   :  { %2467 = vst [vmem:[#allocation1 + $0x2] ss:$9 sm:$0xff] %v2173_v16  ;;  %v2926_v16 = vadd.f32 %v6389_v48, %v2925_v49  ;;  %v3027_v49 = vpop.xlane.xlu0 %3026 }
 0x5c5   :  { %2468 = vst [vmem:[#allocation1 + $0x3] ss:$9 sm:$0xff] %v2174_v44  ;;  %v3184_v44 = vperm.slane %v3118_v60, 2 }
 0x5c6   :  { %2469 = vst [vmem:[#allocation1 + $0x4] ss:$9 sm:$0xff] %v2175_v55  ;;  %v2845_v55 = vmax.f32 %v2802_v3, 0.0  ;;  %v2977_v11 = vmax.f32 %v2926_v16, 0.0  ;;  %v2972_v16 = vmax.f32 %v2914_v9, 0.0 }
 0x5c7   :  { %2470 = vst [vmem:[#allocation1 + $0x5] ss:$9 sm:$0xff] %v2176_v20  ;;  %v6597_v20 = vpop.f32.mrf.mxu3 }
 0x5c8   :  { %2471 = vst [vmem:[#allocation1 + $0x6] ss:$9 sm:$0xff] %v2177_v46  ;;  %v2846_v46 = vmax.f32 %v2804_v61, 0.0  ;;  %v3009_v62 = vmul.f32 %v6399_v31, %v2977_v11  ;;  %v4020_v42 = vpop.f32.mrf.mxu1 }
 0x5c9   :  { %2472 = vst [vmem:[#allocation1 + $0x7] ss:$9 sm:$0xff] %v2178_v40  ;;  %v3185_v40 = vperm.slane %v3118_v60, 3  ;;  %v6606_v60 = vpop.permute.xlu2 %1230  ;;  %v4021_v22 = vadd.f32 %v6730_v50, %v4020_v42 }
 0x5ca   :  { %v2865_v28 = vpack.c.bf16 %v2846_v46, %v2845_v55  ;;  %v3079_v3 = vsel %vm460_vm1, %v3009_v62, 0.0 }
 0x5cb   :  { %3080 = vadd.xlane.f32.xlu0 %v3079_v3 }
 0x5cc   :  { %2937 = vmatmul.bf16.gmra.mxu2 %v2865_v28 }
 0x5cf   :  { %v4142_v61 = vpop.f32.mrf.mxu3 }
 0x5d0   :  { %v6594_v27 = vld [vmem:[#allocation1] sm:$0xff] }
 0x5d1   :  { %7806 = vst [vmem:[#allocation32_spill] sm:$0xff] %v6594_v27  ;;  %v3030_v9 = vpop.xlane.xlu2 %3029 }
 0x5d2   :  { %3438 = vst [vmem:[#allocation1] ss:$9 sm:$0xff] %v3182_v4  ;;  %v3119_v4 = vadd.f32 %v3027_v49, %v5768_v2  ;;  %v3120_v3 = vadd.f32 %v3030_v9, %v5768_v2  ;;  %v6631_v9 = vld [vmem:[%s7756_s4] ss:$0 sm:$0xff] }
 0x5d3   :  { %3440 = vst [vmem:[#allocation1 + $0x1] ss:$9 sm:$0xff] %v3183_v43  ;;  %v4143_v43 = vadd.f32 %v6389_v48, %v4142_v61 }
 0x5d4   :  { %3442 = vst [vmem:[#allocation1 + $0x2] ss:$9 sm:$0xff] %v3184_v44  ;;  %v3190_v44 = vperm.slane %v3119_v4, 0  ;;  %v3191_v46 = vperm.slane %v3119_v4, 1  ;;  %v3193_v28 = vperm.slane %v3119_v4, 3  ;;  %v3194_v11 = vperm.slane %v3119_v4, 4 }
 0x5d5   :  { %3444 = vst [vmem:[#allocation1 + $0x3] ss:$9 sm:$0xff] %v3185_v40  ;;  %v4219_v55 = vmax.f32 %v4143_v43, 0.0  ;;  %v3196_v49 = vperm.slane %v3119_v4, 6  ;;  %v3197_v62 = vperm.slane %v3119_v4, 7  ;;  %v3198_v61 = vperm.slane %v3120_v3, 0 }
 0x5d6   :  { %3446 = vst [vmem:[#allocation1 + $0x4] ss:$9 sm:$0xff] %v3186_v47  ;;  %v3192_v47 = vperm.slane %v3119_v4, 2 }
 0x5d7   :  { %3448 = vst [vmem:[#allocation1 + $0x5] ss:$9 sm:$0xff] %v3187_v36  ;;  %v4251_v38 = vmul.f32 %v6399_v31, %v4219_v55  ;;  %v3004_v36 = vmul.f32 %v6399_v31, %v2972_v16  ;;  %v6615_v31 = vpop.permute.xlu1 %1233  ;;  %v3199_v16 = vperm.slane %v3120_v3, 1  ;;  %v3201_v55 = vperm.slane %v3120_v3, 3 }
 0x5d8   :  { %3450 = vst [vmem:[#allocation1 + $0x6] ss:$9 sm:$0xff] %v3188_v6  ;;  %v3195_v6 = vperm.slane %v3119_v4, 5  ;;  %v6619_v4 = vpop.permute.xlu0 %1236 }
 0x5d9   :  { %3452 = vst [vmem:[#allocation1 + $0x7] ss:$9 sm:$0xff] %v3189_v1  ;;  %v4287_v48 = vsel %vm460_vm1, %v4251_v38, 0.0  ;;  %v3064_v1 = vsel %vm460_vm1, %v3004_v36, 0.0  ;;  %v3204_v38 = vperm.slane %v3120_v3, 6 }
 0x5da   :  { %4288 = vadd.xlane.f32.xlu0 %v4287_v48  ;;  %3065 = vadd.xlane.f32.xlu2 %v3064_v1  ;;  %v6623_v48 = vpop.permute.xlu2 %1239 }
 0x5df   :  { %v3033_v36 = vpop.xlane.xlu1 %3032 }
 0x5e0   :  { %v6608_v40 = vld [vmem:[#allocation1] sm:$0xff] }
 0x5e1   :  { %7807 = vst [vmem:[#allocation33_spill] sm:$0xff] %v6608_v40 }
 0x5e2   :  { %3454 = vst [vmem:[#allocation1] ss:$9 sm:$0xff] %v3190_v44  ;;  %v3200_v44 = vperm.slane %v3120_v3, 2 }
 0x5e3   :  { %3455 = vst [vmem:[#allocation1 + $0x1] ss:$9 sm:$0xff] %v3191_v46  ;;  %v3202_v46 = vperm.slane %v3120_v3, 4 }
 0x5e4   :  { %3456 = vst [vmem:[#allocation1 + $0x2] ss:$9 sm:$0xff] %v3192_v47  ;;  %v3203_v47 = vperm.slane %v3120_v3, 5 }
 0x5e5   :  { %3457 = vst [vmem:[#allocation1 + $0x3] ss:$9 sm:$0xff] %v3193_v28  ;;  %v3205_v28 = vperm.slane %v3120_v3, 7  ;;  %v2916_v3 = vadd.f32 %v6631_v9, %v6510_v13  ;;  %v3907_v13 = vld [vmem:[%s7752_s0 + $0x360] sm:$0xff] }
 0x5e6   :  { %3458 = vst [vmem:[#allocation1 + $0x4] ss:$9 sm:$0xff] %v3194_v11  ;;  %v3121_v11 = vadd.f32 %v3033_v36, %v5768_v2  ;;  %v3908_v36 = vld [vmem:[%s7752_s0 + $0x368] sm:$0xff] }
 0x5e7   :  { %3459 = vst [vmem:[#allocation1 + $0x5] ss:$9 sm:$0xff] %v3195_v6  ;;  %v3036_v6 = vpop.xlane.xlu0 %3035 }
 0x5e8   :  { %3460 = vst [vmem:[#allocation1 + $0x6] ss:$9 sm:$0xff] %v3196_v49  ;;  %v3206_v1 = vperm.slane %v3121_v11, 0 }
 0x5e9   :  { %3461 = vst [vmem:[#allocation1 + $0x7] ss:$9 sm:$0xff] %v3197_v62  ;;  %v3207_v62 = vperm.slane %v3121_v11, 1 }
 0x5ee   :  { %2493 = vperm.xlu0 %5237, %v6324_v23   ;;  %v3208_v23 = vperm.slane %v3121_v11, 2 }
 0x5f0   :  { %v6617_v43 = vld [vmem:[#allocation1] sm:$0xff] }
 0x5f1   :  { %7808 = vst [vmem:[#allocation34_spill] sm:$0xff] %v6617_v43 }
 0x5f2   :  { %3463 = vst [vmem:[#allocation1] ss:$9 sm:$0xff] %v3198_v61  ;;  %2475 = vperm.xlu2 %5236, %v6298_v30   ;;  %v3209_v61 = vperm.slane %v3121_v11, 3  ;;  %v3211_v30 = vperm.slane %v3121_v11, 5 }
 0x5f3   :  { %3464 = vst [vmem:[#allocation1 + $0x1] ss:$9 sm:$0xff] %v3199_v16  ;;  %v6635_v16 = vpop.permute.xlu1 %1242 }
 0x5f4   :  { %3465 = vst [vmem:[#allocation1 + $0x2] ss:$9 sm:$0xff] %v3200_v44  ;;  %v3210_v44 = vperm.slane %v3121_v11, 4 }
 0x5f5   :  { %3466 = vst [vmem:[#allocation1 + $0x3] ss:$9 sm:$0xff] %v3201_v55  ;;  %v2973_v55 = vmax.f32 %v2916_v3, 0.0  ;;  %v3933_v3 = vpack.c.bf16 %v3908_v36, %v3907_v13 }
 0x5f6   :  { %3467 = vst [vmem:[#allocation1 + $0x4] ss:$9 sm:$0xff] %v3202_v46  ;;  %v3212_v46 = vperm.slane %v3121_v11, 6 }
 0x5f7   :  { %3468 = vst [vmem:[#allocation1 + $0x5] ss:$9 sm:$0xff] %v3203_v47  ;;  %v3039_v47 = vpop.xlane.xlu2 %3038  ;;  %5224 = vmatmul.msk.bf16.gmra.mxu1 %vm115_vm0, %v3933_v3 }
 0x5f8   :  { %3469 = vst [vmem:[#allocation1 + $0x6] ss:$9 sm:$0xff] %v3204_v38  ;;  %v6637_v38 = vpop.permute.xlu0 %1245 }
 0x5f9   :  { %3470 = vst [vmem:[#allocation1 + $0x7] ss:$9 sm:$0xff] %v3205_v28  ;;  %v3213_v28 = vperm.slane %v3121_v11, 7  ;;  %v3122_v11 = vadd.f32 %v3036_v6, %v5768_v2 }
 0x5fb   :  { %v3216_v6 = vperm.slane %v3122_v11, 2  ;;  %v3217_v13 = vperm.slane %v3122_v11, 3  ;;  %v3219_v15 = vperm.slane %v3122_v11, 5 }
 0x5ff   :  { %v6660_v19 = vpop.permute.xlu2 %1248 }
 0x600   :  { %v6626_v49 = vld [vmem:[#allocation1] sm:$0xff] }
 0x601   :  { %7809 = vst [vmem:[#allocation35_spill] sm:$0xff] %v6626_v49  ;;  %v6703_v49 = vadd.f32 %v3039_v47, %v5768_v2 }
 0x602   :  { %3472 = vst [vmem:[#allocation1] ss:$9 sm:$0xff] %v3206_v1  ;;  %v6648_v1 = vld [vmem:[%s7757_s5] ss:$0 sm:$0xff] }
 0x603   :  { %3473 = vst [vmem:[#allocation1 + $0x1] ss:$9 sm:$0xff] %v3207_v62  ;;  %v3005_v62 = vmul.f32 %v6648_v1, %v2973_v55 }
 0x604   :  { %3474 = vst [vmem:[#allocation1 + $0x2] ss:$9 sm:$0xff] %v3208_v23  ;;  %v6652_v23 = vpop.xlane.xlu1 %3041 }
 0x605   :  { %3475 = vst [vmem:[#allocation1 + $0x3] ss:$9 sm:$0xff] %v3209_v61  ;;  %v3067_v61 = vsel %vm460_vm1, %v3005_v62, 0.0  ;;  %v3218_v62 = vperm.slane %v3122_v11, 4 }
 0x606   :  { %3476 = vst [vmem:[#allocation1 + $0x4] ss:$9 sm:$0xff] %v3210_v44  ;;  %3068 = vadd.xlane.f32.xlu1 %v3067_v61  ;;  %v7760_v44 = vlaneseq }
 0x607   :  { %3477 = vst [vmem:[#allocation1 + $0x5] ss:$9 sm:$0xff] %v3211_v30  ;;  %v3214_v30 = vperm.slane %v3122_v11, 0 }
 0x608   :  { %3478 = vst [vmem:[#allocation1 + $0x6] ss:$9 sm:$0xff] %v3212_v46  ;;  %v6656_v46 = vpop.xlane.xlu0 %3044  ;;  %v6663_v55 = vand.u32 127, %v7760_v44 }
 0x609   :  { %3479 = vst [vmem:[#allocation1 + $0x7] ss:$9 sm:$0xff] %v3213_v28  ;;  %v3215_v28 = vperm.slane %v3122_v11, 1 }
 0x60a   :  { %v6666_v36 = vadd.s32 4294967288, %v6663_v55  ;;  %v6671_v61 = vadd.s32 4294967280, %v6663_v55  ;;  %v6712_v37 = vadd.s32 4294967240, %v6663_v55 }
 0x60c   :  { %v6668_v3 = vpop.permute.xlu1 %1251  ;;  %v1338_v44 = vperm.slane %v6606_v60, %v6666_v36  ;;  %v1340_v40 = vperm.slane %v6615_v31, %v6671_v61  ;;  %v6684_v60 = vpop.xlane.xlu2 %3047  ;;  %v6690_v31 = vadd.s32 4294967256, %v6663_v55  ;;  %v1350_v45 = vperm.slane %v6660_v19, %v6712_v37 }
 0x610   :  { %v6658_v43 = vld [vmem:[#allocation1] sm:$0xff]  ;;  %v6679_v27 = vpop.permute.xlu0 %1254 }
 0x611   :  { %7810 = vst [vmem:[#allocation36_spill] sm:$0xff] %v6658_v43  ;;  %v3220_v43 = vperm.slane %v3122_v11, 6 }
 0x612   :  { %3481 = vst [vmem:[#allocation1] ss:$9 sm:$0xff] %v3214_v30  ;;  %v2806_v30 = vpop.f32.mrf.mxu0 }
 0x613   :  { %3482 = vst [vmem:[#allocation1 + $0x1] ss:$9 sm:$0xff] %v3215_v28  ;;  %v3221_v28 = vperm.slane %v3122_v11, 7  ;;  %v6687_v11 = vadd.s32 4294967272, %v6663_v55 }
 0x614   :  { %3483 = vst [vmem:[#allocation1 + $0x2] ss:$9 sm:$0xff] %v3216_v6  ;;  %v1337_v6 = vperm.slane %v6590_v10, %v6663_v55  ;;  %v3909_v10 = vld [vmem:[%s7752_s0 + $0x370] sm:$0xff]  ;;  %v6709_v34 = vpop.xlane.xlu1 %3050  ;;  %v1258_v19 = vpop.permute.xlu2 %1257 }
 0x615   :  { %3484 = vst [vmem:[#allocation1 + $0x3] ss:$9 sm:$0xff] %v3217_v13  ;;  %v6682_v13 = vadd.s32 4294967264, %v6663_v55 }
 0x616   :  { %3485 = vst [vmem:[#allocation1 + $0x4] ss:$9 sm:$0xff] %v3218_v62 }
 0x617   :  { %3486 = vst [vmem:[#allocation1 + $0x5] ss:$9 sm:$0xff] %v3219_v15  ;;  %v1339_v15 = vsel %vm1279_vm2, %v1338_v44, %v1337_v6  ;;  %v1342_v44 = vperm.slane %v6619_v4, %v6687_v11  ;;  %v1346_v6 = vperm.slane %v6635_v16, %v6690_v31  ;;  %v6722_v4 = vadd.s32 4294967232, %v6663_v55 }
 0x618   :  { %3487 = vst [vmem:[#allocation1 + $0x6] ss:$9 sm:$0xff] %v3220_v43  ;;  %v3910_v43 = vld [vmem:[%s7752_s0 + $0x378] sm:$0xff]  ;;  %v1341_v62 = vsel %vm1283_vm3, %v1340_v40, %v1339_v15  ;;  %v6715_v40 = vadd.s32 4294967248, %v6663_v55  ;;  %v4022_v15 = vpop.f32.mrf.mxu1 }
 0x619   :  { %7811 = vst [vmem:[#allocation37_spill] sm:$0xff] %v6682_v13  ;;  %v3934_v63 = vpack.c.bf16 %v3910_v43, %v3909_v10  ;;  %v1343_v16 = vsel %vm1287_vm4, %v1342_v44, %v1341_v62  ;;  %v3222_v43 = vperm.slane %v6703_v49, 0  ;;  %v6737_v62 = vpop.xlane.xlu0 %3053  ;;  %v3223_v44 = vperm.slane %v6703_v49, 1 }
 0x61a   :  { %3488 = vst [vmem:[#allocation1 + $0x7] ss:$9 sm:$0xff] %v3221_v28  ;;  %v1344_v28 = vperm.slane %v6623_v48, %v6682_v13  ;;  %v6719_v48 = vadd.s32 4294967216, %v6663_v55  ;;  %v2808_v47 = vpop.f32.mrf.mxu0  ;;  %v4023_v42 = vadd.f32 %v6730_v50, %v4022_v15  ;;  %v3227_v15 = vperm.slane %v6703_v49, 5 }
 0x61b   :  { %5225 = vmatmul.msk.bf16.gmra.mxu1 %vm115_vm0, %v3934_v63  ;;  %7813 = vst [vmem:[#allocation39_spill] sm:$0xff] %v6722_v4  ;;  %v2807_v63 = vadd.f32 %v6730_v50, %v2806_v30  ;;  %v4088_v30 = vmax.f32 %v4021_v22, 0.0  ;;  %v6752_v22 = vadd.s32 4294967224, %v6663_v55 }
 0x61c   :  { %7812 = vst [vmem:[#allocation38_spill] sm:$0xff] %v6719_v48  ;;  %v1345_v10 = vsel %vm1291_vm5, %v1344_v28, %v1343_v16  ;;  %v3224_v28 = vperm.slane %v6703_v49, 2  ;;  %v2809_v16 = vadd.f32 %v6730_v50, %v2808_v47  ;;  %v3226_v47 = vperm.slane %v6703_v49, 4 }
 0x61d   :  { %v1347_v17 = vsel %vm1295_vm6, %v1346_v6, %v1345_v10  ;;  %v2847_v8 = vmax.f32 %v2807_v63, 0.0  ;;  %v3225_v6 = vperm.slane %v6703_v49, 3  ;;  %v1352_v10 = vperm.slane %v6668_v3, %v6722_v4  ;;  %7815 = vst [vmem:[#allocation41_spill] sm:$0xff] %v6752_v22 }
 0x61e   :  { %v2848_v39 = vmax.f32 %v2809_v16, 0.0  ;;  %v6757_v3 = vadd.s32 4294967208, %v6663_v55  ;;  %v3228_v16 = vperm.slane %v6703_v49, 6 }
 0x61f   :  { %2481 = vperm.xlu1 %5238, %v6306_v33   ;;  %v6774_v33 = vadd.s32 4294967200, %v6663_v55 }
 0x620   :  { %v2866_v63 = vpack.c.bf16 %v2848_v39, %v2847_v8  ;;  %7816 = vst [vmem:[#allocation42_spill] sm:$0xff] %v6757_v3  ;;  %v1354_v39 = vperm.slane %v6679_v27, %v6752_v22  ;;  %v3124_v27 = vadd.f32 %v6652_v23, %v5768_v2 }
 0x621   :  { %v6734_v29 = vld [vmem:[#allocation1] sm:$0xff]  ;;  %7817 = vst [vmem:[#allocation43_spill] sm:$0xff] %v6774_v33 }
 0x622   :  { %7814 = vst [vmem:[#allocation40_spill] sm:$0xff] %v6734_v29  ;;  %v1348_v29 = vperm.slane %v6637_v38, %v6715_v40  ;;  %2942 = vmatmul.bf16.gmra.mxu2 %v2866_v63  ;;  %v3232_v63 = vperm.slane %v3124_v27, 2 }
 0x623   :  { %3490 = vst [vmem:[#allocation1] ss:$9 sm:$0xff] %v3222_v43  ;;  %v4089_v43 = vmax.f32 %v4023_v42, 0.0  ;;  %v3229_v42 = vperm.slane %v6703_v49, 7  ;;  %v6771_v49 = vpop.f32.mrf.mxu3 }
 0x624   :  { %3491 = vst [vmem:[#allocation1 + $0x1] ss:$9 sm:$0xff] %v3223_v44  ;;  %v1349_v38 = vsel %vm7764_vm7, %v1348_v29, %v1347_v17  ;;  %v1261_v44 = vpop.permute.xlu1 %1260  ;;  %v6769_v29 = vpop.f32.mrf.mxu2 }
 0x625   :  { %3492 = vst [vmem:[#allocation1 + $0x2] ss:$9 sm:$0xff] %v3224_v28  ;;  %v1351_v28 = vsel %vm1303_vm8, %v1350_v45, %v1349_v38  ;;  %v4116_v14 = vpack.c.bf16 %v4089_v43, %v4088_v30  ;;  %v1358_v8 = vperm.slane %v1261_v44, %v6757_v3  ;;  %v1264_v45 = vpop.permute.xlu0 %1263  ;;  %v3231_v38 = vperm.slane %v3124_v27, 1 }
 0x626   :  { %3493 = vst [vmem:[#allocation1 + $0x3] ss:$9 sm:$0xff] %v3225_v6  ;;  %v1353_v12 = vsel %vm1307_vm9, %v1352_v10, %v1351_v28  ;;  %v1356_v6 = vperm.slane %v1258_v19, %v6719_v48  ;;  %v2811_v10 = vpop.f32.mrf.mxu0  ;;  %v1360_v19 = vperm.slane %v1264_v45, %v6774_v33  ;;  %v3233_v44 = vperm.slane %v3124_v27, 3  ;;  %v3912_v28 = vld [vmem:[%s7752_s0 + $0x388] sm:$0xff] }
 0x627   :  { %3494 = vst [vmem:[#allocation1 + $0x4] ss:$9 sm:$0xff] %v3226_v47  ;;  %4156 = vmatmul.bf16.gmra.mxu3 %v4116_v14  ;;  %v1355_v17 = vsel %vm1311_vm10, %v1354_v39, %v1353_v12  ;;  %v4025_v47 = vpop.f32.mrf.mxu1  ;;  %v3230_v12 = vperm.slane %v3124_v27, 0  ;;  %v2812_v23 = vadd.f32 %v6730_v50, %v2811_v10 }
 0x628   :  { %3495 = vst [vmem:[#allocation1 + $0x5] ss:$9 sm:$0xff] %v3227_v15  ;;  %v1357_v30 = vsel %vm1315_vm11, %v1356_v6, %v1355_v17  ;;  %v4026_v6 = vadd.f32 %v6730_v50, %v4025_v47 }
 0x629   :  { %3496 = vst [vmem:[#allocation1 + $0x6] ss:$9 sm:$0xff] %v3228_v16  ;;  %v1359_v14 = vsel %vm1319_vm12, %v1358_v8, %v1357_v30  ;;  %v3911_v16 = vld [vmem:[%s7752_s0 + $0x380] sm:$0xff]  ;;  %v3235_v8 = vperm.slane %v3124_v27, 5  ;;  %v3236_v30 = vperm.slane %v3124_v27, 6 }
 0x62a   :  { %3497 = vst [vmem:[#allocation1 + $0x7] ss:$9 sm:$0xff] %v3229_v42  ;;  %v6782_v43 = vsel %vm7761_vm13, %v1360_v19, %v1359_v14  ;;  %v3234_v42 = vperm.slane %v3124_v27, 4  ;;  %v3935_v39 = vpack.c.bf16 %v3912_v28, %v3911_v16  ;;  %v2921_v14 = vadd.f32 %v6631_v9, %v6574_v21 }
 0x62b   :  { %v4147_v17 = vpop.f32.mrf.mxu3  ;;  %v3237_v19 = vperm.slane %v3124_v27, 7  ;;  %v3125_v27 = vadd.f32 %v6656_v46, %v5768_v2  ;;  %vm1335_vm13 = vcmask 1048512  }
 0x62c   :  { %v6794_v45 = vpop.f32.mrf.mxu2  ;;  %v4148_v10 = vadd.f32 %v6631_v9, %v4147_v17  ;;  %5226 = vmatmul.msk.bf16.gmra.mxu1 %vm115_vm0, %v3935_v39 }
 0x62f   :  { %v4027_v47 = vpop.f32.mrf.mxu1 }
 0x630   :  { %v4028_v28 = vadd.f32 %v6730_v50, %v4027_v47  ;;  %v3239_v47 = vperm.slane %v3125_v27, 1 }
 0x631   :  { %v6784_v15 = vld [vmem:[#allocation1] sm:$0xff] }
 0x632   :  { %7818 = vst [vmem:[#allocation44_spill] sm:$0xff] %v6784_v15  ;;  %v4091_v21 = vmax.f32 %v4028_v28, 0.0  ;;  %v3242_v28 = vperm.slane %v3125_v27, 4 }
 0x633   :  { %3499 = vst [vmem:[#allocation1] ss:$9 sm:$0xff] %v3230_v12  ;;  %v2849_v12 = vmax.f32 %v2812_v23, 0.0 }
 0x634   :  { %3500 = vst [vmem:[#allocation1 + $0x1] ss:$9 sm:$0xff] %v3231_v38  ;;  %v2813_v38 = vpop.f32.mrf.mxu0 }
 0x635   :  { %3501 = vst [vmem:[#allocation1 + $0x2] ss:$9 sm:$0xff] %v3232_v63  ;;  %v4090_v63 = vmax.f32 %v4026_v6, 0.0  ;;  %v2814_v16 = vadd.f32 %v6730_v50, %v2813_v38  ;;  %v6806_v6 = vpop.f32.mrf.mxu3  ;;  %v3238_v38 = vperm.slane %v3125_v27, 0 }
 0x636   :  { %3502 = vst [vmem:[#allocation1 + $0x3] ss:$9 sm:$0xff] %v3233_v44  ;;  %v4221_v44 = vmax.f32 %v4148_v10, 0.0  ;;  %v4140_v10 = vadd.f32 %v6631_v9, %v6597_v20 }
 0x637   :  { %3503 = vst [vmem:[#allocation1 + $0x4] ss:$9 sm:$0xff] %v3234_v42  ;;  %v2975_v42 = vmax.f32 %v2921_v14, 0.0  ;;  %v2850_v15 = vmax.f32 %v2814_v16, 0.0  ;;  %v4117_v23 = vpack.c.bf16 %v4091_v21, %v4090_v63  ;;  %v3240_v63 = vperm.slane %v3125_v27, 2 }
 0x638   :  { %3504 = vst [vmem:[#allocation1 + $0x5] ss:$9 sm:$0xff] %v3235_v8  ;;  %v4253_v17 = vmul.f32 %v6648_v1, %v4221_v44  ;;  %v3241_v44 = vperm.slane %v3125_v27, 3  ;;  %v4218_v16 = vmax.f32 %v4140_v10, 0.0  ;;  %v3243_v21 = vperm.slane %v3125_v27, 5 }
 0x639   :  { %3505 = vst [vmem:[#allocation1 + $0x6] ss:$9 sm:$0xff] %v3236_v30  ;;  %v2867_v39 = vpack.c.bf16 %v2850_v15, %v2849_v12  ;;  %v2933_v30 = vpop.f32.mrf.mxu2  ;;  %4161 = vmatmul.bf16.gmra.mxu3 %v4117_v23  ;;  %v3245_v23 = vperm.slane %v3125_v27, 7 }
 0x63a   :  { %3506 = vst [vmem:[#allocation1 + $0x7] ss:$9 sm:$0xff] %v3237_v19  ;;  %v4293_v8 = vsel %vm460_vm1, %v4253_v17, 0.0  ;;  %v2934_v14 = vadd.f32 %v6631_v9, %v2933_v30  ;;  %v3007_v19 = vmul.f32 %v6648_v1, %v2975_v42  ;;  %v3244_v17 = vperm.slane %v3125_v27, 6 }
 0x63b   :  { %4294 = vadd.xlane.f32.xlu0 %v4293_v8  ;;  %2947 = vmatmul.bf16.gmra.mxu2 %v2867_v39  ;;  %v4250_v30 = vmul.f32 %v6648_v1, %v4218_v16 }
 0x63c   :  { %v2980_v15 = vmax.f32 %v2934_v14, 0.0  ;;  %v3073_v12 = vsel %vm460_vm1, %v3007_v19, 0.0  ;;  %v3126_v19 = vadd.f32 %v6684_v60, %v5768_v2 }
 0x63d   :  { %3074 = vadd.xlane.f32.xlu2 %v3073_v12  ;;  %v4152_v39 = vpop.f32.mrf.mxu3  ;;  %v4284_v14 = vsel %vm460_vm1, %v4250_v30, 0.0 }
 0x63e   :  { %v3012_v20 = vmul.f32 %v6648_v1, %v2980_v15  ;;  %v4153_v8 = vadd.f32 %v6631_v9, %v4152_v39  ;;  %v3246_v27 = vperm.slane %v3126_v19, 0  ;;  %v3247_v12 = vperm.slane %v3126_v19, 1 }
 0x63f   :  { %v3250_v16 = vperm.slane %v3126_v19, 4  ;;  %v3253_v60 = vperm.slane %v3126_v19, 7 }
 0x640   :  { %v3088_v42 = vsel %vm460_vm1, %v3012_v20, 0.0  ;;  %v4223_v10 = vmax.f32 %v4153_v8, 0.0  ;;  %v3251_v20 = vperm.slane %v3126_v19, 5 }
 0x641   :  { %v6812_v46 = vld [vmem:[#allocation1] sm:$0xff] }
 0x642   :  { %3508 = vst [vmem:[#allocation1] ss:$9 sm:$0xff] %v3238_v38  ;;  %v4255_v38 = vmul.f32 %v6648_v1, %v4223_v10 }
 0x643   :  { %3509 = vst [vmem:[#allocation1 + $0x1] ss:$9 sm:$0xff] %v3239_v47  ;;  %3089 = vadd.xlane.f32.xlu0 %v3088_v42 }
 0x644   :  { %3510 = vst [vmem:[#allocation1 + $0x2] ss:$9 sm:$0xff] %v3240_v63  ;;  %v4299_v47 = vsel %vm460_vm1, %v4255_v38, 0.0  ;;  %v3248_v63 = vperm.slane %v3126_v19, 2  ;;  %v3913_v38 = vld [vmem:[%s7752_s0 + $0x390] sm:$0xff] }
 0x645   :  { %3511 = vst [vmem:[#allocation1 + $0x3] ss:$9 sm:$0xff] %v3241_v44  ;;  %4285 = vadd.xlane.f32.xlu2 %v4284_v14  ;;  %v3249_v44 = vperm.slane %v3126_v19, 3 }
 0x646   :  { %3512 = vst [vmem:[#allocation1 + $0x4] ss:$9 sm:$0xff] %v3242_v28  ;;  %v3252_v28 = vperm.slane %v3126_v19, 6 }
 0x647   :  { %3513 = vst [vmem:[#allocation1 + $0x5] ss:$9 sm:$0xff] %v3243_v21  ;;  %v3127_v21 = vadd.f32 %v6709_v34, %v5768_v2  ;;  %v4138_v34 = vadd.f32 %v6631_v9, %v6580_v35 }
 0x648   :  { %3514 = vst [vmem:[#allocation1 + $0x6] ss:$9 sm:$0xff] %v3244_v17 }
 0x649   :  { %3515 = vst [vmem:[#allocation1 + $0x7] ss:$9 sm:$0xff] %v3245_v23  ;;  %v3254_v42 = vperm.slane %v3127_v21, 0  ;;  %v3255_v39 = vperm.slane %v3127_v21, 1  ;;  %v3256_v23 = vperm.slane %v3127_v21, 2  ;;  %v3257_v8 = vperm.slane %v3127_v21, 3 }
 0x64a   :  { %v3258_v30 = vperm.slane %v3127_v21, 4  ;;  %v3259_v10 = vperm.slane %v3127_v21, 5  ;;  %v3260_v14 = vperm.slane %v3127_v21, 6  ;;  %v3261_v19 = vperm.slane %v3127_v21, 7 }
 0x64b   :  { %4300 = vadd.xlane.f32.xlu0 %v4299_v47  ;;  %v3128_v47 = vadd.f32 %v6737_v62, %v5768_v2 }
 0x64d   :  { %v3262_v35 = vperm.slane %v3128_v47, 0  ;;  %v3265_v21 = vperm.slane %v3128_v47, 3  ;;  %v3266_v62 = vperm.slane %v3128_v47, 4 }
 0x650   :  { %v6824_v15 = vld [vmem:[#allocation1] sm:$0xff] }
 0x651   :  { %3517 = vst [vmem:[#allocation1] ss:$9 sm:$0xff] %v3246_v27  ;;  %v4217_v27 = vmax.f32 %v4138_v34, 0.0  ;;  %v3916_v34 = vld [vmem:[%s7752_s0 + $0x3a8] sm:$0xff] }
 0x652   :  { %3518 = vst [vmem:[#allocation1 + $0x1] ss:$9 sm:$0xff] %v3247_v12  ;;  %v2924_v12 = vadd.f32 %v6631_v9, %v6578_v56  ;;  %v3269_v56 = vperm.slane %v3128_v47, 7 }
 0x653   :  { %3519 = vst [vmem:[#allocation1 + $0x2] ss:$9 sm:$0xff] %v3248_v63  ;;  %v4249_v63 = vmul.f32 %v6648_v1, %v4217_v27 }
 0x654   :  { %3520 = vst [vmem:[#allocation1 + $0x3] ss:$9 sm:$0xff] %v3249_v44  ;;  %v3263_v44 = vperm.slane %v3128_v47, 1 }
 0x655   :  { %3521 = vst [vmem:[#allocation1 + $0x4] ss:$9 sm:$0xff] %v3250_v16 }
 0x656   :  { %3522 = vst [vmem:[#allocation1 + $0x5] ss:$9 sm:$0xff] %v3251_v20  ;;  %v3057_v20 = vpop.xlane.xlu2 %3056 }
 0x657   :  { %3523 = vst [vmem:[#allocation1 + $0x6] ss:$9 sm:$0xff] %v3252_v28  ;;  %v3264_v28 = vperm.slane %v3128_v47, 2 }
 0x658   :  { %3524 = vst [vmem:[#allocation1 + $0x7] ss:$9 sm:$0xff] %v3253_v60  ;;  %v4281_v60 = vsel %vm460_vm1, %v4249_v63, 0.0 }
 0x659   :  { %4282 = vadd.xlane.f32.xlu1 %v4281_v60 }
 0x65d   :  { %2487 = vperm.xlu2 %5236, %v6314_v5   ;;  %v3914_v5 = vld [vmem:[%s7752_s0 + $0x398] sm:$0xff] }
 0x65f   :  { %v6828_v17 = vld [vmem:[#allocation1] sm:$0xff]  ;;  %2502 = vperm.xlu0 %5237, %v6363_v18   ;;  %v3936_v18 = vpack.c.bf16 %v3914_v5, %v3913_v38  ;;  %v3129_v5 = vadd.f32 %v3057_v20, %v5768_v2 }
 0x660   :  { %7819 = vst [vmem:[#allocation45_spill] sm:$0xff] %v6828_v17 }
 0x661   :  { %3526 = vst [vmem:[#allocation1] ss:$9 sm:$0xff] %v3254_v42  ;;  %5227 = vmatmul.msk.bf16.gmra.mxu1 %vm115_vm0, %v3936_v18  ;;  %v2976_v42 = vmax.f32 %v2924_v12, 0.0  ;;  %v1267_v18 = vpop.permute.xlu2 %1266  ;;  %v3270_v63 = vperm.slane %v3129_v5, 0  ;;  %v3271_v20 = vperm.slane %v3129_v5, 1 }
 0x662   :  { %3527 = vst [vmem:[#allocation1 + $0x1] ss:$9 sm:$0xff] %v3255_v39  ;;  %v3267_v39 = vperm.slane %v3128_v47, 5 }
 0x663   :  { %3528 = vst [vmem:[#allocation1 + $0x2] ss:$9 sm:$0xff] %v3256_v23  ;;  %v3268_v23 = vperm.slane %v3128_v47, 6  ;;  %v6861_v47 = vadd.s32 4294967192, %v6663_v55 }
 0x664   :  { %3529 = vst [vmem:[#allocation1 + $0x3] ss:$9 sm:$0xff] %v3257_v8  ;;  %v6849_v8 = vpop.xlane.xlu0 %3062 }
 0x665   :  { %3530 = vst [vmem:[#allocation1 + $0x4] ss:$9 sm:$0xff] %v3258_v30  ;;  %v3060_v30 = vpop.xlane.xlu1 %3059  ;;  %v1362_v27 = vperm.slane %v1267_v18, %v6861_v47  ;;  %v3277_v18 = vperm.slane %v3129_v5, 7 }
 0x666   :  { %3531 = vst [vmem:[#allocation1 + $0x5] ss:$9 sm:$0xff] %v3259_v10  ;;  %v3008_v10 = vmul.f32 %v6648_v1, %v2976_v42 }
 0x667   :  { %3532 = vst [vmem:[#allocation1 + $0x6] ss:$9 sm:$0xff] %v3260_v14  ;;  %v3915_v14 = vld [vmem:[%s7752_s0 + $0x3a0] sm:$0xff] }
 0x668   :  { %3533 = vst [vmem:[#allocation1 + $0x7] ss:$9 sm:$0xff] %v3261_v19  ;;  %v3937_v19 = vpack.c.bf16 %v3916_v34, %v3915_v14  ;;  %v3076_v38 = vsel %vm460_vm1, %v3008_v10, 0.0  ;;  %v3275_v14 = vperm.slane %v3129_v5, 5  ;;  %v2816_v34 = vpop.f32.mrf.mxu0 }
 0x669   :  { %3077 = vadd.xlane.f32.xlu1 %v3076_v38  ;;  %7821 = vst [vmem:[#allocation47_spill] sm:$0xff] %v6861_v47  ;;  %v3276_v38 = vperm.slane %v3129_v5, 6 }
 0x66c   :  { %v1273_v12 = vpop.permute.xlu0 %1272 }
 0x66d   :  { %v1270_v60 = vpop.permute.xlu1 %1269 }
 0x66f   :  { %v6846_v16 = vld [vmem:[#allocation1] sm:$0xff] }
 0x670   :  { %7820 = vst [vmem:[#allocation46_spill] sm:$0xff] %v6846_v16 }
 0x671   :  { %3535 = vst [vmem:[#allocation1] ss:$9 sm:$0xff] %v3262_v35  ;;  %5228 = vmatmul.msk.bf16.gmra.mxu1 %vm115_vm0, %v3937_v19  ;;  %v6866_v35 = vadd.s32 4294967184, %v6663_v55 }
 0x672   :  { %3536 = vst [vmem:[#allocation1 + $0x1] ss:$9 sm:$0xff] %v3263_v44  ;;  %v6869_v44 = vadd.s32 4294967176, %v6663_v55 }
 0x673   :  { %3537 = vst [vmem:[#allocation1 + $0x2] ss:$9 sm:$0xff] %v3264_v28 }
 0x674   :  { %3538 = vst [vmem:[#allocation1 + $0x3] ss:$9 sm:$0xff] %v3265_v21  ;;  %v3272_v21 = vperm.slane %v3129_v5, 2  ;;  %v1366_v42 = vperm.slane %v1273_v12, %v6869_v44  ;;  %v6881_v12 = vpop.xlane.xlu0 %3071 }
 0x675   :  { %3539 = vst [vmem:[#allocation1 + $0x4] ss:$9 sm:$0xff] %v3266_v62  ;;  %v1364_v62 = vperm.slane %v1270_v60, %v6866_v35 }
 0x676   :  { %3540 = vst [vmem:[#allocation1 + $0x5] ss:$9 sm:$0xff] %v3267_v39  ;;  %v3273_v39 = vperm.slane %v3129_v5, 3 }
 0x677   :  { %3541 = vst [vmem:[#allocation1 + $0x6] ss:$9 sm:$0xff] %v3268_v23  ;;  %v1363_v23 = vsel %vm1327_vm14, %v1362_v27, %v6782_v43  ;;  %v3130_v43 = vadd.f32 %v3060_v30, %v5768_v2  ;;  %v6884_v27 = vpop.f32.mrf.mxu2  ;;  %v3917_v30 = vld [vmem:[%s7752_s0 + $0x3b0] sm:$0xff] }
 0x678   :  { %3542 = vst [vmem:[#allocation1 + $0x7] ss:$9 sm:$0xff] %v3269_v56  ;;  %v3274_v56 = vperm.slane %v3129_v5, 4  ;;  %v1365_v10 = vsel %vm1331_vm15, %v1364_v62, %v1363_v23 }
 0x679   :  { %v6879_v19 = vsel %vm1335_vm13, %v1366_v42, %v1365_v10  ;;  %v3278_v60 = vperm.slane %v3130_v43, 0  ;;  %v3279_v42 = vperm.slane %v3130_v43, 1  ;;  %v3280_v23 = vperm.slane %v3130_v43, 2 }
 0x67a   :  { %v3281_v10 = vperm.slane %v3130_v43, 3 }
 0x67f   :  { %v6871_v28 = vld [vmem:[#allocation1] sm:$0xff]  ;;  %v6901_v17 = vpop.f32.mrf.mxu2 }
 0x680   :  { %3544 = vst [vmem:[#allocation1] ss:$9 sm:$0xff] %v3270_v63  ;;  %v6886_v63 = vpop.xlane.xlu2 %3065 }
 0x681   :  { %3545 = vst [vmem:[#allocation1 + $0x1] ss:$9 sm:$0xff] %v3271_v20  ;;  %v2817_v20 = vadd.f32 %v6730_v50, %v2816_v34 }
 0x682   :  { %3546 = vst [vmem:[#allocation1 + $0x2] ss:$9 sm:$0xff] %v3272_v21  ;;  %v2818_v21 = vpop.f32.mrf.mxu0  ;;  %2490 = vperm.xlu1 %5238, %v6318_v53  }
 0x683   :  { %3547 = vst [vmem:[#allocation1 + $0x3] ss:$9 sm:$0xff] %v3273_v39  ;;  %v2851_v39 = vmax.f32 %v2817_v20, 0.0  ;;  %v2819_v5 = vadd.f32 %v6730_v50, %v2818_v21  ;;  %v3283_v20 = vperm.slane %v3130_v43, 5 }
 0x684   :  { %3548 = vst [vmem:[#allocation1 + $0x4] ss:$9 sm:$0xff] %v3274_v56  ;;  %v3918_v56 = vld [vmem:[%s7752_s0 + $0x3b8] sm:$0xff] }
 0x685   :  { %3549 = vst [vmem:[#allocation1 + $0x5] ss:$9 sm:$0xff] %v3275_v14  ;;  %v2852_v14 = vmax.f32 %v2819_v5, 0.0  ;;  %v3938_v34 = vpack.c.bf16 %v3918_v56, %v3917_v30  ;;  %v3285_v5 = vperm.slane %v3130_v43, 7  ;;  %v4145_v30 = vadd.f32 %v6631_v9, %v6771_v49 }
 0x686   :  { %3550 = vst [vmem:[#allocation1 + $0x6] ss:$9 sm:$0xff] %v3276_v38  ;;  %v2479_v38 = vpop.permute.xlu0 %2478  ;;  %v3131_v56 = vadd.f32 %v6849_v8, %v5768_v2 }
 0x687   :  { %3551 = vst [vmem:[#allocation1 + $0x7] ss:$9 sm:$0xff] %v3277_v18  ;;  %v3282_v18 = vperm.slane %v3130_v43, 4  ;;  %v2868_v21 = vpack.c.bf16 %v2852_v14, %v2851_v39  ;;  %5229 = vmatmul.msk.bf16.gmra.mxu1 %vm115_vm0, %v3938_v34  ;;  %v4220_v53 = vmax.f32 %v4145_v30, 0.0 }
 0x688   :  { %v2476_v16 = vpop.permute.xlu2 %2475  ;;  %v3286_v14 = vperm.slane %v3131_v56, 0  ;;  %v3292_v30 = vperm.slane %v3131_v56, 6 }
 0x689   :  { %2952 = vmatmul.bf16.gmra.mxu2 %v2868_v21 }
 0x68e   :  { %v6889_v62 = vld [vmem:[#allocation1] sm:$0xff] }
 0x68f   :  { %7822 = vst [vmem:[#allocation48_spill] sm:$0xff] %v6889_v62  ;;  %v3284_v62 = vperm.slane %v3130_v43, 6  ;;  %v3919_v43 = vld [vmem:[%s7752_s0 + $0x3c0] sm:$0xff] }
 0x690   :  { %3553 = vst [vmem:[#allocation1] ss:$9 sm:$0xff] %v3278_v60  ;;  %v2929_v60 = vadd.f32 %v6631_v9, %v6769_v29 }
 0x691   :  { %3554 = vst [vmem:[#allocation1 + $0x1] ss:$9 sm:$0xff] %v3279_v42  ;;  %v2571_v42 = vperm.slane %v2479_v38, %v6666_v36  ;;  %v3287_v38 = vperm.slane %v3131_v56, 1 }
 0x692   :  { %3555 = vst [vmem:[#allocation1 + $0x2] ss:$9 sm:$0xff] %v3280_v23  ;;  %v2570_v23 = vperm.slane %v2476_v16, %v6663_v55  ;;  %v2978_v29 = vmax.f32 %v2929_v60, 0.0  ;;  %v3920_v16 = vld [vmem:[%s7752_s0 + $0x3c8] sm:$0xff]  ;;  %v3289_v60 = vperm.slane %v3131_v56, 3 }
 0x693   :  { %3556 = vst [vmem:[#allocation1 + $0x3] ss:$9 sm:$0xff] %v3281_v10  ;;  %v2940_v10 = vpop.f32.mrf.mxu2  ;;  %v3939_v21 = vpack.c.bf16 %v3920_v16, %v3919_v43  ;;  %v4030_v16 = vpop.f32.mrf.mxu1 }
 0x694   :  { %3557 = vst [vmem:[#allocation1 + $0x4] ss:$9 sm:$0xff] %v3282_v18  ;;  %v6907_v39 = vsel %vm1279_vm2, %v2571_v42, %v2570_v23  ;;  %v2941_v34 = vadd.f32 %v6631_v9, %v2940_v10  ;;  %v3288_v18 = vperm.slane %v3131_v56, 2  ;;  %v4252_v42 = vmul.f32 %v6648_v1, %v4220_v53 }
 0x695   :  { %3558 = vst [vmem:[#allocation1 + $0x5] ss:$9 sm:$0xff] %v3283_v20  ;;  %v3132_v53 = vadd.f32 %v6886_v63, %v5768_v2 }
 0x696   :  { %3559 = vst [vmem:[#allocation1 + $0x6] ss:$9 sm:$0xff] %v3284_v62  ;;  %v3010_v62 = vmul.f32 %v6648_v1, %v2978_v29  ;;  %v2983_v20 = vmax.f32 %v2941_v34, 0.0  ;;  %v3291_v29 = vperm.slane %v3131_v56, 5  ;;  %v4290_v43 = vsel %vm460_vm1, %v4252_v42, 0.0 }
 0x697   :  { %3560 = vst [vmem:[#allocation1 + $0x7] ss:$9 sm:$0xff] %v3285_v5  ;;  %v3290_v5 = vperm.slane %v3131_v56, 4  ;;  %5230 = vmatmul.msk.bf16.gmra.mxu1 %vm115_vm0, %v3939_v21  ;;  %v3922_v21 = vld [vmem:[%s7752_s0 + $0x3d8] sm:$0xff]  ;;  %v3299_v63 = vperm.slane %v3132_v53, 5 }
 0x698   :  { %v3082_v8 = vsel %vm460_vm1, %v3010_v62, 0.0  ;;  %v3015_v23 = vmul.f32 %v6648_v1, %v2983_v20  ;;  %v3293_v62 = vperm.slane %v3131_v56, 7  ;;  %v3298_v56 = vperm.slane %v3132_v53, 4  ;;  %v3921_v20 = vld [vmem:[%s7752_s0 + $0x3d0] sm:$0xff] }
 0x699   :  { %3083 = vadd.xlane.f32.xlu2 %v3082_v8  ;;  %v3296_v8 = vperm.slane %v3132_v53, 2  ;;  %v3940_v42 = vpack.c.bf16 %v3922_v21, %v3921_v20 }
 0x69a   :  { %v3097_v10 = vsel %vm460_vm1, %v3015_v23, 0.0  ;;  %v3300_v23 = vperm.slane %v3132_v53, 6 }
 0x69b   :  { %3098 = vadd.xlane.f32.xlu0 %v3097_v10  ;;  %v4032_v10 = vpop.f32.mrf.mxu1 }
 0x69e   :  { %v6921_v49 = vld [vmem:[#allocation1] sm:$0xff] }
 0x69f   :  { %7823 = vst [vmem:[#allocation49_spill] sm:$0xff] %v6921_v49 }
 0x6a0   :  { %3562 = vst [vmem:[#allocation1] ss:$9 sm:$0xff] %v3286_v14  ;;  %v3294_v14 = vperm.slane %v3132_v53, 0 }
 0x6a1   :  { %3563 = vst [vmem:[#allocation1 + $0x1] ss:$9 sm:$0xff] %v3287_v38  ;;  %4291 = vadd.xlane.f32.xlu2 %v4290_v43  ;;  %v3295_v38 = vperm.slane %v3132_v53, 1 }
 0x6a2   :  { %3564 = vst [vmem:[#allocation1 + $0x2] ss:$9 sm:$0xff] %v3288_v18  ;;  %v3297_v18 = vperm.slane %v3132_v53, 3 }
 0x6a3   :  { %3565 = vst [vmem:[#allocation1 + $0x3] ss:$9 sm:$0xff] %v3289_v60  ;;  %v4031_v60 = vadd.f32 %v6730_v50, %v4030_v16 }
 0x6a4   :  { %3566 = vst [vmem:[#allocation1 + $0x4] ss:$9 sm:$0xff] %v3290_v5  ;;  %v2931_v5 = vadd.f32 %v6631_v9, %v6794_v45 }
 0x6a5   :  { %3567 = vst [vmem:[#allocation1 + $0x5] ss:$9 sm:$0xff] %v3291_v29  ;;  %v3069_v29 = vpop.xlane.xlu1 %3068 }
 0x6a6   :  { %3568 = vst [vmem:[#allocation1 + $0x6] ss:$9 sm:$0xff] %v3292_v30  ;;  %v3301_v30 = vperm.slane %v3132_v53, 7  ;;  %v3133_v43 = vadd.f32 %v3069_v29, %v5768_v2  ;;  %v2979_v16 = vmax.f32 %v2931_v5, 0.0 }
 0x6a7   :  { %3569 = vst [vmem:[#allocation1 + $0x7] ss:$9 sm:$0xff] %v3293_v62  ;;  %5231 = vmatmul.msk.bf16.gmra.mxu1 %vm115_vm0, %v3940_v42  ;;  %v4092_v62 = vmax.f32 %v4031_v60, 0.0  ;;  %v3923_v60 = vld [vmem:[%s7752_s0 + $0x3e0] sm:$0xff] }
 0x6a8   :  { %v3302_v9 = vperm.slane %v3133_v43, 0  ;;  %v3011_v53 = vmul.f32 %v6648_v1, %v2979_v16  ;;  %v3305_v21 = vperm.slane %v3133_v43, 3  ;;  %v3306_v42 = vperm.slane %v3133_v43, 4 }
 0x6a9   :  { %v3308_v1 = vperm.slane %v3133_v43, 6 }
 0x6aa   :  { %v3085_v5 = vsel %vm460_vm1, %v3011_v53, 0.0 }
 0x6ac   :  { %3086 = vadd.xlane.f32.xlu1 %v3085_v5 }
 0x6ae   :  { %v6931_v34 = vld [vmem:[#allocation1] sm:$0xff] }
 0x6af   :  { %3571 = vst [vmem:[#allocation1] ss:$9 sm:$0xff] %v3294_v14  ;;  %v4033_v14 = vadd.f32 %v6730_v50, %v4032_v10  ;;  %2511 = vperm.xlu0 %5237, %v6378_v54   ;;  %v3924_v54 = vld [vmem:[%s7752_s0 + $0x3e8] sm:$0xff]  ;;  %v2482_v10 = vpop.permute.xlu1 %2481 }
 0x6b0   :  { %3572 = vst [vmem:[#allocation1 + $0x1] ss:$9 sm:$0xff] %v3295_v38  ;;  %v3941_v29 = vpack.c.bf16 %v3924_v54, %v3923_v60 }
 0x6b1   :  { %3573 = vst [vmem:[#allocation1 + $0x2] ss:$9 sm:$0xff] %v3296_v8  ;;  %v4093_v38 = vmax.f32 %v4033_v14, 0.0  ;;  %v3303_v8 = vperm.slane %v3133_v43, 1  ;;  %v3075_v14 = vpop.xlane.xlu2 %3074 }
 0x6b2   :  { %3574 = vst [vmem:[#allocation1 + $0x3] ss:$9 sm:$0xff] %v3297_v18  ;;  %v6946_v18 = vpop.f32.mrf.mxu3 }
 0x6b3   :  { %3575 = vst [vmem:[#allocation1 + $0x4] ss:$9 sm:$0xff] %v3298_v56  ;;  %v4118_v45 = vpack.c.bf16 %v4093_v38, %v4092_v62  ;;  %v3304_v56 = vperm.slane %v3133_v43, 2  ;;  %v3309_v62 = vperm.slane %v3133_v43, 7 }
 0x6b4   :  { %3576 = vst [vmem:[#allocation1 + $0x5] ss:$9 sm:$0xff] %v3299_v63  ;;  %v4035_v63 = vpop.f32.mrf.mxu1 }
 0x6b5   :  { %3577 = vst [vmem:[#allocation1 + $0x6] ss:$9 sm:$0xff] %v3300_v23  ;;  %4166 = vmatmul.bf16.gmra.mxu3 %v4118_v45  ;;  %v3307_v23 = vperm.slane %v3133_v43, 5  ;;  %v4036_v16 = vadd.f32 %v6730_v50, %v4035_v63  ;;  %v2485_v45 = vpop.permute.xlu0 %2484  ;;  %v3134_v43 = vadd.f32 %v6881_v12, %v5768_v2 }
 0x6b6   :  { %3578 = vst [vmem:[#allocation1 + $0x7] ss:$9 sm:$0xff] %v3301_v30  ;;  %v6959_v30 = vpop.f32.mrf.mxu2 }
 0x6b7   :  { %5232 = vmatmul.msk.bf16.gmra.mxu1 %vm115_vm0, %v3941_v29  ;;  %v3310_v5 = vperm.slane %v3134_v43, 0  ;;  %v3311_v29 = vperm.slane %v3134_v43, 1  ;;  %v3312_v12 = vperm.slane %v3134_v43, 2 }
 0x6b9   :  { %2496 = vperm.xlu2 %5236, %v6330_v0  }
 0x6ba   :  { %v6962_v38 = vpop.f32.mrf.mxu3 }
 0x6bc   :  { %v4037_v0 = vpop.f32.mrf.mxu1 }
 0x6bd   :  { %v6949_v20 = vld [vmem:[#allocation1] sm:$0xff]  ;;  %v4038_v53 = vadd.f32 %v6730_v50, %v4037_v0  ;;  %v3315_v0 = vperm.slane %v3134_v43, 5 }
 0x6be   :  { %7824 = vst [vmem:[#allocation50_spill] sm:$0xff] %v6949_v20  ;;  %v6972_v54 = vpop.f32.mrf.mxu2  ;;  %v3135_v20 = vadd.f32 %v3075_v14, %v5768_v2 }
 0x6bf   :  { %3580 = vst [vmem:[#allocation1] ss:$9 sm:$0xff] %v3302_v9  ;;  %v2573_v9 = vperm.slane %v2482_v10, %v6671_v61  ;;  %v4095_v63 = vmax.f32 %v4038_v53, 0.0  ;;  %v3316_v53 = vperm.slane %v3134_v43, 6 }
 0x6c0   :  { %3581 = vst [vmem:[#allocation1 + $0x1] ss:$9 sm:$0xff] %v3303_v8  ;;  %v4094_v8 = vmax.f32 %v4036_v16, 0.0  ;;  %v3926_v16 = vld [vmem:[%s7752_s0 + $0x3f8] sm:$0xff]  ;;  %v3322_v49 = vperm.slane %v3135_v20, 4 }
 0x6c1   :  { %3582 = vst [vmem:[#allocation1 + $0x2] ss:$9 sm:$0xff] %v3304_v56  ;;  %v2574_v56 = vsel %vm1283_vm3, %v2573_v9, %v6907_v39  ;;  %v3313_v9 = vperm.slane %v3134_v43, 3 }
 0x6c2   :  { %3583 = vst [vmem:[#allocation1 + $0x3] ss:$9 sm:$0xff] %v3305_v21  ;;  %v2575_v21 = vperm.slane %v2485_v45, %v6687_v11  ;;  %v4119_v60 = vpack.c.bf16 %v4095_v63, %v4094_v8  ;;  %v3314_v45 = vperm.slane %v3134_v43, 4 }
 0x6c3   :  { %3584 = vst [vmem:[#allocation1 + $0x4] ss:$9 sm:$0xff] %v3306_v42 }
 0x6c4   :  { %3585 = vst [vmem:[#allocation1 + $0x5] ss:$9 sm:$0xff] %v3307_v23  ;;  %v2576_v42 = vsel %vm1287_vm4, %v2575_v21, %v2574_v56  ;;  %v6975_v23 = vpop.f32.mrf.mxu3  ;;  %v4040_v39 = vpop.f32.mrf.mxu1  ;;  %v3317_v56 = vperm.slane %v3134_v43, 7 }
 0x6c5   :  { %3586 = vst [vmem:[#allocation1 + $0x6] ss:$9 sm:$0xff] %v3308_v1  ;;  %v6977_v1 = vpop.xlane.xlu2 %4285  ;;  %4171 = vmatmul.bf16.gmra.mxu3 %v4119_v60  ;;  %v4041_v21 = vadd.f32 %v6730_v50, %v4040_v39  ;;  %2499 = vperm.xlu1 %5238, %v6343_v51  }
 0x6c6   :  { %3587 = vst [vmem:[#allocation1 + $0x7] ss:$9 sm:$0xff] %v3309_v62  ;;  %v3925_v62 = vld [vmem:[%s7752_s0 + $0x3f0] sm:$0xff]  ;;  %v2948_v63 = vpop.f32.mrf.mxu2 }
 0x6c7   :  { %v3942_v8 = vpack.c.bf16 %v3926_v16, %v3925_v62  ;;  %v4096_v62 = vmax.f32 %v4041_v21, 0.0 }
 0x6c9   :  { %5233 = vmatmul.msk.bf16.gmra.mxu1 %vm115_vm0, %v3942_v8  ;;  %v3319_v8 = vperm.slane %v3135_v20, 1  ;;  %vm7837_vm0 = vcmask 851712  }
 0x6cc   :  { %v6988_v60 = vpop.f32.mrf.mxu3  ;;  %v4042_v39 = vpop.f32.mrf.mxu1 }
 0x6cd   :  { %v6979_v10 = vld [vmem:[#allocation1] sm:$0xff]  ;;  %v4043_v16 = vadd.f32 %v6730_v50, %v4042_v39  ;;  %v3324_v39 = vperm.slane %v3135_v20, 6 }
 0x6ce   :  { %7825 = vst [vmem:[#allocation51_spill] sm:$0xff] %v6979_v10 }
 0x6cf   :  { %3589 = vst [vmem:[#allocation1] ss:$9 sm:$0xff] %v3310_v5  ;;  %v2488_v5 = vpop.permute.xlu2 %2487  ;;  %v4097_v14 = vmax.f32 %v4043_v16, 0.0 }
 0x6d0   :  { %3590 = vst [vmem:[#allocation1 + $0x1] ss:$9 sm:$0xff] %v3311_v29  ;;  %v6995_v29 = vld [vmem:[%s7756_s4] ss:$0 sm:$0xff] }
 0x6d1   :  { %3591 = vst [vmem:[#allocation1 + $0x2] ss:$9 sm:$0xff] %v3312_v12  ;;  %v2949_v43 = vadd.f32 %v6995_v29, %v2948_v63  ;;  %v2577_v12 = vperm.slane %v2488_v5, %v6682_v13  ;;  %v4120_v63 = vpack.c.bf16 %v4097_v14, %v4096_v62  ;;  %v3321_v5 = vperm.slane %v3135_v20, 3 }
 0x6d2   :  { %3592 = vst [vmem:[#allocation1 + $0x3] ss:$9 sm:$0xff] %v3313_v9  ;;  %v3325_v62 = vperm.slane %v3135_v20, 7  ;;  %v2936_v14 = vadd.f32 %v6995_v29, %v6884_v27 }
 0x6d3   :  { %3593 = vst [vmem:[#allocation1 + $0x4] ss:$9 sm:$0xff] %v3314_v45  ;;  %v7001_v9 = vsel %vm1291_vm5, %v2577_v12, %v2576_v42  ;;  %v3318_v45 = vperm.slane %v3135_v20, 0  ;;  %v3323_v12 = vperm.slane %v3135_v20, 5 }
 0x6d4   :  { %3594 = vst [vmem:[#allocation1 + $0x5] ss:$9 sm:$0xff] %v3315_v0  ;;  %v2986_v0 = vmax.f32 %v2949_v43, 0.0  ;;  %v4164_v21 = vpop.f32.mrf.mxu3  ;;  %v7012_v43 = vld [vmem:[%s7757_s5] ss:$0 sm:$0xff] }
 0x6d5   :  { %3595 = vst [vmem:[#allocation1 + $0x6] ss:$9 sm:$0xff] %v3316_v53  ;;  %v4150_v53 = vadd.f32 %v6995_v29, %v6806_v6  ;;  %4176 = vmatmul.bf16.gmra.mxu3 %v4120_v63  ;;  %v4165_v42 = vadd.f32 %v6995_v29, %v4164_v21 }
 0x6d6   :  { %3596 = vst [vmem:[#allocation1 + $0x7] ss:$9 sm:$0xff] %v3317_v56  ;;  %v3320_v56 = vperm.slane %v3135_v20, 2  ;;  %v3018_v51 = vmul.f32 %v7012_v43, %v2986_v0  ;;  %v7021_v20 = vpop.xlane.xlu1 %4282 }
 0x6d7   :  { %v4222_v6 = vmax.f32 %v4150_v53, 0.0  ;;  %v4228_v16 = vmax.f32 %v4165_v42, 0.0 }
 0x6d9   :  { %v4254_v63 = vmul.f32 %v7012_v43, %v4222_v6  ;;  %v4260_v0 = vmul.f32 %v7012_v43, %v4228_v16 }
 0x6db   :  { %v4296_v53 = vsel %vm460_vm1, %v4254_v63, 0.0 }
 0x6dd   :  { %v7006_v10 = vld [vmem:[#allocation1] sm:$0xff] }
 0x6de   :  { %3598 = vst [vmem:[#allocation1] ss:$9 sm:$0xff] %v3318_v45  ;;  %v3106_v45 = vsel %vm460_vm1, %v3018_v51, 0.0 }
 0x6df   :  { %3599 = vst [vmem:[#allocation1 + $0x1] ss:$9 sm:$0xff] %v3319_v8  ;;  %3107 = vadd.xlane.f32.xlu0 %v3106_v45  ;;  %v2981_v8 = vmax.f32 %v2936_v14, 0.0 }
 0x6e0   :  { %3600 = vst [vmem:[#allocation1 + $0x2] ss:$9 sm:$0xff] %v3320_v56  ;;  %v4155_v56 = vadd.f32 %v6995_v29, %v6946_v18 }
 0x6e1   :  { %3601 = vst [vmem:[#allocation1 + $0x3] ss:$9 sm:$0xff] %v3321_v5  ;;  %v4045_v5 = vpop.f32.mrf.mxu1  ;;  %v3013_v27 = vmul.f32 %v7012_v43, %v2981_v8 }
 0x6e2   :  { %3602 = vst [vmem:[#allocation1 + $0x4] ss:$9 sm:$0xff] %v3322_v49  ;;  %v4314_v49 = vsel %vm460_vm1, %v4260_v0, 0.0  ;;  %4297 = vadd.xlane.f32.xlu2 %v4296_v53  ;;  %v4224_v21 = vmax.f32 %v4155_v56, 0.0  ;;  %v4046_v51 = vadd.f32 %v6730_v50, %v4045_v5  ;;  %v3081_v53 = vpop.xlane.xlu0 %3080  ;;  %v2939_v56 = vadd.f32 %v6995_v29, %v6901_v17 }
 0x6e3   :  { %3603 = vst [vmem:[#allocation1 + $0x5] ss:$9 sm:$0xff] %v3323_v12  ;;  %v3091_v42 = vsel %vm460_vm1, %v3013_v27, 0.0  ;;  %v3078_v12 = vpop.xlane.xlu1 %3077 }
 0x6e4   :  { %3604 = vst [vmem:[#allocation1 + $0x6] ss:$9 sm:$0xff] %v3324_v39  ;;  %v3136_v6 = vadd.f32 %v3078_v12, %v5768_v2  ;;  %v4098_v63 = vmax.f32 %v4046_v51, 0.0  ;;  %v1278_v12 = vperm.slane %v5987_v57, %v6666_v36  ;;  %v7829_v57 = vld [vmem:[#allocation7_spill] sm:$0xff] }
 0x6e5   :  { %3605 = vst [vmem:[#allocation1 + $0x7] ss:$9 sm:$0xff] %v3325_v62  ;;  %v4256_v62 = vmul.f32 %v7012_v43, %v4224_v21 }
 0x6e6   :  { %v3326_v16 = vperm.slane %v3136_v6, 0  ;;  %v3327_v45 = vperm.slane %v3136_v6, 1  ;;  %v3328_v14 = vperm.slane %v3136_v6, 2  ;;  %v3329_v8 = vperm.slane %v3136_v6, 3 }
 0x6e7   :  { %4315 = vadd.xlane.f32.xlu0 %v4314_v49  ;;  %v3330_v49 = vperm.slane %v3136_v6, 4  ;;  %v3331_v27 = vperm.slane %v3136_v6, 5  ;;  %v4302_v21 = vsel %vm460_vm1, %v4256_v62, 0.0 }
 0x6e9   :  { %v4047_v39 = vpop.f32.mrf.mxu1 }
 0x6ea   :  { %3092 = vadd.xlane.f32.xlu2 %v3091_v42  ;;  %v4048_v0 = vadd.f32 %v6730_v50, %v4047_v39  ;;  %v3332_v42 = vperm.slane %v3136_v6, 6  ;;  %v7827_v50 = vld [vmem:[#allocation6_spill] sm:$0xff] }
 0x6eb   :  { %v1276_v39 = vperm.slane %v7827_v50, %v6663_v55 }
 0x6ec   :  { %v7031_v18 = vld [vmem:[#allocation1] sm:$0xff]  ;;  %v4099_v5 = vmax.f32 %v4048_v0, 0.0 }
 0x6ed   :  { %7826 = vst [vmem:[#allocation52_spill] sm:$0xff] %v7031_v18  ;;  %v3333_v18 = vperm.slane %v3136_v6, 7  ;;  %v1280_v62 = vsel %vm1279_vm2, %v1278_v12, %v1276_v39  ;;  %v1282_v6 = vperm.slane %v7829_v57, %v6671_v61  ;;  %v7055_v12 = vpop.xlane.xlu0 %4288 }
 0x6ee   :  { %3607 = vst [vmem:[#allocation1] ss:$9 sm:$0xff] %v3326_v16  ;;  %v4121_v51 = vpack.c.bf16 %v4099_v5, %v4098_v63  ;;  %v2982_v16 = vmax.f32 %v2939_v56, 0.0  ;;  %v7830_v63 = vld [vmem:[#allocation9_spill] sm:$0xff]  ;;  %v3137_v56 = vadd.f32 %v3081_v53, %v5768_v2  ;;  %v7064_v53 = vld [vmem:[%s7754_s2] ss:$0 sm:$0xff] }
 0x6ef   :  { %3608 = vst [vmem:[#allocation1 + $0x1] ss:$9 sm:$0xff] %v3327_v45  ;;  %v7828_v45 = vld [vmem:[#allocation8_spill] sm:$0xff]  ;;  %v1290_v0 = vperm.slane %v7830_v63, %v6682_v13 }
 0x6f0   :  { %3609 = vst [vmem:[#allocation1 + $0x2] ss:$9 sm:$0xff] %v3328_v14  ;;  %4181 = vmatmul.bf16.gmra.mxu3 %v4121_v51  ;;  %v1286_v14 = vperm.slane %v7828_v45, %v6687_v11  ;;  %v3014_v5 = vmul.f32 %v7012_v43, %v2982_v16  ;;  %v7833_v16 = vld [vmem:[#allocation11_spill] sm:$0xff]  ;;  %v3334_v57 = vperm.slane %v3137_v56, 0  ;;  %v3335_v63 = vperm.slane %v3137_v56, 1 }
 0x6f1   :  { %3610 = vst [vmem:[#allocation1 + $0x3] ss:$9 sm:$0xff] %v3329_v8  ;;  %v4050_v17 = vpop.f32.mrf.mxu1  ;;  %v7831_v8 = vld [vmem:[#allocation10_spill] sm:$0xff] }
 0x6f2   :  { %3611 = vst [vmem:[#allocation1 + $0x4] ss:$9 sm:$0xff] %v3330_v49  ;;  %4303 = vadd.xlane.f32.xlu2 %v4302_v21  ;;  %v1294_v49 = vperm.slane %v7831_v8, %v6690_v31  ;;  %v7832_v21 = vld [vmem:[#allocation12_spill] sm:$0xff]  ;;  %v4051_v50 = vadd.f32 %v7064_v53, %v4050_v17 }
 0x6f3   :  { %3612 = vst [vmem:[#allocation1 + $0x5] ss:$9 sm:$0xff] %v3331_v27  ;;  %v1284_v27 = vsel %vm1283_vm3, %v1282_v6, %v1280_v62  ;;  %v1302_v62 = vperm.slane %v7833_v16, %v6712_v37  ;;  %v3338_v16 = vperm.slane %v3137_v56, 4 }
 0x6f4   :  { %3613 = vst [vmem:[#allocation1 + $0x6] ss:$9 sm:$0xff] %v3332_v42  ;;  %v1298_v42 = vperm.slane %v7832_v21, %v6715_v40  ;;  %v1288_v51 = vsel %vm1287_vm4, %v1286_v14, %v1284_v27 }
 0x6f5   :  { %3614 = vst [vmem:[#allocation1 + $0x7] ss:$9 sm:$0xff] %v3333_v18  ;;  %v4158_v18 = vadd.f32 %v6995_v29, %v6962_v38  ;;  %v1292_v39 = vsel %vm1291_vm5, %v1290_v0, %v1288_v51  ;;  %v3094_v38 = vsel %vm460_vm1, %v3014_v5, 0.0  ;;  %v7835_v0 = vld [vmem:[#allocation15_spill] sm:$0xff]  ;;  %v3336_v51 = vperm.slane %v3137_v56, 2  ;;  %v2494_v13 = vpop.permute.xlu0 %2493 }
 0x6f6   :  { %v1296_v45 = vsel %vm1295_vm6, %v1294_v49, %v1292_v39  ;;  %3095 = vadd.xlane.f32.xlu1 %v3094_v38  ;;  %v1310_v21 = vperm.slane %v7835_v0, %v6752_v22  ;;  %v4100_v49 = vmax.f32 %v4051_v50, 0.0  ;;  %v3337_v5 = vperm.slane %v3137_v56, 3 }
 0x6f7   :  { %v1300_v14 = vsel %vm7764_vm7, %v1298_v42, %v1296_v45  ;;  %v4225_v8 = vmax.f32 %v4158_v18, 0.0  ;;  %v1318_v50 = vperm.slane %v6256_v26, %v6757_v3 }
 0x6f8   :  { %v1304_v42 = vsel %vm1303_vm8, %v1302_v62, %v1300_v14  ;;  %v7836_v62 = vld [vmem:[#allocation14_spill] sm:$0xff] }
 0x6f9   :  { %v4052_v17 = vpop.f32.mrf.mxu1  ;;  %v4257_v38 = vmul.f32 %v7012_v43, %v4225_v8  ;;  %v1314_v14 = vperm.slane %v7836_v62, %v6719_v48  ;;  %v2581_v8 = vperm.slane %v2494_v13, %v6715_v40  ;;  %v1330_v13 = vperm.slane %v6554_v25, %v6866_v35 }
 0x6fa   :  { %v4053_v39 = vadd.f32 %v7064_v53, %v4052_v17  ;;  %v2491_v17 = vpop.permute.xlu1 %2490  ;;  %v7839_v25 = vlaneseq }
 0x6fb   :  { %2520 = vperm.xlu0 %5237, %v6416_v59   ;;  %v7834_v59 = vld [vmem:[#allocation13_spill] sm:$0xff]  ;;  %v4305_v26 = vsel %vm460_vm1, %v4257_v38, 0.0 }
 0x6fc   :  { %v1306_v6 = vperm.slane %v7834_v59, %v6722_v4  ;;  %v7075_v27 = vld [vmem:[#allocation1] sm:$0xff]  ;;  %v4101_v45 = vmax.f32 %v4053_v39, 0.0  ;;  %v3339_v59 = vperm.slane %v3137_v56, 5  ;;  %v2579_v39 = vperm.slane %v2491_v17, %v6690_v31 }
 0x6fd   :  { %3616 = vst [vmem:[#allocation1] ss:$9 sm:$0xff] %v3334_v57  ;;  %v3340_v57 = vperm.slane %v3137_v56, 6 }
 0x6fe   :  { %3617 = vst [vmem:[#allocation1 + $0x1] ss:$9 sm:$0xff] %v3335_v63  ;;  %v1308_v18 = vsel %vm1307_vm9, %v1306_v6, %v1304_v42  ;;  %v4122_v63 = vpack.c.bf16 %v4101_v45, %v4100_v49  ;;  %v1322_v6 = vperm.slane %v6274_v7, %v6774_v33  ;;  %v2580_v49 = vsel %vm1295_vm6, %v2579_v39, %v7001_v9  ;;  %v7838_v42 = vld [vmem:[#allocation16_spill] sm:$0xff] }
 0x6ff   :  { %3618 = vst [vmem:[#allocation1 + $0x2] ss:$9 sm:$0xff] %v3336_v51  ;;  %v1312_v0 = vsel %vm1311_vm10, %v1310_v21, %v1308_v18  ;;  %v3341_v51 = vperm.slane %v3137_v56, 7  ;;  %4306 = vadd.xlane.f32.xlu1 %v4305_v26  ;;  %v2582_v7 = vsel %vm7764_vm7, %v2581_v8, %v2580_v49  ;;  %v1334_v45 = vperm.slane %v6567_v32, %v6869_v44 }
 0x700   :  { %3619 = vst [vmem:[#allocation1 + $0x3] ss:$9 sm:$0xff] %v3337_v5  ;;  %4186 = vmatmul.bf16.gmra.mxu3 %v4122_v63  ;;  %v1316_v21 = vsel %vm1315_vm11, %v1314_v14, %v1312_v0  ;;  %v1368_v18 = vrot.slane %v6879_v19, 7  ;;  %vm7113_vm7 = vcmp.lt.s32.totalorder %v7839_v25, 256 }
 0x701   :  { %3620 = vst [vmem:[#allocation1 + $0x4] ss:$9 sm:$0xff] %v3338_v16  ;;  %v1320_v5 = vsel %vm1319_vm12, %v1318_v50, %v1316_v21  ;;  %v1326_v16 = vperm.slane %v7838_v42, %v6861_v47 }
 0x702   :  { %3621 = vst [vmem:[#allocation1 + $0x5] ss:$9 sm:$0xff] %v3339_v59  ;;  %v1324_v56 = vsel %vm7837_vm0, %v1322_v6, %v1320_v5  ;;  %v7107_v59 = vpop.f32.mrf.mxu2  ;;  %vm7765_vm0 = vcmask 1040384  }
 0x703   :  { %3622 = vst [vmem:[#allocation1 + $0x6] ss:$9 sm:$0xff] %v3340_v57  ;;  %v1328_v9 = vsel %vm1327_vm14, %v1326_v16, %v1324_v56  ;;  %v7840_v57 = vmov 0 }
 0x704   :  { %3623 = vst [vmem:[#allocation1 + $0x7] ss:$9 sm:$0xff] %v3341_v51  ;;  %v1332_v38 = vsel %vm1331_vm15, %v1330_v13, %v1328_v9  ;;  %v4055_v50 = vpop.f32.mrf.mxu1  ;;  %v7841_v57 = vsel %vm7113_vm7, 4294967295, %v7840_v57 }
 0x705   :  { %v1336_v0 = vsel %vm1335_vm13, %v1334_v45, %v1332_v38  ;;  %7842 = vst [vmem:[#allocation6_spill] sm:$0xff] %v7841_v57 }
 0x706   :  { %v1370_v32 = vsel %vm7765_vm0, %v1336_v0, %v1368_v18  ;;  %vm7847_vm0 = vcmask 851712  }
 0x707   :  { %1376 = vst.msk [vmem:[#allocation3] sm:$0x3] %vm7113_vm7, %v1370_v32 }
 0x70a   :  { %2505 = vperm.xlu2 %5236, %v6368_v52   ;;  %v4056_v52 = vadd.f32 %v7064_v53, %v4055_v50 }
 0x70b   :  { %v7121_v6 = vld [vmem:[#allocation1] sm:$0xff] }
 0x70c   :  { %v3084_v19 = vpop.xlane.xlu2 %3083  ;;  %v7124_v26 = vpop.f32.mrf.mxu2  ;;  %v4102_v56 = vmax.f32 %v4056_v52, 0.0 }
 0x70d   :  { %v3138_v63 = vadd.f32 %v3084_v19, %v5768_v2  ;;  %v4057_v21 = vpop.f32.mrf.mxu1 }
 0x70e   :  { %v4058_v5 = vadd.f32 %v7064_v53, %v4057_v21 }
 0x70f   :  { %v3342_v17 = vperm.slane %v3138_v63, 0  ;;  %v3343_v62 = vperm.slane %v3138_v63, 1  ;;  %v3344_v14 = vperm.slane %v3138_v63, 2  ;;  %v3345_v51 = vperm.slane %v3138_v63, 3 }
 0x710   :  { %v3346_v39 = vperm.slane %v3138_v63, 4  ;;  %v3347_v8 = vperm.slane %v3138_v63, 5  ;;  %v3348_v49 = vperm.slane %v3138_v63, 6  ;;  %v3349_v13 = vperm.slane %v3138_v63, 7 }
 0x711   :  { %3625 = vst [vmem:[#allocation1] ss:$9 sm:$0xff] %v3342_v17  ;;  %v4103_v16 = vmax.f32 %v4058_v5, 0.0  ;;  %v7141_v5 = vpop.xlane.xlu0 %4294 }
 0x712   :  { %3626 = vst [vmem:[#allocation1 + $0x1] ss:$9 sm:$0xff] %v3343_v62 }
 0x713   :  { %3627 = vst [vmem:[#allocation1 + $0x2] ss:$9 sm:$0xff] %v3344_v14  ;;  %v4123_v45 = vpack.c.bf16 %v4103_v16, %v4102_v56 }
 0x714   :  { %3628 = vst [vmem:[#allocation1 + $0x3] ss:$9 sm:$0xff] %v3345_v51  ;;  %v7127_v42 = vpop.xlane.xlu2 %4291  ;;  %v2955_v18 = vpop.f32.mrf.mxu2 }
 0x715   :  { %3629 = vst [vmem:[#allocation1 + $0x4] ss:$9 sm:$0xff] %v3346_v39  ;;  %4191 = vmatmul.bf16.gmra.mxu3 %v4123_v45  ;;  %v4060_v9 = vpop.f32.mrf.mxu1  ;;  %v2956_v38 = vadd.f32 %v6995_v29, %v2955_v18 }
 0x716   :  { %3630 = vst [vmem:[#allocation1 + $0x5] ss:$9 sm:$0xff] %v3347_v8  ;;  %v4061_v19 = vadd.f32 %v7064_v53, %v4060_v9 }
 0x717   :  { %3631 = vst [vmem:[#allocation1 + $0x6] ss:$9 sm:$0xff] %v3348_v49  ;;  %v2989_v50 = vmax.f32 %v2956_v38, 0.0 }
 0x718   :  { %3632 = vst [vmem:[#allocation1 + $0x7] ss:$9 sm:$0xff] %v3349_v13  ;;  %2508 = vperm.xlu1 %5238, %v6372_v24   ;;  %v4104_v14 = vmax.f32 %v4061_v19, 0.0  ;;  %v2944_v24 = vadd.f32 %v6995_v29, %v6959_v30  ;;  %v4160_v13 = vadd.f32 %v6995_v29, %v6975_v23 }
 0x719   :  { %v3021_v32 = vmul.f32 %v7012_v43, %v2989_v50 }
 0x71a   :  { %v2984_v8 = vmax.f32 %v2944_v24, 0.0 }
 0x71b   :  { %v3115_v17 = vsel %vm460_vm1, %v3021_v32, 0.0  ;;  %v4226_v32 = vmax.f32 %v4160_v13, 0.0 }
 0x71c   :  { %v2497_v0 = vpop.permute.xlu2 %2496 }
 0x71d   :  { %v2583_v25 = vperm.slane %v2497_v0, %v6712_v37  ;;  %v4062_v62 = vpop.f32.mrf.mxu1 }
 0x71e   :  { %v4063_v52 = vadd.f32 %v7064_v53, %v4062_v62 }
 0x71f   :  { %v7135_v63 = vsel %vm1303_vm8, %v2583_v25, %v2582_v7  ;;  %v3087_v49 = vpop.xlane.xlu1 %3086  ;;  %v3016_v7 = vmul.f32 %v7012_v43, %v2984_v8  ;;  %v7147_v9 = vld [vmem:[#allocation1] sm:$0xff] }
 0x720   :  { %v4105_v51 = vmax.f32 %v4063_v52, 0.0  ;;  %v3139_v56 = vadd.f32 %v3087_v49, %v5768_v2  ;;  %7843 = vst [vmem:[#allocation8_spill] sm:$0xff] %v7147_v9  ;;  %v4163_v52 = vadd.f32 %v6995_v29, %v6988_v60 }
 0x721   :  { %v3100_v0 = vsel %vm460_vm1, %v3016_v7, 0.0 }
 0x722   :  { %v4124_v39 = vpack.c.bf16 %v4105_v51, %v4104_v14  ;;  %v3350_v16 = vperm.slane %v3139_v56, 0  ;;  %v3351_v45 = vperm.slane %v3139_v56, 1  ;;  %v3352_v18 = vperm.slane %v3139_v56, 2  ;;  %v3090_v51 = vpop.xlane.xlu0 %3089 }
 0x723   :  { %v3353_v38 = vperm.slane %v3139_v56, 3  ;;  %v3354_v50 = vperm.slane %v3139_v56, 4  ;;  %v3355_v25 = vperm.slane %v3139_v56, 5  ;;  %v3357_v14 = vperm.slane %v3139_v56, 7 }
 0x724   :  { %3634 = vst [vmem:[#allocation1] ss:$9 sm:$0xff] %v3350_v16  ;;  %v3140_v7 = vadd.f32 %v3090_v51, %v5768_v2 }
 0x725   :  { %3116 = vadd.xlane.f32.xlu0 %v3115_v17  ;;  %4196 = vmatmul.bf16.gmra.mxu3 %v4124_v39  ;;  %v4065_v21 = vpop.f32.mrf.mxu1  ;;  %3635 = vst [vmem:[#allocation1 + $0x1] ss:$9 sm:$0xff] %v3351_v45  ;;  %v3356_v17 = vperm.slane %v3139_v56, 6  ;;  %v4258_v39 = vmul.f32 %v7012_v43, %v4226_v32  ;;  %v2946_v56 = vadd.f32 %v6995_v29, %v6972_v54 }
 0x726   :  { %v4066_v30 = vadd.f32 %v7064_v53, %v4065_v21  ;;  %3636 = vst [vmem:[#allocation1 + $0x2] ss:$9 sm:$0xff] %v3352_v18  ;;  %v4227_v21 = vmax.f32 %v4163_v52, 0.0  ;;  %v3358_v45 = vperm.slane %v3140_v7, 0  ;;  %v3359_v18 = vperm.slane %v3140_v7, 1 }
 0x727   :  { %3637 = vst [vmem:[#allocation1 + $0x3] ss:$9 sm:$0xff] %v3353_v38  ;;  %v4308_v13 = vsel %vm460_vm1, %v4258_v39, 0.0  ;;  %v3360_v38 = vperm.slane %v3140_v7, 2  ;;  %v3362_v32 = vperm.slane %v3140_v7, 4  ;;  %v3365_v39 = vperm.slane %v3140_v7, 7 }
 0x728   :  { %v4106_v62 = vmax.f32 %v4066_v30, 0.0  ;;  %3638 = vst [vmem:[#allocation1 + $0x4] ss:$9 sm:$0xff] %v3354_v50  ;;  %v4259_v16 = vmul.f32 %v7012_v43, %v4227_v21  ;;  %v3361_v50 = vperm.slane %v3140_v7, 3 }
 0x729   :  { %3639 = vst [vmem:[#allocation1 + $0x5] ss:$9 sm:$0xff] %v3355_v25 }
 0x72a   :  { %3640 = vst [vmem:[#allocation1 + $0x6] ss:$9 sm:$0xff] %v3356_v17  ;;  %v4311_v54 = vsel %vm460_vm1, %v4259_v16, 0.0  ;;  %v3363_v17 = vperm.slane %v3140_v7, 5 }
 0x72b   :  { %3641 = vst [vmem:[#allocation1 + $0x7] ss:$9 sm:$0xff] %v3357_v14  ;;  %v7170_v14 = vpop.xlane.xlu0 %4300 }
 0x72d   :  { %v4067_v19 = vpop.f32.mrf.mxu1 }
 0x72e   :  { %v4068_v23 = vadd.f32 %v7064_v53, %v4067_v19 }
 0x730   :  { %v4107_v24 = vmax.f32 %v4068_v23, 0.0  ;;  %v3364_v23 = vperm.slane %v3140_v7, 6 }
 0x732   :  { %v4125_v8 = vpack.c.bf16 %v4107_v24, %v4106_v62  ;;  %v7163_v30 = vld [vmem:[#allocation1] sm:$0xff] }
 0x733   :  { %3101 = vadd.xlane.f32.xlu2 %v3100_v0  ;;  %3643 = vst [vmem:[#allocation1] ss:$9 sm:$0xff] %v3358_v45 }
 0x734   :  { %3644 = vst [vmem:[#allocation1 + $0x1] ss:$9 sm:$0xff] %v3359_v18 }
 0x735   :  { %4201 = vmatmul.bf16.gmra.mxu3 %v4125_v8  ;;  %v4070_v60 = vpop.f32.mrf.mxu1  ;;  %3645 = vst [vmem:[#allocation1 + $0x2] ss:$9 sm:$0xff] %v3360_v38 }
 0x736   :  { %v4071_v0 = vadd.f32 %v7064_v53, %v4070_v60  ;;  %3646 = vst [vmem:[#allocation1 + $0x3] ss:$9 sm:$0xff] %v3361_v50 }
 0x737   :  { %3647 = vst [vmem:[#allocation1 + $0x4] ss:$9 sm:$0xff] %v3362_v32  ;;  %v2500_v51 = vpop.permute.xlu1 %2499 }
 0x738   :  { %v7156_v49 = vpop.f32.mrf.mxu3  ;;  %v4108_v52 = vmax.f32 %v4071_v0, 0.0  ;;  %3648 = vst [vmem:[#allocation1 + $0x5] ss:$9 sm:$0xff] %v3363_v17  ;;  %v2585_v8 = vperm.slane %v2500_v51, %v6722_v4 }
 0x739   :  { %2529 = vperm.xlu0 %5237, %v6434_v58   ;;  %v2985_v58 = vmax.f32 %v2946_v56, 0.0  ;;  %3649 = vst [vmem:[#allocation1 + $0x6] ss:$9 sm:$0xff] %v3364_v23 }
 0x73a   :  { %3650 = vst [vmem:[#allocation1 + $0x7] ss:$9 sm:$0xff] %v3365_v39  ;;  %v2586_v60 = vsel %vm1307_vm9, %v2585_v8, %v7135_v63  ;;  %v7844_v8 = vld [vmem:[#allocation17_spill] sm:$0xff] }
 0x73b   :  { %4309 = vadd.xlane.f32.xlu2 %v4308_v13  ;;  %v3017_v19 = vmul.f32 %v7012_v43, %v2985_v58  ;;  %v2503_v58 = vpop.permute.xlu0 %2502 }
 0x73c   :  { %v2587_v7 = vperm.slane %v2503_v58, %v6752_v22 }
 0x73d   :  { %v4072_v62 = vpop.f32.mrf.mxu1  ;;  %v3103_v56 = vsel %vm460_vm1, %v3017_v19, 0.0 }
 0x73e   :  { %v4073_v24 = vadd.f32 %v7064_v53, %v4072_v62  ;;  %v2588_v0 = vsel %vm1311_vm10, %v2587_v7, %v2586_v60 }
 0x740   :  { %v7166_v25 = vpop.f32.mrf.mxu3  ;;  %v4109_v21 = vmax.f32 %v4073_v24, 0.0 }
 0x742   :  { %3104 = vadd.xlane.f32.xlu1 %v3103_v56  ;;  %v4126_v13 = vpack.c.bf16 %v4109_v21, %v4108_v52 }
 0x743   :  { %4312 = vadd.xlane.f32.xlu2 %v4311_v54 }
 0x745   :  { %4206 = vmatmul.bf16.gmra.mxu3 %v4126_v13  ;;  %v7193_v13 = vld [vmem:[#allocation1] sm:$0xff] }
 0x746   :  { %v4075_v45 = vpop.f32.mrf.mxu1 }
 0x747   :  { %v4076_v18 = vadd.f32 %v7064_v53, %v4075_v45 }
 0x748   :  { %v7177_v16 = vpop.f32.mrf.mxu3 }
 0x749   :  { %v4110_v54 = vmax.f32 %v4076_v18, 0.0 }
 0x74e   :  { %v4077_v50 = vpop.f32.mrf.mxu1 }
 0x74f   :  { %v4078_v32 = vadd.f32 %v7064_v53, %v4077_v50 }
 0x750   :  { %v7181_v38 = vpop.f32.mrf.mxu3 }
 0x751   :  { %v4111_v19 = vmax.f32 %v4078_v32, 0.0 }
 0x753   :  { %v4127_v17 = vpack.c.bf16 %v4111_v19, %v4110_v54 }
 0x755   :  { %v7185_v63 = vpop.xlane.xlu2 %4297  ;;  %4211 = vmatmul.bf16.gmra.mxu3 %v4127_v17 }
 0x758   :  { %v4177_v62 = vpop.f32.mrf.mxu3 }
 0x759   :  { %v4178_v23 = vadd.f32 %v6995_v29, %v4177_v62 }
 0x75b   :  { %2514 = vperm.xlu2 %5236, %v6384_v41   ;;  %v4233_v52 = vmax.f32 %v4178_v23, 0.0  ;;  %2517 = vperm.xlu1 %5238, %v7844_v8  }
 0x75d   :  { %v3093_v24 = vpop.xlane.xlu2 %3092  ;;  %v4265_v51 = vmul.f32 %v7012_v43, %v4233_v52 }
 0x75e   :  { %v3141_v39 = vadd.f32 %v3093_v24, %v5768_v2 }
 0x75f   :  { %v4329_v53 = vsel %vm460_vm1, %v4265_v51, 0.0 }
 0x760   :  { %v3366_v21 = vperm.slane %v3141_v39, 0  ;;  %v3367_v56 = vperm.slane %v3141_v39, 1  ;;  %v3368_v60 = vperm.slane %v3141_v39, 2  ;;  %v3369_v45 = vperm.slane %v3141_v39, 3  ;;  %v7197_v54 = vpop.f32.mrf.mxu3 }
 0x761   :  { %v3370_v58 = vperm.slane %v3141_v39, 4  ;;  %v3371_v41 = vperm.slane %v3141_v39, 5  ;;  %v3372_v7 = vperm.slane %v3141_v39, 6  ;;  %v3373_v18 = vperm.slane %v3141_v39, 7 }
 0x762   :  { %3652 = vst [vmem:[#allocation1] ss:$9 sm:$0xff] %v3366_v21 }
 0x763   :  { %4330 = vadd.xlane.f32.xlu0 %v4329_v53  ;;  %3653 = vst [vmem:[#allocation1 + $0x1] ss:$9 sm:$0xff] %v3367_v56  ;;  %v7846_v56 = vld [vmem:[#allocation22_spill] sm:$0xff] }
 0x764   :  { %3654 = vst [vmem:[#allocation1 + $0x2] ss:$9 sm:$0xff] %v3368_v60 }
 0x765   :  { %3655 = vst [vmem:[#allocation1 + $0x3] ss:$9 sm:$0xff] %v3369_v45  ;;  %v7195_v50 = vpop.xlane.xlu2 %4303 }
 0x766   :  { %3656 = vst [vmem:[#allocation1 + $0x4] ss:$9 sm:$0xff] %v3370_v58 }
 0x767   :  { %3657 = vst [vmem:[#allocation1 + $0x5] ss:$9 sm:$0xff] %v3371_v41  ;;  %v3099_v41 = vpop.xlane.xlu0 %3098 }
 0x768   :  { %3658 = vst [vmem:[#allocation1 + $0x6] ss:$9 sm:$0xff] %v3372_v7 }
 0x769   :  { %3659 = vst [vmem:[#allocation1 + $0x7] ss:$9 sm:$0xff] %v3373_v18  ;;  %v3096_v17 = vpop.xlane.xlu1 %3095  ;;  %v3143_v18 = vadd.f32 %v3099_v41, %v5768_v2 }
 0x76a   :  { %v3142_v62 = vadd.f32 %v3096_v17, %v5768_v2 }
 0x76c   :  { %v3374_v52 = vperm.slane %v3142_v62, 0  ;;  %v3375_v24 = vperm.slane %v3142_v62, 1  ;;  %v3376_v51 = vperm.slane %v3142_v62, 2  ;;  %v3377_v8 = vperm.slane %v3142_v62, 3 }
 0x76d   :  { %v2506_v32 = vpop.permute.xlu2 %2505  ;;  %v3378_v53 = vperm.slane %v3142_v62, 4  ;;  %v3379_v21 = vperm.slane %v3142_v62, 5  ;;  %v3380_v45 = vperm.slane %v3142_v62, 6  ;;  %v3381_v58 = vperm.slane %v3142_v62, 7 }
 0x76e   :  { %v2589_v19 = vperm.slane %v2506_v32, %v6719_v48  ;;  %v2954_v32 = vadd.f32 %v6995_v29, %v7124_v26  ;;  %v3386_v26 = vperm.slane %v3143_v18, 4  ;;  %v7853_v48 = vld [vmem:[#allocation31_spill] sm:$0xff] }
 0x770   :  { %v7202_v23 = vsel %vm1315_vm11, %v2589_v19, %v2588_v0  ;;  %v7204_v39 = vld [vmem:[#allocation1] sm:$0xff]  ;;  %v2951_v0 = vadd.f32 %v6995_v29, %v7107_v59  ;;  %v4168_v19 = vadd.f32 %v6995_v29, %v7156_v49  ;;  %v2988_v59 = vmax.f32 %v2954_v32, 0.0 }
 0x771   :  { %7845 = vst [vmem:[#allocation7_spill] sm:$0xff] %v7204_v39  ;;  %v4170_v49 = vadd.f32 %v6995_v29, %v7166_v25 }
 0x772   :  { %3661 = vst [vmem:[#allocation1] ss:$9 sm:$0xff] %v3374_v52  ;;  %v2987_v7 = vmax.f32 %v2951_v0, 0.0  ;;  %v3382_v52 = vperm.slane %v3143_v18, 0  ;;  %v7228_v32 = vpop.xlane.xlu1 %4306 }
 0x773   :  { %3662 = vst [vmem:[#allocation1 + $0x1] ss:$9 sm:$0xff] %v3375_v24  ;;  %v7207_v60 = vpop.f32.mrf.mxu3  ;;  %v3383_v24 = vperm.slane %v3143_v18, 1 }
 0x774   :  { %3663 = vst [vmem:[#allocation1 + $0x2] ss:$9 sm:$0xff] %v3376_v51  ;;  %v3019_v62 = vmul.f32 %v7012_v43, %v2987_v7  ;;  %v4229_v51 = vmax.f32 %v4168_v19, 0.0  ;;  %v3388_v7 = vperm.slane %v3143_v18, 6  ;;  %v3389_v19 = vperm.slane %v3143_v18, 7 }
 0x775   :  { %3664 = vst [vmem:[#allocation1 + $0x3] ss:$9 sm:$0xff] %v3377_v8 }
 0x776   :  { %3665 = vst [vmem:[#allocation1 + $0x4] ss:$9 sm:$0xff] %v3378_v53  ;;  %v3384_v53 = vperm.slane %v3143_v18, 2  ;;  %v4261_v0 = vmul.f32 %v7012_v43, %v4229_v51 }
 0x777   :  { %2538 = vperm.xlu0 %5237, %v7846_v56   ;;  %3666 = vst [vmem:[#allocation1 + $0x5] ss:$9 sm:$0xff] %v3379_v21  ;;  %v3385_v21 = vperm.slane %v3143_v18, 3  ;;  %v3109_v56 = vsel %vm460_vm1, %v3019_v62, 0.0  ;;  %v4230_v62 = vmax.f32 %v4170_v49, 0.0  ;;  %v2512_v49 = vpop.permute.xlu0 %2511 }
 0x778   :  { %3667 = vst [vmem:[#allocation1 + $0x6] ss:$9 sm:$0xff] %v3380_v45  ;;  %v3020_v45 = vmul.f32 %v7012_v43, %v2988_v59  ;;  %v4317_v25 = vsel %vm460_vm1, %v4261_v0, 0.0 }
 0x779   :  { %3668 = vst [vmem:[#allocation1 + $0x7] ss:$9 sm:$0xff] %v3381_v58  ;;  %v3387_v58 = vperm.slane %v3143_v18, 5  ;;  %v4262_v59 = vmul.f32 %v7012_v43, %v4230_v62  ;;  %v7848_v62 = vld [vmem:[#allocation18_spill] sm:$0xff] }
 0x77b   :  { %v7216_v17 = vpop.f32.mrf.mxu3  ;;  %v4320_v18 = vsel %vm460_vm1, %v4262_v59, 0.0 }
 0x780   :  { %v7219_v8 = vld [vmem:[#allocation1] sm:$0xff] }
 0x781   :  { %3670 = vst [vmem:[#allocation1] ss:$9 sm:$0xff] %v3382_v52  ;;  %v3112_v52 = vsel %vm460_vm1, %v3020_v45, 0.0 }
 0x782   :  { %3671 = vst [vmem:[#allocation1 + $0x1] ss:$9 sm:$0xff] %v3383_v24 }
 0x783   :  { %3672 = vst [vmem:[#allocation1 + $0x2] ss:$9 sm:$0xff] %v3384_v53  ;;  %v7226_v41 = vpop.f32.mrf.mxu3 }
 0x784   :  { %3110 = vadd.xlane.f32.xlu2 %v3109_v56  ;;  %3673 = vst [vmem:[#allocation1 + $0x3] ss:$9 sm:$0xff] %v3385_v21 }
 0x785   :  { %3674 = vst [vmem:[#allocation1 + $0x4] ss:$9 sm:$0xff] %v3386_v26  ;;  %3113 = vadd.xlane.f32.xlu1 %v3112_v52 }
 0x786   :  { %3675 = vst [vmem:[#allocation1 + $0x5] ss:$9 sm:$0xff] %v3387_v58 }
 0x787   :  { %3676 = vst [vmem:[#allocation1 + $0x6] ss:$9 sm:$0xff] %v3388_v7  ;;  %v2593_v7 = vperm.slane %v2512_v49, %v6774_v33  ;;  %v4173_v33 = vadd.f32 %v6995_v29, %v7177_v16  ;;  %v4175_v16 = vadd.f32 %v6995_v29, %v7181_v38 }
 0x788   :  { %3677 = vst [vmem:[#allocation1 + $0x7] ss:$9 sm:$0xff] %v3389_v19 }
 0x78a   :  { %v2509_v24 = vpop.permute.xlu1 %2508 }
 0x78b   :  { %v4189_v51 = vpop.f32.mrf.mxu3  ;;  %v2591_v53 = vperm.slane %v2509_v24, %v6757_v3 }
 0x78c   :  { %4318 = vadd.xlane.f32.xlu2 %v4317_v25  ;;  %v4190_v21 = vadd.f32 %v6995_v29, %v4189_v51 }
 0x78d   :  { %v2592_v56 = vsel %vm1319_vm12, %v2591_v53, %v7202_v23  ;;  %4321 = vadd.xlane.f32.xlu1 %v4320_v18  ;;  %v7849_v18 = vld [vmem:[#allocation19_spill] sm:$0xff] }
 0x78e   :  { %v4238_v26 = vmax.f32 %v4190_v21, 0.0  ;;  %v2594_v19 = vsel %vm7847_vm0, %v2593_v7, %v2592_v56  ;;  %vm7871_vm0 = vcmask 458112  }
 0x78f   :  { %v7248_v53 = vld [vmem:[#allocation1] sm:$0xff] }
 0x790   :  { %v4270_v45 = vmul.f32 %v7012_v43, %v4238_v26 }
 0x792   :  { %v4344_v58 = vsel %vm460_vm1, %v4270_v45, 0.0 }
 0x798   :  { %v7240_v0 = vpop.f32.mrf.mxu3 }
 0x7a0   :  { %v7245_v52 = vpop.f32.mrf.mxu3 }
 0x7a1   :  { %4345 = vadd.xlane.f32.xlu0 %v4344_v58 }
 0x7a4   :  { %2523 = vperm.xlu2 %5236, %v7848_v62   ;;  %v7850_v62 = vld [vmem:[#allocation25_spill] sm:$0xff] }
 0x7a6   :  { %v3102_v25 = vpop.xlane.xlu2 %3101  ;;  %2526 = vperm.xlu1 %5238, %v7849_v18  }
 0x7a7   :  { %v3144_v23 = vadd.f32 %v3102_v25, %v5768_v2 }
 0x7a8   :  { %v7251_v49 = vpop.f32.mrf.mxu3 }
 0x7a9   :  { %v3390_v59 = vperm.slane %v3144_v23, 0  ;;  %v3391_v24 = vperm.slane %v3144_v23, 1  ;;  %v3392_v51 = vperm.slane %v3144_v23, 2  ;;  %v3393_v21 = vperm.slane %v3144_v23, 3 }
 0x7aa   :  { %v3394_v26 = vperm.slane %v3144_v23, 4  ;;  %v3395_v45 = vperm.slane %v3144_v23, 5  ;;  %v3396_v56 = vperm.slane %v3144_v23, 6  ;;  %v3397_v58 = vperm.slane %v3144_v23, 7 }
 0x7ab   :  { %3679 = vst [vmem:[#allocation1] ss:$9 sm:$0xff] %v3390_v59 }
 0x7ac   :  { %3680 = vst [vmem:[#allocation1 + $0x1] ss:$9 sm:$0xff] %v3391_v24  ;;  %v7851_v24 = vld [vmem:[#allocation28_spill] sm:$0xff] }
 0x7ad   :  { %3681 = vst [vmem:[#allocation1 + $0x2] ss:$9 sm:$0xff] %v3392_v51 }
 0x7ae   :  { %3682 = vst [vmem:[#allocation1 + $0x3] ss:$9 sm:$0xff] %v3393_v21  ;;  %v7253_v7 = vpop.xlane.xlu2 %4309 }
 0x7af   :  { %3683 = vst [vmem:[#allocation1 + $0x4] ss:$9 sm:$0xff] %v3394_v26  ;;  %v3108_v26 = vpop.xlane.xlu0 %3107 }
 0x7b0   :  { %3684 = vst [vmem:[#allocation1 + $0x5] ss:$9 sm:$0xff] %v3395_v45  ;;  %v7256_v25 = vpop.f32.mrf.mxu3 }
 0x7b1   :  { %3685 = vst [vmem:[#allocation1 + $0x6] ss:$9 sm:$0xff] %v3396_v56 }
 0x7b2   :  { %3686 = vst [vmem:[#allocation1 + $0x7] ss:$9 sm:$0xff] %v3397_v58 }
 0x7b5   :  { %2547 = vperm.xlu0 %5237, %v7850_v62   ;;  %v3105_v59 = vpop.xlane.xlu1 %3104 }
 0x7b6   :  { %v7258_v18 = vpop.xlane.xlu2 %4312  ;;  %v3145_v51 = vadd.f32 %v3105_v59, %v5768_v2 }
 0x7b8   :  { %v7262_v39 = vpop.f32.mrf.mxu3  ;;  %v3398_v23 = vperm.slane %v3145_v51, 0  ;;  %v3399_v21 = vperm.slane %v3145_v51, 1  ;;  %v3400_v57 = vperm.slane %v3145_v51, 2  ;;  %v3401_v58 = vperm.slane %v3145_v51, 3 }
 0x7b9   :  { %v7264_v45 = vld [vmem:[#allocation1] sm:$0xff]  ;;  %v3402_v9 = vperm.slane %v3145_v51, 4  ;;  %v3404_v3 = vperm.slane %v3145_v51, 6  ;;  %v3405_v22 = vperm.slane %v3145_v51, 7 }
 0x7ba   :  { %7852 = vst [vmem:[#allocation9_spill] sm:$0xff] %v7264_v45  ;;  %v4231_v45 = vmax.f32 %v4173_v33, 0.0 }
 0x7bb   :  { %3688 = vst [vmem:[#allocation1] ss:$9 sm:$0xff] %v3398_v23 }
 0x7bc   :  { %3689 = vst [vmem:[#allocation1 + $0x1] ss:$9 sm:$0xff] %v3399_v21  ;;  %v4263_v23 = vmul.f32 %v7012_v43, %v4231_v45  ;;  %v7277_v21 = vpop.xlane.xlu0 %4315 }
 0x7bd   :  { %2556 = vperm.xlu0 %5237, %v7851_v24   ;;  %v3403_v24 = vperm.slane %v3145_v51, 5  ;;  %3690 = vst [vmem:[#allocation1 + $0x2] ss:$9 sm:$0xff] %v3400_v57  ;;  %v4232_v57 = vmax.f32 %v4175_v16, 0.0 }
 0x7be   :  { %v2515_v56 = vpop.permute.xlu2 %2514  ;;  %3691 = vst [vmem:[#allocation1 + $0x3] ss:$9 sm:$0xff] %v3401_v58 }
 0x7bf   :  { %v2595_v62 = vperm.slane %v2515_v56, %v6861_v47  ;;  %3692 = vst [vmem:[#allocation1 + $0x4] ss:$9 sm:$0xff] %v3402_v9  ;;  %v4264_v38 = vmul.f32 %v7012_v43, %v4232_v57 }
 0x7c0   :  { %3693 = vst [vmem:[#allocation1 + $0x5] ss:$9 sm:$0xff] %v3403_v24  ;;  %v7271_v4 = vpop.f32.mrf.mxu3 }
 0x7c1   :  { %v2596_v59 = vsel %vm1327_vm14, %v2595_v62, %v2594_v19  ;;  %3694 = vst [vmem:[#allocation1 + $0x6] ss:$9 sm:$0xff] %v3404_v3  ;;  %v3146_v19 = vadd.f32 %v3108_v26, %v5768_v2  ;;  %v4180_v26 = vadd.f32 %v6995_v29, %v7197_v54  ;;  %v4326_v57 = vsel %vm460_vm1, %v4264_v38, 0.0 }
 0x7c2   :  { %3695 = vst [vmem:[#allocation1 + $0x7] ss:$9 sm:$0xff] %v3405_v22 }
 0x7c3   :  { %v3406_v51 = vperm.slane %v3146_v19, 0  ;;  %v3407_v9 = vperm.slane %v3146_v19, 1  ;;  %v3408_v22 = vperm.slane %v3146_v19, 2  ;;  %v3409_v3 = vperm.slane %v3146_v19, 3 }
 0x7c4   :  { %v3410_v45 = vperm.slane %v3146_v19, 4  ;;  %v2521_v58 = vpop.permute.xlu0 %2520  ;;  %v3411_v62 = vperm.slane %v3146_v19, 5  ;;  %v3412_v16 = vperm.slane %v3146_v19, 6  ;;  %v4234_v47 = vmax.f32 %v4180_v26, 0.0 }
 0x7c5   :  { %2565 = vperm.xlu0 %5237, %v7853_v48   ;;  %v4323_v48 = vsel %vm460_vm1, %v4263_v23, 0.0 }
 0x7c8   :  { %v7282_v56 = vpop.f32.mrf.mxu3 }
 0x7c9   :  { %v7280_v33 = vld [vmem:[#allocation1] sm:$0xff] }
 0x7ca   :  { %3697 = vst [vmem:[#allocation1] ss:$9 sm:$0xff] %v3406_v51  ;;  %v2599_v51 = vperm.slane %v2521_v58, %v6869_v44 }
 0x7cb   :  { %3698 = vst [vmem:[#allocation1 + $0x1] ss:$9 sm:$0xff] %v3407_v9 }
 0x7cc   :  { %3699 = vst [vmem:[#allocation1 + $0x2] ss:$9 sm:$0xff] %v3408_v22  ;;  %v4266_v22 = vmul.f32 %v7012_v43, %v4234_v47 }
 0x7cd   :  { %4324 = vadd.xlane.f32.xlu2 %v4323_v48  ;;  %3700 = vst [vmem:[#allocation1 + $0x3] ss:$9 sm:$0xff] %v3409_v3  ;;  %v2518_v24 = vpop.permute.xlu1 %2517  ;;  %v3413_v48 = vperm.slane %v3146_v19, 7 }
 0x7ce   :  { %3701 = vst [vmem:[#allocation1 + $0x4] ss:$9 sm:$0xff] %v3410_v45  ;;  %v2597_v23 = vperm.slane %v2518_v24, %v6866_v35  ;;  %v4332_v19 = vsel %vm460_vm1, %v4266_v22, 0.0  ;;  %v7855_v45 = vld [vmem:[#allocation20_spill] sm:$0xff]  ;;  %v7856_v24 = vld [vmem:[#allocation23_spill] sm:$0xff] }
 0x7cf   :  { %3702 = vst [vmem:[#allocation1 + $0x5] ss:$9 sm:$0xff] %v3411_v62 }
 0x7d0   :  { %3703 = vst [vmem:[#allocation1 + $0x6] ss:$9 sm:$0xff] %v3412_v16  ;;  %v2598_v29 = vsel %vm1331_vm15, %v2597_v23, %v2596_v59  ;;  %4327 = vadd.xlane.f32.xlu1 %v4326_v57  ;;  %v7291_v54 = vpop.f32.mrf.mxu3  ;;  %v7304_v59 = vld [vmem:[%s7756_s4] ss:$0 sm:$0xff]  ;;  %v7857_v16 = vld [vmem:[#allocation26_spill] sm:$0xff]  ;;  %v7858_v23 = vld [vmem:[#allocation21_spill] sm:$0xff] }
 0x7d1   :  { %3704 = vst [vmem:[#allocation1 + $0x7] ss:$9 sm:$0xff] %v3413_v48  ;;  %v7294_v9 = vsel %vm1335_vm13, %v2599_v51, %v2598_v29 }
 0x7d2   :  { %7854 = vst [vmem:[#allocation10_spill] sm:$0xff] %v7294_v9 }
 0x7d8   :  { %4333 = vadd.xlane.f32.xlu1 %v4332_v19  ;;  %v7298_v3 = vpop.f32.mrf.mxu3  ;;  %v7313_v19 = vld [vmem:[#allocation1] sm:$0xff] }
 0x7e0   :  { %v4214_v26 = vpop.f32.mrf.mxu3 }
 0x7e1   :  { %v4215_v38 = vadd.f32 %v7304_v59, %v4214_v26 }
 0x7e3   :  { %v4248_v58 = vmax.f32 %v4215_v38, 0.0  ;;  %v7859_v38 = vld [vmem:[#allocation29_spill] sm:$0xff] }
 0x7e5   :  { %2532 = vperm.xlu2 %5236, %v7855_v45   ;;  %v4280_v62 = vmul.f32 %v7012_v43, %v4248_v58 }
 0x7e7   :  { %v4374_v47 = vsel %vm460_vm1, %v4280_v62, 0.0 }
 0x7ed   :  { %2541 = vperm.xlu2 %5236, %v7856_v24   ;;  %v7860_v24 = vld [vmem:[#allocation35_spill] sm:$0xff] }
 0x7ef   :  { %4375 = vadd.xlane.f32.xlu0 %v4374_v47 }
 0x7f1   :  { %2535 = vperm.xlu1 %5238, %v7858_v23  }
 0x7f5   :  { %2550 = vperm.xlu2 %5236, %v7857_v16  }
 0x7f7   :  { %v3111_v48 = vpop.xlane.xlu2 %3110 }
 0x7f8   :  { %v3147_v51 = vadd.f32 %v3111_v48, %v5768_v2  ;;  %v3114_v47 = vpop.xlane.xlu1 %3113 }
 0x7f9   :  { %v3148_v16 = vadd.f32 %v3114_v47, %v5768_v2 }
 0x7fa   :  { %v3414_v57 = vperm.slane %v3147_v51, 0  ;;  %v3415_v29 = vperm.slane %v3147_v51, 1  ;;  %v3416_v22 = vperm.slane %v3147_v51, 2  ;;  %v3417_v26 = vperm.slane %v3147_v51, 3 }
 0x7fb   :  { %v3418_v45 = vperm.slane %v3147_v51, 4  ;;  %v3419_v43 = vperm.slane %v3147_v51, 5  ;;  %v3420_v58 = vperm.slane %v3147_v51, 6  ;;  %v3421_v62 = vperm.slane %v3147_v51, 7 }
 0x7fc   :  { %3706 = vst [vmem:[#allocation1] ss:$9 sm:$0xff] %v3414_v57  ;;  %v3422_v23 = vperm.slane %v3148_v16, 0  ;;  %v3423_v48 = vperm.slane %v3148_v16, 1  ;;  %v7861_v57 = vld [vmem:[#allocation40_spill] sm:$0xff]  ;;  %v3427_v51 = vperm.slane %v3148_v16, 5 }
 0x7fd   :  { %3707 = vst [vmem:[#allocation1 + $0x1] ss:$9 sm:$0xff] %v3415_v29  ;;  %2559 = vperm.xlu2 %5236, %v7859_v38   ;;  %v3424_v29 = vperm.slane %v3148_v16, 2  ;;  %v3425_v38 = vperm.slane %v3148_v16, 3 }
 0x7fe   :  { %3708 = vst [vmem:[#allocation1 + $0x2] ss:$9 sm:$0xff] %v3416_v22  ;;  %v3426_v22 = vperm.slane %v3148_v16, 4 }
 0x7ff   :  { %3709 = vst [vmem:[#allocation1 + $0x3] ss:$9 sm:$0xff] %v3417_v26  ;;  %v3428_v26 = vperm.slane %v3148_v16, 6 }
 0x800   :  { %3710 = vst [vmem:[#allocation1 + $0x4] ss:$9 sm:$0xff] %v3418_v45  ;;  %v3429_v45 = vperm.slane %v3148_v16, 7 }
 0x801   :  { %3711 = vst [vmem:[#allocation1 + $0x5] ss:$9 sm:$0xff] %v3419_v43  ;;  %v3117_v43 = vpop.xlane.xlu0 %3116 }
 0x802   :  { %3712 = vst [vmem:[#allocation1 + $0x6] ss:$9 sm:$0xff] %v3420_v58  ;;  %v3149_v58 = vadd.f32 %v3117_v43, %v5768_v2 }
 0x803   :  { %3740 = vperm.xlu0 %5237, %v7860_v24   ;;  %3713 = vst [vmem:[#allocation1 + $0x7] ss:$9 sm:$0xff] %v3421_v62 }
 0x804   :  { %v3430_v62 = vperm.slane %v3149_v58, 0  ;;  %v3431_v47 = vperm.slane %v3149_v58, 1  ;;  %v3434_v16 = vperm.slane %v3149_v58, 4 }
 0x80a   :  { %v7319_v9 = vld [vmem:[#allocation1] sm:$0xff] }
 0x80b   :  { %3746 = vperm.xlu0 %5237, %v7861_v57   ;;  %3715 = vst [vmem:[#allocation1] ss:$9 sm:$0xff] %v3422_v23  ;;  %v3432_v23 = vperm.slane %v3149_v58, 2  ;;  %v3435_v57 = vperm.slane %v3149_v58, 5 }
 0x80c   :  { %3716 = vst [vmem:[#allocation1 + $0x1] ss:$9 sm:$0xff] %v3423_v48  ;;  %v3433_v48 = vperm.slane %v3149_v58, 3 }
 0x80d   :  { %3717 = vst [vmem:[#allocation1 + $0x2] ss:$9 sm:$0xff] %v3424_v29  ;;  %v3436_v29 = vperm.slane %v3149_v58, 6 }
 0x80e   :  { %3718 = vst [vmem:[#allocation1 + $0x3] ss:$9 sm:$0xff] %v3425_v38  ;;  %v4377_v38 = vadd.f32 %v7021_v20, %v5768_v2 }
 0x80f   :  { %3719 = vst [vmem:[#allocation1 + $0x4] ss:$9 sm:$0xff] %v3426_v22 }
 0x810   :  { %3720 = vst [vmem:[#allocation1 + $0x5] ss:$9 sm:$0xff] %v3427_v51  ;;  %v4441_v22 = vperm.slane %v4377_v38, 0  ;;  %v4442_v51 = vperm.slane %v4377_v38, 1  ;;  %v4446_v20 = vperm.slane %v4377_v38, 5 }
 0x811   :  { %3721 = vst [vmem:[#allocation1 + $0x6] ss:$9 sm:$0xff] %v3428_v26 }
 0x812   :  { %3722 = vst [vmem:[#allocation1 + $0x7] ss:$9 sm:$0xff] %v3429_v45  ;;  %v4443_v45 = vperm.slane %v4377_v38, 2 }
 0x813   :  { %3755 = vperm.xlu0 %5237, %v6824_v15   ;;  %v3437_v15 = vperm.slane %v3149_v58, 7  ;;  %v4203_v58 = vadd.f32 %v7304_v59, %v7262_v39  ;;  %v4185_v39 = vadd.f32 %v7304_v59, %v7216_v17 }
 0x819   :  { %v7323_v24 = vld [vmem:[#allocation1] sm:$0xff] }
 0x81a   :  { %3724 = vst [vmem:[#allocation1] ss:$9 sm:$0xff] %v3430_v62  ;;  %v4444_v62 = vperm.slane %v4377_v38, 3 }
 0x81b   :  { %3764 = vperm.xlu0 %5237, %v6871_v28   ;;  %3725 = vst [vmem:[#allocation1 + $0x1] ss:$9 sm:$0xff] %v3431_v47  ;;  %v4183_v28 = vadd.f32 %v7304_v59, %v7207_v60  ;;  %v7336_v47 = vpop.xlane.xlu2 %4318  ;;  %v4447_v60 = vperm.slane %v4377_v38, 6 }
 0x81c   :  { %3726 = vst [vmem:[#allocation1 + $0x2] ss:$9 sm:$0xff] %v3432_v23  ;;  %v7341_v23 = vld [vmem:[%s7757_s5] ss:$0 sm:$0xff] }
 0x81d   :  { %3727 = vst [vmem:[#allocation1 + $0x3] ss:$9 sm:$0xff] %v3433_v48  ;;  %v4235_v43 = vmax.f32 %v4183_v28, 0.0 }
 0x81e   :  { %3728 = vst [vmem:[#allocation1 + $0x4] ss:$9 sm:$0xff] %v3434_v16  ;;  %v4448_v16 = vperm.slane %v4377_v38, 7 }
 0x81f   :  { %3729 = vst [vmem:[#allocation1 + $0x5] ss:$9 sm:$0xff] %v3435_v57  ;;  %v4267_v48 = vmul.f32 %v7341_v23, %v4235_v43  ;;  %v7346_v57 = vpop.xlane.xlu1 %4321 }
 0x820   :  { %3730 = vst [vmem:[#allocation1 + $0x6] ss:$9 sm:$0xff] %v3436_v29  ;;  %v4236_v29 = vmax.f32 %v4185_v39, 0.0 }
 0x821   :  { %3731 = vst [vmem:[#allocation1 + $0x7] ss:$9 sm:$0xff] %v3437_v15  ;;  %v4335_v28 = vsel %vm460_vm1, %v4267_v48, 0.0 }
 0x822   :  { %4336 = vadd.xlane.f32.xlu1 %v4335_v28  ;;  %v4268_v17 = vmul.f32 %v7341_v23, %v4236_v29 }
 0x823   :  { %3773 = vperm.xlu0 %5237, %v6931_v34   ;;  %v4445_v34 = vperm.slane %v4377_v38, 4  ;;  %v4188_v38 = vadd.f32 %v7304_v59, %v7226_v41 }
 0x825   :  { %v4237_v39 = vmax.f32 %v4188_v38, 0.0 }
 0x828   :  { %v7331_v26 = vld [vmem:[#allocation1] sm:$0xff] }
 0x829   :  { %4697 = vst [vmem:[#allocation1] ss:$9 sm:$0xff] %v4441_v22  ;;  %v4378_v22 = vadd.f32 %v6977_v1, %v5768_v2 }
 0x82a   :  { %4699 = vst [vmem:[#allocation1 + $0x1] ss:$9 sm:$0xff] %v4442_v51  ;;  %v2524_v51 = vpop.permute.xlu2 %2523 }
 0x82b   :  { %3782 = vperm.xlu0 %5237, %v7006_v10   ;;  %4701 = vst [vmem:[#allocation1 + $0x2] ss:$9 sm:$0xff] %v4443_v45  ;;  %v4243_v10 = vmax.f32 %v4203_v58, 0.0  ;;  %v4449_v43 = vperm.slane %v4378_v22, 0  ;;  %v2530_v58 = vpop.permute.xlu0 %2529  ;;  %v2601_v1 = vperm.slane %v2524_v51, %v6663_v55  ;;  %v4452_v48 = vperm.slane %v4378_v22, 3 }
 0x82c   :  { %4703 = vst [vmem:[#allocation1 + $0x3] ss:$9 sm:$0xff] %v4444_v62  ;;  %v4450_v62 = vperm.slane %v4378_v22, 1  ;;  %v2604_v41 = vperm.slane %v2530_v58, %v6671_v61  ;;  %v4455_v51 = vperm.slane %v4378_v22, 6  ;;  %v4456_v38 = vperm.slane %v4378_v22, 7 }
 0x82d   :  { %4705 = vst [vmem:[#allocation1 + $0x4] ss:$9 sm:$0xff] %v4445_v34  ;;  %v4275_v15 = vmul.f32 %v7341_v23, %v4243_v10  ;;  %v4338_v10 = vsel %vm460_vm1, %v4268_v17, 0.0 }
 0x82e   :  { %4707 = vst [vmem:[#allocation1 + $0x5] ss:$9 sm:$0xff] %v4446_v20  ;;  %v2527_v20 = vpop.permute.xlu1 %2526  ;;  %4339 = vadd.xlane.f32.xlu1 %v4338_v10 }
 0x82f   :  { %4709 = vst [vmem:[#allocation1 + $0x6] ss:$9 sm:$0xff] %v4447_v60  ;;  %v4359_v45 = vsel %vm460_vm1, %v4275_v15, 0.0  ;;  %v2602_v60 = vperm.slane %v2527_v20, %v6666_v36  ;;  %v4454_v15 = vperm.slane %v4378_v22, 5 }
 0x830   :  { %4711 = vst [vmem:[#allocation1 + $0x7] ss:$9 sm:$0xff] %v4448_v16  ;;  %4360 = vadd.xlane.f32.xlu2 %v4359_v45  ;;  %v4453_v16 = vperm.slane %v4378_v22, 4  ;;  %v4269_v45 = vmul.f32 %v7341_v23, %v4237_v39 }
 0x831   :  { %v2603_v29 = vsel %vm1279_vm2, %v2602_v60, %v2601_v1 }
 0x832   :  { %v7366_v28 = vsel %vm1283_vm3, %v2604_v41, %v2603_v29  ;;  %v4341_v17 = vsel %vm460_vm1, %v4269_v45, 0.0  ;;  %v7865_v45 = vld [vmem:[#allocation36_spill] sm:$0xff] }
 0x833   :  { %3791 = vperm.xlu0 %5237, %v7121_v6   ;;  %v4451_v6 = vperm.slane %v4378_v22, 2 }
 0x836   :  { %4342 = vadd.xlane.f32.xlu1 %v4341_v17 }
 0x837   :  { %v7357_v34 = vld [vmem:[#allocation1] sm:$0xff] }
 0x838   :  { %4713 = vst [vmem:[#allocation1] ss:$9 sm:$0xff] %v4449_v43 }
 0x839   :  { %4714 = vst [vmem:[#allocation1 + $0x1] ss:$9 sm:$0xff] %v4450_v62 }
 0x83a   :  { %4715 = vst [vmem:[#allocation1 + $0x2] ss:$9 sm:$0xff] %v4451_v6 }
 0x83b   :  { %3800 = vperm.xlu0 %5237, %v7193_v13   ;;  %4716 = vst [vmem:[#allocation1 + $0x3] ss:$9 sm:$0xff] %v4452_v48  ;;  %v4379_v13 = vadd.f32 %v7055_v12, %v5768_v2  ;;  %v4380_v48 = vadd.f32 %v7127_v42, %v5768_v2 }
 0x83c   :  { %4717 = vst [vmem:[#allocation1 + $0x4] ss:$9 sm:$0xff] %v4453_v16  ;;  %v7863_v16 = vld [vmem:[#allocation33_spill] sm:$0xff] }
 0x83d   :  { %4718 = vst [vmem:[#allocation1 + $0x5] ss:$9 sm:$0xff] %v4454_v15  ;;  %v4457_v43 = vperm.slane %v4379_v13, 0  ;;  %v4458_v58 = vperm.slane %v4379_v13, 1  ;;  %v4459_v20 = vperm.slane %v4379_v13, 2  ;;  %v4460_v22 = vperm.slane %v4379_v13, 3 }
 0x83e   :  { %4719 = vst [vmem:[#allocation1 + $0x6] ss:$9 sm:$0xff] %v4455_v51  ;;  %v4461_v6 = vperm.slane %v4379_v13, 4  ;;  %v4462_v1 = vperm.slane %v4379_v13, 5  ;;  %v4463_v12 = vperm.slane %v4379_v13, 6  ;;  %v4464_v60 = vperm.slane %v4379_v13, 7 }
 0x83f   :  { %4720 = vst [vmem:[#allocation1 + $0x7] ss:$9 sm:$0xff] %v4456_v38  ;;  %v4465_v39 = vperm.slane %v4380_v48, 0  ;;  %v4466_v41 = vperm.slane %v4380_v48, 1  ;;  %v4468_v29 = vperm.slane %v4380_v48, 3  ;;  %v4469_v15 = vperm.slane %v4380_v48, 4 }
 0x840   :  { %v4470_v51 = vperm.slane %v4380_v48, 5  ;;  %v4471_v38 = vperm.slane %v4380_v48, 6  ;;  %v4472_v42 = vperm.slane %v4380_v48, 7  ;;  %v4381_v13 = vadd.f32 %v7141_v5, %v5768_v2 }
 0x841   :  { %v4382_v5 = vadd.f32 %v7185_v63, %v5768_v2  ;;  %v4383_v63 = vadd.f32 %v7170_v14, %v5768_v2  ;;  %v4384_v14 = vadd.f32 %v7195_v50, %v5768_v2 }
 0x842   :  { %v4473_v17 = vperm.slane %v4381_v13, 0 }
 0x843   :  { %3809 = vperm.xlu0 %5237, %v7248_v53   ;;  %v7862_v53 = vld [vmem:[#allocation32_spill] sm:$0xff] }
 0x846   :  { %v7373_v62 = vld [vmem:[#allocation1] sm:$0xff] }
 0x847   :  { %4722 = vst [vmem:[#allocation1] ss:$9 sm:$0xff] %v4457_v43  ;;  %v4474_v43 = vperm.slane %v4381_v13, 1 }
 0x848   :  { %4723 = vst [vmem:[#allocation1 + $0x1] ss:$9 sm:$0xff] %v4458_v58  ;;  %2568 = vperm.xlu2 %5236, %v7862_v53   ;;  %v4481_v53 = vperm.slane %v4382_v5, 0 }
 0x849   :  { %4724 = vst [vmem:[#allocation1 + $0x2] ss:$9 sm:$0xff] %v4459_v20  ;;  %v4475_v20 = vperm.slane %v4381_v13, 2 }
 0x84a   :  { %4725 = vst [vmem:[#allocation1 + $0x3] ss:$9 sm:$0xff] %v4460_v22  ;;  %v4477_v22 = vperm.slane %v4381_v13, 4 }
 0x84b   :  { %3815 = vperm.xlu0 %5237, %v7280_v33   ;;  %4726 = vst [vmem:[#allocation1 + $0x4] ss:$9 sm:$0xff] %v4461_v6  ;;  %v4467_v33 = vperm.slane %v4380_v48, 2  ;;  %v4478_v6 = vperm.slane %v4381_v13, 5  ;;  %v4482_v48 = vperm.slane %v4382_v5, 1 }
 0x84c   :  { %4727 = vst [vmem:[#allocation1 + $0x5] ss:$9 sm:$0xff] %v4462_v1  ;;  %v4479_v1 = vperm.slane %v4381_v13, 6 }
 0x84d   :  { %4728 = vst [vmem:[#allocation1 + $0x6] ss:$9 sm:$0xff] %v4463_v12  ;;  %v4480_v12 = vperm.slane %v4381_v13, 7 }
 0x84e   :  { %4729 = vst [vmem:[#allocation1 + $0x7] ss:$9 sm:$0xff] %v4464_v60  ;;  %v7866_v60 = vld [vmem:[#allocation46_spill] sm:$0xff] }
 0x850   :  { %3734 = vperm.xlu2 %5236, %v7863_v16   ;;  %v7867_v16 = vld [vmem:[#allocation49_spill] sm:$0xff] }
 0x853   :  { %3821 = vperm.xlu0 %5237, %v7319_v9   ;;  %v7864_v9 = vld [vmem:[#allocation24_spill] sm:$0xff] }
 0x854   :  { %2544 = vperm.xlu1 %5238, %v7864_v9   ;;  %v4490_v9 = vperm.slane %v4383_v63, 1 }
 0x855   :  { %v7380_v10 = vld [vmem:[#allocation1] sm:$0xff] }
 0x856   :  { %4731 = vst [vmem:[#allocation1] ss:$9 sm:$0xff] %v4465_v39 }
 0x857   :  { %4732 = vst [vmem:[#allocation1 + $0x1] ss:$9 sm:$0xff] %v4466_v41  ;;  %v4484_v41 = vperm.slane %v4382_v5, 3 }
 0x858   :  { %4733 = vst [vmem:[#allocation1 + $0x2] ss:$9 sm:$0xff] %v4467_v33  ;;  %3743 = vperm.xlu2 %5236, %v7865_v45   ;;  %v4485_v33 = vperm.slane %v4382_v5, 4 }
 0x859   :  { %4734 = vst [vmem:[#allocation1 + $0x3] ss:$9 sm:$0xff] %v4468_v29  ;;  %v4486_v29 = vperm.slane %v4382_v5, 5 }
 0x85a   :  { %4735 = vst [vmem:[#allocation1 + $0x4] ss:$9 sm:$0xff] %v4469_v15  ;;  %v4487_v15 = vperm.slane %v4382_v5, 6 }
 0x85b   :  { %3827 = vperm.xlu0 %5237, %v7331_v26   ;;  %4736 = vst [vmem:[#allocation1 + $0x5] ss:$9 sm:$0xff] %v4470_v51  ;;  %v4476_v26 = vperm.slane %v4381_v13, 3  ;;  %v4488_v51 = vperm.slane %v4382_v5, 7  ;;  %v4491_v13 = vperm.slane %v4383_v63, 2 }
 0x85c   :  { %4737 = vst [vmem:[#allocation1 + $0x6] ss:$9 sm:$0xff] %v4471_v38  ;;  %v7868_v38 = vld [vmem:[#allocation51_spill] sm:$0xff] }
 0x85d   :  { %4738 = vst [vmem:[#allocation1 + $0x7] ss:$9 sm:$0xff] %v4472_v42  ;;  %v4489_v42 = vperm.slane %v4383_v63, 0 }
 0x860   :  { %3752 = vperm.xlu2 %5236, %v6812_v46   ;;  %v4483_v46 = vperm.slane %v4382_v5, 2  ;;  %v4499_v5 = vperm.slane %v4384_v14, 2 }
 0x864   :  { %v7388_v58 = vld [vmem:[#allocation1] sm:$0xff] }
 0x865   :  { %4740 = vst [vmem:[#allocation1] ss:$9 sm:$0xff] %v4473_v17  ;;  %v4492_v17 = vperm.slane %v4383_v63, 3 }
 0x866   :  { %4741 = vst [vmem:[#allocation1 + $0x1] ss:$9 sm:$0xff] %v4474_v43  ;;  %v4493_v43 = vperm.slane %v4383_v63, 4 }
 0x867   :  { %4742 = vst [vmem:[#allocation1 + $0x2] ss:$9 sm:$0xff] %v4475_v20  ;;  %v4494_v20 = vperm.slane %v4383_v63, 5 }
 0x868   :  { %4743 = vst [vmem:[#allocation1 + $0x3] ss:$9 sm:$0xff] %v4476_v26  ;;  %3761 = vperm.xlu2 %5236, %v7866_v60   ;;  %v4495_v26 = vperm.slane %v4383_v63, 6  ;;  %v4500_v60 = vperm.slane %v4384_v14, 3 }
 0x869   :  { %4744 = vst [vmem:[#allocation1 + $0x4] ss:$9 sm:$0xff] %v4477_v22  ;;  %v4496_v22 = vperm.slane %v4383_v63, 7  ;;  %v7414_v63 = vpop.xlane.xlu2 %4324 }
 0x86a   :  { %4745 = vst [vmem:[#allocation1 + $0x5] ss:$9 sm:$0xff] %v4478_v6  ;;  %v4497_v6 = vperm.slane %v4384_v14, 0 }
 0x86b   :  { %4746 = vst [vmem:[#allocation1 + $0x6] ss:$9 sm:$0xff] %v4479_v1  ;;  %v4498_v1 = vperm.slane %v4384_v14, 1 }
 0x86c   :  { %4747 = vst [vmem:[#allocation1 + $0x7] ss:$9 sm:$0xff] %v4480_v12 }
 0x870   :  { %3770 = vperm.xlu2 %5236, %v7867_v16  }
 0x873   :  { %v7394_v39 = vld [vmem:[#allocation1] sm:$0xff] }
 0x874   :  { %4749 = vst [vmem:[#allocation1] ss:$9 sm:$0xff] %v4481_v53  ;;  %v4502_v53 = vperm.slane %v4384_v14, 5 }
 0x875   :  { %4750 = vst [vmem:[#allocation1 + $0x1] ss:$9 sm:$0xff] %v4482_v48  ;;  %v4503_v48 = vperm.slane %v4384_v14, 6 }
 0x876   :  { %4751 = vst [vmem:[#allocation1 + $0x2] ss:$9 sm:$0xff] %v4483_v46  ;;  %v4504_v46 = vperm.slane %v4384_v14, 7 }
 0x877   :  { %4752 = vst [vmem:[#allocation1 + $0x3] ss:$9 sm:$0xff] %v4484_v41 }
 0x878   :  { %4753 = vst [vmem:[#allocation1 + $0x4] ss:$9 sm:$0xff] %v4485_v33  ;;  %3779 = vperm.xlu2 %5236, %v7868_v38  }
 0x879   :  { %4754 = vst [vmem:[#allocation1 + $0x5] ss:$9 sm:$0xff] %v4486_v29  ;;  %v7412_v29 = vpop.xlane.xlu1 %4327 }
 0x87a   :  { %4755 = vst [vmem:[#allocation1 + $0x6] ss:$9 sm:$0xff] %v4487_v15 }
 0x87b   :  { %4756 = vst [vmem:[#allocation1 + $0x7] ss:$9 sm:$0xff] %v4488_v51 }
 0x880   :  { %3788 = vperm.xlu2 %5236, %v7075_v27   ;;  %v4501_v27 = vperm.slane %v4384_v14, 4 }
 0x882   :  { %v7400_v45 = vld [vmem:[#allocation1] sm:$0xff] }
 0x883   :  { %4758 = vst [vmem:[#allocation1] ss:$9 sm:$0xff] %v4489_v42  ;;  %v4386_v42 = vadd.f32 %v7253_v7, %v5768_v2 }
 0x884   :  { %4759 = vst [vmem:[#allocation1 + $0x1] ss:$9 sm:$0xff] %v4490_v9  ;;  %v7421_v9 = vpop.xlane.xlu0 %4330 }
 0x885   :  { %4760 = vst [vmem:[#allocation1 + $0x2] ss:$9 sm:$0xff] %v4491_v13  ;;  %v7423_v13 = vpop.xlane.xlu1 %4333  ;;  %v4517_v7 = vperm.slane %v4386_v42, 4 }
 0x886   :  { %4761 = vst [vmem:[#allocation1 + $0x3] ss:$9 sm:$0xff] %v4492_v17 }
 0x887   :  { %4762 = vst [vmem:[#allocation1 + $0x4] ss:$9 sm:$0xff] %v4493_v43  ;;  %v4513_v43 = vperm.slane %v4386_v42, 0 }
 0x888   :  { %4763 = vst [vmem:[#allocation1 + $0x5] ss:$9 sm:$0xff] %v4494_v20  ;;  %3797 = vperm.xlu2 %5236, %v7163_v30   ;;  %v4385_v30 = vadd.f32 %v7228_v32, %v5768_v2  ;;  %v2533_v20 = vpop.permute.xlu2 %2532 }
 0x889   :  { %4764 = vst [vmem:[#allocation1 + $0x6] ss:$9 sm:$0xff] %v4495_v26  ;;  %v4514_v26 = vperm.slane %v4386_v42, 1 }
 0x88a   :  { %4765 = vst [vmem:[#allocation1 + $0x7] ss:$9 sm:$0xff] %v4496_v22  ;;  %v4505_v50 = vperm.slane %v4385_v30, 0  ;;  %v4506_v41 = vperm.slane %v4385_v30, 1  ;;  %v4507_v16 = vperm.slane %v4385_v30, 2  ;;  %v4508_v15 = vperm.slane %v4385_v30, 3 }
 0x88b   :  { %v4510_v51 = vperm.slane %v4385_v30, 5  ;;  %v4511_v38 = vperm.slane %v4385_v30, 6  ;;  %v4512_v32 = vperm.slane %v4385_v30, 7 }
 0x890   :  { %3806 = vperm.xlu2 %5236, %v7219_v8   ;;  %v4509_v8 = vperm.slane %v4385_v30, 4 }
 0x891   :  { %v4766_v12 = vld [vmem:[#allocation1] sm:$0xff] }
 0x892   :  { %5011 = vperm.xlu0 %5237, %v4766_v12   ;;  %4767 = vst [vmem:[#allocation1] ss:$9 sm:$0xff] %v4497_v6  ;;  %v2606_v6 = vperm.slane %v2533_v20, %v6687_v11  ;;  %v4518_v12 = vperm.slane %v4386_v42, 5 }
 0x893   :  { %4768 = vst [vmem:[#allocation1 + $0x1] ss:$9 sm:$0xff] %v4498_v1  ;;  %v2539_v1 = vpop.permute.xlu0 %2538 }
 0x894   :  { %4769 = vst [vmem:[#allocation1 + $0x2] ss:$9 sm:$0xff] %v4499_v5  ;;  %v2536_v5 = vpop.permute.xlu1 %2535 }
 0x895   :  { %4770 = vst [vmem:[#allocation1 + $0x3] ss:$9 sm:$0xff] %v4500_v60  ;;  %v4519_v60 = vperm.slane %v4386_v42, 6 }
 0x896   :  { %4771 = vst [vmem:[#allocation1 + $0x4] ss:$9 sm:$0xff] %v4501_v27 }
 0x897   :  { %4772 = vst [vmem:[#allocation1 + $0x5] ss:$9 sm:$0xff] %v4502_v53  ;;  %v4520_v53 = vperm.slane %v4386_v42, 7 }
 0x898   :  { %4773 = vst [vmem:[#allocation1 + $0x6] ss:$9 sm:$0xff] %v4503_v48  ;;  %3818 = vperm.xlu2 %5236, %v7313_v19   ;;  %v4193_v19 = vadd.f32 %v7304_v59, %v7240_v0  ;;  %v4516_v0 = vperm.slane %v4386_v42, 3  ;;  %v2610_v48 = vperm.slane %v2539_v1, %v6690_v31 }
 0x899   :  { %4774 = vst [vmem:[#allocation1 + $0x7] ss:$9 sm:$0xff] %v4504_v46  ;;  %v2607_v46 = vsel %vm1287_vm4, %v2606_v6, %v7366_v28 }
 0x89a   :  { %v4239_v17 = vmax.f32 %v4193_v19, 0.0 }
 0x89c   :  { %v4271_v14 = vmul.f32 %v7341_v23, %v4239_v17 }
 0x89e   :  { %v4347_v30 = vsel %vm460_vm1, %v4271_v14, 0.0 }
 0x89f   :  { %4348 = vadd.xlane.f32.xlu1 %v4347_v30 }
 0x8a0   :  { %v7410_v33 = vld [vmem:[#allocation1] sm:$0xff]  ;;  %3824 = vperm.xlu2 %5236, %v7323_v24   ;;  %v4515_v24 = vperm.slane %v4386_v42, 2 }
 0x8a1   :  { %4776 = vst [vmem:[#allocation1] ss:$9 sm:$0xff] %v4505_v50 }
 0x8a2   :  { %4777 = vst [vmem:[#allocation1 + $0x1] ss:$9 sm:$0xff] %v4506_v41  ;;  %v4195_v41 = vadd.f32 %v7304_v59, %v7245_v52 }
 0x8a3   :  { %4778 = vst [vmem:[#allocation1 + $0x2] ss:$9 sm:$0xff] %v4507_v16 }
 0x8a4   :  { %4779 = vst [vmem:[#allocation1 + $0x3] ss:$9 sm:$0xff] %v4508_v15  ;;  %v4387_v15 = vadd.f32 %v7258_v18, %v5768_v2  ;;  %v4240_v28 = vmax.f32 %v4195_v41, 0.0 }
 0x8a5   :  { %4780 = vst [vmem:[#allocation1 + $0x4] ss:$9 sm:$0xff] %v4509_v8 }
 0x8a6   :  { %4781 = vst [vmem:[#allocation1 + $0x5] ss:$9 sm:$0xff] %v4510_v51  ;;  %v4521_v8 = vperm.slane %v4387_v15, 0  ;;  %v4522_v51 = vperm.slane %v4387_v15, 1  ;;  %v4523_v19 = vperm.slane %v4387_v15, 2  ;;  %v4525_v52 = vperm.slane %v4387_v15, 4 }
 0x8a7   :  { %4782 = vst [vmem:[#allocation1 + $0x6] ss:$9 sm:$0xff] %v4511_v38  ;;  %v4526_v42 = vperm.slane %v4387_v15, 5  ;;  %v4527_v17 = vperm.slane %v4387_v15, 6 }
 0x8a8   :  { %4783 = vst [vmem:[#allocation1 + $0x7] ss:$9 sm:$0xff] %v4512_v32  ;;  %4996 = vperm.xlu2 %5236, %v7373_v62   ;;  %v7869_v62 = vld [vmem:[#allocation37_spill] sm:$0xff]  ;;  %v4272_v32 = vmul.f32 %v7341_v23, %v4240_v28 }
 0x8a9   :  { %v2608_v27 = vperm.slane %v2536_v5, %v7869_v62 }
 0x8aa   :  { %v4350_v18 = vsel %vm460_vm1, %v4272_v32, 0.0 }
 0x8ab   :  { %v2609_v50 = vsel %vm1291_vm5, %v2608_v27, %v2607_v46  ;;  %4351 = vadd.xlane.f32.xlu1 %v4350_v18 }
 0x8ac   :  { %v7440_v16 = vsel %vm1295_vm6, %v2610_v48, %v2609_v50 }
 0x8af   :  { %v7426_v22 = vld [vmem:[#allocation1] sm:$0xff] }
 0x8b0   :  { %4785 = vst [vmem:[#allocation1] ss:$9 sm:$0xff] %v4513_v43  ;;  %5002 = vperm.xlu2 %5236, %v7388_v58   ;;  %v4524_v58 = vperm.slane %v4387_v15, 3  ;;  %v4528_v43 = vperm.slane %v4387_v15, 7 }
 0x8b1   :  { %4786 = vst [vmem:[#allocation1 + $0x1] ss:$9 sm:$0xff] %v4514_v26 }
 0x8b2   :  { %4787 = vst [vmem:[#allocation1 + $0x2] ss:$9 sm:$0xff] %v4515_v24 }
 0x8b3   :  { %4788 = vst [vmem:[#allocation1 + $0x3] ss:$9 sm:$0xff] %v4516_v0 }
 0x8b4   :  { %4789 = vst [vmem:[#allocation1 + $0x4] ss:$9 sm:$0xff] %v4517_v7 }
 0x8b5   :  { %4790 = vst [vmem:[#allocation1 + $0x5] ss:$9 sm:$0xff] %v4518_v12 }
 0x8b6   :  { %4791 = vst [vmem:[#allocation1 + $0x6] ss:$9 sm:$0xff] %v4519_v60 }
 0x8b7   :  { %4792 = vst [vmem:[#allocation1 + $0x7] ss:$9 sm:$0xff] %v4520_v53  ;;  %v7870_v53 = vld [vmem:[#allocation27_spill] sm:$0xff] }
 0x8b8   :  { %5005 = vperm.xlu2 %5236, %v7394_v39   ;;  %v4388_v39 = vadd.f32 %v7277_v21, %v5768_v2  ;;  %v4389_v21 = vadd.f32 %v7336_v47, %v5768_v2  ;;  %v4390_v47 = vadd.f32 %v7346_v57, %v5768_v2  ;;  %v4391_v57 = vadd.f32 %v7414_v63, %v5768_v2 }
 0x8b9   :  { %v4392_v63 = vadd.f32 %v7412_v29, %v5768_v2  ;;  %v4393_v29 = vadd.f32 %v7421_v9, %v5768_v2  ;;  %v4394_v9 = vadd.f32 %v7423_v13, %v5768_v2  ;;  %v4198_v13 = vadd.f32 %v7304_v59, %v7251_v49  ;;  %v2542_v49 = vpop.permute.xlu2 %2541 }
 0x8ba   :  { %v4529_v20 = vperm.slane %v4388_v39, 0  ;;  %v4530_v26 = vperm.slane %v4388_v39, 1  ;;  %v4531_v14 = vperm.slane %v4388_v39, 2  ;;  %v4532_v0 = vperm.slane %v4388_v39, 3 }
 0x8bb   :  { %v4533_v6 = vperm.slane %v4388_v39, 4  ;;  %v4534_v7 = vperm.slane %v4388_v39, 5  ;;  %v4535_v1 = vperm.slane %v4388_v39, 6  ;;  %v4536_v12 = vperm.slane %v4388_v39, 7 }
 0x8bc   :  { %v4538_v5 = vperm.slane %v4389_v21, 1  ;;  %v4539_v27 = vperm.slane %v4389_v21, 2  ;;  %v4540_v48 = vperm.slane %v4389_v21, 3  ;;  %v4541_v46 = vperm.slane %v4389_v21, 4 }
 0x8bd   :  { %v4542_v30 = vperm.slane %v4389_v21, 5  ;;  %v4543_v50 = vperm.slane %v4389_v21, 6  ;;  %v4544_v41 = vperm.slane %v4389_v21, 7  ;;  %v4545_v15 = vperm.slane %v4390_v47, 0 }
 0x8be   :  { %v4793_v38 = vld [vmem:[#allocation1] sm:$0xff]  ;;  %v4546_v28 = vperm.slane %v4390_v47, 1  ;;  %v4549_v32 = vperm.slane %v4390_v47, 4  ;;  %v4556_v39 = vperm.slane %v4391_v57, 3 }
 0x8bf   :  { %5020 = vperm.xlu0 %5237, %v4793_v38   ;;  %4794 = vst [vmem:[#allocation1] ss:$9 sm:$0xff] %v4521_v8  ;;  %v4548_v38 = vperm.slane %v4390_v47, 3 }
 0x8c0   :  { %4795 = vst [vmem:[#allocation1 + $0x1] ss:$9 sm:$0xff] %v4522_v51  ;;  %5014 = vperm.xlu2 %5236, %v7410_v33   ;;  %v4537_v33 = vperm.slane %v4389_v21, 0  ;;  %v4547_v51 = vperm.slane %v4390_v47, 2  ;;  %v4565_v21 = vperm.slane %v4392_v63, 4 }
 0x8c1   :  { %4796 = vst [vmem:[#allocation1 + $0x2] ss:$9 sm:$0xff] %v4523_v19  ;;  %v4550_v19 = vperm.slane %v4390_v47, 5 }
 0x8c2   :  { %4797 = vst [vmem:[#allocation1 + $0x3] ss:$9 sm:$0xff] %v4524_v58  ;;  %v4551_v58 = vperm.slane %v4390_v47, 6 }
 0x8c3   :  { %4798 = vst [vmem:[#allocation1 + $0x4] ss:$9 sm:$0xff] %v4525_v52  ;;  %v4552_v52 = vperm.slane %v4390_v47, 7  ;;  %v4574_v47 = vperm.slane %v4393_v29, 5 }
 0x8c4   :  { %4799 = vst [vmem:[#allocation1 + $0x5] ss:$9 sm:$0xff] %v4526_v42  ;;  %2553 = vperm.xlu1 %5238, %v7870_v53   ;;  %v4553_v42 = vperm.slane %v4391_v57, 0  ;;  %v4569_v53 = vperm.slane %v4393_v29, 0 }
 0x8c5   :  { %4800 = vst [vmem:[#allocation1 + $0x6] ss:$9 sm:$0xff] %v4527_v17  ;;  %v4554_v17 = vperm.slane %v4391_v57, 1 }
 0x8c6   :  { %4801 = vst [vmem:[#allocation1 + $0x7] ss:$9 sm:$0xff] %v4528_v43  ;;  %v4555_v43 = vperm.slane %v4391_v57, 2 }
 0x8cd   :  { %v4802_v24 = vld [vmem:[#allocation1] sm:$0xff] }
 0x8ce   :  { %4803 = vst [vmem:[#allocation1] ss:$9 sm:$0xff] %v4529_v20  ;;  %5023 = vperm.xlu2 %5236, %v4802_v24   ;;  %v4557_v20 = vperm.slane %v4391_v57, 4  ;;  %v4559_v24 = vperm.slane %v4391_v57, 6 }
 0x8cf   :  { %4804 = vst [vmem:[#allocation1 + $0x1] ss:$9 sm:$0xff] %v4530_v26  ;;  %v4558_v26 = vperm.slane %v4391_v57, 5 }
 0x8d0   :  { %4805 = vst [vmem:[#allocation1 + $0x2] ss:$9 sm:$0xff] %v4531_v14  ;;  %v4560_v14 = vperm.slane %v4391_v57, 7  ;;  %v4582_v57 = vperm.slane %v4394_v9, 5 }
 0x8d1   :  { %4806 = vst [vmem:[#allocation1 + $0x3] ss:$9 sm:$0xff] %v4532_v0  ;;  %v4561_v0 = vperm.slane %v4392_v63, 0 }
 0x8d2   :  { %4807 = vst [vmem:[#allocation1 + $0x4] ss:$9 sm:$0xff] %v4533_v6  ;;  %v4562_v6 = vperm.slane %v4392_v63, 1 }
 0x8d3   :  { %4808 = vst [vmem:[#allocation1 + $0x5] ss:$9 sm:$0xff] %v4534_v7 }
 0x8d4   :  { %4809 = vst [vmem:[#allocation1 + $0x6] ss:$9 sm:$0xff] %v4535_v1  ;;  %v4563_v1 = vperm.slane %v4392_v63, 2 }
 0x8d5   :  { %4810 = vst [vmem:[#allocation1 + $0x7] ss:$9 sm:$0xff] %v4536_v12  ;;  %v4564_v12 = vperm.slane %v4392_v63, 3 }
 0x8dc   :  { %v7452_v60 = vld [vmem:[#allocation1] sm:$0xff] }
 0x8dd   :  { %4812 = vst [vmem:[#allocation1] ss:$9 sm:$0xff] %v4537_v33  ;;  %v4566_v33 = vperm.slane %v4392_v63, 5 }
 0x8de   :  { %4813 = vst [vmem:[#allocation1 + $0x1] ss:$9 sm:$0xff] %v4538_v5  ;;  %v4567_v5 = vperm.slane %v4392_v63, 6 }
 0x8df   :  { %4814 = vst [vmem:[#allocation1 + $0x2] ss:$9 sm:$0xff] %v4539_v27  ;;  %v4568_v27 = vperm.slane %v4392_v63, 7 }
 0x8e0   :  { %4815 = vst [vmem:[#allocation1 + $0x3] ss:$9 sm:$0xff] %v4540_v48  ;;  %v4570_v48 = vperm.slane %v4393_v29, 1 }
 0x8e1   :  { %4816 = vst [vmem:[#allocation1 + $0x4] ss:$9 sm:$0xff] %v4541_v46 }
 0x8e2   :  { %4817 = vst [vmem:[#allocation1 + $0x5] ss:$9 sm:$0xff] %v4542_v30  ;;  %v4571_v30 = vperm.slane %v4393_v29, 2 }
 0x8e3   :  { %4818 = vst [vmem:[#allocation1 + $0x6] ss:$9 sm:$0xff] %v4543_v50  ;;  %v4572_v50 = vperm.slane %v4393_v29, 3 }
 0x8e4   :  { %4819 = vst [vmem:[#allocation1 + $0x7] ss:$9 sm:$0xff] %v4544_v41  ;;  %v4573_v41 = vperm.slane %v4393_v29, 4 }
 0x8eb   :  { %v4820_v8 = vld [vmem:[#allocation1] sm:$0xff] }
 0x8ec   :  { %5029 = vperm.xlu0 %5237, %v4820_v8   ;;  %4821 = vst [vmem:[#allocation1] ss:$9 sm:$0xff] %v4545_v15  ;;  %v4575_v15 = vperm.slane %v4393_v29, 6  ;;  %v4337_v8 = vpop.xlane.xlu1 %4336 }
 0x8ed   :  { %4822 = vst [vmem:[#allocation1 + $0x1] ss:$9 sm:$0xff] %v4546_v28  ;;  %v4576_v28 = vperm.slane %v4393_v29, 7 }
 0x8ee   :  { %4823 = vst [vmem:[#allocation1 + $0x2] ss:$9 sm:$0xff] %v4547_v51  ;;  %v4577_v51 = vperm.slane %v4394_v9, 0 }
 0x8ef   :  { %4824 = vst [vmem:[#allocation1 + $0x3] ss:$9 sm:$0xff] %v4548_v38  ;;  %v4578_v38 = vperm.slane %v4394_v9, 1 }
 0x8f0   :  { %4825 = vst [vmem:[#allocation1 + $0x4] ss:$9 sm:$0xff] %v4549_v32 }
 0x8f1   :  { %4826 = vst [vmem:[#allocation1 + $0x5] ss:$9 sm:$0xff] %v4550_v19  ;;  %v4579_v19 = vperm.slane %v4394_v9, 2 }
 0x8f2   :  { %4827 = vst [vmem:[#allocation1 + $0x6] ss:$9 sm:$0xff] %v4551_v58  ;;  %v4580_v58 = vperm.slane %v4394_v9, 3 }
 0x8f3   :  { %4828 = vst [vmem:[#allocation1 + $0x7] ss:$9 sm:$0xff] %v4552_v52  ;;  %v4581_v52 = vperm.slane %v4394_v9, 4 }
 0x8fa   :  { %v4829_v18 = vld [vmem:[#allocation1] sm:$0xff] }
 0x8fb   :  { %4830 = vst [vmem:[#allocation1] ss:$9 sm:$0xff] %v4553_v42  ;;  %5032 = vperm.xlu2 %5236, %v4829_v18   ;;  %v4340_v42 = vpop.xlane.xlu1 %4339  ;;  %v4584_v18 = vperm.slane %v4394_v9, 7 }
 0x8fc   :  { %4831 = vst [vmem:[#allocation1 + $0x1] ss:$9 sm:$0xff] %v4554_v17  ;;  %v4583_v17 = vperm.slane %v4394_v9, 6 }
 0x8fd   :  { %4832 = vst [vmem:[#allocation1 + $0x2] ss:$9 sm:$0xff] %v4555_v43  ;;  %v4395_v43 = vadd.f32 %v4337_v8, %v5768_v2 }
 0x8fe   :  { %4833 = vst [vmem:[#allocation1 + $0x3] ss:$9 sm:$0xff] %v4556_v39  ;;  %v4241_v39 = vmax.f32 %v4198_v13, 0.0 }
 0x8ff   :  { %4834 = vst [vmem:[#allocation1 + $0x4] ss:$9 sm:$0xff] %v4557_v20  ;;  %v4585_v20 = vperm.slane %v4395_v43, 0  ;;  %v4587_v63 = vperm.slane %v4395_v43, 2 }
 0x900   :  { %4835 = vst [vmem:[#allocation1 + $0x5] ss:$9 sm:$0xff] %v4558_v26 }
 0x901   :  { %4836 = vst [vmem:[#allocation1 + $0x6] ss:$9 sm:$0xff] %v4559_v24  ;;  %v4586_v24 = vperm.slane %v4395_v43, 1 }
 0x902   :  { %4837 = vst [vmem:[#allocation1 + $0x7] ss:$9 sm:$0xff] %v4560_v14 }
 0x903   :  { %v4343_v26 = vpop.xlane.xlu1 %4342 }
 0x909   :  { %v7461_v7 = vld [vmem:[#allocation1] sm:$0xff] }
 0x90a   :  { %4839 = vst [vmem:[#allocation1] ss:$9 sm:$0xff] %v4561_v0  ;;  %v4273_v0 = vmul.f32 %v7341_v23, %v4241_v39 }
 0x90b   :  { %4840 = vst [vmem:[#allocation1 + $0x1] ss:$9 sm:$0xff] %v4562_v6  ;;  %v4200_v6 = vadd.f32 %v7304_v59, %v7256_v25 }
 0x90c   :  { %4841 = vst [vmem:[#allocation1 + $0x2] ss:$9 sm:$0xff] %v4563_v1  ;;  %v4588_v1 = vperm.slane %v4395_v43, 3  ;;  %v4353_v29 = vsel %vm460_vm1, %v4273_v0, 0.0 }
 0x90d   :  { %4842 = vst [vmem:[#allocation1 + $0x3] ss:$9 sm:$0xff] %v4564_v12  ;;  %v4589_v12 = vperm.slane %v4395_v43, 4  ;;  %4354 = vadd.xlane.f32.xlu1 %v4353_v29 }
 0x90e   :  { %4843 = vst [vmem:[#allocation1 + $0x4] ss:$9 sm:$0xff] %v4565_v21  ;;  %v4590_v21 = vperm.slane %v4395_v43, 5 }
 0x90f   :  { %4844 = vst [vmem:[#allocation1 + $0x5] ss:$9 sm:$0xff] %v4566_v33  ;;  %v4591_v33 = vperm.slane %v4395_v43, 6 }
 0x910   :  { %4845 = vst [vmem:[#allocation1 + $0x6] ss:$9 sm:$0xff] %v4567_v5  ;;  %v4242_v5 = vmax.f32 %v4200_v6, 0.0 }
 0x911   :  { %4846 = vst [vmem:[#allocation1 + $0x7] ss:$9 sm:$0xff] %v4568_v27  ;;  %v4592_v27 = vperm.slane %v4395_v43, 7 }
 0x918   :  { %v7465_v46 = vld [vmem:[#allocation1] sm:$0xff] }
 0x919   :  { %4848 = vst [vmem:[#allocation1] ss:$9 sm:$0xff] %v4569_v53  ;;  %v2612_v53 = vperm.slane %v2542_v49, %v6715_v40 }
 0x91a   :  { %4849 = vst [vmem:[#allocation1 + $0x1] ss:$9 sm:$0xff] %v4570_v48  ;;  %v2545_v48 = vpop.permute.xlu1 %2544 }
 0x91b   :  { %4850 = vst [vmem:[#allocation1 + $0x2] ss:$9 sm:$0xff] %v4571_v30  ;;  %v2614_v25 = vperm.slane %v2545_v48, %v6712_v37  ;;  %v2613_v59 = vsel %vm7871_vm0, %v2612_v53, %v7440_v16  ;;  %v4274_v30 = vmul.f32 %v7341_v23, %v4242_v5  ;;  %vm7888_vm0 = vcmask 1040384  }
 0x91c   :  { %4851 = vst [vmem:[#allocation1 + $0x3] ss:$9 sm:$0xff] %v4572_v50  ;;  %v4396_v50 = vadd.f32 %v4340_v42, %v5768_v2 }
 0x91d   :  { %4852 = vst [vmem:[#allocation1 + $0x4] ss:$9 sm:$0xff] %v4573_v41  ;;  %v7485_v41 = vsel %vm1303_vm8, %v2614_v25, %v2613_v59 }
 0x91e   :  { %4853 = vst [vmem:[#allocation1 + $0x5] ss:$9 sm:$0xff] %v4574_v47  ;;  %v4593_v47 = vperm.slane %v4396_v50, 0  ;;  %v4595_v9 = vperm.slane %v4396_v50, 2  ;;  %v4598_v16 = vperm.slane %v4396_v50, 5  ;;  %v4599_v23 = vperm.slane %v4396_v50, 6 }
 0x91f   :  { %4854 = vst [vmem:[#allocation1 + $0x6] ss:$9 sm:$0xff] %v4575_v15  ;;  %v4356_v15 = vsel %vm460_vm1, %v4274_v30, 0.0 }
 0x920   :  { %4855 = vst [vmem:[#allocation1 + $0x7] ss:$9 sm:$0xff] %v4576_v28  ;;  %v4594_v28 = vperm.slane %v4396_v50, 1  ;;  %4357 = vadd.xlane.f32.xlu1 %v4356_v15 }
 0x922   :  { %v4349_v5 = vpop.xlane.xlu1 %4348 }
 0x923   :  { %v4399_v29 = vadd.f32 %v4349_v5, %v5768_v2 }
 0x925   :  { %v4617_v53 = vperm.slane %v4399_v29, 0  ;;  %v4618_v48 = vperm.slane %v4399_v29, 1  ;;  %v4619_v25 = vperm.slane %v4399_v29, 2  ;;  %v4620_v59 = vperm.slane %v4399_v29, 3 }
 0x926   :  { %v4623_v15 = vperm.slane %v4399_v29, 6 }
 0x927   :  { %v4856_v32 = vld [vmem:[#allocation1] sm:$0xff] }
 0x928   :  { %4857 = vst [vmem:[#allocation1] ss:$9 sm:$0xff] %v4577_v51  ;;  %5041 = vperm.xlu2 %5236, %v4856_v32   ;;  %v4596_v51 = vperm.slane %v4396_v50, 3  ;;  %v4600_v32 = vperm.slane %v4396_v50, 7 }
 0x929   :  { %4858 = vst [vmem:[#allocation1 + $0x1] ss:$9 sm:$0xff] %v4578_v38  ;;  %v4597_v38 = vperm.slane %v4396_v50, 4  ;;  %v4621_v50 = vperm.slane %v4399_v29, 4 }
 0x92a   :  { %4859 = vst [vmem:[#allocation1 + $0x2] ss:$9 sm:$0xff] %v4579_v19  ;;  %v4397_v19 = vadd.f32 %v4343_v26, %v5768_v2 }
 0x92b   :  { %4860 = vst [vmem:[#allocation1 + $0x3] ss:$9 sm:$0xff] %v4580_v58 }
 0x92c   :  { %4861 = vst [vmem:[#allocation1 + $0x4] ss:$9 sm:$0xff] %v4581_v52  ;;  %v4601_v58 = vperm.slane %v4397_v19, 0  ;;  %v4602_v52 = vperm.slane %v4397_v19, 1  ;;  %v4603_v42 = vperm.slane %v4397_v19, 2  ;;  %v4606_v13 = vperm.slane %v4397_v19, 5 }
 0x92d   :  { %4862 = vst [vmem:[#allocation1 + $0x5] ss:$9 sm:$0xff] %v4582_v57  ;;  %v4607_v43 = vperm.slane %v4397_v19, 6  ;;  %v4608_v39 = vperm.slane %v4397_v19, 7 }
 0x92e   :  { %4863 = vst [vmem:[#allocation1 + $0x6] ss:$9 sm:$0xff] %v4583_v17  ;;  %v4604_v17 = vperm.slane %v4397_v19, 3 }
 0x92f   :  { %4864 = vst [vmem:[#allocation1 + $0x7] ss:$9 sm:$0xff] %v4584_v18  ;;  %v4605_v18 = vperm.slane %v4397_v19, 4 }
 0x936   :  { %v7472_v14 = vld [vmem:[#allocation1] sm:$0xff] }
 0x937   :  { %4866 = vst [vmem:[#allocation1] ss:$9 sm:$0xff] %v4585_v20  ;;  %v4346_v20 = vpop.xlane.xlu0 %4345 }
 0x938   :  { %4867 = vst [vmem:[#allocation1 + $0x1] ss:$9 sm:$0xff] %v4586_v24  ;;  %v4398_v26 = vadd.f32 %v4346_v20, %v5768_v2  ;;  %v7872_v24 = vld [vmem:[#allocation30_spill] sm:$0xff] }
 0x939   :  { %4868 = vst [vmem:[#allocation1 + $0x2] ss:$9 sm:$0xff] %v4587_v63  ;;  %2562 = vperm.xlu1 %5238, %v7872_v24  }
 0x93a   :  { %4869 = vst [vmem:[#allocation1 + $0x3] ss:$9 sm:$0xff] %v4588_v1  ;;  %v4609_v63 = vperm.slane %v4398_v26, 0  ;;  %v4610_v0 = vperm.slane %v4398_v26, 1  ;;  %v4611_v1 = vperm.slane %v4398_v26, 2  ;;  %v4613_v49 = vperm.slane %v4398_v26, 4 }
 0x93b   :  { %4870 = vst [vmem:[#allocation1 + $0x4] ss:$9 sm:$0xff] %v4589_v12  ;;  %v4612_v12 = vperm.slane %v4398_v26, 3 }
 0x93c   :  { %4871 = vst [vmem:[#allocation1 + $0x5] ss:$9 sm:$0xff] %v4590_v21  ;;  %v4614_v21 = vperm.slane %v4398_v26, 5 }
 0x93d   :  { %4872 = vst [vmem:[#allocation1 + $0x6] ss:$9 sm:$0xff] %v4591_v33  ;;  %v4615_v33 = vperm.slane %v4398_v26, 6 }
 0x93e   :  { %4873 = vst [vmem:[#allocation1 + $0x7] ss:$9 sm:$0xff] %v4592_v27  ;;  %v4616_v27 = vperm.slane %v4398_v26, 7 }
 0x945   :  { %v4874_v8 = vld [vmem:[#allocation1] sm:$0xff] }
 0x946   :  { %4875 = vst [vmem:[#allocation1] ss:$9 sm:$0xff] %v4593_v47  ;;  %5047 = vperm.xlu2 %5236, %v4874_v8   ;;  %v4622_v47 = vperm.slane %v4399_v29, 5  ;;  %v4352_v8 = vpop.xlane.xlu1 %4351 }
 0x947   :  { %4876 = vst [vmem:[#allocation1 + $0x1] ss:$9 sm:$0xff] %v4594_v28  ;;  %v4624_v28 = vperm.slane %v4399_v29, 7 }
 0x948   :  { %4877 = vst [vmem:[#allocation1 + $0x2] ss:$9 sm:$0xff] %v4595_v9  ;;  %v4400_v9 = vadd.f32 %v4352_v8, %v5768_v2 }
 0x949   :  { %4878 = vst [vmem:[#allocation1 + $0x3] ss:$9 sm:$0xff] %v4596_v51  ;;  %v5259_v51 = vld [vmem:[%s7756_s4] ss:$0 sm:$0xff]  ;;  %s5288_s4 = smov [#allocation3]  }
 0x94a   :  { %4879 = vst [vmem:[#allocation1 + $0x4] ss:$9 sm:$0xff] %v4597_v38  ;;  %v4205_v38 = vadd.f32 %v5259_v51, %v7271_v4  ;;  %v4627_v19 = vperm.slane %v4400_v9, 2  ;;  %v4632_v4 = vperm.slane %v4400_v9, 7  ;;  %v4210_v24 = vadd.f32 %v5259_v51, %v7291_v54 }
 0x94b   :  { %4880 = vst [vmem:[#allocation1 + $0x5] ss:$9 sm:$0xff] %v4598_v16  ;;  %v4625_v16 = vperm.slane %v4400_v9, 0 }
 0x94c   :  { %4881 = vst [vmem:[#allocation1 + $0x6] ss:$9 sm:$0xff] %v4599_v23  ;;  %v4244_v23 = vmax.f32 %v4205_v38, 0.0 }
 0x94d   :  { %4882 = vst [vmem:[#allocation1 + $0x7] ss:$9 sm:$0xff] %v4600_v32  ;;  %v4626_v32 = vperm.slane %v4400_v9, 1 }
 0x954   :  { %v4883_v57 = vld [vmem:[#allocation1] sm:$0xff] }
 0x955   :  { %5050 = vperm.xlu0 %5237, %v4883_v57   ;;  %4884 = vst [vmem:[#allocation1] ss:$9 sm:$0xff] %v4601_v58  ;;  %v4628_v58 = vperm.slane %v4400_v9, 3  ;;  %v4629_v57 = vperm.slane %v4400_v9, 4 }
 0x956   :  { %4885 = vst [vmem:[#allocation1 + $0x1] ss:$9 sm:$0xff] %v4602_v52 }
 0x957   :  { %4886 = vst [vmem:[#allocation1 + $0x2] ss:$9 sm:$0xff] %v4603_v42  ;;  %v5260_v42 = vld [vmem:[%s7757_s5] ss:$0 sm:$0xff]  ;;  %s5159_s5 = sshll.u32 %s5288_s4, 4  ;;  %s5160_s5 = int_to_ptr.vmem [resolvable:$true] %s5159_s5 }
 0x958   :  { %4887 = vst [vmem:[#allocation1 + $0x3] ss:$9 sm:$0xff] %v4604_v17  ;;  %v4276_v17 = vmul.f32 %v5260_v42, %v4244_v23  ;;  %v7874_v23 = vld [vmem:[#allocation44_spill] sm:$0xff] }
 0x959   :  { %4888 = vst [vmem:[#allocation1 + $0x4] ss:$9 sm:$0xff] %v4605_v18  ;;  %v4208_v18 = vadd.f32 %v5259_v51, %v7282_v56 }
 0x95a   :  { %4889 = vst [vmem:[#allocation1 + $0x5] ss:$9 sm:$0xff] %v4606_v13  ;;  %v4630_v13 = vperm.slane %v4400_v9, 5  ;;  %v4362_v20 = vsel %vm460_vm1, %v4276_v17, 0.0 }
 0x95b   :  { %4890 = vst [vmem:[#allocation1 + $0x6] ss:$9 sm:$0xff] %v4607_v43  ;;  %v4631_v43 = vperm.slane %v4400_v9, 6  ;;  %v7873_v9 = vld [vmem:[#allocation34_spill] sm:$0xff] }
 0x95c   :  { %4891 = vst [vmem:[#allocation1 + $0x7] ss:$9 sm:$0xff] %v4608_v39  ;;  %v4245_v39 = vmax.f32 %v4208_v18, 0.0  ;;  %v2548_v18 = vpop.permute.xlu0 %2547 }
 0x95e   :  { %v4277_v26 = vmul.f32 %v5260_v42, %v4245_v39 }
 0x960   :  { %v4365_v56 = vsel %vm460_vm1, %v4277_v26, 0.0 }
 0x963   :  { %v7491_v6 = vld [vmem:[#allocation1] sm:$0xff]  ;;  %4363 = vadd.xlane.f32.xlu1 %v4362_v20 }
 0x964   :  { %4893 = vst [vmem:[#allocation1] ss:$9 sm:$0xff] %v4609_v63  ;;  %v4246_v63 = vmax.f32 %v4210_v24, 0.0  ;;  %v7876_v20 = vld [vmem:[#allocation39_spill] sm:$0xff]  ;;  %v2557_v24 = vpop.permute.xlu0 %2556 }
 0x965   :  { %4894 = vst [vmem:[#allocation1 + $0x1] ss:$9 sm:$0xff] %v4610_v0  ;;  %v2616_v26 = vperm.slane %v2548_v18, %v7876_v20 }
 0x966   :  { %4895 = vst [vmem:[#allocation1 + $0x2] ss:$9 sm:$0xff] %v4611_v1  ;;  %v4278_v1 = vmul.f32 %v5260_v42, %v4246_v63 }
 0x967   :  { %4896 = vst [vmem:[#allocation1 + $0x3] ss:$9 sm:$0xff] %v4612_v12  ;;  %v4213_v12 = vadd.f32 %v5259_v51, %v7298_v3 }
 0x968   :  { %4897 = vst [vmem:[#allocation1 + $0x4] ss:$9 sm:$0xff] %v4613_v49 }
 0x969   :  { %4898 = vst [vmem:[#allocation1 + $0x5] ss:$9 sm:$0xff] %v4614_v21  ;;  %v4247_v49 = vmax.f32 %v4213_v12, 0.0  ;;  %v4368_v21 = vsel %vm460_vm1, %v4278_v1, 0.0  ;;  %v2617_v1 = vsel %vm1307_vm9, %v2616_v26, %v7485_v41  ;;  %v7878_v12 = vld [vmem:[#allocation38_spill] sm:$0xff] }
 0x96a   :  { %4899 = vst [vmem:[#allocation1 + $0x6] ss:$9 sm:$0xff] %v4615_v33 }
 0x96b   :  { %4900 = vst [vmem:[#allocation1 + $0x7] ss:$9 sm:$0xff] %v4616_v27  ;;  %4366 = vadd.xlane.f32.xlu1 %v4365_v56  ;;  %v4279_v33 = vmul.f32 %v5260_v42, %v4247_v49  ;;  %v7511_v27 = vpop.permute.xlu1 %2553  ;;  %v7877_v56 = vld [vmem:[#allocation48_spill] sm:$0xff] }
 0x96c   :  { %v2620_v49 = vperm.slane %v7511_v27, %v7878_v12 }
 0x96d   :  { %v4371_v5 = vsel %vm460_vm1, %v4279_v33, 0.0  ;;  %v7879_v33 = vld [vmem:[#allocation41_spill] sm:$0xff]  ;;  %vm7884_vm1 = vcmask 851712  }
 0x972   :  { %v7494_v30 = vld [vmem:[#allocation1] sm:$0xff] }
 0x973   :  { %4902 = vst [vmem:[#allocation1] ss:$9 sm:$0xff] %v4617_v53  ;;  %4369 = vadd.xlane.f32.xlu1 %v4368_v21 }
 0x974   :  { %4903 = vst [vmem:[#allocation1 + $0x1] ss:$9 sm:$0xff] %v4618_v48 }
 0x975   :  { %4904 = vst [vmem:[#allocation1 + $0x2] ss:$9 sm:$0xff] %v4619_v25 }
 0x976   :  { %4905 = vst [vmem:[#allocation1 + $0x3] ss:$9 sm:$0xff] %v4620_v59 }
 0x977   :  { %4906 = vst [vmem:[#allocation1 + $0x4] ss:$9 sm:$0xff] %v4621_v50 }
 0x978   :  { %4907 = vst [vmem:[#allocation1 + $0x5] ss:$9 sm:$0xff] %v4622_v47 }
 0x979   :  { %4908 = vst [vmem:[#allocation1 + $0x6] ss:$9 sm:$0xff] %v4623_v15  ;;  %v2551_v15 = vpop.permute.xlu2 %2550 }
 0x97a   :  { %4909 = vst [vmem:[#allocation1 + $0x7] ss:$9 sm:$0xff] %v4624_v28 }
 0x97b   :  { %4372 = vadd.xlane.f32.xlu1 %v4371_v5  ;;  %v2618_v5 = vperm.slane %v2551_v15, %v7879_v33 }
 0x980   :  { %v4355_v54 = vpop.xlane.xlu1 %4354 }
 0x981   :  { %v4910_v52 = vld [vmem:[#allocation1] sm:$0xff]  ;;  %v4401_v29 = vadd.f32 %v4355_v54, %v5768_v2 }
 0x982   :  { %5059 = vperm.xlu0 %5237, %v4910_v52   ;;  %4911 = vst [vmem:[#allocation1] ss:$9 sm:$0xff] %v4625_v16 }
 0x983   :  { %4912 = vst [vmem:[#allocation1 + $0x1] ss:$9 sm:$0xff] %v4626_v32  ;;  %v4633_v53 = vperm.slane %v4401_v29, 0  ;;  %v4634_v48 = vperm.slane %v4401_v29, 1  ;;  %v4635_v25 = vperm.slane %v4401_v29, 2  ;;  %v4636_v59 = vperm.slane %v4401_v29, 3  ;;  %v2560_v32 = vpop.permute.xlu2 %2559 }
 0x984   :  { %4913 = vst [vmem:[#allocation1 + $0x2] ss:$9 sm:$0xff] %v4627_v19  ;;  %v4637_v50 = vperm.slane %v4401_v29, 4  ;;  %v4638_v3 = vperm.slane %v4401_v29, 5  ;;  %v4639_v47 = vperm.slane %v4401_v29, 6  ;;  %v4640_v28 = vperm.slane %v4401_v29, 7 }
 0x985   :  { %4914 = vst [vmem:[#allocation1 + $0x3] ss:$9 sm:$0xff] %v4628_v58 }
 0x986   :  { %4915 = vst [vmem:[#allocation1 + $0x4] ss:$9 sm:$0xff] %v4629_v57 }
 0x987   :  { %4916 = vst [vmem:[#allocation1 + $0x5] ss:$9 sm:$0xff] %v4630_v13 }
 0x988   :  { %4917 = vst [vmem:[#allocation1 + $0x6] ss:$9 sm:$0xff] %v4631_v43  ;;  %v7875_v43 = vld [vmem:[#allocation45_spill] sm:$0xff] }
 0x989   :  { %4918 = vst [vmem:[#allocation1 + $0x7] ss:$9 sm:$0xff] %v4632_v4 }
 0x98b   :  { %v4361_v4 = vpop.xlane.xlu2 %4360 }
 0x98c   :  { %v4403_v39 = vadd.f32 %v4361_v4, %v5768_v2  ;;  %v7886_v4 = vld [vmem:[#allocation8_spill] sm:$0xff] }
 0x98e   :  { %v4649_v63 = vperm.slane %v4403_v39, 0  ;;  %v4651_v54 = vperm.slane %v4403_v39, 2  ;;  %v4652_v29 = vperm.slane %v4403_v39, 3  ;;  %v4655_v27 = vperm.slane %v4403_v39, 6 }
 0x990   :  { %v4919_v0 = vld [vmem:[#allocation1] sm:$0xff] }
 0x991   :  { %5062 = vperm.xlu2 %5236, %v4919_v0   ;;  %4920 = vst [vmem:[#allocation1] ss:$9 sm:$0xff] %v4633_v53  ;;  %v4650_v0 = vperm.slane %v4403_v39, 1  ;;  %v4653_v53 = vperm.slane %v4403_v39, 4 }
 0x992   :  { %4921 = vst [vmem:[#allocation1 + $0x1] ss:$9 sm:$0xff] %v4634_v48  ;;  %v2619_v48 = vsel %vm1311_vm10, %v2618_v5, %v2617_v1 }
 0x993   :  { %4922 = vst [vmem:[#allocation1 + $0x2] ss:$9 sm:$0xff] %v4635_v25  ;;  %v4358_v8 = vpop.xlane.xlu1 %4357  ;;  %v4654_v25 = vperm.slane %v4403_v39, 5 }
 0x994   :  { %4923 = vst [vmem:[#allocation1 + $0x3] ss:$9 sm:$0xff] %v4636_v59  ;;  %3737 = vperm.xlu1 %5238, %v7873_v9   ;;  %v4402_v51 = vadd.f32 %v4358_v8, %v5768_v2  ;;  %v2621_v59 = vsel %vm1315_vm11, %v2620_v49, %v2619_v48  ;;  %v7882_v9 = vld [vmem:[#allocation50_spill] sm:$0xff] }
 0x995   :  { %4924 = vst [vmem:[#allocation1 + $0x4] ss:$9 sm:$0xff] %v4637_v50  ;;  %v7880_v50 = vld [vmem:[#allocation42_spill] sm:$0xff] }
 0x996   :  { %4925 = vst [vmem:[#allocation1 + $0x5] ss:$9 sm:$0xff] %v4638_v3  ;;  %v4641_v38 = vperm.slane %v4402_v51, 0  ;;  %v4642_v16 = vperm.slane %v4402_v51, 1  ;;  %v4643_v19 = vperm.slane %v4402_v51, 2  ;;  %v4644_v58 = vperm.slane %v4402_v51, 3 }
 0x997   :  { %4926 = vst [vmem:[#allocation1 + $0x6] ss:$9 sm:$0xff] %v4639_v47  ;;  %v4645_v57 = vperm.slane %v4402_v51, 4  ;;  %v4646_v42 = vperm.slane %v4402_v51, 5  ;;  %v4647_v17 = vperm.slane %v4402_v51, 6  ;;  %v4648_v13 = vperm.slane %v4402_v51, 7 }
 0x998   :  { %4927 = vst [vmem:[#allocation1 + $0x7] ss:$9 sm:$0xff] %v4640_v28  ;;  %v2622_v3 = vperm.slane %v2557_v24, %v7880_v50  ;;  %v4656_v47 = vperm.slane %v4403_v39, 7  ;;  %v7881_v28 = vld [vmem:[#allocation47_spill] sm:$0xff]  ;;  %v7887_v39 = vld [vmem:[#allocation10_spill] sm:$0xff] }
 0x999   :  { %v7883_v51 = vld [vmem:[#allocation43_spill] sm:$0xff] }
 0x99a   :  { %v2623_v15 = vsel %vm1319_vm12, %v2622_v3, %v2621_v59 }
 0x99c   :  { %3749 = vperm.xlu1 %5238, %v7874_v23  }
 0x99f   :  { %v7517_v52 = vld [vmem:[#allocation1] sm:$0xff] }
 0x9a0   :  { %4929 = vst [vmem:[#allocation1] ss:$9 sm:$0xff] %v4641_v38  ;;  %v2624_v38 = vperm.slane %v2560_v32, %v7883_v51 }
 0x9a1   :  { %4930 = vst [vmem:[#allocation1 + $0x1] ss:$9 sm:$0xff] %v4642_v16  ;;  %v2566_v16 = vpop.permute.xlu0 %2565 }
 0x9a2   :  { %4931 = vst [vmem:[#allocation1 + $0x2] ss:$9 sm:$0xff] %v4643_v19  ;;  %v2625_v23 = vsel %vm7884_vm1, %v2624_v38, %v2623_v15  ;;  %vm7892_vm1 = vcmask 458112  }
 0x9a3   :  { %4932 = vst [vmem:[#allocation1 + $0x3] ss:$9 sm:$0xff] %v4644_v58  ;;  %v2628_v58 = vperm.slane %v2566_v16, %v6866_v35 }
 0x9a4   :  { %4933 = vst [vmem:[#allocation1 + $0x4] ss:$9 sm:$0xff] %v4645_v57  ;;  %3758 = vperm.xlu1 %5238, %v7875_v43   ;;  %v2569_v57 = vpop.permute.xlu2 %2568 }
 0x9a5   :  { %4934 = vst [vmem:[#allocation1 + $0x5] ss:$9 sm:$0xff] %v4646_v42 }
 0x9a6   :  { %4935 = vst [vmem:[#allocation1 + $0x6] ss:$9 sm:$0xff] %v4647_v17  ;;  %v2630_v17 = vperm.slane %v2569_v57, %v6869_v44 }
 0x9a7   :  { %4936 = vst [vmem:[#allocation1 + $0x7] ss:$9 sm:$0xff] %v4648_v13  ;;  %v7885_v13 = vld [vmem:[#allocation52_spill] sm:$0xff] }
 0x9ab   :  { %v2563_v41 = vpop.permute.xlu1 %2562 }
 0x9ac   :  { %3767 = vperm.xlu1 %5238, %v7877_v56   ;;  %v2626_v8 = vperm.slane %v2563_v41, %v7881_v28  ;;  %v7548_v56 = vpop.permute.xlu2 %3734 }
 0x9ae   :  { %v4937_v21 = vld [vmem:[#allocation1] sm:$0xff]  ;;  %v2627_v19 = vsel %vm1327_vm14, %v2626_v8, %v2625_v23 }
 0x9af   :  { %5068 = vperm.xlu0 %5237, %v4937_v21   ;;  %4938 = vst [vmem:[#allocation1] ss:$9 sm:$0xff] %v4649_v63  ;;  %v2629_v42 = vsel %vm1331_vm15, %v2628_v58, %v2627_v19  ;;  %v7890_v63 = vld [vmem:[#allocation7_spill] sm:$0xff] }
 0x9b0   :  { %4939 = vst [vmem:[#allocation1 + $0x1] ss:$9 sm:$0xff] %v4650_v0  ;;  %v2631_v43 = vsel %vm1335_vm13, %v2630_v17, %v2629_v42  ;;  %v7891_v0 = vld [vmem:[#allocation9_spill] sm:$0xff] }
 0x9b1   :  { %4940 = vst [vmem:[#allocation1 + $0x2] ss:$9 sm:$0xff] %v4651_v54  ;;  %v2632_v32 = vrot.slane %v2631_v43, 7 }
 0x9b2   :  { %4941 = vst [vmem:[#allocation1 + $0x3] ss:$9 sm:$0xff] %v4652_v29 }
 0x9b3   :  { %4942 = vst [vmem:[#allocation1 + $0x4] ss:$9 sm:$0xff] %v4653_v53  ;;  %v2633_v26 = vsel %vm7888_vm0, %v7887_v39, %v2632_v32  ;;  %vm7893_vm0 = vcmask 851712  }
 0x9b4   :  { %4943 = vst [vmem:[#allocation1 + $0x5] ss:$9 sm:$0xff] %v4654_v25  ;;  %3776 = vperm.xlu1 %5238, %v7882_v9   ;;  %v7552_v48 = vpop.permute.xlu2 %3743 }
 0x9b5   :  { %4944 = vst [vmem:[#allocation1 + $0x6] ss:$9 sm:$0xff] %v4655_v27  ;;  %v7555_v27 = vpop.xlane.xlu0 %4375 }
 0x9b6   :  { %4945 = vst [vmem:[#allocation1 + $0x7] ss:$9 sm:$0xff] %v4656_v47 }
 0x9b7   :  { %2635 = vst.msk [vmem:[#allocation3 + $0x2] sm:$0x3] %vm7113_vm7, %v2633_v26 }
 0x9bc   :  { %3785 = vperm.xlu1 %5238, %v7885_v13   ;;  %v7559_v15 = vpop.permute.xlu2 %3752 }
 0x9bd   :  { %v4946_v18 = vld [vmem:[#allocation1] sm:$0xff]  ;;  %v7561_v38 = vpop.permute.xlu0 %3740 }
 0x9be   :  { %5071 = vperm.xlu2 %5236, %v4946_v18  }
 0x9c4   :  { %3794 = vperm.xlu1 %5238, %v7886_v4   ;;  %v7566_v17 = vpop.permute.xlu2 %3761 }
 0x9c5   :  { %v3747_v13 = vpop.permute.xlu0 %3746 }
 0x9cc   :  { %3803 = vperm.xlu1 %5238, %v7890_v63   ;;  %v7570_v63 = vpop.permute.xlu2 %3770 }
 0x9d4   :  { %3812 = vperm.xlu1 %5238, %v7891_v0  }
 0x9d6   :  { %v4364_v1 = vpop.xlane.xlu1 %4363 }
 0x9d7   :  { %v4404_v49 = vadd.f32 %v4364_v1, %v5768_v2 }
 0x9d9   :  { %v4657_v21 = vperm.slane %v4404_v49, 0  ;;  %v4658_v5 = vperm.slane %v4404_v49, 1  ;;  %v4659_v54 = vperm.slane %v4404_v49, 2  ;;  %v4660_v29 = vperm.slane %v4404_v49, 3 }
 0x9da   :  { %v4661_v53 = vperm.slane %v4404_v49, 4  ;;  %v4662_v25 = vperm.slane %v4404_v49, 5  ;;  %v4663_v59 = vperm.slane %v4404_v49, 6  ;;  %v4664_v41 = vperm.slane %v4404_v49, 7 }
 0x9db   :  { %4947 = vst [vmem:[#allocation1] ss:$9 sm:$0xff] %v4657_v21  ;;  %v3756_v21 = vpop.permute.xlu0 %3755 }
 0x9dc   :  { %4948 = vst [vmem:[#allocation1 + $0x1] ss:$9 sm:$0xff] %v4658_v5  ;;  %4993 = vperm.xlu1 %5238, %v7357_v34  }
 0x9dd   :  { %4949 = vst [vmem:[#allocation1 + $0x2] ss:$9 sm:$0xff] %v4659_v54  ;;  %v7574_v54 = vpop.permute.xlu2 %3779 }
 0x9de   :  { %4950 = vst [vmem:[#allocation1 + $0x3] ss:$9 sm:$0xff] %v4660_v29  ;;  %v4367_v3 = vpop.xlane.xlu1 %4366 }
 0x9df   :  { %4951 = vst [vmem:[#allocation1 + $0x4] ss:$9 sm:$0xff] %v4661_v53  ;;  %v4405_v47 = vadd.f32 %v4367_v3, %v5768_v2 }
 0x9e0   :  { %4952 = vst [vmem:[#allocation1 + $0x5] ss:$9 sm:$0xff] %v4662_v25 }
 0x9e1   :  { %4953 = vst [vmem:[#allocation1 + $0x6] ss:$9 sm:$0xff] %v4663_v59  ;;  %v4665_v8 = vperm.slane %v4405_v47, 0  ;;  %v4666_v9 = vperm.slane %v4405_v47, 1  ;;  %v4667_v34 = vperm.slane %v4405_v47, 2  ;;  %v4668_v16 = vperm.slane %v4405_v47, 3 }
 0x9e2   :  { %4954 = vst [vmem:[#allocation1 + $0x7] ss:$9 sm:$0xff] %v4664_v41  ;;  %v4669_v19 = vperm.slane %v4405_v47, 4  ;;  %v4670_v58 = vperm.slane %v4405_v47, 5  ;;  %v4671_v57 = vperm.slane %v4405_v47, 6  ;;  %v4672_v42 = vperm.slane %v4405_v47, 7 }
 0x9e3   :  { %v7577_v41 = vpop.permute.xlu0 %3764 }
 0x9e4   :  { %4999 = vperm.xlu1 %5238, %v7380_v10  }
 0x9e6   :  { %v4370_v10 = vpop.xlane.xlu1 %4369 }
 0x9e7   :  { %v4406_v18 = vadd.f32 %v4370_v10, %v5768_v2 }
 0x9e9   :  { %v7563_v23 = vld [vmem:[#allocation1] sm:$0xff]  ;;  %v4673_v43 = vperm.slane %v4406_v18, 0  ;;  %v4674_v32 = vperm.slane %v4406_v18, 1  ;;  %v4675_v4 = vperm.slane %v4406_v18, 2  ;;  %v4676_v39 = vperm.slane %v4406_v18, 3 }
 0x9ea   :  { %4956 = vst [vmem:[#allocation1] ss:$9 sm:$0xff] %v4665_v8  ;;  %v4678_v0 = vperm.slane %v4406_v18, 5  ;;  %v4679_v1 = vperm.slane %v4406_v18, 6  ;;  %v4680_v49 = vperm.slane %v4406_v18, 7 }
 0x9eb   :  { %4957 = vst [vmem:[#allocation1 + $0x1] ss:$9 sm:$0xff] %v4666_v9  ;;  %v3832_v9 = vperm.slane %v7561_v38, %v6671_v61 }
 0x9ec   :  { %4958 = vst [vmem:[#allocation1 + $0x2] ss:$9 sm:$0xff] %v4667_v34  ;;  %5008 = vperm.xlu1 %5238, %v7400_v45   ;;  %v4677_v45 = vperm.slane %v4406_v18, 4 }
 0x9ed   :  { %4959 = vst [vmem:[#allocation1 + $0x3] ss:$9 sm:$0xff] %v4668_v16 }
 0x9ee   :  { %4960 = vst [vmem:[#allocation1 + $0x4] ss:$9 sm:$0xff] %v4669_v19 }
 0x9ef   :  { %4961 = vst [vmem:[#allocation1 + $0x5] ss:$9 sm:$0xff] %v4670_v58  ;;  %v3836_v58 = vperm.slane %v3747_v13, %v7869_v62 }
 0x9f0   :  { %4962 = vst [vmem:[#allocation1 + $0x6] ss:$9 sm:$0xff] %v4671_v57 }
 0x9f1   :  { %4963 = vst [vmem:[#allocation1 + $0x7] ss:$9 sm:$0xff] %v4672_v42 }
 0x9f4   :  { %5017 = vperm.xlu1 %5238, %v7426_v22   ;;  %v4373_v22 = vpop.xlane.xlu1 %4372 }
 0x9f5   :  { %v4407_v5 = vadd.f32 %v4373_v22, %v5768_v2 }
 0x9f7   :  { %v4681_v29 = vperm.slane %v4407_v5, 0  ;;  %v4682_v53 = vperm.slane %v4407_v5, 1  ;;  %v4683_v25 = vperm.slane %v4407_v5, 2  ;;  %v4684_v3 = vperm.slane %v4407_v5, 3 }
 0x9f8   :  { %v4964_v26 = vld [vmem:[#allocation1] sm:$0xff]  ;;  %v4685_v34 = vperm.slane %v4407_v5, 4  ;;  %v4686_v16 = vperm.slane %v4407_v5, 5  ;;  %v4688_v42 = vperm.slane %v4407_v5, 7 }
 0x9f9   :  { %5077 = vperm.xlu0 %5237, %v4964_v26   ;;  %4965 = vst [vmem:[#allocation1] ss:$9 sm:$0xff] %v4673_v43  ;;  %v3840_v43 = vperm.slane %v7559_v15, %v6715_v40 }
 0x9fa   :  { %4966 = vst [vmem:[#allocation1 + $0x1] ss:$9 sm:$0xff] %v4674_v32  ;;  %v4408_v32 = vadd.f32 %v7555_v27, %v5768_v2 }
 0x9fb   :  { %4967 = vst [vmem:[#allocation1 + $0x2] ss:$9 sm:$0xff] %v4675_v4  ;;  %v7601_v4 = vpop.permute.xlu0 %3773 }
 0x9fc   :  { %4968 = vst [vmem:[#allocation1 + $0x3] ss:$9 sm:$0xff] %v4676_v39  ;;  %5026 = vperm.xlu1 %5238, %v7452_v60   ;;  %v3829_v60 = vperm.slane %v7548_v56, %v6663_v55  ;;  %v4687_v56 = vperm.slane %v4407_v5, 6  ;;  %v4692_v27 = vperm.slane %v4408_v32, 3  ;;  %v4693_v5 = vperm.slane %v4408_v32, 4 }
 0x9fd   :  { %4969 = vst [vmem:[#allocation1 + $0x4] ss:$9 sm:$0xff] %v4677_v45 }
 0x9fe   :  { %4970 = vst [vmem:[#allocation1 + $0x5] ss:$9 sm:$0xff] %v4678_v0  ;;  %v4689_v0 = vperm.slane %v4408_v32, 0 }
 0x9ff   :  { %4971 = vst [vmem:[#allocation1 + $0x6] ss:$9 sm:$0xff] %v4679_v1  ;;  %v4690_v1 = vperm.slane %v4408_v32, 1 }
 0xa00   :  { %4972 = vst [vmem:[#allocation1 + $0x7] ss:$9 sm:$0xff] %v4680_v49 }
 0xa04   :  { %5044 = vperm.xlu1 %5238, %v7472_v14   ;;  %v3834_v14 = vperm.slane %v7552_v48, %v6687_v11  ;;  %v7592_v48 = vpop.permute.xlu2 %3788 }
 0xa06   :  { %v3738_v59 = vpop.permute.xlu1 %3737 }
 0xa07   :  { %v4973_v47 = vld [vmem:[#allocation1] sm:$0xff]  ;;  %v3830_v8 = vperm.slane %v3738_v59, %v6666_v36  ;;  %v3783_v59 = vpop.permute.xlu0 %3782 }
 0xa08   :  { %5080 = vperm.xlu2 %5236, %v4973_v47   ;;  %4974 = vst [vmem:[#allocation1] ss:$9 sm:$0xff] %v4681_v29 }
 0xa09   :  { %4975 = vst [vmem:[#allocation1 + $0x1] ss:$9 sm:$0xff] %v4682_v53  ;;  %v3831_v19 = vsel %vm1279_vm2, %v3830_v8, %v3829_v60  ;;  %v4694_v53 = vperm.slane %v4408_v32, 5  ;;  %v4696_v60 = vperm.slane %v4408_v32, 7  ;;  %v3852_v8 = vperm.slane %v7570_v63, %v7883_v51 }
 0xa0a   :  { %4976 = vst [vmem:[#allocation1 + $0x2] ss:$9 sm:$0xff] %v4683_v25  ;;  %v3833_v57 = vsel %vm1283_vm3, %v3832_v9, %v3831_v19  ;;  %v4695_v25 = vperm.slane %v4408_v32, 6 }
 0xa0b   :  { %4977 = vst [vmem:[#allocation1 + $0x3] ss:$9 sm:$0xff] %v4684_v3  ;;  %v3835_v38 = vsel %vm1287_vm4, %v3834_v14, %v3833_v57 }
 0xa0c   :  { %4978 = vst [vmem:[#allocation1 + $0x4] ss:$9 sm:$0xff] %v4685_v34  ;;  %5053 = vperm.xlu1 %5238, %v7491_v6   ;;  %v3837_v10 = vsel %vm1291_vm5, %v3836_v58, %v3835_v38  ;;  %v3842_v6 = vperm.slane %v3756_v21, %v6712_v37  ;;  %v3846_v21 = vperm.slane %v7566_v17, %v7879_v33  ;;  %v3798_v22 = vpop.permute.xlu2 %3797 }
 0xa0d   :  { %4979 = vst [vmem:[#allocation1 + $0x5] ss:$9 sm:$0xff] %v4686_v16  ;;  %v3848_v17 = vperm.slane %v7577_v41, %v7878_v12 }
 0xa0e   :  { %4980 = vst [vmem:[#allocation1 + $0x6] ss:$9 sm:$0xff] %v4687_v56  ;;  %v3750_v18 = vpop.permute.xlu1 %3749 }
 0xa0f   :  { %4981 = vst [vmem:[#allocation1 + $0x7] ss:$9 sm:$0xff] %v4688_v42  ;;  %v3838_v13 = vperm.slane %v3750_v18, %v6690_v31  ;;  %v3860_v42 = vperm.slane %v3783_v59, %v6663_v55 }
 0xa10   :  { %5038 = vperm.xlu2 %5236, %v7465_v46   ;;  %v4691_v46 = vperm.slane %v4408_v32, 2 }
 0xa11   :  { %v3839_v39 = vsel %vm1295_vm6, %v3838_v13, %v3837_v10  ;;  %v3863_v13 = vperm.slane %v7592_v48, %v6671_v61 }
 0xa12   :  { %v3841_v26 = vsel %vm7892_vm1, %v3840_v43, %v3839_v39 }
 0xa13   :  { %v3843_v45 = vsel %vm1303_vm8, %v3842_v6, %v3841_v26 }
 0xa14   :  { %5056 = vperm.xlu1 %5238, %v7494_v30   ;;  %v3807_v14 = vpop.permute.xlu2 %3806 }
 0xa16   :  { %v4982_v15 = vld [vmem:[#allocation1] sm:$0xff]  ;;  %v3759_v49 = vpop.permute.xlu1 %3758 }
 0xa17   :  { %4983 = vst [vmem:[#allocation1] ss:$9 sm:$0xff] %v4689_v0  ;;  %v3844_v2 = vperm.slane %v3759_v49, %v7876_v20 }
 0xa18   :  { %4984 = vst [vmem:[#allocation1 + $0x1] ss:$9 sm:$0xff] %v4690_v1 }
 0xa19   :  { %4985 = vst [vmem:[#allocation1 + $0x2] ss:$9 sm:$0xff] %v4691_v46  ;;  %v3845_v29 = vsel %vm1307_vm9, %v3844_v2, %v3843_v45  ;;  %v3869_v45 = vperm.slane %v3798_v22, %v6690_v31 }
 0xa1a   :  { %4986 = vst [vmem:[#allocation1 + $0x3] ss:$9 sm:$0xff] %v4692_v27  ;;  %v3847_v30 = vsel %vm1311_vm10, %v3846_v21, %v3845_v29  ;;  %v3875_v21 = vperm.slane %v3807_v14, %v7876_v20 }
 0xa1b   :  { %4987 = vst [vmem:[#allocation1 + $0x4] ss:$9 sm:$0xff] %v4693_v5  ;;  %v3849_v9 = vsel %vm1315_vm11, %v3848_v17, %v3847_v30 }
 0xa1c   :  { %4988 = vst [vmem:[#allocation1 + $0x5] ss:$9 sm:$0xff] %v4694_v53  ;;  %5065 = vperm.xlu1 %5238, %v7517_v52   ;;  %v3792_v52 = vpop.permute.xlu0 %3791  ;;  %v3819_v58 = vpop.permute.xlu2 %3818 }
 0xa1d   :  { %4989 = vst [vmem:[#allocation1 + $0x6] ss:$9 sm:$0xff] %v4695_v25  ;;  %v3865_v6 = vperm.slane %v3792_v52, %v6687_v11 }
 0xa1e   :  { %4990 = vst [vmem:[#allocation1 + $0x7] ss:$9 sm:$0xff] %v4696_v60  ;;  %v3768_v3 = vpop.permute.xlu1 %3767 }
 0xa1f   :  { %v3850_v47 = vperm.slane %v3768_v3, %v7880_v50 }
 0xa21   :  { %v3851_v34 = vsel %vm1319_vm12, %v3850_v47, %v3849_v9  ;;  %v3883_v9 = vperm.slane %v3819_v58, %v7883_v51 }
 0xa22   :  { %v7621_v16 = vsel %vm7893_vm0, %v3852_v8, %v3851_v34 }
 0xa24   :  { %5074 = vperm.xlu1 %5238, %v7563_v23   ;;  %v3801_v57 = vpop.permute.xlu0 %3800  ;;  %v3825_v38 = vpop.permute.xlu2 %3824 }
 0xa25   :  { %v4991_v19 = vld [vmem:[#allocation1] sm:$0xff]  ;;  %v3871_v48 = vperm.slane %v3801_v57, %v6715_v40 }
 0xa26   :  { %5086 = vperm.xlu0 %5237, %v4991_v19   ;;  %v7624_v41 = vpop.permute.xlu1 %3776 }
 0xa2c   :  { %5083 = vperm.xlu1 %5238, %v4982_v15   ;;  %v3810_v23 = vpop.permute.xlu0 %3809  ;;  %v4997_v0 = vpop.permute.xlu2 %4996 }
 0xa2d   :  { %v3877_v22 = vperm.slane %v3810_v23, %v7879_v33  ;;  %v5089_v3 = vperm.slane %v4997_v0, %v6666_v36 }
 0xa2e   :  { %v3786_v56 = vpop.permute.xlu1 %3785 }
 0xa2f   :  { %v3861_v63 = vperm.slane %v3786_v56, %v6666_v36 }
 0xa31   :  { %v3862_v18 = vsel %vm1279_vm2, %v3861_v63, %v3860_v42  ;;  %v3887_v42 = vperm.slane %v3825_v38, %v6866_v35 }
 0xa32   :  { %v3864_v43 = vsel %vm1283_vm3, %v3863_v13, %v3862_v18 }
 0xa33   :  { %v3866_v39 = vsel %vm1287_vm4, %v3865_v6, %v3864_v43  ;;  %v3854_v6 = vperm.slane %v7601_v4, %v7881_v28 }
 0xa34   :  { %5035 = vperm.xlu1 %5238, %v7461_v7   ;;  %v3816_v49 = vpop.permute.xlu0 %3815  ;;  %v5003_v53 = vpop.permute.xlu2 %5002 }
 0xa35   :  { %v3881_v60 = vperm.slane %v3816_v49, %v7880_v50  ;;  %v5093_v18 = vperm.slane %v5003_v53, %v6687_v11 }
 0xa36   :  { %v3795_v10 = vpop.permute.xlu1 %3794 }
 0xa37   :  { %v3867_v32 = vperm.slane %v3795_v10, %v7869_v62 }
 0xa39   :  { %v3868_v7 = vsel %vm1291_vm5, %v3867_v32, %v3866_v39  ;;  %v3856_v32 = vperm.slane %v7624_v41, %v6866_v35 }
 0xa3a   :  { %v3870_v1 = vsel %vm1295_vm6, %v3869_v45, %v3868_v7 }
 0xa3b   :  { %v3872_v46 = vsel %vm7892_vm1, %v3871_v48, %v3870_v1  ;;  %v3858_v1 = vperm.slane %v7574_v54, %v6869_v44  ;;  %vm7894_vm1 = vcmask 1040384  }
 0xa3c   :  { %v3822_v25 = vpop.permute.xlu0 %3821  ;;  %v5006_v19 = vpop.permute.xlu2 %5005 }
 0xa3d   :  { %v3885_v52 = vperm.slane %v3822_v25, %v7881_v28 }
 0xa3e   :  { %v3804_v26 = vpop.permute.xlu1 %3803 }
 0xa3f   :  { %v3873_v15 = vperm.slane %v3804_v26, %v6712_v37  ;;  %v3855_v26 = vsel %vm1327_vm14, %v3854_v6, %v7621_v16 }
 0xa40   :  { %v3857_v45 = vsel %vm1331_vm15, %v3856_v32, %v3855_v26 }
 0xa41   :  { %v3874_v2 = vsel %vm1303_vm8, %v3873_v15, %v3872_v46  ;;  %v3859_v15 = vsel %vm1335_vm13, %v3858_v1, %v3857_v45 }
 0xa42   :  { %v3876_v5 = vsel %vm1307_vm9, %v3875_v21, %v3874_v2 }
 0xa43   :  { %v3878_v30 = vsel %vm1311_vm10, %v3877_v22, %v3876_v5 }
 0xa44   :  { %v3828_v63 = vpop.permute.xlu0 %3827  ;;  %v5015_v39 = vpop.permute.xlu2 %5014 }
 0xa45   :  { %v3889_v13 = vperm.slane %v3828_v63, %v6869_v44  ;;  %v5101_v26 = vperm.slane %v5015_v39, %v6712_v37 }
 0xa46   :  { %v3813_v27 = vpop.permute.xlu1 %3812 }
 0xa47   :  { %v3879_v29 = vperm.slane %v3813_v27, %v7878_v12 }
 0xa49   :  { %v3880_v59 = vsel %vm1315_vm11, %v3879_v29, %v3878_v30 }
 0xa4a   :  { %v3882_v8 = vsel %vm1319_vm12, %v3881_v60, %v3880_v59 }
 0xa4b   :  { %v3884_v14 = vsel %vm7893_vm0, %v3883_v9, %v3882_v8 }
 0xa4c   :  { %v3886_v56 = vsel %vm1327_vm14, %v3885_v52, %v3884_v14  ;;  %v7679_v48 = vpop.permute.xlu2 %5023  ;;  %v5012_v49 = vpop.permute.xlu0 %5011 }
 0xa4d   :  { %v3888_v23 = vsel %vm1331_vm15, %v3887_v42, %v3886_v56  ;;  %v5099_v32 = vperm.slane %v5012_v49, %v6715_v40 }
 0xa4e   :  { %v4994_v17 = vpop.permute.xlu1 %4993  ;;  %v3890_v38 = vsel %vm1335_vm13, %v3889_v13, %v3888_v23 }
 0xa4f   :  { %v5088_v47 = vperm.slane %v4994_v17, %v6663_v55  ;;  %v3891_v0 = vrot.slane %v3890_v38, 7 }
 0xa51   :  { %v5090_v34 = vsel %vm1279_vm2, %v5089_v3, %v5088_v47  ;;  %v3892_v41 = vsel %vm7894_vm1, %v3859_v15, %v3891_v0 }
 0xa52   :  { %3894 = vst.msk [vmem:[#allocation3 + $0x4] sm:$0x3] %vm7113_vm7, %v3892_v41 }
 0xa54   :  { %v7683_v16 = vpop.permute.xlu2 %5032  ;;  %v5021_v2 = vpop.permute.xlu0 %5020 }
 0xa55   :  { %v5105_v49 = vperm.slane %v5021_v2, %v7879_v33 }
 0xa56   :  { %v5000_v57 = vpop.permute.xlu1 %4999 }
 0xa57   :  { %v5091_v10 = vperm.slane %v5000_v57, %v6671_v61  ;;  %v5095_v57 = vperm.slane %v5006_v19, %v7869_v62 }
 0xa59   :  { %v5092_v58 = vsel %vm1283_vm3, %v5091_v10, %v5090_v34 }
 0xa5a   :  { %v5094_v43 = vsel %vm1287_vm4, %v5093_v18, %v5092_v58 }
 0xa5b   :  { %v5096_v23 = vsel %vm1291_vm5, %v5095_v57, %v5094_v43 }
 0xa5c   :  { %v7685_v21 = vpop.permute.xlu0 %5029  ;;  %v5042_v54 = vpop.permute.xlu2 %5041 }
 0xa5d   :  { %v5119_v30 = vperm.slane %v5042_v54, %v6663_v55  ;;  %v5107_v54 = vperm.slane %v7679_v48, %v7878_v12 }
 0xa5e   :  { %v5009_v7 = vpop.permute.xlu1 %5008 }
 0xa64   :  { %v5051_v29 = vpop.permute.xlu0 %5050  ;;  %v5048_v53 = vpop.permute.xlu2 %5047 }
 0xa65   :  { %v5122_v60 = vperm.slane %v5048_v53, %v6671_v61  ;;  %v5124_v8 = vperm.slane %v5051_v29, %v6687_v11  ;;  %v5097_v61 = vperm.slane %v5009_v7, %v6690_v31 }
 0xa66   :  { %v5018_v4 = vpop.permute.xlu1 %5017 }
 0xa67   :  { %v5098_v58 = vsel %vm1295_vm6, %v5097_v61, %v5096_v23  ;;  %v5103_v38 = vperm.slane %v5018_v4, %v7876_v20 }
 0xa6c   :  { %v5060_v17 = vpop.permute.xlu0 %5059  ;;  %v5063_v34 = vpop.permute.xlu2 %5062 }
 0xa6d   :  { %v5130_v56 = vperm.slane %v5060_v17, %v6715_v40  ;;  %v5132_v10 = vperm.slane %v5063_v34, %v6712_v37 }
 0xa6e   :  { %v7681_v46 = vpop.permute.xlu1 %5026 }
 0xa6f   :  { %v5109_v4 = vperm.slane %v7681_v46, %v7880_v50 }
 0xa74   :  { %v5069_v63 = vpop.permute.xlu0 %5068  ;;  %v5072_v18 = vpop.permute.xlu2 %5071 }
 0xa75   :  { %v5138_v45 = vperm.slane %v5072_v18, %v7878_v12 }
 0xa76   :  { %v5045_v27 = vpop.permute.xlu1 %5044 }
 0xa77   :  { %v5120_v22 = vperm.slane %v5045_v27, %v6666_v36 }
 0xa79   :  { %v5121_v25 = vsel %vm1279_vm2, %v5120_v22, %v5119_v30  ;;  %vm7895_vm2 = vcmask 458112  }
 0xa7a   :  { %v5123_v3 = vsel %vm1283_vm3, %v5122_v60, %v5121_v25  ;;  %vm7896_vm3 = vmmov %vm7895_vm2 }
 0xa7b   :  { %v5125_v36 = vsel %vm1287_vm4, %v5124_v8, %v5123_v3  ;;  %v5100_v6 = vsel %vm7896_vm3, %v5099_v32, %v5098_v58  ;;  %vm7897_vm4 = vmmov %vm7893_vm0 }
 0xa7c   :  { %v5078_v0 = vpop.permute.xlu0 %5077  ;;  %v5102_v40 = vsel %vm1303_vm8, %v5101_v26, %v5100_v6  ;;  %v5081_v1 = vpop.permute.xlu2 %5080 }
 0xa7d   :  { %v5104_v15 = vsel %vm1307_vm9, %v5103_v38, %v5102_v40  ;;  %v5142_v37 = vperm.slane %v5078_v0, %v7883_v51  ;;  %v5144_v22 = vperm.slane %v5081_v1, %v7881_v28 }
 0xa7e   :  { %v5054_v5 = vpop.permute.xlu1 %5053  ;;  %v5106_v39 = vsel %vm1311_vm10, %v5105_v49, %v5104_v15 }
 0xa7f   :  { %v5126_v47 = vperm.slane %v5054_v5, %v7869_v62  ;;  %v5136_v62 = vperm.slane %v5069_v63, %v7879_v33  ;;  %v5108_v33 = vsel %vm1315_vm11, %v5107_v54, %v5106_v39 }
 0xa80   :  { %v5110_v53 = vsel %vm1319_vm12, %v5109_v4, %v5108_v33 }
 0xa81   :  { %v5127_v14 = vsel %vm1291_vm5, %v5126_v47, %v5125_v36  ;;  %vm7898_vm5 = vmmov %vm7893_vm0 }
 0xa84   :  { %v5039_v48 = vpop.permute.xlu2 %5038 }
 0xa86   :  { %v5057_v59 = vpop.permute.xlu1 %5056 }
 0xa87   :  { %v5128_v9 = vperm.slane %v5057_v59, %v6690_v31  ;;  %v5113_v59 = vperm.slane %v7683_v16, %v7881_v28 }
 0xa89   :  { %v5129_v55 = vsel %vm1295_vm6, %v5128_v9, %v5127_v14  ;;  %vm7899_vm6 = vmmov %vm7894_vm1 }
 0xa8a   :  { %v5131_v42 = vsel %vm7895_vm2, %v5130_v56, %v5129_v55 }
 0xa8b   :  { %v5133_v13 = vsel %vm1303_vm8, %v5132_v10, %v5131_v42 }
 0xa8e   :  { %v5066_v52 = vpop.permute.xlu1 %5065 }
 0xa8f   :  { %v5134_v11 = vperm.slane %v5066_v52, %v7876_v20 }
 0xa91   :  { %v5135_v31 = vsel %vm1307_vm9, %v5134_v11, %v5133_v13 }
 0xa92   :  { %v5137_v7 = vsel %vm1311_vm10, %v5136_v62, %v5135_v31 }
 0xa93   :  { %v5139_v41 = vsel %vm1315_vm11, %v5138_v45, %v5137_v7 }
 0xa96   :  { %v5075_v19 = vpop.permute.xlu1 %5074 }
 0xa97   :  { %v5140_v43 = vperm.slane %v5075_v19, %v7880_v50  ;;  %v5111_v50 = vperm.slane %v7685_v21, %v7883_v51  ;;  %v5117_v51 = vperm.slane %v5039_v48, %v6869_v44 }
 0xa98   :  { %v5087_v2 = vpop.permute.xlu0 %5086 }
 0xa99   :  { %v5141_v20 = vsel %vm1319_vm12, %v5140_v43, %v5139_v41  ;;  %v5148_v12 = vperm.slane %v5087_v2, %v6869_v44  ;;  %v5112_v25 = vsel %vm7898_vm5, %v5111_v50, %v5110_v53 }
 0xa9a   :  { %v5143_v5 = vsel %vm7897_vm4, %v5142_v37, %v5141_v20  ;;  %v5114_v21 = vsel %vm1327_vm14, %v5113_v59, %v5112_v25 }
 0xa9b   :  { %v5145_v30 = vsel %vm1327_vm14, %v5144_v22, %v5143_v5 }
 0xa9e   :  { %v5084_v27 = vpop.permute.xlu1 %5083 }
 0xa9f   :  { %v5146_v29 = vperm.slane %v5084_v27, %v6866_v35 }
 0xaa1   :  { %v5147_v46 = vsel %vm1331_vm15, %v5146_v29, %v5145_v30 }
 0xaa2   :  { %v5149_v60 = vsel %vm1335_vm13, %v5148_v12, %v5147_v46 }
 0xaa3   :  { %v5150_v47 = vrot.slane %v5149_v60, 7 }
 0xaa6   :  { %v5036_v17 = vpop.permute.xlu1 %5035 }
 0xaa7   :  { %v5115_v3 = vperm.slane %v5036_v17, %v6866_v35 }
 0xaa9   :  { %v5116_v8 = vsel %vm1331_vm15, %v5115_v3, %v5114_v21 }
 0xaaa   :  { %v5118_v28 = vsel %vm1335_vm13, %v5117_v51, %v5116_v8 }
 0xaab   :  { %v5151_v16 = vsel %vm7899_vm6, %v5118_v28, %v5150_v47 }
 0xaac   :  { %5153 = vst.msk [vmem:[#allocation3 + $0x6] sm:$0x3] %vm7113_vm7, %v5151_v16 }
 0xaad   :  { %5164 = dma.vmem_to_hbm [thread:$0]  %s5160_s5, 128, %s5162_s8, [#allocation4]  }
 0xaae   :  { %5285 = dma.done.wait [#allocation4], 128  }
 0xaaf   :  { %5286 = vsyncadd [#allocation4], 4294967168 }
 0xab0   :  { %5169 = vsyncpa [#allocation4], 1 }

</bundles_post_ra>
